<compile_context>
chip_gen: v5e
topology: v5e:2x2
jax: 0.10.0
libtpu: 0.0.40
codegen_flags: <defaults>
</compile_context>

<pallas_src>
import numpy as np
import jax
import jax.numpy as jnp
from jax.experimental import pallas as pl
from jax.experimental.pallas import tpu as pltpu

LEAKY_SLOPE = 0.2
KSIZE = 5
STRIDE = 2
PAD = 2

VMEM_GUARD_BYTES = 12 * 1024 * 1024   # stay under v5e's 16 MiB default scoped VMEM


def _round_up(x, m):
    return ((x + m - 1) // m) * m


def _out_size(s):
    return (s + 2 * PAD - KSIZE) // STRIDE + 1


# ---------------------------------------------------------------------------
# Fused kernel factory (all shapes / offsets are static per trace)
# ---------------------------------------------------------------------------
def _make_fused_kernel(cfg):
    layers = cfg["layers"]
    n_in = cfg["n_inputs"]

    def kernel(*refs):
        in_refs = refs[:n_in]
        out_ref = refs[n_in]
        pm_refs = refs[n_in + 1:]

        it = iter(in_refs)
        patches_ref = next(it)
        w1_ref = next(it)
        smalls_ref = next(it)

        def small(off, width):
            return smalls_ref[:, off:off + width]            # (1, width) f32

        def lrelu(v):
            return jnp.where(v > 0, v, LEAKY_SLOPE * v)

        # ---- layer 1: host-im2col patches @ W1 (bf16 operands, f32 acc) ----
        b1 = small(cfg["b1_off"], cfg["c1"])
        a = lrelu(jnp.dot(patches_ref[...], w1_ref[...],
                          preferred_element_type=jnp.float32) + b1)
        a = a.astype(jnp.bfloat16)

        # ---- layers 2..6 -----------------------------------------------------
        pm_i = 0
        for L in layers:
            bias = small(L["bias_off"], L["cout"])
            if L["kind"] == "taps":
                g_ref = next(it)
                w_ref = next(it)
                pm_ref = pm_refs[pm_i]; pm_i += 1
                if L["init_pm"]:
                    pm_ref[...] = jnp.zeros_like(pm_ref)
                # one gather matmul for every kernel tap (t-outer row blocks)
                p = jnp.dot(g_ref[...], a,
                            preferred_element_type=jnp.float32
                            ).astype(jnp.bfloat16)
                # scatter tap blocks into the lane-aligned patch matrix (no matmuls)
                cin, slot = L["cin"], L["slot"]
                m_out, m_blk = L["m_out"], L["m_blk"]
                for t in range(L["n_taps"]):
                    pm_ref[:, t * slot: t * slot + cin] = (
                        p[t * m_blk: t * m_blk + m_out, :])
                acc = jnp.dot(pm_ref[...], w_ref[...],
                              preferred_element_type=jnp.float32) + bias
            else:  # "dense": 1x1 spatial input -> centre-tap matmul only
                w_ref = next(it)
                acc = jnp.dot(a, w_ref[...],
                              preferred_element_type=jnp.float32) + bias
            a = lrelu(acc).astype(jnp.bfloat16)

        # ---- final 1x1 conv (Cout = 1): VPU multiply + lane reduce, f32 -----
        wf = small(cfg["wf_off"], cfg["c_last"])             # (1, C_last)
        bf = small(cfg["bf_off"], 1)                         # (1, 1)
        y = jnp.sum(a.astype(jnp.float32) * wf, axis=-1, keepdims=True) + bf

        hw = cfg["hw_last"]
        if hw == 1:
            out_ref[...] = y                                  # spatial sum is identity
        else:
            # general path (not hit for 16x16 inputs): per-batch spatial sum
            for b in range(cfg["batch"]):
                out_ref[b:b + 1, :] = jnp.sum(y[b * hw:(b + 1) * hw, :],
                                              axis=0, keepdims=True)

    return kernel


# ---------------------------------------------------------------------------
# Host-side helpers (shape-static, run once per trace)
# ---------------------------------------------------------------------------
def _im2col(x_nhwc):
    """im2col for the first layer only (raw input, tiny)."""
    n, h, w, c = x_nhwc.shape
    oh, ow = _out_size(h), _out_size(w)
    xp = jnp.pad(x_nhwc, ((0, 0), (PAD, PAD), (PAD, PAD), (0, 0)))
    cols = []
    for i in range(KSIZE):
        for j in range(KSIZE):
            cols.append(xp[:, i:i + STRIDE * (oh - 1) + 1:STRIDE,
                           j:j + STRIDE * (ow - 1) + 1:STRIDE, :])
    patches = jnp.concatenate(cols, axis=-1).reshape(n * oh * ow,
                                                     KSIZE * KSIZE * c)
    return patches, oh, ow


def _build_gcat(n, h, w):
    """Stacked 0/1 tap-selection matrix, taps stacked t-outer, per-tap block
    padded to a multiple of 8 rows.  Pure-padding taps are pruned."""
    oh, ow = _out_size(h), _out_size(w)
    m_in = n * h * w
    m_out = n * oh * ow
    m_blk = _round_up(m_out, 8)
    taps, blocks = [], []
    for kh in range(KSIZE):
        for kw in range(KSIZE):
            g = np.zeros((m_blk, m_in), np.float32)
            valid = False
            for b in range(n):
                for r in range(oh):
                    ih = STRIDE * r + kh - PAD
                    if ih < 0 or ih >= h:
                        continue
                    for c in range(ow):
                        iw = STRIDE * c + kw - PAD
                        if iw < 0 or iw >= w:
                            continue
                        g[b * oh * ow + r * ow + c, b * h * w + ih * w + iw] = 1.0
                        valid = True
            if valid:
                taps.append((kh, kw))
                blocks.append(g)
    gcat = np.concatenate(blocks, axis=0)
    return gcat, taps, oh, ow, m_out, m_blk


# ---------------------------------------------------------------------------
# Spectral norm (power iteration, matches torch.nn.utils.spectral_norm math)
# TODO(synk): torch's spectral_norm persists the power-iteration vector `u`
# across forward passes; here it is a stateless host-side transform.
# ---------------------------------------------------------------------------
def spectral_normalize(w_oihw, u0, n_iter=1, eps=1e-12):
    cout = w_oihw.shape[0]
    wmat = w_oihw.reshape(cout, -1)
    u = u0 / (jnp.linalg.norm(u0) + eps)
    v = None
    for _ in range(n_iter):
        v = wmat.T @ u
        v = v / (jnp.linalg.norm(v) + eps)
        u = wmat @ v
        u = u / (jnp.linalg.norm(u) + eps)
    sigma = u @ (wmat @ v)
    return w_oihw / sigma


# ---------------------------------------------------------------------------
# Full forward pass (single fused pallas_call)
# ---------------------------------------------------------------------------
def discriminator_forward(x_nchw, conv_params, w_final, b_final):
    x = jnp.transpose(x_nchw, (0, 2, 3, 1)).astype(jnp.float32)   # NCHW -> NHWC
    n = x.shape[0]

    # -- pack every tiny operand into ONE f32 buffer (128-aligned slots) -----
    small_vecs = [b for (_, b) in conv_params] + [w_final.reshape(-1),
                                                  b_final.reshape(-1)]
    offs, segs, cursor = [], [], 0
    for v in small_vecs:
        ln = int(v.shape[0])
        slot = _round_up(ln, 128)
        offs.append(cursor)
        segs.append(jnp.pad(v.astype(jnp.float32), (0, slot - ln)))
        cursor += slot
    smalls = jnp.concatenate(segs).reshape(1, cursor)

    # -- layer 1: host im2col of the raw input, K padded 75 -> 128 -----------
    w1, _ = conv_params[0]
    c1 = w1.shape[0]
    patches, cur_h, cur_w = _im2col(x)
    k1 = patches.shape[1]
    k1p = _round_up(k1, 128)
    patches = jnp.pad(patches, ((0, 0), (0, k1p - k1))).astype(jnp.bfloat16)
    w1mat = jnp.transpose(w1, (2, 3, 1, 0)).reshape(k1, c1)        # (kh,kw,cin)
    w1mat = jnp.pad(w1mat, ((0, k1p - k1), (0, 0))).astype(jnp.bfloat16)

    inputs = [patches, w1mat, smalls]
    layer_cfg = []
    scratch_shapes = []
    scratch_bytes = 0

    # -- layers 2..6 ----------------------------------------------------------
    for li, (w, b) in enumerate(conv_params[1:], start=1):
        cout, cin = w.shape[0], w.shape[1]
        if cur_h == 1 and cur_w == 1:
            # only the centre 5x5 tap touches real data -> dense matmul
            wmat = jnp.transpose(w[:, :, PAD, PAD], (1, 0)).astype(jnp.bfloat16)
            inputs.append(wmat)
            layer_cfg.append(dict(kind="dense", cout=cout, bias_off=offs[li]))
        else:
            gcat, taps, oh, ow, m_out, m_blk = _build_gcat(n, cur_h, cur_w)
            slot = _round_up(cin, 128)                    # lane-aligned tap slot
            wstk = jnp.stack([jnp.transpose(w[:, :, kh, kw], (1, 0))
                              for (kh, kw) in taps], axis=0)   # (T, cin, cout)
            if slot > cin:
                wstk = jnp.pad(wstk, ((0, 0), (0, slot - cin), (0, 0)))
            wcat = wstk.reshape(len(taps) * slot, cout).astype(jnp.bfloat16)
            inputs += [jnp.asarray(gcat, jnp.bfloat16), wcat]
            layer_cfg.append(dict(kind="taps", cin=cin, cout=cout,
                                  n_taps=len(taps), m_out=m_out, m_blk=m_blk,
                                  slot=slot, bias_off=offs[li],
                                  init_pm=(slot > cin)))
            scratch_shapes.append(
                pltpu.VMEM((m_out, len(taps) * slot), jnp.bfloat16))
            scratch_bytes += m_out * len(taps) * slot * 2
            cur_h, cur_w = oh, ow

    c_last = conv_params[-1][0].shape[0]
    cfg = dict(layers=layer_cfg, n_inputs=len(inputs),
               b1_off=offs[0], c1=c1,
               wf_off=offs[len(conv_params)], bf_off=offs[len(conv_params) + 1],
               c_last=c_last, hw_last=cur_h * cur_w, batch=n)

    # -- VMEM-footprint guard: selection matrices scale as O((N*H*W)^2) ------
    in_bytes = sum(int(np.prod(t.shape)) * jnp.dtype(t.dtype).itemsize
                   for t in inputs)
    if in_bytes + scratch_bytes > VMEM_GUARD_BYTES:
        raise ValueError(
            f"fused discriminator kernel working set "
            f"({(in_bytes + scratch_bytes) / 2**20:.1f} MiB) exceeds the "
            f"scoped-VMEM budget; use a gridded / strided-gather design for "
            f"this resolution.")

    kernel = _make_fused_kernel(cfg)
    out = pl.pallas_call(
        kernel,
        out_shape=jax.ShapeDtypeStruct((n, 1), jnp.float32),
        in_specs=[pl.BlockSpec(memory_space=pltpu.MemorySpace.VMEM)] * len(inputs),
        out_specs=pl.BlockSpec(memory_space=pltpu.MemorySpace.VMEM),
        scratch_shapes=scratch_shapes,
        # No vmem_limit override: the fused working set is only a few MiB.
    )(*inputs)
    return out.reshape(n)


# ---------------------------------------------------------------------------
if __name__ == "__main__":
    key = jax.random.PRNGKey(0)
    in_channels = 3
    channels = [in_channels, 64, 128, 256, 256, 256, 512]

    conv_params = []
    for li in range(6):
        key, kw_, kb_, ku_ = jax.random.split(key, 4)
        cin, cout = channels[li], channels[li + 1]
        w = jax.random.normal(kw_, (cout, cin, KSIZE, KSIZE), jnp.float32) * 0.05
        b = jax.random.normal(kb_, (cout,), jnp.float32) * 0.01
        u = jax.random.normal(ku_, (cout,), jnp.float32)
        conv_params.append((spectral_normalize(w, u), b))

    key, kwf, kbf = jax.random.split(key, 3)
    w_final = jax.random.normal(kwf, (1, 512, 1, 1), jnp.float32) * 0.05
    b_final = jax.random.normal(kbf, (1,), jnp.float32) * 0.01

    key, kx = jax.random.split(key)
    x_nchw = jax.random.normal(kx, (2, in_channels, 16, 16), jnp.float32)

    out = jax.jit(discriminator_forward)(x_nchw, conv_params, w_final, b_final)
    out = jax.block_until_ready(out)
    assert out.shape == (2,)
    print("KERNEL_OK")
</pallas_src>

<mosaic_0001>
module attributes {stable_mosaic.version = 11 : i64} {
  func.func @kernel(%arg0: memref<128x128xbf16, #tpu.memory_space<vmem>>, %arg1: memref<128x64xbf16, #tpu.memory_space<vmem>>, %arg2: memref<1x2176xf32, #tpu.memory_space<vmem>>, %arg3: memref<800x128xbf16, #tpu.memory_space<vmem>>, %arg4: memref<3200x128xbf16, #tpu.memory_space<vmem>>, %arg5: memref<200x32xbf16, #tpu.memory_space<vmem>>, %arg6: memref<3200x256xbf16, #tpu.memory_space<vmem>>, %arg7: memref<32x8xbf16, #tpu.memory_space<vmem>>, %arg8: memref<1024x256xbf16, #tpu.memory_space<vmem>>, %arg9: memref<256x256xbf16, #tpu.memory_space<vmem>>, %arg10: memref<256x512xbf16, #tpu.memory_space<vmem>>, %arg11: memref<2x1xf32, #tpu.memory_space<vmem>>, %arg12: memref<32x3200xbf16, #tpu.memory_space<vmem>>, %arg13: memref<8x3200xbf16, #tpu.memory_space<vmem>>, %arg14: memref<2x1024xbf16, #tpu.memory_space<vmem>>) attributes {dimension_semantics = [], scalar_prefetch = 0 : i64, scratch_operands = 3 : i64, tpu.core_type = #tpu.core_type<tc>} {
    %c0 = arith.constant 0 : index
    %c0_0 = arith.constant 0 : index
    %0 = vector.load %arg2[%c0, %c0_0] : memref<1x2176xf32, #tpu.memory_space<vmem>>, vector<1x64xf32>
    %c0_1 = arith.constant 0 : index
    %c0_2 = arith.constant 0 : index
    %1 = vector.load %arg0[%c0_1, %c0_2] : memref<128x128xbf16, #tpu.memory_space<vmem>>, vector<128x128xbf16>
    %c0_3 = arith.constant 0 : index
    %c0_4 = arith.constant 0 : index
    %2 = vector.load %arg1[%c0_3, %c0_4] : memref<128x64xbf16, #tpu.memory_space<vmem>>, vector<128x64xbf16>
    %cst = arith.constant dense<0.000000e+00> : vector<128x64xf32>
    %3 = tpu.matmul %1, %2, %cst {dimension_numbers = #tpu.dot_dimension_numbers<[1], [0], [0], [1], [0, 0, 1, 1], [], []>} : vector<128x128xbf16>, vector<128x64xbf16>, vector<128x64xf32> -> vector<128x64xf32>
    %4 = vector.broadcast %0 : vector<1x64xf32> to vector<128x64xf32>
    %5 = arith.addf %3, %4 : vector<128x64xf32>
    %cst_5 = arith.constant 0.000000e+00 : f32
    %6 = vector.broadcast %cst_5 : f32 to vector<128x64xf32>
    %7 = arith.cmpf ogt, %5, %6 : vector<128x64xf32>
    %cst_6 = arith.constant 2.000000e-01 : f32
    %8 = vector.broadcast %cst_6 : f32 to vector<128x64xf32>
    %9 = arith.mulf %8, %5 : vector<128x64xf32>
    %10 = arith.select %7, %5, %9 : vector<128x64xi1>, vector<128x64xf32>
    %11 = arith.truncf %10 : vector<128x64xf32> to vector<128x64xbf16>
    %c0_7 = arith.constant 0 : index
    %c128 = arith.constant 128 : index
    %12 = vector.load %arg2[%c0_7, %c128] : memref<1x2176xf32, #tpu.memory_space<vmem>>, vector<1x128xf32>
    %cst_8 = arith.constant 0.000000e+00 : bf16
    %13 = vector.broadcast %cst_8 : bf16 to vector<32x3200xbf16>
    %c0_9 = arith.constant 0 : index
    %c0_10 = arith.constant 0 : index
    %14 = vector.load %arg12[%c0_9, %c0_10] : memref<32x3200xbf16, #tpu.memory_space<vmem>>, vector<32x3200xbf16>
    tpu.vector_store %arg12[%c0_9, %c0_10], %13 {strides = array<i32>} : memref<32x3200xbf16, #tpu.memory_space<vmem>>, vector<32x3200xbf16>,
    %c0_11 = arith.constant 0 : index
    %c0_12 = arith.constant 0 : index
    %15 = vector.load %arg3[%c0_11, %c0_12] : memref<800x128xbf16, #tpu.memory_space<vmem>>, vector<800x128xbf16>
    %cst_13 = arith.constant dense<0.000000e+00> : vector<800x64xf32>
    %16 = tpu.matmul %15, %11, %cst_13 {dimension_numbers = #tpu.dot_dimension_numbers<[1], [0], [0], [1], [0, 0, 1, 1], [], []>} : vector<800x128xbf16>, vector<128x64xbf16>, vector<800x64xf32> -> vector<800x64xf32>
    %17 = arith.truncf %16 : vector<800x64xf32> to vector<800x64xbf16>
    %18 = vector.extract_strided_slice %17 {offsets = [0, 0], sizes = [32, 64], strides = [1, 1]} : vector<800x64xbf16> to vector<32x64xbf16>
    %c0_14 = arith.constant 0 : index
    %c0_15 = arith.constant 0 : index
    %19 = vector.load %arg12[%c0_14, %c0_15] : memref<32x3200xbf16, #tpu.memory_space<vmem>>, vector<32x64xbf16>
    tpu.vector_store %arg12[%c0_14, %c0_15], %18 {strides = array<i32>} : memref<32x3200xbf16, #tpu.memory_space<vmem>>, vector<32x64xbf16>,
    %20 = vector.extract_strided_slice %17 {offsets = [32, 0], sizes = [32, 64], strides = [1, 1]} : vector<800x64xbf16> to vector<32x64xbf16>
    %c0_16 = arith.constant 0 : index
    %c128_17 = arith.constant 128 : index
    %21 = vector.load %arg12[%c0_16, %c128_17] : memref<32x3200xbf16, #tpu.memory_space<vmem>>, vector<32x64xbf16>
    tpu.vector_store %arg12[%c0_16, %c128_17], %20 {strides = array<i32>} : memref<32x3200xbf16, #tpu.memory_space<vmem>>, vector<32x64xbf16>,
    %22 = vector.extract_strided_slice %17 {offsets = [64, 0], sizes = [32, 64], strides = [1, 1]} : vector<800x64xbf16> to vector<32x64xbf16>
    %c0_18 = arith.constant 0 : index
    %c256 = arith.constant 256 : index
    %23 = vector.load %arg12[%c0_18, %c256] : memref<32x3200xbf16, #tpu.memory_space<vmem>>, vector<32x64xbf16>
    tpu.vector_store %arg12[%c0_18, %c256], %22 {strides = array<i32>} : memref<32x3200xbf16, #tpu.memory_space<vmem>>, vector<32x64xbf16>,
    %24 = vector.extract_strided_slice %17 {offsets = [96, 0], sizes = [32, 64], strides = [1, 1]} : vector<800x64xbf16> to vector<32x64xbf16>
    %c0_19 = arith.constant 0 : index
    %c384 = arith.constant 384 : index
    %25 = vector.load %arg12[%c0_19, %c384] : memref<32x3200xbf16, #tpu.memory_space<vmem>>, vector<32x64xbf16>
    tpu.vector_store %arg12[%c0_19, %c384], %24 {strides = array<i32>} : memref<32x3200xbf16, #tpu.memory_space<vmem>>, vector<32x64xbf16>,
    %26 = vector.extract_strided_slice %17 {offsets = [128, 0], sizes = [32, 64], strides = [1, 1]} : vector<800x64xbf16> to vector<32x64xbf16>
    %c0_20 = arith.constant 0 : index
    %c512 = arith.constant 512 : index
    %27 = vector.load %arg12[%c0_20, %c512] : memref<32x3200xbf16, #tpu.memory_space<vmem>>, vector<32x64xbf16>
    tpu.vector_store %arg12[%c0_20, %c512], %26 {strides = array<i32>} : memref<32x3200xbf16, #tpu.memory_space<vmem>>, vector<32x64xbf16>,
    %28 = vector.extract_strided_slice %17 {offsets = [160, 0], sizes = [32, 64], strides = [1, 1]} : vector<800x64xbf16> to vector<32x64xbf16>
    %c0_21 = arith.constant 0 : index
    %c640 = arith.constant 640 : index
    %29 = vector.load %arg12[%c0_21, %c640] : memref<32x3200xbf16, #tpu.memory_space<vmem>>, vector<32x64xbf16>
    tpu.vector_store %arg12[%c0_21, %c640], %28 {strides = array<i32>} : memref<32x3200xbf16, #tpu.memory_space<vmem>>, vector<32x64xbf16>,
    %30 = vector.extract_strided_slice %17 {offsets = [192, 0], sizes = [32, 64], strides = [1, 1]} : vector<800x64xbf16> to vector<32x64xbf16>
    %c0_22 = arith.constant 0 : index
    %c768 = arith.constant 768 : index
    %31 = vector.load %arg12[%c0_22, %c768] : memref<32x3200xbf16, #tpu.memory_space<vmem>>, vector<32x64xbf16>
    tpu.vector_store %arg12[%c0_22, %c768], %30 {strides = array<i32>} : memref<32x3200xbf16, #tpu.memory_space<vmem>>, vector<32x64xbf16>,
    %32 = vector.extract_strided_slice %17 {offsets = [224, 0], sizes = [32, 64], strides = [1, 1]} : vector<800x64xbf16> to vector<32x64xbf16>
    %c0_23 = arith.constant 0 : index
    %c896 = arith.constant 896 : index
    %33 = vector.load %arg12[%c0_23, %c896] : memref<32x3200xbf16, #tpu.memory_space<vmem>>, vector<32x64xbf16>
    tpu.vector_store %arg12[%c0_23, %c896], %32 {strides = array<i32>} : memref<32x3200xbf16, #tpu.memory_space<vmem>>, vector<32x64xbf16>,
    %34 = vector.extract_strided_slice %17 {offsets = [256, 0], sizes = [32, 64], strides = [1, 1]} : vector<800x64xbf16> to vector<32x64xbf16>
    %c0_24 = arith.constant 0 : index
    %c1024 = arith.constant 1024 : index
    %35 = vector.load %arg12[%c0_24, %c1024] : memref<32x3200xbf16, #tpu.memory_space<vmem>>, vector<32x64xbf16>
    tpu.vector_store %arg12[%c0_24, %c1024], %34 {strides = array<i32>} : memref<32x3200xbf16, #tpu.memory_space<vmem>>, vector<32x64xbf16>,
    %36 = vector.extract_strided_slice %17 {offsets = [288, 0], sizes = [32, 64], strides = [1, 1]} : vector<800x64xbf16> to vector<32x64xbf16>
    %c0_25 = arith.constant 0 : index
    %c1152 = arith.constant 1152 : index
    %37 = vector.load %arg12[%c0_25, %c1152] : memref<32x3200xbf16, #tpu.memory_space<vmem>>, vector<32x64xbf16>
    tpu.vector_store %arg12[%c0_25, %c1152], %36 {strides = array<i32>} : memref<32x3200xbf16, #tpu.memory_space<vmem>>, vector<32x64xbf16>,
    %38 = vector.extract_strided_slice %17 {offsets = [320, 0], sizes = [32, 64], strides = [1, 1]} : vector<800x64xbf16> to vector<32x64xbf16>
    %c0_26 = arith.constant 0 : index
    %c1280 = arith.constant 1280 : index
    %39 = vector.load %arg12[%c0_26, %c1280] : memref<32x3200xbf16, #tpu.memory_space<vmem>>, vector<32x64xbf16>
    tpu.vector_store %arg12[%c0_26, %c1280], %38 {strides = array<i32>} : memref<32x3200xbf16, #tpu.memory_space<vmem>>, vector<32x64xbf16>,
    %40 = vector.extract_strided_slice %17 {offsets = [352, 0], sizes = [32, 64], strides = [1, 1]} : vector<800x64xbf16> to vector<32x64xbf16>
    %c0_27 = arith.constant 0 : index
    %c1408 = arith.constant 1408 : index
    %41 = vector.load %arg12[%c0_27, %c1408] : memref<32x3200xbf16, #tpu.memory_space<vmem>>, vector<32x64xbf16>
    tpu.vector_store %arg12[%c0_27, %c1408], %40 {strides = array<i32>} : memref<32x3200xbf16, #tpu.memory_space<vmem>>, vector<32x64xbf16>,
    %42 = vector.extract_strided_slice %17 {offsets = [384, 0], sizes = [32, 64], strides = [1, 1]} : vector<800x64xbf16> to vector<32x64xbf16>
    %c0_28 = arith.constant 0 : index
    %c1536 = arith.constant 1536 : index
    %43 = vector.load %arg12[%c0_28, %c1536] : memref<32x3200xbf16, #tpu.memory_space<vmem>>, vector<32x64xbf16>
    tpu.vector_store %arg12[%c0_28, %c1536], %42 {strides = array<i32>} : memref<32x3200xbf16, #tpu.memory_space<vmem>>, vector<32x64xbf16>,
    %44 = vector.extract_strided_slice %17 {offsets = [416, 0], sizes = [32, 64], strides = [1, 1]} : vector<800x64xbf16> to vector<32x64xbf16>
    %c0_29 = arith.constant 0 : index
    %c1664 = arith.constant 1664 : index
    %45 = vector.load %arg12[%c0_29, %c1664] : memref<32x3200xbf16, #tpu.memory_space<vmem>>, vector<32x64xbf16>
    tpu.vector_store %arg12[%c0_29, %c1664], %44 {strides = array<i32>} : memref<32x3200xbf16, #tpu.memory_space<vmem>>, vector<32x64xbf16>,
    %46 = vector.extract_strided_slice %17 {offsets = [448, 0], sizes = [32, 64], strides = [1, 1]} : vector<800x64xbf16> to vector<32x64xbf16>
    %c0_30 = arith.constant 0 : index
    %c1792 = arith.constant 1792 : index
    %47 = vector.load %arg12[%c0_30, %c1792] : memref<32x3200xbf16, #tpu.memory_space<vmem>>, vector<32x64xbf16>
    tpu.vector_store %arg12[%c0_30, %c1792], %46 {strides = array<i32>} : memref<32x3200xbf16, #tpu.memory_space<vmem>>, vector<32x64xbf16>,
    %48 = vector.extract_strided_slice %17 {offsets = [480, 0], sizes = [32, 64], strides = [1, 1]} : vector<800x64xbf16> to vector<32x64xbf16>
    %c0_31 = arith.constant 0 : index
    %c1920 = arith.constant 1920 : index
    %49 = vector.load %arg12[%c0_31, %c1920] : memref<32x3200xbf16, #tpu.memory_space<vmem>>, vector<32x64xbf16>
    tpu.vector_store %arg12[%c0_31, %c1920], %48 {strides = array<i32>} : memref<32x3200xbf16, #tpu.memory_space<vmem>>, vector<32x64xbf16>,
    %50 = vector.extract_strided_slice %17 {offsets = [512, 0], sizes = [32, 64], strides = [1, 1]} : vector<800x64xbf16> to vector<32x64xbf16>
    %c0_32 = arith.constant 0 : index
    %c2048 = arith.constant 2048 : index
    %51 = vector.load %arg12[%c0_32, %c2048] : memref<32x3200xbf16, #tpu.memory_space<vmem>>, vector<32x64xbf16>
    tpu.vector_store %arg12[%c0_32, %c2048], %50 {strides = array<i32>} : memref<32x3200xbf16, #tpu.memory_space<vmem>>, vector<32x64xbf16>,
    %52 = vector.extract_strided_slice %17 {offsets = [544, 0], sizes = [32, 64], strides = [1, 1]} : vector<800x64xbf16> to vector<32x64xbf16>
    %c0_33 = arith.constant 0 : index
    %c2176 = arith.constant 2176 : index
    %53 = vector.load %arg12[%c0_33, %c2176] : memref<32x3200xbf16, #tpu.memory_space<vmem>>, vector<32x64xbf16>
    tpu.vector_store %arg12[%c0_33, %c2176], %52 {strides = array<i32>} : memref<32x3200xbf16, #tpu.memory_space<vmem>>, vector<32x64xbf16>,
    %54 = vector.extract_strided_slice %17 {offsets = [576, 0], sizes = [32, 64], strides = [1, 1]} : vector<800x64xbf16> to vector<32x64xbf16>
    %c0_34 = arith.constant 0 : index
    %c2304 = arith.constant 2304 : index
    %55 = vector.load %arg12[%c0_34, %c2304] : memref<32x3200xbf16, #tpu.memory_space<vmem>>, vector<32x64xbf16>
    tpu.vector_store %arg12[%c0_34, %c2304], %54 {strides = array<i32>} : memref<32x3200xbf16, #tpu.memory_space<vmem>>, vector<32x64xbf16>,
    %56 = vector.extract_strided_slice %17 {offsets = [608, 0], sizes = [32, 64], strides = [1, 1]} : vector<800x64xbf16> to vector<32x64xbf16>
    %c0_35 = arith.constant 0 : index
    %c2432 = arith.constant 2432 : index
    %57 = vector.load %arg12[%c0_35, %c2432] : memref<32x3200xbf16, #tpu.memory_space<vmem>>, vector<32x64xbf16>
    tpu.vector_store %arg12[%c0_35, %c2432], %56 {strides = array<i32>} : memref<32x3200xbf16, #tpu.memory_space<vmem>>, vector<32x64xbf16>,
    %58 = vector.extract_strided_slice %17 {offsets = [640, 0], sizes = [32, 64], strides = [1, 1]} : vector<800x64xbf16> to vector<32x64xbf16>
    %c0_36 = arith.constant 0 : index
    %c2560 = arith.constant 2560 : index
    %59 = vector.load %arg12[%c0_36, %c2560] : memref<32x3200xbf16, #tpu.memory_space<vmem>>, vector<32x64xbf16>
    tpu.vector_store %arg12[%c0_36, %c2560], %58 {strides = array<i32>} : memref<32x3200xbf16, #tpu.memory_space<vmem>>, vector<32x64xbf16>,
    %60 = vector.extract_strided_slice %17 {offsets = [672, 0], sizes = [32, 64], strides = [1, 1]} : vector<800x64xbf16> to vector<32x64xbf16>
    %c0_37 = arith.constant 0 : index
    %c2688 = arith.constant 2688 : index
    %61 = vector.load %arg12[%c0_37, %c2688] : memref<32x3200xbf16, #tpu.memory_space<vmem>>, vector<32x64xbf16>
    tpu.vector_store %arg12[%c0_37, %c2688], %60 {strides = array<i32>} : memref<32x3200xbf16, #tpu.memory_space<vmem>>, vector<32x64xbf16>,
    %62 = vector.extract_strided_slice %17 {offsets = [704, 0], sizes = [32, 64], strides = [1, 1]} : vector<800x64xbf16> to vector<32x64xbf16>
    %c0_38 = arith.constant 0 : index
    %c2816 = arith.constant 2816 : index
    %63 = vector.load %arg12[%c0_38, %c2816] : memref<32x3200xbf16, #tpu.memory_space<vmem>>, vector<32x64xbf16>
    tpu.vector_store %arg12[%c0_38, %c2816], %62 {strides = array<i32>} : memref<32x3200xbf16, #tpu.memory_space<vmem>>, vector<32x64xbf16>,
    %64 = vector.extract_strided_slice %17 {offsets = [736, 0], sizes = [32, 64], strides = [1, 1]} : vector<800x64xbf16> to vector<32x64xbf16>
    %c0_39 = arith.constant 0 : index
    %c2944 = arith.constant 2944 : index
    %65 = vector.load %arg12[%c0_39, %c2944] : memref<32x3200xbf16, #tpu.memory_space<vmem>>, vector<32x64xbf16>
    tpu.vector_store %arg12[%c0_39, %c2944], %64 {strides = array<i32>} : memref<32x3200xbf16, #tpu.memory_space<vmem>>, vector<32x64xbf16>,
    %66 = vector.extract_strided_slice %17 {offsets = [768, 0], sizes = [32, 64], strides = [1, 1]} : vector<800x64xbf16> to vector<32x64xbf16>
    %c0_40 = arith.constant 0 : index
    %c3072 = arith.constant 3072 : index
    %67 = vector.load %arg12[%c0_40, %c3072] : memref<32x3200xbf16, #tpu.memory_space<vmem>>, vector<32x64xbf16>
    tpu.vector_store %arg12[%c0_40, %c3072], %66 {strides = array<i32>} : memref<32x3200xbf16, #tpu.memory_space<vmem>>, vector<32x64xbf16>,
    %c0_41 = arith.constant 0 : index
    %c0_42 = arith.constant 0 : index
    %68 = vector.load %arg12[%c0_41, %c0_42] : memref<32x3200xbf16, #tpu.memory_space<vmem>>, vector<32x3200xbf16>
    %c0_43 = arith.constant 0 : index
    %c0_44 = arith.constant 0 : index
    %69 = vector.load %arg4[%c0_43, %c0_44] : memref<3200x128xbf16, #tpu.memory_space<vmem>>, vector<3200x128xbf16>
    %cst_45 = arith.constant dense<0.000000e+00> : vector<32x128xf32>
    %70 = tpu.matmul %68, %69, %cst_45 {dimension_numbers = #tpu.dot_dimension_numbers<[1], [0], [0], [1], [0, 0, 1, 1], [], []>} : vector<32x3200xbf16>, vector<3200x128xbf16>, vector<32x128xf32> -> vector<32x128xf32>
    %71 = vector.broadcast %12 : vector<1x128xf32> to vector<32x128xf32>
    %72 = arith.addf %70, %71 : vector<32x128xf32>
    %cst_46 = arith.constant 0.000000e+00 : f32
    %73 = vector.broadcast %cst_46 : f32 to vector<32x128xf32>
    %74 = arith.cmpf ogt, %72, %73 : vector<32x128xf32>
    %cst_47 = arith.constant 2.000000e-01 : f32
    %75 = vector.broadcast %cst_47 : f32 to vector<32x128xf32>
    %76 = arith.mulf %75, %72 : vector<32x128xf32>
    %77 = arith.select %74, %72, %76 : vector<32x128xi1>, vector<32x128xf32>
    %78 = arith.truncf %77 : vector<32x128xf32> to vector<32x128xbf16>
    %c0_48 = arith.constant 0 : index
    %c256_49 = arith.constant 256 : index
    %79 = vector.load %arg2[%c0_48, %c256_49] : memref<1x2176xf32, #tpu.memory_space<vmem>>, vector<1x256xf32>
    %c0_50 = arith.constant 0 : index
    %c0_51 = arith.constant 0 : index
    %80 = vector.load %arg5[%c0_50, %c0_51] : memref<200x32xbf16, #tpu.memory_space<vmem>>, vector<200x32xbf16>
    %cst_52 = arith.constant dense<0.000000e+00> : vector<200x128xf32>
    %81 = tpu.matmul %80, %78, %cst_52 {dimension_numbers = #tpu.dot_dimension_numbers<[1], [0], [0], [1], [0, 0, 1, 1], [], []>} : vector<200x32xbf16>, vector<32x128xbf16>, vector<200x128xf32> -> vector<200x128xf32>
    %82 = arith.truncf %81 : vector<200x128xf32> to vector<200x128xbf16>
    %83 = vector.extract_strided_slice %82 {offsets = [0, 0], sizes = [8, 128], strides = [1, 1]} : vector<200x128xbf16> to vector<8x128xbf16>
    %c0_53 = arith.constant 0 : index
    %c0_54 = arith.constant 0 : index
    %84 = vector.load %arg13[%c0_53, %c0_54] : memref<8x3200xbf16, #tpu.memory_space<vmem>>, vector<8x128xbf16>
    tpu.vector_store %arg13[%c0_53, %c0_54], %83 {strides = array<i32>} : memref<8x3200xbf16, #tpu.memory_space<vmem>>, vector<8x128xbf16>,
    %85 = vector.extract_strided_slice %82 {offsets = [8, 0], sizes = [8, 128], strides = [1, 1]} : vector<200x128xbf16> to vector<8x128xbf16>
    %c0_55 = arith.constant 0 : index
    %c128_56 = arith.constant 128 : index
    %86 = vector.load %arg13[%c0_55, %c128_56] : memref<8x3200xbf16, #tpu.memory_space<vmem>>, vector<8x128xbf16>
    tpu.vector_store %arg13[%c0_55, %c128_56], %85 {strides = array<i32>} : memref<8x3200xbf16, #tpu.memory_space<vmem>>, vector<8x128xbf16>,
    %87 = vector.extract_strided_slice %82 {offsets = [16, 0], sizes = [8, 128], strides = [1, 1]} : vector<200x128xbf16> to vector<8x128xbf16>
    %c0_57 = arith.constant 0 : index
    %c256_58 = arith.constant 256 : index
    %88 = vector.load %arg13[%c0_57, %c256_58] : memref<8x3200xbf16, #tpu.memory_space<vmem>>, vector<8x128xbf16>
    tpu.vector_store %arg13[%c0_57, %c256_58], %87 {strides = array<i32>} : memref<8x3200xbf16, #tpu.memory_space<vmem>>, vector<8x128xbf16>,
    %89 = vector.extract_strided_slice %82 {offsets = [24, 0], sizes = [8, 128], strides = [1, 1]} : vector<200x128xbf16> to vector<8x128xbf16>
    %c0_59 = arith.constant 0 : index
    %c384_60 = arith.constant 384 : index
    %90 = vector.load %arg13[%c0_59, %c384_60] : memref<8x3200xbf16, #tpu.memory_space<vmem>>, vector<8x128xbf16>
    tpu.vector_store %arg13[%c0_59, %c384_60], %89 {strides = array<i32>} : memref<8x3200xbf16, #tpu.memory_space<vmem>>, vector<8x128xbf16>,
    %91 = vector.extract_strided_slice %82 {offsets = [32, 0], sizes = [8, 128], strides = [1, 1]} : vector<200x128xbf16> to vector<8x128xbf16>
    %c0_61 = arith.constant 0 : index
    %c512_62 = arith.constant 512 : index
    %92 = vector.load %arg13[%c0_61, %c512_62] : memref<8x3200xbf16, #tpu.memory_space<vmem>>, vector<8x128xbf16>
    tpu.vector_store %arg13[%c0_61, %c512_62], %91 {strides = array<i32>} : memref<8x3200xbf16, #tpu.memory_space<vmem>>, vector<8x128xbf16>,
    %93 = vector.extract_strided_slice %82 {offsets = [40, 0], sizes = [8, 128], strides = [1, 1]} : vector<200x128xbf16> to vector<8x128xbf16>
    %c0_63 = arith.constant 0 : index
    %c640_64 = arith.constant 640 : index
    %94 = vector.load %arg13[%c0_63, %c640_64] : memref<8x3200xbf16, #tpu.memory_space<vmem>>, vector<8x128xbf16>
    tpu.vector_store %arg13[%c0_63, %c640_64], %93 {strides = array<i32>} : memref<8x3200xbf16, #tpu.memory_space<vmem>>, vector<8x128xbf16>,
    %95 = vector.extract_strided_slice %82 {offsets = [48, 0], sizes = [8, 128], strides = [1, 1]} : vector<200x128xbf16> to vector<8x128xbf16>
    %c0_65 = arith.constant 0 : index
    %c768_66 = arith.constant 768 : index
    %96 = vector.load %arg13[%c0_65, %c768_66] : memref<8x3200xbf16, #tpu.memory_space<vmem>>, vector<8x128xbf16>
    tpu.vector_store %arg13[%c0_65, %c768_66], %95 {strides = array<i32>} : memref<8x3200xbf16, #tpu.memory_space<vmem>>, vector<8x128xbf16>,
    %97 = vector.extract_strided_slice %82 {offsets = [56, 0], sizes = [8, 128], strides = [1, 1]} : vector<200x128xbf16> to vector<8x128xbf16>
    %c0_67 = arith.constant 0 : index
    %c896_68 = arith.constant 896 : index
    %98 = vector.load %arg13[%c0_67, %c896_68] : memref<8x3200xbf16, #tpu.memory_space<vmem>>, vector<8x128xbf16>
    tpu.vector_store %arg13[%c0_67, %c896_68], %97 {strides = array<i32>} : memref<8x3200xbf16, #tpu.memory_space<vmem>>, vector<8x128xbf16>,
    %99 = vector.extract_strided_slice %82 {offsets = [64, 0], sizes = [8, 128], strides = [1, 1]} : vector<200x128xbf16> to vector<8x128xbf16>
    %c0_69 = arith.constant 0 : index
    %c1024_70 = arith.constant 1024 : index
    %100 = vector.load %arg13[%c0_69, %c1024_70] : memref<8x3200xbf16, #tpu.memory_space<vmem>>, vector<8x128xbf16>
    tpu.vector_store %arg13[%c0_69, %c1024_70], %99 {strides = array<i32>} : memref<8x3200xbf16, #tpu.memory_space<vmem>>, vector<8x128xbf16>,
    %101 = vector.extract_strided_slice %82 {offsets = [72, 0], sizes = [8, 128], strides = [1, 1]} : vector<200x128xbf16> to vector<8x128xbf16>
    %c0_71 = arith.constant 0 : index
    %c1152_72 = arith.constant 1152 : index
    %102 = vector.load %arg13[%c0_71, %c1152_72] : memref<8x3200xbf16, #tpu.memory_space<vmem>>, vector<8x128xbf16>
    tpu.vector_store %arg13[%c0_71, %c1152_72], %101 {strides = array<i32>} : memref<8x3200xbf16, #tpu.memory_space<vmem>>, vector<8x128xbf16>,
    %103 = vector.extract_strided_slice %82 {offsets = [80, 0], sizes = [8, 128], strides = [1, 1]} : vector<200x128xbf16> to vector<8x128xbf16>
    %c0_73 = arith.constant 0 : index
    %c1280_74 = arith.constant 1280 : index
    %104 = vector.load %arg13[%c0_73, %c1280_74] : memref<8x3200xbf16, #tpu.memory_space<vmem>>, vector<8x128xbf16>
    tpu.vector_store %arg13[%c0_73, %c1280_74], %103 {strides = array<i32>} : memref<8x3200xbf16, #tpu.memory_space<vmem>>, vector<8x128xbf16>,
    %105 = vector.extract_strided_slice %82 {offsets = [88, 0], sizes = [8, 128], strides = [1, 1]} : vector<200x128xbf16> to vector<8x128xbf16>
    %c0_75 = arith.constant 0 : index
    %c1408_76 = arith.constant 1408 : index
    %106 = vector.load %arg13[%c0_75, %c1408_76] : memref<8x3200xbf16, #tpu.memory_space<vmem>>, vector<8x128xbf16>
    tpu.vector_store %arg13[%c0_75, %c1408_76], %105 {strides = array<i32>} : memref<8x3200xbf16, #tpu.memory_space<vmem>>, vector<8x128xbf16>,
    %107 = vector.extract_strided_slice %82 {offsets = [96, 0], sizes = [8, 128], strides = [1, 1]} : vector<200x128xbf16> to vector<8x128xbf16>
    %c0_77 = arith.constant 0 : index
    %c1536_78 = arith.constant 1536 : index
    %108 = vector.load %arg13[%c0_77, %c1536_78] : memref<8x3200xbf16, #tpu.memory_space<vmem>>, vector<8x128xbf16>
    tpu.vector_store %arg13[%c0_77, %c1536_78], %107 {strides = array<i32>} : memref<8x3200xbf16, #tpu.memory_space<vmem>>, vector<8x128xbf16>,
    %109 = vector.extract_strided_slice %82 {offsets = [104, 0], sizes = [8, 128], strides = [1, 1]} : vector<200x128xbf16> to vector<8x128xbf16>
    %c0_79 = arith.constant 0 : index
    %c1664_80 = arith.constant 1664 : index
    %110 = vector.load %arg13[%c0_79, %c1664_80] : memref<8x3200xbf16, #tpu.memory_space<vmem>>, vector<8x128xbf16>
    tpu.vector_store %arg13[%c0_79, %c1664_80], %109 {strides = array<i32>} : memref<8x3200xbf16, #tpu.memory_space<vmem>>, vector<8x128xbf16>,
    %111 = vector.extract_strided_slice %82 {offsets = [112, 0], sizes = [8, 128], strides = [1, 1]} : vector<200x128xbf16> to vector<8x128xbf16>
    %c0_81 = arith.constant 0 : index
    %c1792_82 = arith.constant 1792 : index
    %112 = vector.load %arg13[%c0_81, %c1792_82] : memref<8x3200xbf16, #tpu.memory_space<vmem>>, vector<8x128xbf16>
    tpu.vector_store %arg13[%c0_81, %c1792_82], %111 {strides = array<i32>} : memref<8x3200xbf16, #tpu.memory_space<vmem>>, vector<8x128xbf16>,
    %113 = vector.extract_strided_slice %82 {offsets = [120, 0], sizes = [8, 128], strides = [1, 1]} : vector<200x128xbf16> to vector<8x128xbf16>
    %c0_83 = arith.constant 0 : index
    %c1920_84 = arith.constant 1920 : index
    %114 = vector.load %arg13[%c0_83, %c1920_84] : memref<8x3200xbf16, #tpu.memory_space<vmem>>, vector<8x128xbf16>
    tpu.vector_store %arg13[%c0_83, %c1920_84], %113 {strides = array<i32>} : memref<8x3200xbf16, #tpu.memory_space<vmem>>, vector<8x128xbf16>,
    %115 = vector.extract_strided_slice %82 {offsets = [128, 0], sizes = [8, 128], strides = [1, 1]} : vector<200x128xbf16> to vector<8x128xbf16>
    %c0_85 = arith.constant 0 : index
    %c2048_86 = arith.constant 2048 : index
    %116 = vector.load %arg13[%c0_85, %c2048_86] : memref<8x3200xbf16, #tpu.memory_space<vmem>>, vector<8x128xbf16>
    tpu.vector_store %arg13[%c0_85, %c2048_86], %115 {strides = array<i32>} : memref<8x3200xbf16, #tpu.memory_space<vmem>>, vector<8x128xbf16>,
    %117 = vector.extract_strided_slice %82 {offsets = [136, 0], sizes = [8, 128], strides = [1, 1]} : vector<200x128xbf16> to vector<8x128xbf16>
    %c0_87 = arith.constant 0 : index
    %c2176_88 = arith.constant 2176 : index
    %118 = vector.load %arg13[%c0_87, %c2176_88] : memref<8x3200xbf16, #tpu.memory_space<vmem>>, vector<8x128xbf16>
    tpu.vector_store %arg13[%c0_87, %c2176_88], %117 {strides = array<i32>} : memref<8x3200xbf16, #tpu.memory_space<vmem>>, vector<8x128xbf16>,
    %119 = vector.extract_strided_slice %82 {offsets = [144, 0], sizes = [8, 128], strides = [1, 1]} : vector<200x128xbf16> to vector<8x128xbf16>
    %c0_89 = arith.constant 0 : index
    %c2304_90 = arith.constant 2304 : index
    %120 = vector.load %arg13[%c0_89, %c2304_90] : memref<8x3200xbf16, #tpu.memory_space<vmem>>, vector<8x128xbf16>
    tpu.vector_store %arg13[%c0_89, %c2304_90], %119 {strides = array<i32>} : memref<8x3200xbf16, #tpu.memory_space<vmem>>, vector<8x128xbf16>,
    %121 = vector.extract_strided_slice %82 {offsets = [152, 0], sizes = [8, 128], strides = [1, 1]} : vector<200x128xbf16> to vector<8x128xbf16>
    %c0_91 = arith.constant 0 : index
    %c2432_92 = arith.constant 2432 : index
    %122 = vector.load %arg13[%c0_91, %c2432_92] : memref<8x3200xbf16, #tpu.memory_space<vmem>>, vector<8x128xbf16>
    tpu.vector_store %arg13[%c0_91, %c2432_92], %121 {strides = array<i32>} : memref<8x3200xbf16, #tpu.memory_space<vmem>>, vector<8x128xbf16>,
    %123 = vector.extract_strided_slice %82 {offsets = [160, 0], sizes = [8, 128], strides = [1, 1]} : vector<200x128xbf16> to vector<8x128xbf16>
    %c0_93 = arith.constant 0 : index
    %c2560_94 = arith.constant 2560 : index
    %124 = vector.load %arg13[%c0_93, %c2560_94] : memref<8x3200xbf16, #tpu.memory_space<vmem>>, vector<8x128xbf16>
    tpu.vector_store %arg13[%c0_93, %c2560_94], %123 {strides = array<i32>} : memref<8x3200xbf16, #tpu.memory_space<vmem>>, vector<8x128xbf16>,
    %125 = vector.extract_strided_slice %82 {offsets = [168, 0], sizes = [8, 128], strides = [1, 1]} : vector<200x128xbf16> to vector<8x128xbf16>
    %c0_95 = arith.constant 0 : index
    %c2688_96 = arith.constant 2688 : index
    %126 = vector.load %arg13[%c0_95, %c2688_96] : memref<8x3200xbf16, #tpu.memory_space<vmem>>, vector<8x128xbf16>
    tpu.vector_store %arg13[%c0_95, %c2688_96], %125 {strides = array<i32>} : memref<8x3200xbf16, #tpu.memory_space<vmem>>, vector<8x128xbf16>,
    %127 = vector.extract_strided_slice %82 {offsets = [176, 0], sizes = [8, 128], strides = [1, 1]} : vector<200x128xbf16> to vector<8x128xbf16>
    %c0_97 = arith.constant 0 : index
    %c2816_98 = arith.constant 2816 : index
    %128 = vector.load %arg13[%c0_97, %c2816_98] : memref<8x3200xbf16, #tpu.memory_space<vmem>>, vector<8x128xbf16>
    tpu.vector_store %arg13[%c0_97, %c2816_98], %127 {strides = array<i32>} : memref<8x3200xbf16, #tpu.memory_space<vmem>>, vector<8x128xbf16>,
    %129 = vector.extract_strided_slice %82 {offsets = [184, 0], sizes = [8, 128], strides = [1, 1]} : vector<200x128xbf16> to vector<8x128xbf16>
    %c0_99 = arith.constant 0 : index
    %c2944_100 = arith.constant 2944 : index
    %130 = vector.load %arg13[%c0_99, %c2944_100] : memref<8x3200xbf16, #tpu.memory_space<vmem>>, vector<8x128xbf16>
    tpu.vector_store %arg13[%c0_99, %c2944_100], %129 {strides = array<i32>} : memref<8x3200xbf16, #tpu.memory_space<vmem>>, vector<8x128xbf16>,
    %131 = vector.extract_strided_slice %82 {offsets = [192, 0], sizes = [8, 128], strides = [1, 1]} : vector<200x128xbf16> to vector<8x128xbf16>
    %c0_101 = arith.constant 0 : index
    %c3072_102 = arith.constant 3072 : index
    %132 = vector.load %arg13[%c0_101, %c3072_102] : memref<8x3200xbf16, #tpu.memory_space<vmem>>, vector<8x128xbf16>
    tpu.vector_store %arg13[%c0_101, %c3072_102], %131 {strides = array<i32>} : memref<8x3200xbf16, #tpu.memory_space<vmem>>, vector<8x128xbf16>,
    %c0_103 = arith.constant 0 : index
    %c0_104 = arith.constant 0 : index
    %133 = vector.load %arg13[%c0_103, %c0_104] : memref<8x3200xbf16, #tpu.memory_space<vmem>>, vector<8x3200xbf16>
    %c0_105 = arith.constant 0 : index
    %c0_106 = arith.constant 0 : index
    %134 = vector.load %arg6[%c0_105, %c0_106] : memref<3200x256xbf16, #tpu.memory_space<vmem>>, vector<3200x256xbf16>
    %cst_107 = arith.constant dense<0.000000e+00> : vector<8x256xf32>
    %135 = tpu.matmul %133, %134, %cst_107 {dimension_numbers = #tpu.dot_dimension_numbers<[1], [0], [0], [1], [0, 0, 1, 1], [], []>} : vector<8x3200xbf16>, vector<3200x256xbf16>, vector<8x256xf32> -> vector<8x256xf32>
    %136 = vector.broadcast %79 : vector<1x256xf32> to vector<8x256xf32>
    %137 = arith.addf %135, %136 : vector<8x256xf32>
    %cst_108 = arith.constant 0.000000e+00 : f32
    %138 = vector.broadcast %cst_108 : f32 to vector<8x256xf32>
    %139 = arith.cmpf ogt, %137, %138 : vector<8x256xf32>
    %cst_109 = arith.constant 2.000000e-01 : f32
    %140 = vector.broadcast %cst_109 : f32 to vector<8x256xf32>
    %141 = arith.mulf %140, %137 : vector<8x256xf32>
    %142 = arith.select %139, %137, %141 : vector<8x256xi1>, vector<8x256xf32>
    %143 = arith.truncf %142 : vector<8x256xf32> to vector<8x256xbf16>
    %c0_110 = arith.constant 0 : index
    %c512_111 = arith.constant 512 : index
    %144 = vector.load %arg2[%c0_110, %c512_111] : memref<1x2176xf32, #tpu.memory_space<vmem>>, vector<1x256xf32>
    %c0_112 = arith.constant 0 : index
    %c0_113 = arith.constant 0 : index
    %145 = vector.load %arg7[%c0_112, %c0_113] : memref<32x8xbf16, #tpu.memory_space<vmem>>, vector<32x8xbf16>
    %cst_114 = arith.constant dense<0.000000e+00> : vector<32x256xf32>
    %146 = tpu.matmul %145, %143, %cst_114 {dimension_numbers = #tpu.dot_dimension_numbers<[1], [0], [0], [1], [0, 0, 1, 1], [], []>} : vector<32x8xbf16>, vector<8x256xbf16>, vector<32x256xf32> -> vector<32x256xf32>
    %147 = arith.truncf %146 : vector<32x256xf32> to vector<32x256xbf16>
    %148 = vector.extract_strided_slice %147 {offsets = [0, 0], sizes = [2, 256], strides = [1, 1]} : vector<32x256xbf16> to vector<2x256xbf16>
    %c0_115 = arith.constant 0 : index
    %c0_116 = arith.constant 0 : index
    %149 = vector.load %arg14[%c0_115, %c0_116] : memref<2x1024xbf16, #tpu.memory_space<vmem>>, vector<2x256xbf16>
    tpu.vector_store %arg14[%c0_115, %c0_116], %148 {strides = array<i32>} : memref<2x1024xbf16, #tpu.memory_space<vmem>>, vector<2x256xbf16>,
    %150 = vector.extract_strided_slice %147 {offsets = [8, 0], sizes = [2, 256], strides = [1, 1]} : vector<32x256xbf16> to vector<2x256xbf16>
    %c0_117 = arith.constant 0 : index
    %c256_118 = arith.constant 256 : index
    %151 = vector.load %arg14[%c0_117, %c256_118] : memref<2x1024xbf16, #tpu.memory_space<vmem>>, vector<2x256xbf16>
    tpu.vector_store %arg14[%c0_117, %c256_118], %150 {strides = array<i32>} : memref<2x1024xbf16, #tpu.memory_space<vmem>>, vector<2x256xbf16>,
    %152 = vector.extract_strided_slice %147 {offsets = [16, 0], sizes = [2, 256], strides = [1, 1]} : vector<32x256xbf16> to vector<2x256xbf16>
    %c0_119 = arith.constant 0 : index
    %c512_120 = arith.constant 512 : index
    %153 = vector.load %arg14[%c0_119, %c512_120] : memref<2x1024xbf16, #tpu.memory_space<vmem>>, vector<2x256xbf16>
    tpu.vector_store %arg14[%c0_119, %c512_120], %152 {strides = array<i32>} : memref<2x1024xbf16, #tpu.memory_space<vmem>>, vector<2x256xbf16>,
    %154 = vector.extract_strided_slice %147 {offsets = [24, 0], sizes = [2, 256], strides = [1, 1]} : vector<32x256xbf16> to vector<2x256xbf16>
    %c0_121 = arith.constant 0 : index
    %c768_122 = arith.constant 768 : index
    %155 = vector.load %arg14[%c0_121, %c768_122] : memref<2x1024xbf16, #tpu.memory_space<vmem>>, vector<2x256xbf16>
    tpu.vector_store %arg14[%c0_121, %c768_122], %154 {strides = array<i32>} : memref<2x1024xbf16, #tpu.memory_space<vmem>>, vector<2x256xbf16>,
    %c0_123 = arith.constant 0 : index
    %c0_124 = arith.constant 0 : index
    %156 = vector.load %arg14[%c0_123, %c0_124] : memref<2x1024xbf16, #tpu.memory_space<vmem>>, vector<2x1024xbf16>
    %c0_125 = arith.constant 0 : index
    %c0_126 = arith.constant 0 : index
    %157 = vector.load %arg8[%c0_125, %c0_126] : memref<1024x256xbf16, #tpu.memory_space<vmem>>, vector<1024x256xbf16>
    %cst_127 = arith.constant dense<0.000000e+00> : vector<2x256xf32>
    %158 = tpu.matmul %156, %157, %cst_127 {dimension_numbers = #tpu.dot_dimension_numbers<[1], [0], [0], [1], [0, 0, 1, 1], [], []>} : vector<2x1024xbf16>, vector<1024x256xbf16>, vector<2x256xf32> -> vector<2x256xf32>
    %159 = vector.broadcast %144 : vector<1x256xf32> to vector<2x256xf32>
    %160 = arith.addf %158, %159 : vector<2x256xf32>
    %cst_128 = arith.constant 0.000000e+00 : f32
    %161 = vector.broadcast %cst_128 : f32 to vector<2x256xf32>
    %162 = arith.cmpf ogt, %160, %161 : vector<2x256xf32>
    %cst_129 = arith.constant 2.000000e-01 : f32
    %163 = vector.broadcast %cst_129 : f32 to vector<2x256xf32>
    %164 = arith.mulf %163, %160 : vector<2x256xf32>
    %165 = arith.select %162, %160, %164 : vector<2x256xi1>, vector<2x256xf32>
    %166 = arith.truncf %165 : vector<2x256xf32> to vector<2x256xbf16>
    %c0_130 = arith.constant 0 : index
    %c768_131 = arith.constant 768 : index
    %167 = vector.load %arg2[%c0_130, %c768_131] : memref<1x2176xf32, #tpu.memory_space<vmem>>, vector<1x256xf32>
    %c0_132 = arith.constant 0 : index
    %c0_133 = arith.constant 0 : index
    %168 = vector.load %arg9[%c0_132, %c0_133] : memref<256x256xbf16, #tpu.memory_space<vmem>>, vector<256x256xbf16>
    %cst_134 = arith.constant dense<0.000000e+00> : vector<2x256xf32>
    %169 = tpu.matmul %166, %168, %cst_134 {dimension_numbers = #tpu.dot_dimension_numbers<[1], [0], [0], [1], [0, 0, 1, 1], [], []>} : vector<2x256xbf16>, vector<256x256xbf16>, vector<2x256xf32> -> vector<2x256xf32>
    %170 = vector.broadcast %167 : vector<1x256xf32> to vector<2x256xf32>
    %171 = arith.addf %169, %170 : vector<2x256xf32>
    %cst_135 = arith.constant 0.000000e+00 : f32
    %172 = vector.broadcast %cst_135 : f32 to vector<2x256xf32>
    %173 = arith.cmpf ogt, %171, %172 : vector<2x256xf32>
    %cst_136 = arith.constant 2.000000e-01 : f32
    %174 = vector.broadcast %cst_136 : f32 to vector<2x256xf32>
    %175 = arith.mulf %174, %171 : vector<2x256xf32>
    %176 = arith.select %173, %171, %175 : vector<2x256xi1>, vector<2x256xf32>
    %177 = arith.truncf %176 : vector<2x256xf32> to vector<2x256xbf16>
    %c0_137 = arith.constant 0 : index
    %c1024_138 = arith.constant 1024 : index
    %178 = vector.load %arg2[%c0_137, %c1024_138] : memref<1x2176xf32, #tpu.memory_space<vmem>>, vector<1x512xf32>
    %c0_139 = arith.constant 0 : index
    %c0_140 = arith.constant 0 : index
    %179 = vector.load %arg10[%c0_139, %c0_140] : memref<256x512xbf16, #tpu.memory_space<vmem>>, vector<256x512xbf16>
    %cst_141 = arith.constant dense<0.000000e+00> : vector<2x512xf32>
    %180 = tpu.matmul %177, %179, %cst_141 {dimension_numbers = #tpu.dot_dimension_numbers<[1], [0], [0], [1], [0, 0, 1, 1], [], []>} : vector<2x256xbf16>, vector<256x512xbf16>, vector<2x512xf32> -> vector<2x512xf32>
    %181 = vector.broadcast %178 : vector<1x512xf32> to vector<2x512xf32>
    %182 = arith.addf %180, %181 : vector<2x512xf32>
    %cst_142 = arith.constant 0.000000e+00 : f32
    %183 = vector.broadcast %cst_142 : f32 to vector<2x512xf32>
    %184 = arith.cmpf ogt, %182, %183 : vector<2x512xf32>
    %cst_143 = arith.constant 2.000000e-01 : f32
    %185 = vector.broadcast %cst_143 : f32 to vector<2x512xf32>
    %186 = arith.mulf %185, %182 : vector<2x512xf32>
    %187 = arith.select %184, %182, %186 : vector<2x512xi1>, vector<2x512xf32>
    %188 = arith.truncf %187 : vector<2x512xf32> to vector<2x512xbf16>
    %c0_144 = arith.constant 0 : index
    %c1536_145 = arith.constant 1536 : index
    %189 = vector.load %arg2[%c0_144, %c1536_145] : memref<1x2176xf32, #tpu.memory_space<vmem>>, vector<1x512xf32>
    %c0_146 = arith.constant 0 : index
    %c2048_147 = arith.constant 2048 : index
    %190 = vector.load %arg2[%c0_146, %c2048_147] : memref<1x2176xf32, #tpu.memory_space<vmem>>, vector<1x1xf32>
    %191 = arith.extf %188 : vector<2x512xbf16> to vector<2x512xf32>
    %192 = vector.broadcast %189 : vector<1x512xf32> to vector<2x512xf32>
    %193 = arith.mulf %191, %192 : vector<2x512xf32>
    %cst_148 = arith.constant dense<0.000000e+00> : vector<2xf32>
    %194 = vector.multi_reduction <add>, %193, %cst_148 [1] : vector<2x512xf32> to vector<2xf32>
    %195 = vector.shape_cast %194 : vector<2xf32> to vector<2x1xf32>
    %196 = vector.broadcast %190 : vector<1x1xf32> to vector<2x1xf32>
    %197 = arith.addf %195, %196 : vector<2x1xf32>
    %c0_149 = arith.constant 0 : index
    %c0_150 = arith.constant 0 : index
    %198 = vector.load %arg11[%c0_149, %c0_150] : memref<2x1xf32, #tpu.memory_space<vmem>>, vector<2x1xf32>
    tpu.vector_store %arg11[%c0_149, %c0_150], %197 {strides = array<i32>} : memref<2x1xf32, #tpu.memory_space<vmem>>, vector<2x1xf32>,
    return
  }
}

</mosaic_0001>

<bundles_post_ra>
// kernel: custom-call.2
= control target key start
LH: loop header
LB: loop body
LE: loop exit
PB: predicated region body
PF: predicated region fallthrough
CT: control target
= control target key end

     0   :  { %s6_s0 = inlined_call_operand.vmem [shape: f32[2176], index: 0, kind: output, shape index: {}]  }

// kernel: discriminator_forward.1
= control target key start
LH: loop header
LB: loop body
LE: loop exit
PB: predicated region body
PF: predicated region fallthrough
CT: control target
= control target key end

     0   :  { %s19026_s1 = inlined_call_operand.vmem [shape: bf16[128,64], index: 1, kind: input, shape index: {}]   ;;  %s19027_s2 = inlined_call_operand.vmem [shape: f32[1,2176], index: 2, kind: input, shape index: {}]   ;;  %s19028_s0 = inlined_call_operand.vmem [shape: bf16[128,128], index: 0, kind: input, shape index: {}]   ;;  %s19029_s3 = inlined_call_operand.vmem [shape: bf16[800,128], index: 3, kind: input, shape index: {}]   ;;  %s19030_s4 = inlined_call_operand.vmem [shape: bf16[3200,128], index: 4, kind: input, shape index: {}]   ;;  %s19031_s6 = inlined_call_operand.vmem [shape: bf16[3200,256], index: 6, kind: input, shape index: {}]   ;;  %s19032_s5 = inlined_call_operand.vmem [shape: bf16[200,32], index: 5, kind: input, shape index: {}]   ;;  %s19033_s7 = inlined_call_operand.vmem [shape: bf16[32,8], index: 7, kind: input, shape index: {}]   ;;  %s19034_s8 = inlined_call_operand.vmem [shape: bf16[1024,256], index: 8, kind: input, shape index: {}]   ;;  %s19035_s9 = inlined_call_operand.vmem [shape: bf16[256,256], index: 9, kind: input, shape index: {}]   ;;  %s19036_s10 = inlined_call_operand.vmem [shape: bf16[256,512], index: 10, kind: input, shape index: {}]   ;;  %s19037_s11 = inlined_call_operand.vmem [shape: f32[2,1], index: 11, kind: output, shape index: {}]  }
   0x1   :  { %v12766_v0 = vld [vmem:[%s19026_s1 + $0x38] sm:$0xff]  ;;  %v12765_v1 = vld [vmem:[%s19026_s1 + $0x30] sm:$0xff]  ;;  %v12764_v2 = vld [vmem:[%s19026_s1 + $0x28] sm:$0xff] }
   0x2   :  { %171 = vmatpush.bf16.msra.mxu0 %v12766_v0  ;;  %v12763_v3 = vld [vmem:[%s19026_s1 + $0x20] sm:$0xff]  ;;  %v12762_v4 = vld [vmem:[%s19026_s1 + $0x18] sm:$0xff]  ;;  %v12761_v5 = vld [vmem:[%s19026_s1 + $0x10] sm:$0xff] }
   0x3   :  { %v12760_v6 = vld [vmem:[%s19026_s1 + $0x8] sm:$0xff]  ;;  %v12759_v7 = vld [vmem:[%s19026_s1] sm:$0xff]  ;;  %v12753_v10 = vld [vmem:[%s19028_s0 + $0x10] sm:$0xff] }
   0x4   :  { %v12751_v8 = vld [vmem:[%s19028_s0] sm:$0xff]  ;;  %v12752_v9 = vld [vmem:[%s19028_s0 + $0x8] sm:$0xff]  ;;  %v12754_v11 = vld [vmem:[%s19028_s0 + $0x18] sm:$0xff] }
   0x5   :  { %v12755_v12 = vld [vmem:[%s19028_s0 + $0x20] sm:$0xff]  ;;  %v12756_v13 = vld [vmem:[%s19028_s0 + $0x28] sm:$0xff]  ;;  %v12757_v14 = vld [vmem:[%s19028_s0 + $0x30] sm:$0xff] }
   0x6   :  { %172 = vmatpush.bf16.msra.mxu0 %v12765_v1  ;;  %v12758_v15 = vld [vmem:[%s19028_s0 + $0x38] sm:$0xff]  ;;  %v13900_v31 = vld [vmem:[%s19027_s2] ss:$0 sm:$0xff] }
   0xa   :  { %173 = vmatpush.bf16.msra.mxu0 %v12764_v2 }
   0xe   :  { %174 = vmatpush.bf16.msra.mxu0 %v12763_v3 }
  0x12   :  { %175 = vmatpush.bf16.msra.mxu0 %v12762_v4 }
  0x16   :  { %176 = vmatpush.bf16.msra.mxu0 %v12761_v5 }
  0x1a   :  { %177 = vmatpush.bf16.msra.mxu0 %v12760_v6 }
  0x1e   :  { %178 = vmatpush.bf16.msra.mxu0 %v12759_v7 }
  0x21   :  { %179 = vmatmul.bf16.vlgmr.msra.gmra.mxu0 %v12751_v8 }
  0x31   :  { %184 = vmatmul.bf16.gmra.mxu0 %v12752_v9 }
  0x41   :  { %189 = vmatmul.bf16.gmra.mxu0 %v12753_v10 }
  0x51   :  { %194 = vmatmul.bf16.gmra.mxu0 %v12754_v11 }
  0x61   :  { %199 = vmatmul.bf16.gmra.mxu0 %v12755_v12 }
  0x71   :  { %204 = vmatmul.bf16.gmra.mxu0 %v12756_v13 }
  0x81   :  { %209 = vmatmul.bf16.gmra.mxu0 %v12757_v14 }
  0x91   :  { %214 = vmatmul.bf16.gmra.mxu0 %v12758_v15 }
  0x9e   :  { %v13891_v16 = vpop.f32.mrf.mxu0 }
  0x9f   :  { %v181_v13 = vadd.f32 %v13900_v31, %v13891_v16  ;;  %v12767_v16 = vld [vmem:[%s19029_s3] sm:$0xff] }
  0xa1   :  { %vm220_vm15 = vcmp.gt.f32.partialorder %v181_v13, 0.0 }
  0xa6   :  { %v13893_v17 = vpop.f32.mrf.mxu0 }
  0xa7   :  { %v183_v10 = vadd.f32 %v13900_v31, %v13893_v17 }
  0xa9   :  { %vm221_vm14 = vcmp.gt.f32.partialorder %v183_v10, 0.0 }
  0xae   :  { %v13895_v18 = vpop.f32.mrf.mxu0 }
  0xaf   :  { %v186_v6 = vadd.f32 %v13900_v31, %v13895_v18 }
  0xb1   :  { %v238_v14 = vmul.f32 0.2, %v186_v6  ;;  %vm222_vm13 = vcmp.gt.f32.partialorder %v186_v6, 0.0 }
  0xb6   :  { %v187_v19 = vpop.f32.mrf.mxu0 }
  0xb7   :  { %v188_v3 = vadd.f32 %v13900_v31, %v187_v19 }
  0xb9   :  { %v239_v11 = vmul.f32 0.2, %v188_v3  ;;  %vm223_vm12 = vcmp.gt.f32.partialorder %v188_v3, 0.0 }
  0xbb   :  { %v255_v18 = vsel %vm223_vm12, %v188_v3, %v239_v11  ;;  %v12885_v11 = vld [vmem:[%s19030_s4 + $0x90] sm:$0xff] }
  0xbe   :  { %v190_v20 = vpop.f32.mrf.mxu0 }
  0xbf   :  { %v191_v63 = vadd.f32 %v13900_v31, %v190_v20  ;;  %v237_v20 = vmul.f32 0.2, %v183_v10 }
  0xc1   :  { %v240_v7 = vmul.f32 0.2, %v191_v63  ;;  %vm224_vm11 = vcmp.gt.f32.partialorder %v191_v63, 0.0  ;;  %v253_v17 = vsel %vm221_vm14, %v183_v10, %v237_v20 }
  0xc3   :  { %v256_v15 = vsel %vm224_vm11, %v191_v63, %v240_v7  ;;  %v12889_v63 = vld [vmem:[%s19030_s4 + $0xb0] sm:$0xff] }
  0xc6   :  { %v192_v21 = vpop.f32.mrf.mxu0 }
  0xc7   :  { %v193_v60 = vadd.f32 %v13900_v31, %v192_v21  ;;  %v236_v21 = vmul.f32 0.2, %v181_v13 }
  0xc9   :  { %v241_v4 = vmul.f32 0.2, %v193_v60  ;;  %vm225_vm10 = vcmp.gt.f32.partialorder %v193_v60, 0.0 }
  0xcb   :  { %v257_v12 = vsel %vm225_vm10, %v193_v60, %v241_v4  ;;  %v12887_v4 = vld [vmem:[%s19030_s4 + $0xa0] sm:$0xff]  ;;  %vm7074_vm10 = vcmask 1040384  }
  0xcc   :  { %v270_v19 = vpack.c.bf16 %v257_v12, %v256_v15 }
  0xce   :  { %v195_v22 = vpop.f32.mrf.mxu0 }
  0xcf   :  { %v196_v56 = vadd.f32 %v13900_v31, %v195_v22  ;;  %v254_v22 = vsel %vm222_vm13, %v186_v6, %v238_v14  ;;  %v12778_v14 = vld [vmem:[%s19029_s3 + $0x58] sm:$0xff] }
  0xd1   :  { %v242_v0 = vmul.f32 0.2, %v196_v56  ;;  %vm226_vm9 = vcmp.gt.f32.partialorder %v196_v56, 0.0 }
  0xd3   :  { %v258_v8 = vsel %vm226_vm9, %v196_v56, %v242_v0  ;;  %v12875_v56 = vld [vmem:[%s19030_s4 + $0x40] sm:$0xff] }
  0xd6   :  { %v197_v23 = vpop.f32.mrf.mxu0 }
  0xd7   :  { %v198_v53 = vadd.f32 %v13900_v31, %v197_v23  ;;  %v269_v23 = vpack.c.bf16 %v255_v18, %v254_v22 }
  0xd9   :  { %v243_v61 = vmul.f32 0.2, %v198_v53  ;;  %vm227_vm8 = vcmp.gt.f32.partialorder %v198_v53, 0.0 }
  0xdb   :  { %v259_v5 = vsel %vm227_vm8, %v198_v53, %v243_v61  ;;  %v12876_v53 = vld [vmem:[%s19030_s4 + $0x48] sm:$0xff]  ;;  %v12890_v61 = vld [vmem:[%s19030_s4 + $0xb8] sm:$0xff]  ;;  %vm7016_vm8 = vcmask 64512  }
  0xdc   :  { %v271_v9 = vpack.c.bf16 %v259_v5, %v258_v8 }
  0xde   :  { %v200_v24 = vpop.f32.mrf.mxu0 }
  0xdf   :  { %v201_v49 = vadd.f32 %v13900_v31, %v200_v24  ;;  %v252_v24 = vsel %vm220_vm15, %v181_v13, %v236_v21  ;;  %v12884_v13 = vld [vmem:[%s19030_s4 + $0x88] sm:$0xff] }
  0xe1   :  { %v244_v57 = vmul.f32 0.2, %v201_v49  ;;  %vm228_vm7 = vcmp.gt.f32.partialorder %v201_v49, 0.0 }
  0xe3   :  { %v260_v1 = vsel %vm228_vm7, %v201_v49, %v244_v57  ;;  %v12878_v49 = vld [vmem:[%s19030_s4 + $0x58] sm:$0xff]  ;;  %vm7023_vm7 = vcmask 1043456  }
  0xe6   :  { %v202_v25 = vpop.f32.mrf.mxu0 }
  0xe7   :  { %v203_v46 = vadd.f32 %v13900_v31, %v202_v25  ;;  %v268_v25 = vpack.c.bf16 %v253_v17, %v252_v24  ;;  %v12897_v24 = vld [vmem:[%s19030_s4 + $0xf0] sm:$0xff] }
  0xe9   :  { %v245_v54 = vmul.f32 0.2, %v203_v46  ;;  %vm229_vm6 = vcmp.gt.f32.partialorder %v203_v46, 0.0 }
  0xeb   :  { %v261_v62 = vsel %vm229_vm6, %v203_v46, %v245_v54  ;;  %v12776_v54 = vld [vmem:[%s19029_s3 + $0x48] sm:$0xff] }
  0xec   :  { %v272_v2 = vpack.c.bf16 %v261_v62, %v260_v1  ;;  %v12888_v1 = vld [vmem:[%s19030_s4 + $0xa8] sm:$0xff] }
  0xee   :  { %v205_v26 = vpop.f32.mrf.mxu0 }
  0xef   :  { %v206_v41 = vadd.f32 %v13900_v31, %v205_v26  ;;  %v12768_v26 = vld [vmem:[%s19029_s3 + $0x8] sm:$0xff] }
  0xf1   :  { %v246_v50 = vmul.f32 0.2, %v206_v41  ;;  %vm230_vm5 = vcmp.gt.f32.partialorder %v206_v41, 0.0 }
  0xf3   :  { %v262_v58 = vsel %vm230_vm5, %v206_v41, %v246_v50  ;;  %v12867_v41 = vld [vmem:[%s19030_s4] sm:$0xff]  ;;  %vm3674_vm5 = vcmask 261120  }
  0xf6   :  { %v207_v27 = vpop.f32.mrf.mxu0 }
  0xf7   :  { %v208_v38 = vadd.f32 %v13900_v31, %v207_v27  ;;  %v12769_v27 = vld [vmem:[%s19029_s3 + $0x10] sm:$0xff] }
  0xf9   :  { %v247_v47 = vmul.f32 0.2, %v208_v38  ;;  %vm231_vm4 = vcmp.gt.f32.partialorder %v208_v38, 0.0 }
  0xfb   :  { %v263_v55 = vsel %vm231_vm4, %v208_v38, %v247_v47  ;;  %v12869_v38 = vld [vmem:[%s19030_s4 + $0x10] sm:$0xff]  ;;  %v12879_v47 = vld [vmem:[%s19030_s4 + $0x60] sm:$0xff] }
  0xfc   :  { %v273_v59 = vpack.c.bf16 %v263_v55, %v262_v58 }
  0xfe   :  { %v210_v28 = vpop.f32.mrf.mxu0 }
  0xff   :  { %v211_v35 = vadd.f32 %v13900_v31, %v210_v28  ;;  %v12770_v28 = vld [vmem:[%s19029_s3 + $0x18] sm:$0xff] }
 0x101   :  { %v248_v42 = vmul.f32 0.2, %v211_v35  ;;  %vm232_vm3 = vcmp.gt.f32.partialorder %v211_v35, 0.0 }
 0x103   :  { %v264_v51 = vsel %vm232_vm3, %v211_v35, %v248_v42  ;;  %v12773_v35 = vld [vmem:[%s19029_s3 + $0x30] sm:$0xff]  ;;  %v12882_v42 = vld [vmem:[%s19030_s4 + $0x78] sm:$0xff] }
 0x104   :  { %3115 = vmatpush.bf16.msra.mxu3 %v12882_v42 }
 0x106   :  { %v212_v29 = vpop.f32.mrf.mxu0 }
 0x107   :  { %v213_v33 = vadd.f32 %v13900_v31, %v212_v29  ;;  %v12771_v29 = vld [vmem:[%s19029_s3 + $0x20] sm:$0xff] }
 0x109   :  { %v249_v39 = vmul.f32 0.2, %v213_v33  ;;  %vm233_vm2 = vcmp.gt.f32.partialorder %v213_v33, 0.0 }
 0x10b   :  { %v265_v48 = vsel %vm233_vm2, %v213_v33, %v249_v39  ;;  %v12873_v33 = vld [vmem:[%s19030_s4 + $0x30] sm:$0xff]  ;;  %v12868_v39 = vld [vmem:[%s19030_s4 + $0x8] sm:$0xff] }
 0x10c   :  { %v274_v52 = vpack.c.bf16 %v265_v48, %v264_v51  ;;  %v12877_v51 = vld [vmem:[%s19030_s4 + $0x50] sm:$0xff] }
 0x10e   :  { %v215_v30 = vpop.f32.mrf.mxu0 }
 0x10f   :  { %v216_v32 = vadd.f32 %v13900_v31, %v215_v30  ;;  %v12772_v30 = vld [vmem:[%s19029_s3 + $0x28] sm:$0xff] }
 0x111   :  { %v250_v36 = vmul.f32 0.2, %v216_v32  ;;  %vm234_vm0 = vcmp.gt.f32.partialorder %v216_v32, 0.0 }
 0x113   :  { %v266_v43 = vsel %vm234_vm0, %v216_v32, %v250_v36  ;;  %v13782_v32 = vmov 0   ;;  %v12871_v36 = vld [vmem:[%s19030_s4 + $0x20] sm:$0xff]  ;;  %vm1088_vm0 = vcmask 519168  }
 0x114   :  { %277 = vst [vmem:[#allocation2] sm:$0xff] %v13782_v32 }
 0x115   :  { %278 = vst [vmem:[#allocation2 + $0x8] sm:$0xff] %v13782_v32 }
 0x116   :  { %v217_v34 = vpop.f32.mrf.mxu0  ;;  %279 = vst [vmem:[#allocation2 + $0x10] sm:$0xff] %v13782_v32 }
 0x117   :  { %v218_v37 = vadd.f32 %v13900_v31, %v217_v34  ;;  %v12874_v31 = vld [vmem:[%s19030_s4 + $0x38] sm:$0xff]  ;;  %280 = vst [vmem:[#allocation2 + $0x18] sm:$0xff] %v13782_v32  ;;  %v12872_v34 = vld [vmem:[%s19030_s4 + $0x28] sm:$0xff] }
 0x118   :  { %3096 = vmatpush.bf16.msra.mxu2 %v12874_v31  ;;  %281 = vst [vmem:[#allocation2 + $0x20] sm:$0xff] %v13782_v32 }
 0x119   :  { %vm235_vm1 = vcmp.gt.f32.partialorder %v218_v37, 0.0  ;;  %v251_v40 = vmul.f32 0.2, %v218_v37  ;;  %282 = vst [vmem:[#allocation2 + $0x28] sm:$0xff] %v13782_v32 }
 0x11a   :  { %283 = vst [vmem:[#allocation2 + $0x30] sm:$0xff] %v13782_v32 }
 0x11b   :  { %v267_v44 = vsel %vm235_vm1, %v218_v37, %v251_v40  ;;  %284 = vst [vmem:[#allocation2 + $0x38] sm:$0xff] %v13782_v32  ;;  %v12870_v37 = vld [vmem:[%s19030_s4 + $0x18] sm:$0xff] }
 0x11c   :  { %v275_v45 = vpack.c.bf16 %v267_v44, %v266_v43  ;;  %3097 = vmatpush.bf16.msra.mxu2 %v12873_v33  ;;  %285 = vst [vmem:[#allocation2 + $0x40] sm:$0xff] %v13782_v32  ;;  %v12774_v40 = vld [vmem:[%s19029_s3 + $0x38] sm:$0xff]  ;;  %v12881_v43 = vld [vmem:[%s19030_s4 + $0x70] sm:$0xff]  ;;  %v12880_v44 = vld [vmem:[%s19030_s4 + $0x68] sm:$0xff] }
 0x11d   :  { %286 = vst [vmem:[#allocation2 + $0x48] sm:$0xff] %v13782_v32  ;;  %3116 = vmatpush.bf16.msra.mxu3 %v12881_v43  ;;  %v12894_v33 = vld [vmem:[%s19030_s4 + $0xd8] sm:$0xff] }
 0x11e   :  { %729 = vmatpush.bf16.msra.mxu1 %v275_v45  ;;  %287 = vst [vmem:[#allocation2 + $0x50] sm:$0xff] %v13782_v32  ;;  %v12775_v45 = vld [vmem:[%s19029_s3 + $0x40] sm:$0xff] }
 0x11f   :  { %288 = vst [vmem:[#allocation2 + $0x58] sm:$0xff] %v13782_v32 }
 0x120   :  { %3098 = vmatpush.bf16.msra.mxu2 %v12872_v34  ;;  %289 = vst [vmem:[#allocation2 + $0x60] sm:$0xf] %v13782_v32 }
 0x121   :  { %290 = vst [vmem:[#allocation2 + $0x64] sm:$0xff] %v13782_v32  ;;  %3117 = vmatpush.bf16.msra.mxu3 %v12880_v44 }
 0x122   :  { %730 = vmatpush.bf16.msra.mxu1 %v274_v52  ;;  %291 = vst [vmem:[#allocation2 + $0x6c] sm:$0xff] %v13782_v32 }
 0x123   :  { %292 = vst [vmem:[#allocation2 + $0x74] sm:$0xff] %v13782_v32 }
 0x124   :  { %3099 = vmatpush.bf16.msra.mxu2 %v12871_v36  ;;  %293 = vst [vmem:[#allocation2 + $0x7c] sm:$0xff] %v13782_v32 }
 0x125   :  { %294 = vst [vmem:[#allocation2 + $0x84] sm:$0xff] %v13782_v32  ;;  %3118 = vmatpush.bf16.msra.mxu3 %v12879_v47  ;;  %v12905_v47 = vld [vmem:[%s19030_s4 + $0x130] sm:$0xff] }
 0x126   :  { %731 = vmatpush.bf16.msra.mxu1 %v273_v59  ;;  %295 = vst [vmem:[#allocation2 + $0x8c] sm:$0xff] %v13782_v32 }
 0x127   :  { %296 = vst [vmem:[#allocation2 + $0x94] sm:$0xff] %v13782_v32 }
 0x128   :  { %3100 = vmatpush.bf16.msra.mxu2 %v12870_v37  ;;  %297 = vst [vmem:[#allocation2 + $0x9c] sm:$0xff] %v13782_v32  ;;  %v12892_v37 = vld [vmem:[%s19030_s4 + $0xc8] sm:$0xff] }
 0x129   :  { %298 = vst [vmem:[#allocation2 + $0xa4] sm:$0xff] %v13782_v32  ;;  %3119 = vmatpush.bf16.msra.mxu3 %v12878_v49  ;;  %v12904_v49 = vld [vmem:[%s19030_s4 + $0x128] sm:$0xff] }
 0x12a   :  { %732 = vmatpush.bf16.msra.mxu1 %v272_v2  ;;  %299 = vst [vmem:[#allocation2 + $0xac] sm:$0xff] %v13782_v32  ;;  %v12777_v2 = vld [vmem:[%s19029_s3 + $0x50] sm:$0xff] }
 0x12b   :  { %300 = vst [vmem:[#allocation2 + $0xb4] sm:$0xff] %v13782_v32 }
 0x12c   :  { %3101 = vmatpush.bf16.msra.mxu2 %v12869_v38  ;;  %301 = vst [vmem:[#allocation2 + $0xbc] sm:$0xff] %v13782_v32  ;;  %v12780_v38 = vld [vmem:[%s19029_s3 + $0x68] sm:$0xff] }
 0x12d   :  { %302 = vst [vmem:[#allocation2 + $0xc4] sm:$0xf] %v13782_v32  ;;  %3120 = vmatpush.bf16.msra.mxu3 %v12877_v51 }
 0x12e   :  { %733 = vmatpush.bf16.msra.mxu1 %v271_v9  ;;  %303 = vst [vmem:[#allocation2 + $0xc8] sm:$0xff] %v13782_v32  ;;  %v12886_v9 = vld [vmem:[%s19030_s4 + $0x98] sm:$0xff] }
 0x12f   :  { %304 = vst [vmem:[#allocation2 + $0xd0] sm:$0xff] %v13782_v32 }
 0x130   :  { %3102 = vmatpush.bf16.msra.mxu2 %v12868_v39  ;;  %305 = vst [vmem:[#allocation2 + $0xd8] sm:$0xff] %v13782_v32 }
 0x131   :  { %306 = vst [vmem:[#allocation2 + $0xe0] sm:$0xff] %v13782_v32  ;;  %3121 = vmatpush.bf16.msra.mxu3 %v12876_v53 }
 0x132   :  { %734 = vmatpush.bf16.msra.mxu1 %v270_v19  ;;  %307 = vst [vmem:[#allocation2 + $0xe8] sm:$0xff] %v13782_v32  ;;  %v12883_v19 = vld [vmem:[%s19030_s4 + $0x80] sm:$0xff] }
 0x133   :  { %308 = vst [vmem:[#allocation2 + $0xf0] sm:$0xff] %v13782_v32 }
 0x134   :  { %3103 = vmatpush.bf16.msra.mxu2 %v12867_v41  ;;  %309 = vst [vmem:[#allocation2 + $0xf8] sm:$0xff] %v13782_v32 }
 0x135   :  { %310 = vst [vmem:[#allocation2 + $0x100] sm:$0xff] %v13782_v32  ;;  %3122 = vmatpush.bf16.msra.mxu3 %v12875_v56 }
 0x136   :  { %735 = vmatpush.bf16.msra.mxu1 %v269_v23  ;;  %311 = vst [vmem:[#allocation2 + $0x108] sm:$0xff] %v13782_v32  ;;  %v12898_v23 = vld [vmem:[%s19030_s4 + $0xf8] sm:$0xff] }
 0x137   :  { %312 = vst [vmem:[#allocation2 + $0x110] sm:$0xff] %v13782_v32 }
 0x138   :  { %313 = vst [vmem:[#allocation2 + $0x118] sm:$0xff] %v13782_v32  ;;  %3134 = vmatpush.bf16.msrb.mxu2 %v12890_v61  ;;  %v12900_v61 = vld [vmem:[%s19030_s4 + $0x108] sm:$0xff] }
 0x139   :  { %314 = vst [vmem:[#allocation2 + $0x120] sm:$0xff] %v13782_v32  ;;  %3153 = vmatpush.bf16.msrb.mxu3 %v12898_v23  ;;  %v12908_v23 = vld [vmem:[%s19030_s4 + $0x148] sm:$0xff] }
 0x13a   :  { %736 = vmatpush.bf16.msra.mxu1 %v268_v25  ;;  %315 = vst [vmem:[#allocation2 + $0x128] sm:$0xf] %v13782_v32 }
 0x13b   :  { %316 = vst [vmem:[#allocation2 + $0x12c] sm:$0xff] %v13782_v32 }
 0x13c   :  { %317 = vst [vmem:[#allocation2 + $0x134] sm:$0xff] %v13782_v32  ;;  %3135 = vmatpush.bf16.msrb.mxu2 %v12889_v63 }
 0x13d   :  { %737 = vmatmul.bf16.vlgmr.msra.gmra.mxu1 %v12767_v16  ;;  %318 = vst [vmem:[#allocation2 + $0x13c] sm:$0xff] %v13782_v32  ;;  %3154 = vmatpush.bf16.msrb.mxu3 %v12897_v24  ;;  %v12896_v16 = vld [vmem:[%s19030_s4 + $0xe8] sm:$0xff] }
 0x13e   :  { %319 = vst [vmem:[#allocation2 + $0x144] sm:$0xff] %v13782_v32 }
 0x13f   :  { %320 = vst [vmem:[#allocation2 + $0x14c] sm:$0xff] %v13782_v32 }
 0x140   :  { %321 = vst [vmem:[#allocation2 + $0x154] sm:$0xff] %v13782_v32  ;;  %3136 = vmatpush.bf16.msrb.mxu2 %v12888_v1 }
 0x141   :  { %322 = vst [vmem:[#allocation2 + $0x15c] sm:$0xff] %v13782_v32  ;;  %3155 = vmatpush.bf16.msrb.mxu3 %v12896_v16 }
 0x142   :  { %323 = vst [vmem:[#allocation2 + $0x164] sm:$0xff] %v13782_v32 }
 0x143   :  { %324 = vst [vmem:[#allocation2 + $0x16c] sm:$0xff] %v13782_v32 }
 0x144   :  { %325 = vst [vmem:[#allocation2 + $0x174] sm:$0xff] %v13782_v32  ;;  %3137 = vmatpush.bf16.msrb.mxu2 %v12887_v4 }
 0x145   :  { %326 = vst [vmem:[#allocation2 + $0x17c] sm:$0xff] %v13782_v32 }
 0x146   :  { %327 = vst [vmem:[#allocation2 + $0x184] sm:$0xff] %v13782_v32 }
 0x147   :  { %328 = vst [vmem:[#allocation2 + $0x18c] sm:$0xf] %v13782_v32 }
 0x148   :  { %3138 = vmatpush.bf16.msrb.mxu2 %v12886_v9  ;;  %v12912_v9 = vld [vmem:[%s19030_s4 + $0x168] sm:$0xff] }
 0x14c   :  { %3139 = vmatpush.bf16.msrb.mxu2 %v12885_v11 }
 0x14d   :  { %742 = vmatmul.bf16.gmra.mxu1 %v12768_v26  ;;  %v12779_v26 = vld [vmem:[%s19029_s3 + $0x60] sm:$0xff] }
 0x150   :  { %3140 = vmatpush.bf16.msrb.mxu2 %v12884_v13 }
 0x154   :  { %3141 = vmatpush.bf16.msrb.mxu2 %v12883_v19 }
 0x15d   :  { %747 = vmatmul.bf16.gmra.mxu1 %v12769_v27 }
 0x16d   :  { %752 = vmatmul.bf16.gmra.mxu1 %v12770_v28  ;;  %v12895_v28 = vld [vmem:[%s19030_s4 + $0xe0] sm:$0xff] }
 0x16e   :  { %3156 = vmatpush.bf16.msrb.mxu3 %v12895_v28 }
 0x172   :  { %3157 = vmatpush.bf16.msrb.mxu3 %v12894_v33  ;;  %v12920_v33 = vld [vmem:[%s19030_s4 + $0x1a8] sm:$0xff] }
 0x17d   :  { %757 = vmatmul.bf16.gmra.mxu1 %v12771_v29 }
 0x18d   :  { %762 = vmatmul.bf16.gmra.mxu1 %v12772_v30 }
 0x19d   :  { %767 = vmatmul.bf16.gmra.mxu1 %v12773_v35  ;;  %v12893_v35 = vld [vmem:[%s19030_s4 + $0xd0] sm:$0xff] }
 0x19e   :  { %3158 = vmatpush.bf16.msrb.mxu3 %v12893_v35 }
 0x1a2   :  { %3159 = vmatpush.bf16.msrb.mxu3 %v12892_v37 }
 0x1ad   :  { %772 = vmatmul.bf16.gmra.mxu1 %v12774_v40  ;;  %v12891_v40 = vld [vmem:[%s19030_s4 + $0xc0] sm:$0xff] }
 0x1ae   :  { %3160 = vmatpush.bf16.msrb.mxu3 %v12891_v40 }
 0x1ba   :  { %v738_v46 = vpop.f32.mrf.mxu1 }
 0x1bb   :  { %v988_v48 = vpack.c.bf16 %v738_v46, %v738_v46 }
 0x1bd   :  { %1089 = vst.msk [vmem:[#allocation2] sm:$0xf] %vm1088_vm0, %v988_v48  ;;  %777 = vmatmul.bf16.gmra.mxu1 %v12775_v45  ;;  %v12906_v45 = vld [vmem:[%s19030_s4 + $0x138] sm:$0xff] }
 0x1c2   :  { %v740_v50 = vpop.f32.mrf.mxu1 }
 0x1c3   :  { %v989_v52 = vpack.c.bf16 %v740_v50, %v740_v50  ;;  %v12781_v50 = vld [vmem:[%s19029_s3 + $0x70] sm:$0xff] }
 0x1c4   :  { %v9184_v58 = vld [vmem:[#allocation2] sm:$0xf] }
 0x1c5   :  { %1090 = vst.msk [vmem:[#allocation2 + $0x64] sm:$0xf] %vm1088_vm0, %v989_v52  ;;  %v12903_v52 = vld [vmem:[%s19030_s4 + $0x120] sm:$0xff] }
 0x1ca   :  { %v743_v55 = vpop.f32.mrf.mxu1 }
 0x1cb   :  { %v990_v57 = vpack.c.bf16 %v743_v55, %v743_v55 }
 0x1cc   :  { %v12829_v59 = vld [vmem:[#allocation2 + $0x60] sm:$0xf0] }
 0x1cd   :  { %1091 = vst.msk [vmem:[#allocation2 + $0xc8] sm:$0xf] %vm1088_vm0, %v990_v57  ;;  %782 = vmatmul.bf16.gmra.mxu1 %v12776_v54  ;;  %v9185_v60 = vor.u32 %v12829_v59, %v9184_v58  ;;  %v12902_v57 = vld [vmem:[%s19030_s4 + $0x118] sm:$0xff]  ;;  %v12901_v59 = vld [vmem:[%s19030_s4 + $0x110] sm:$0xff] }
 0x1cf   :  { %3104 = vmatmul.bf16.vlgmr.msra.gmra.mxu2 %v9185_v60 }
 0x1d0   :  { %3172 = vmatpush.bf16.msra.mxu2 %v12906_v45  ;;  %v12916_v45 = vld [vmem:[%s19030_s4 + $0x188] sm:$0xff] }
 0x1d2   :  { %v745_v62 = vpop.f32.mrf.mxu1 }
 0x1d3   :  { %v991_v0 = vpack.c.bf16 %v745_v62, %v745_v62  ;;  %v12782_v62 = vld [vmem:[%s19029_s3 + $0x78] sm:$0xff] }
 0x1d4   :  { %v9284_v6 = vld [vmem:[#allocation2 + $0xc8] sm:$0xf]  ;;  %3173 = vmatpush.bf16.msra.mxu2 %v12905_v47 }
 0x1d5   :  { %1092 = vst.msk [vmem:[#allocation2 + $0x12c] sm:$0xf] %vm1088_vm0, %v991_v0  ;;  %v12899_v0 = vld [vmem:[%s19030_s4 + $0x100] sm:$0xff] }
 0x1d8   :  { %3174 = vmatpush.bf16.msra.mxu2 %v12904_v49  ;;  %v12915_v49 = vld [vmem:[%s19030_s4 + $0x180] sm:$0xff] }
 0x1da   :  { %v748_v3 = vpop.f32.mrf.mxu1 }
 0x1db   :  { %v992_v5 = vpack.c.bf16 %v748_v3, %v748_v3 }
 0x1dc   :  { %v12854_v7 = vld [vmem:[#allocation2 + $0x128] sm:$0xf0]  ;;  %3175 = vmatpush.bf16.msra.mxu2 %v12903_v52 }
 0x1dd   :  { %1093 = vst.msk [vmem:[#allocation2 + $0x4] sm:$0xf] %vm1088_vm0, %v992_v5  ;;  %787 = vmatmul.bf16.gmra.mxu1 %v12777_v2  ;;  %v9285_v8 = vor.u32 %v12854_v7, %v9284_v6  ;;  %v12914_v5 = vld [vmem:[%s19030_s4 + $0x178] sm:$0xff]  ;;  %v12913_v7 = vld [vmem:[%s19030_s4 + $0x170] sm:$0xff] }
 0x1df   :  { %3109 = vmatmul.bf16.gmra.mxu2 %v9285_v8 }
 0x1e0   :  { %3176 = vmatpush.bf16.msra.mxu2 %v12902_v57 }
 0x1e2   :  { %v750_v10 = vpop.f32.mrf.mxu1 }
 0x1e3   :  { %v993_v12 = vpack.c.bf16 %v750_v10, %v750_v10  ;;  %v12783_v10 = vld [vmem:[%s19029_s3 + $0x80] sm:$0xff] }
 0x1e4   :  { %v12817_v18 = vld [vmem:[#allocation2 + $0x4] sm:$0xf]  ;;  %3177 = vmatpush.bf16.msra.mxu2 %v12901_v59  ;;  %v12929_v59 = vld [vmem:[%s19030_s4 + $0x1f0] sm:$0xff] }
 0x1e5   :  { %1094 = vst.msk [vmem:[#allocation2 + $0x68] sm:$0xf] %vm1088_vm0, %v993_v12  ;;  %v12911_v12 = vld [vmem:[%s19030_s4 + $0x160] sm:$0xff] }
 0x1e8   :  { %3178 = vmatpush.bf16.msra.mxu2 %v12900_v61 }
 0x1ea   :  { %v753_v15 = vpop.f32.mrf.mxu1 }
 0x1eb   :  { %v994_v20 = vpack.c.bf16 %v753_v15, %v753_v15 }
 0x1ec   :  { %v9186_v21 = vld [vmem:[#allocation2 + $0x64] sm:$0xf0]  ;;  %3179 = vmatpush.bf16.msra.mxu2 %v12899_v0  ;;  %v12787_v0 = vld [vmem:[%s19029_s3 + $0xa0] sm:$0xff] }
 0x1ed   :  { %1095 = vst.msk [vmem:[#allocation2 + $0xcc] sm:$0xf] %vm1088_vm0, %v994_v20  ;;  %792 = vmatmul.bf16.gmra.mxu1 %v12778_v14  ;;  %v9189_v22 = vor.u32 %v12817_v18, %v9186_v21  ;;  %v12910_v20 = vld [vmem:[%s19030_s4 + $0x158] sm:$0xff]  ;;  %v12909_v21 = vld [vmem:[%s19030_s4 + $0x150] sm:$0xff] }
 0x1ef   :  { %3123 = vmatmul.bf16.vlgmr.msra.gmra.mxu3 %v9189_v22 }
 0x1f0   :  { %3191 = vmatpush.bf16.msra.mxu3 %v12914_v5 }
 0x1f2   :  { %v755_v17 = vpop.f32.mrf.mxu1 }
 0x1f3   :  { %v995_v25 = vpack.c.bf16 %v755_v17, %v755_v17  ;;  %v12784_v17 = vld [vmem:[%s19029_s3 + $0x88] sm:$0xff] }
 0x1f4   :  { %v12842_v30 = vld [vmem:[#allocation2 + $0xcc] sm:$0xf]  ;;  %3192 = vmatpush.bf16.msra.mxu3 %v12913_v7 }
 0x1f5   :  { %1096 = vst.msk [vmem:[#allocation2 + $0x130] sm:$0xf] %vm1088_vm0, %v995_v25  ;;  %v12907_v25 = vld [vmem:[%s19030_s4 + $0x140] sm:$0xff] }
 0x1f8   :  { %3193 = vmatpush.bf16.msra.mxu3 %v12912_v9  ;;  %v12926_v9 = vld [vmem:[%s19030_s4 + $0x1d8] sm:$0xff] }
 0x1fa   :  { %v758_v27 = vpop.f32.mrf.mxu1 }
 0x1fb   :  { %v996_v29 = vpack.c.bf16 %v758_v27, %v758_v27 }
 0x1fc   :  { %v9286_v31 = vld [vmem:[#allocation2 + $0x12c] sm:$0xf0]  ;;  %3194 = vmatpush.bf16.msra.mxu3 %v12911_v12 }
 0x1fd   :  { %1097 = vst.msk [vmem:[#allocation2 + $0x8] sm:$0xf] %vm1088_vm0, %v996_v29  ;;  %797 = vmatmul.bf16.gmra.mxu1 %v12779_v26  ;;  %v9289_v32 = vor.u32 %v12842_v30, %v9286_v31  ;;  %v12922_v29 = vld [vmem:[%s19030_s4 + $0x1b8] sm:$0xff]  ;;  %v12921_v31 = vld [vmem:[%s19030_s4 + $0x1b0] sm:$0xff] }
 0x1ff   :  { %3128 = vmatmul.bf16.gmra.mxu3 %v9289_v32 }
 0x200   :  { %3195 = vmatpush.bf16.msra.mxu3 %v12910_v20  ;;  %v12788_v20 = vld [vmem:[%s19029_s3 + $0xa8] sm:$0xff] }
 0x202   :  { %v760_v34 = vpop.f32.mrf.mxu1 }
 0x203   :  { %v997_v36 = vpack.c.bf16 %v760_v34, %v760_v34  ;;  %v12785_v34 = vld [vmem:[%s19029_s3 + $0x90] sm:$0xff] }
 0x204   :  { %v9192_v42 = vld [vmem:[#allocation2 + $0x8] sm:$0xf]  ;;  %3196 = vmatpush.bf16.msra.mxu3 %v12909_v21 }
 0x205   :  { %1098 = vst.msk [vmem:[#allocation2 + $0x6c] sm:$0xf] %vm1088_vm0, %v997_v36  ;;  %v12919_v36 = vld [vmem:[%s19030_s4 + $0x1a0] sm:$0xff] }
 0x208   :  { %3197 = vmatpush.bf16.msra.mxu3 %v12908_v23 }
 0x20a   :  { %v763_v39 = vpop.f32.mrf.mxu1 }
 0x20b   :  { %v998_v41 = vpack.c.bf16 %v763_v39, %v763_v39 }
 0x20c   :  { %v12830_v43 = vld [vmem:[#allocation2 + $0x68] sm:$0xf0]  ;;  %3198 = vmatpush.bf16.msra.mxu3 %v12907_v25 }
 0x20d   :  { %1099 = vst.msk [vmem:[#allocation2 + $0xd0] sm:$0xf] %vm1088_vm0, %v998_v41  ;;  %802 = vmatmul.bf16.gmra.mxu1 %v12780_v38  ;;  %v9193_v44 = vor.u32 %v12830_v43, %v9192_v42  ;;  %v12918_v41 = vld [vmem:[%s19030_s4 + $0x198] sm:$0xff]  ;;  %v12917_v43 = vld [vmem:[%s19030_s4 + $0x190] sm:$0xff] }
 0x20f   :  { %3142 = vmatmul.bf16.vlgmr.msrb.gmra.mxu2 %v9193_v44 }
 0x210   :  { %3210 = vmatpush.bf16.msrb.mxu2 %v12922_v29 }
 0x212   :  { %v765_v46 = vpop.f32.mrf.mxu1 }
 0x213   :  { %v999_v48 = vpack.c.bf16 %v765_v46, %v765_v46  ;;  %v12786_v46 = vld [vmem:[%s19029_s3 + $0x98] sm:$0xff] }
 0x214   :  { %v9292_v54 = vld [vmem:[#allocation2 + $0xd0] sm:$0xf]  ;;  %3211 = vmatpush.bf16.msrb.mxu2 %v12921_v31  ;;  %v12936_v31 = vld [vmem:[%s19030_s4 + $0x228] sm:$0xff] }
 0x215   :  { %1100 = vst.msk [vmem:[#allocation2 + $0x134] sm:$0xf] %vm1088_vm0, %v999_v48 }
 0x218   :  { %3212 = vmatpush.bf16.msrb.mxu2 %v12920_v33 }
 0x21a   :  { %v768_v51 = vpop.f32.mrf.mxu1 }
 0x21b   :  { %v1000_v53 = vpack.c.bf16 %v768_v51, %v768_v51 }
 0x21c   :  { %v12855_v55 = vld [vmem:[#allocation2 + $0x130] sm:$0xf0]  ;;  %3213 = vmatpush.bf16.msrb.mxu2 %v12919_v36 }
 0x21d   :  { %1101 = vst.msk [vmem:[#allocation2 + $0xc] sm:$0xf] %vm1088_vm0, %v1000_v53  ;;  %807 = vmatmul.bf16.gmra.mxu1 %v12781_v50  ;;  %v9293_v56 = vor.u32 %v12855_v55, %v9292_v54  ;;  %v13778_v53 = vld [vmem:[%s19027_s2 + $0x1] ss:$0 sm:$0xff]  ;;  %v12930_v55 = vld [vmem:[%s19030_s4 + $0x1f8] sm:$0xff] }
 0x21f   :  { %3147 = vmatmul.bf16.gmra.mxu2 %v9293_v56 }
 0x220   :  { %3214 = vmatpush.bf16.msrb.mxu2 %v12918_v41 }
 0x222   :  { %v770_v58 = vpop.f32.mrf.mxu1 }
 0x223   :  { %v1001_v60 = vpack.c.bf16 %v770_v58, %v770_v58 }
 0x224   :  { %v12818_v2 = vld [vmem:[#allocation2 + $0xc] sm:$0xf]  ;;  %3215 = vmatpush.bf16.msrb.mxu2 %v12917_v43 }
 0x225   :  { %1102 = vst.msk [vmem:[#allocation2 + $0x70] sm:$0xf] %vm1088_vm0, %v1001_v60  ;;  %v12933_v43 = vld [vmem:[%s19030_s4 + $0x210] sm:$0xff] }
 0x228   :  { %3216 = vmatpush.bf16.msrb.mxu2 %v12916_v45 }
 0x22a   :  { %v773_v63 = vpop.f32.mrf.mxu1 }
 0x22b   :  { %v1002_v1 = vpack.c.bf16 %v773_v63, %v773_v63  ;;  %v12928_v63 = vld [vmem:[%s19030_s4 + $0x1e8] sm:$0xff] }
 0x22c   :  { %v9194_v3 = vld [vmem:[#allocation2 + $0x6c] sm:$0xf0]  ;;  %3217 = vmatpush.bf16.msrb.mxu2 %v12915_v49 }
 0x22d   :  { %1103 = vst.msk [vmem:[#allocation2 + $0xd4] sm:$0xf] %vm1088_vm0, %v1002_v1  ;;  %812 = vmatmul.bf16.gmra.mxu1 %v12782_v62  ;;  %v9197_v4 = vor.u32 %v12818_v2, %v9194_v3  ;;  %v12927_v3 = vld [vmem:[%s19030_s4 + $0x1e0] sm:$0xff] }
 0x22f   :  { %3161 = vmatmul.bf16.vlgmr.msrb.gmra.mxu3 %v9197_v4 }
 0x230   :  { %3229 = vmatpush.bf16.msrb.mxu3 %v12930_v55  ;;  %v12946_v55 = vld [vmem:[%s19030_s4 + $0x278] sm:$0xff] }
 0x232   :  { %v775_v6 = vpop.f32.mrf.mxu1 }
 0x233   :  { %v1003_v8 = vpack.c.bf16 %v775_v6, %v775_v6 }
 0x234   :  { %v12843_v14 = vld [vmem:[#allocation2 + $0xd4] sm:$0xf]  ;;  %3230 = vmatpush.bf16.msrb.mxu3 %v12929_v59 }
 0x235   :  { %1104 = vst.msk [vmem:[#allocation2 + $0x138] sm:$0xf] %vm1088_vm0, %v1003_v8 }
 0x238   :  { %3231 = vmatpush.bf16.msrb.mxu3 %v12928_v63  ;;  %v12791_v63 = vld [vmem:[%s19029_s3 + $0xc0] sm:$0xff] }
 0x23a   :  { %v778_v11 = vpop.f32.mrf.mxu1 }
 0x23b   :  { %v1004_v13 = vpack.c.bf16 %v778_v11, %v778_v11 }
 0x23c   :  { %v9294_v15 = vld [vmem:[#allocation2 + $0x134] sm:$0xf0]  ;;  %3232 = vmatpush.bf16.msrb.mxu3 %v12927_v3 }
 0x23d   :  { %1105 = vst.msk [vmem:[#allocation2 + $0x10] sm:$0xf] %vm1088_vm0, %v1004_v13  ;;  %817 = vmatmul.bf16.gmra.mxu1 %v12783_v10  ;;  %v9297_v19 = vor.u32 %v12843_v14, %v9294_v15  ;;  %v12925_v13 = vld [vmem:[%s19030_s4 + $0x1d0] sm:$0xff]  ;;  %v12943_v3 = vld [vmem:[%s19030_s4 + $0x260] sm:$0xff] }
 0x23f   :  { %3166 = vmatmul.bf16.gmra.mxu3 %v9297_v19  ;;  %v12924_v19 = vld [vmem:[%s19030_s4 + $0x1c8] sm:$0xff] }
 0x240   :  { %3233 = vmatpush.bf16.msrb.mxu3 %v12926_v9 }
 0x242   :  { %v780_v18 = vpop.f32.mrf.mxu1 }
 0x243   :  { %v1005_v22 = vpack.c.bf16 %v780_v18, %v780_v18 }
 0x244   :  { %v9200_v26 = vld [vmem:[#allocation2 + $0x10] sm:$0xf]  ;;  %3234 = vmatpush.bf16.msrb.mxu3 %v12925_v13 }
 0x245   :  { %1106 = vst.msk [vmem:[#allocation2 + $0x74] sm:$0xf] %vm1088_vm0, %v1005_v22  ;;  %v12923_v22 = vld [vmem:[%s19030_s4 + $0x1c0] sm:$0xff] }
 0x248   :  { %3235 = vmatpush.bf16.msrb.mxu3 %v12924_v19 }
 0x24a   :  { %v783_v24 = vpop.f32.mrf.mxu1 }
 0x24b   :  { %v1006_v16 = vpack.c.bf16 %v783_v24, %v783_v24 }
 0x24c   :  { %v12831_v27 = vld [vmem:[#allocation2 + $0x70] sm:$0xf0]  ;;  %3236 = vmatpush.bf16.msrb.mxu3 %v12923_v22 }
 0x24d   :  { %1107 = vst.msk [vmem:[#allocation2 + $0xd8] sm:$0xf] %vm1088_vm0, %v1006_v16  ;;  %822 = vmatmul.bf16.gmra.mxu1 %v12784_v17  ;;  %v9201_v28 = vor.u32 %v12831_v27, %v9200_v26  ;;  %v12938_v16 = vld [vmem:[%s19030_s4 + $0x238] sm:$0xff] }
 0x24e   :  { %3248 = vmatpush.bf16.msrb.mxu0 %v12938_v16 }
 0x24f   :  { %3180 = vmatmul.bf16.vlgmr.msra.gmra.mxu2 %v9201_v28  ;;  %v12937_v28 = vld [vmem:[%s19030_s4 + $0x230] sm:$0xff] }
 0x250   :  { %3267 = vmatpush.bf16.msra.mxu2 %v12946_v55 }
 0x252   :  { %v785_v30 = vpop.f32.mrf.mxu1  ;;  %v3105_v47 = vpop.f32.mrf.mxu2  ;;  %3249 = vmatpush.bf16.msrb.mxu0 %v12937_v28 }
 0x253   :  { %v1007_v32 = vpack.c.bf16 %v785_v30, %v785_v30  ;;  %v3106_v56 = vadd.f32 %v13778_v53, %v3105_v47  ;;  %v12790_v47 = vld [vmem:[%s19029_s3 + $0xb8] sm:$0xff] }
 0x254   :  { %v9300_v38 = vld [vmem:[#allocation2 + $0xd8] sm:$0xf] }
 0x255   :  { %1108 = vst.msk [vmem:[#allocation2 + $0x13c] sm:$0xf] %vm1088_vm0, %v1007_v32  ;;  %v12789_v32 = vld [vmem:[%s19029_s3 + $0xb0] sm:$0xff] }
 0x256   :  { %3250 = vmatpush.bf16.msrb.mxu0 %v12936_v31  ;;  %v12793_v31 = vld [vmem:[%s19029_s3 + $0xd0] sm:$0xff] }
 0x25a   :  { %v788_v35 = vpop.f32.mrf.mxu1  ;;  %v14233_v62 = vpop.f32.mrf.mxu2 }
 0x25b   :  { %v1008_v37 = vpack.c.bf16 %v788_v35, %v788_v35  ;;  %v12935_v35 = vld [vmem:[%s19030_s4 + $0x220] sm:$0xff] }
 0x25c   :  { %v12856_v39 = vld [vmem:[#allocation2 + $0x138] sm:$0xf0]  ;;  %3251 = vmatpush.bf16.msrb.mxu0 %v12935_v35 }
 0x25d   :  { %1109 = vst.msk [vmem:[#allocation2 + $0x14] sm:$0xf] %vm1088_vm0, %v1008_v37  ;;  %827 = vmatmul.bf16.gmra.mxu1 %v12785_v34  ;;  %v9301_v40 = vor.u32 %v12856_v39, %v9300_v38  ;;  %v12951_v35 = vld [vmem:[%s19030_s4 + $0x2a0] sm:$0xff] }
 0x25f   :  { %3185 = vmatmul.bf16.gmra.mxu2 %v9301_v40  ;;  %v12934_v40 = vld [vmem:[%s19030_s4 + $0x218] sm:$0xff] }
 0x260   :  { %3252 = vmatpush.bf16.msrb.mxu0 %v12934_v40  ;;  %v12950_v40 = vld [vmem:[%s19030_s4 + $0x298] sm:$0xff] }
 0x262   :  { %v790_v42 = vpop.f32.mrf.mxu1  ;;  %v3110_v8 = vpop.f32.mrf.mxu2 }
 0x263   :  { %v1009_v44 = vpack.c.bf16 %v790_v42, %v790_v42  ;;  %v3111_v10 = vadd.f32 %v13778_v53, %v3110_v8  ;;  %v12942_v8 = vld [vmem:[%s19030_s4 + $0x258] sm:$0xff] }
 0x264   :  { %v12819_v51 = vld [vmem:[#allocation2 + $0x14] sm:$0xf]  ;;  %3253 = vmatpush.bf16.msrb.mxu0 %v12933_v43  ;;  %v12949_v43 = vld [vmem:[%s19030_s4 + $0x290] sm:$0xff] }
 0x265   :  { %1110 = vst.msk [vmem:[#allocation2 + $0x78] sm:$0xf] %vm1088_vm0, %v1009_v44 }
 0x26a   :  { %v793_v48 = vpop.f32.mrf.mxu1  ;;  %v14261_v18 = vpop.f32.mrf.mxu2 }
 0x26b   :  { %v1010_v50 = vpack.c.bf16 %v793_v48, %v793_v48 }
 0x26c   :  { %v9202_v52 = vld [vmem:[#allocation2 + $0x74] sm:$0xf0] }
 0x26d   :  { %1111 = vst.msk [vmem:[#allocation2 + $0xdc] sm:$0xf] %vm1088_vm0, %v1010_v50  ;;  %832 = vmatmul.bf16.gmra.mxu1 %v12786_v46  ;;  %v9205_v54 = vor.u32 %v12819_v51, %v9202_v52  ;;  %v12932_v46 = vld [vmem:[%s19030_s4 + $0x208] sm:$0xff]  ;;  %v12931_v50 = vld [vmem:[%s19030_s4 + $0x200] sm:$0xff] }
 0x26e   :  { %3254 = vmatpush.bf16.msrb.mxu0 %v12932_v46  ;;  %v12948_v46 = vld [vmem:[%s19030_s4 + $0x288] sm:$0xff] }
 0x26f   :  { %3199 = vmatmul.bf16.vlgmr.msra.gmra.mxu3 %v9205_v54 }
 0x272   :  { %v795_v57 = vpop.f32.mrf.mxu1  ;;  %v3124_v58 = vpop.f32.mrf.mxu3  ;;  %3255 = vmatpush.bf16.msrb.mxu0 %v12931_v50 }
 0x273   :  { %v1011_v60 = vpack.c.bf16 %v795_v57, %v795_v57  ;;  %v3125_v61 = vadd.f32 %v3124_v58, %v3106_v56  ;;  %v12945_v58 = vld [vmem:[%s19030_s4 + $0x270] sm:$0xff] }
 0x274   :  { %v12844_v5 = vld [vmem:[#allocation2 + $0xdc] sm:$0xf]  ;;  %3268 = vmatpush.bf16.msra.mxu2 %v12945_v58 }
 0x275   :  { %1112 = vst.msk [vmem:[#allocation2 + $0x140] sm:$0xf] %vm1088_vm0, %v1011_v60 }
 0x27a   :  { %v798_v1 = vpop.f32.mrf.mxu1  ;;  %v14242_v2 = vpop.f32.mrf.mxu3 }
 0x27b   :  { %v1012_v4 = vpack.c.bf16 %v798_v1, %v798_v1 }
 0x27c   :  { %v9302_v6 = vld [vmem:[#allocation2 + $0x13c] sm:$0xf0] }
 0x27d   :  { %1113 = vst.msk [vmem:[#allocation2 + $0x18] sm:$0xf] %vm1088_vm0, %v1012_v4  ;;  %837 = vmatmul.bf16.gmra.mxu1 %v12787_v0  ;;  %v9305_v7 = vor.u32 %v12844_v5, %v9302_v6 }
 0x27f   :  { %3204 = vmatmul.bf16.gmra.mxu3 %v9305_v7 }
 0x282   :  { %v800_v11 = vpop.f32.mrf.mxu1  ;;  %v3129_v12 = vpop.f32.mrf.mxu3 }
 0x283   :  { %v1013_v14 = vpack.c.bf16 %v800_v11, %v800_v11  ;;  %v3130_v15 = vadd.f32 %v3129_v12, %v3111_v10  ;;  %v12941_v11 = vld [vmem:[%s19030_s4 + $0x250] sm:$0xff] }
 0x284   :  { %v9208_v17 = vld [vmem:[#allocation2 + $0x18] sm:$0xf] }
 0x285   :  { %1114 = vst.msk [vmem:[#allocation2 + $0x7c] sm:$0xf] %vm1088_vm0, %v1013_v14  ;;  %v12940_v14 = vld [vmem:[%s19030_s4 + $0x248] sm:$0xff] }
 0x28a   :  { %v803_v21 = vpop.f32.mrf.mxu1  ;;  %v14299_v48 = vpop.f32.mrf.mxu3 }
 0x28b   :  { %v1014_v23 = vpack.c.bf16 %v803_v21, %v803_v21  ;;  %v12939_v21 = vld [vmem:[%s19030_s4 + $0x240] sm:$0xff] }
 0x28c   :  { %v12832_v24 = vld [vmem:[#allocation2 + $0x78] sm:$0xf0] }
 0x28d   :  { %1115 = vst.msk [vmem:[#allocation2 + $0xe0] sm:$0xf] %vm1088_vm0, %v1014_v23  ;;  %842 = vmatmul.bf16.gmra.mxu1 %v12788_v20  ;;  %v9209_v25 = vor.u32 %v12832_v24, %v9208_v17 }
 0x28f   :  { %3218 = vmatmul.bf16.vlgmr.msrb.gmra.mxu2 %v9209_v25  ;;  %v12954_v25 = vld [vmem:[%s19030_s4 + $0x2b8] sm:$0xff] }
 0x290   :  { %3286 = vmatpush.bf16.msra.mxu3 %v12954_v25 }
 0x292   :  { %v805_v26 = vpop.f32.mrf.mxu1  ;;  %v3143_v27 = vpop.f32.mrf.mxu2 }
 0x293   :  { %v1015_v29 = vpack.c.bf16 %v805_v26, %v805_v26  ;;  %v3144_v30 = vadd.f32 %v3143_v27, %v3125_v61  ;;  %v12944_v61 = vld [vmem:[%s19030_s4 + $0x268] sm:$0xff]  ;;  %v12953_v27 = vld [vmem:[%s19030_s4 + $0x2b0] sm:$0xff] }
 0x294   :  { %v9308_v37 = vld [vmem:[#allocation2 + $0xe0] sm:$0xf]  ;;  %3269 = vmatpush.bf16.msra.mxu2 %v12944_v61  ;;  %3287 = vmatpush.bf16.msra.mxu3 %v12953_v27  ;;  %v12970_v27 = vld [vmem:[%s19030_s4 + $0x338] sm:$0xff] }
 0x295   :  { %1116 = vst.msk [vmem:[#allocation2 + $0x144] sm:$0xf] %vm1088_vm0, %v1015_v29 }
 0x298   :  { %3270 = vmatpush.bf16.msra.mxu2 %v12943_v3 }
 0x29a   :  { %v808_v33 = vpop.f32.mrf.mxu1  ;;  %v14280_v34 = vpop.f32.mrf.mxu2 }
 0x29b   :  { %v1016_v36 = vpack.c.bf16 %v808_v33, %v808_v33 }
 0x29c   :  { %v12857_v38 = vld [vmem:[#allocation2 + $0x140] sm:$0xf0]  ;;  %3271 = vmatpush.bf16.msra.mxu2 %v12942_v8 }
 0x29d   :  { %1117 = vst.msk [vmem:[#allocation2 + $0x1c] sm:$0xf] %vm1088_vm0, %v1016_v36  ;;  %847 = vmatmul.bf16.gmra.mxu1 %v12789_v32  ;;  %v9309_v39 = vor.u32 %v12857_v38, %v9308_v37 }
 0x29f   :  { %3223 = vmatmul.bf16.gmra.mxu2 %v9309_v39 }
 0x2a0   :  { %3272 = vmatpush.bf16.msra.mxu2 %v12941_v11 }
 0x2a2   :  { %v810_v41 = vpop.f32.mrf.mxu1  ;;  %v3148_v42 = vpop.f32.mrf.mxu2 }
 0x2a3   :  { %v1017_v44 = vpack.c.bf16 %v810_v41, %v810_v41  ;;  %v3149_v45 = vadd.f32 %v3148_v42, %v3130_v15  ;;  %v12792_v15 = vld [vmem:[%s19029_s3 + $0xc8] sm:$0xff] }
 0x2a4   :  { %v12820_v52 = vld [vmem:[#allocation2 + $0x1c] sm:$0xf]  ;;  %3273 = vmatpush.bf16.msra.mxu2 %v12940_v14 }
 0x2a5   :  { %1118 = vst.msk [vmem:[#allocation2 + $0x80] sm:$0xf] %vm1088_vm0, %v1017_v44 }
 0x2a8   :  { %3274 = vmatpush.bf16.msra.mxu2 %v12939_v21  ;;  %v12796_v21 = vld [vmem:[%s19029_s3 + $0xe8] sm:$0xff] }
 0x2aa   :  { %v813_v49 = vpop.f32.mrf.mxu1  ;;  %v14337_v19 = vpop.f32.mrf.mxu2 }
 0x2ab   :  { %v1018_v51 = vpack.c.bf16 %v813_v49, %v813_v49 }
 0x2ac   :  { %v9210_v53 = vld [vmem:[#allocation2 + $0x7c] sm:$0xf0]  ;;  %3324 = vmatpush.bf16.msrb.mxu2 %v12970_v27 }
 0x2ad   :  { %1119 = vst.msk [vmem:[#allocation2 + $0xe4] sm:$0xf] %vm1088_vm0, %v1018_v51  ;;  %852 = vmatmul.bf16.gmra.mxu1 %v12790_v47  ;;  %v9213_v54 = vor.u32 %v12820_v52, %v9210_v53  ;;  %v12794_v47 = vld [vmem:[%s19029_s3 + $0xd8] sm:$0xff]  ;;  %v12947_v51 = vld [vmem:[%s19030_s4 + $0x280] sm:$0xff] }
 0x2af   :  { %3237 = vmatmul.bf16.vlgmr.msrb.gmra.mxu3 %v9213_v54 }
 0x2b2   :  { %v815_v56 = vpop.f32.mrf.mxu1  ;;  %v3162_v57 = vpop.f32.mrf.mxu3 }
 0x2b3   :  { %v1019_v59 = vpack.c.bf16 %v815_v56, %v815_v56  ;;  %v3163_v60 = vadd.f32 %v3162_v57, %v3144_v30  ;;  %v12952_v30 = vld [vmem:[%s19030_s4 + $0x2a8] sm:$0xff]  ;;  %v12962_v56 = vld [vmem:[%s19030_s4 + $0x2f8] sm:$0xff] }
 0x2b4   :  { %v12845_v5 = vld [vmem:[#allocation2 + $0xe4] sm:$0xf]  ;;  %3288 = vmatpush.bf16.msra.mxu3 %v12952_v30  ;;  %3305 = vmatpush.bf16.msra.mxu0 %v12962_v56  ;;  %v12969_v30 = vld [vmem:[%s19030_s4 + $0x330] sm:$0xff]  ;;  %v12963_v56 = vld [vmem:[%s19030_s4 + $0x300] sm:$0xff] }
 0x2b5   :  { %1120 = vst.msk [vmem:[#allocation2 + $0x148] sm:$0xf] %vm1088_vm0, %v1019_v59  ;;  %v12961_v59 = vld [vmem:[%s19030_s4 + $0x2f0] sm:$0xff]  ;;  %3325 = vmatpush.bf16.msrb.mxu2 %v12969_v30 }
 0x2b8   :  { %3289 = vmatpush.bf16.msra.mxu3 %v12951_v35  ;;  %3306 = vmatpush.bf16.msra.mxu0 %v12961_v59  ;;  %v12968_v35 = vld [vmem:[%s19030_s4 + $0x328] sm:$0xff] }
 0x2b9   :  { %3326 = vmatpush.bf16.msrb.mxu2 %v12968_v35 }
 0x2ba   :  { %v818_v0 = vpop.f32.mrf.mxu1  ;;  %v14318_v1 = vpop.f32.mrf.mxu3 }
 0x2bb   :  { %v1020_v4 = vpack.c.bf16 %v818_v0, %v818_v0  ;;  %v12795_v0 = vld [vmem:[%s19029_s3 + $0xe0] sm:$0xff] }
 0x2bc   :  { %v9310_v6 = vld [vmem:[#allocation2 + $0x144] sm:$0xf0]  ;;  %3290 = vmatpush.bf16.msra.mxu3 %v12950_v40 }
 0x2bd   :  { %1121 = vst.msk [vmem:[#allocation2 + $0x20] sm:$0xf] %vm1088_vm0, %v1020_v4  ;;  %857 = vmatmul.bf16.gmra.mxu1 %v12791_v63  ;;  %v9313_v7 = vor.u32 %v12845_v5, %v9310_v6  ;;  %v12960_v63 = vld [vmem:[%s19030_s4 + $0x2e8] sm:$0xff]  ;;  %v12959_v5 = vld [vmem:[%s19030_s4 + $0x2e0] sm:$0xff] }
 0x2be   :  { %3307 = vmatpush.bf16.msra.mxu0 %v12960_v63 }
 0x2bf   :  { %3242 = vmatmul.bf16.gmra.mxu3 %v9313_v7 }
 0x2c0   :  { %3291 = vmatpush.bf16.msra.mxu3 %v12949_v43 }
 0x2c2   :  { %v820_v9 = vpop.f32.mrf.mxu1  ;;  %v3167_v10 = vpop.f32.mrf.mxu3  ;;  %3308 = vmatpush.bf16.msra.mxu0 %v12959_v5 }
 0x2c3   :  { %v1021_v12 = vpack.c.bf16 %v820_v9, %v820_v9  ;;  %v3168_v13 = vadd.f32 %v3167_v10, %v3149_v45  ;;  %v12958_v10 = vld [vmem:[%s19030_s4 + $0x2d8] sm:$0xff] }
 0x2c4   :  { %v9216_v23 = vld [vmem:[#allocation2 + $0x20] sm:$0xf]  ;;  %3292 = vmatpush.bf16.msra.mxu3 %v12948_v46 }
 0x2c5   :  { %1122 = vst.msk [vmem:[#allocation2 + $0x84] sm:$0xf] %vm1088_vm0, %v1021_v12 }
 0x2c6   :  { %3309 = vmatpush.bf16.msra.mxu0 %v12958_v10 }
 0x2c8   :  { %3293 = vmatpush.bf16.msra.mxu3 %v12947_v51 }
 0x2ca   :  { %v823_v20 = vpop.f32.mrf.mxu1  ;;  %v14375_v49 = vpop.f32.mrf.mxu3 }
 0x2cb   :  { %v1022_v22 = vpack.c.bf16 %v823_v20, %v823_v20  ;;  %v12956_v20 = vld [vmem:[%s19030_s4 + $0x2c8] sm:$0xff] }
 0x2cc   :  { %v12833_v17 = vld [vmem:[#allocation2 + $0x80] sm:$0xf0] }
 0x2cd   :  { %1123 = vst.msk [vmem:[#allocation2 + $0xe8] sm:$0xf] %vm1088_vm0, %v1022_v22  ;;  %862 = vmatmul.bf16.gmra.mxu1 %v12792_v15  ;;  %v9217_v24 = vor.u32 %v12833_v17, %v9216_v23  ;;  %v12955_v17 = vld [vmem:[%s19030_s4 + $0x2c0] sm:$0xff] }
 0x2cf   :  { %3256 = vmatmul.bf16.vlgmr.msrb.gmra.mxu0 %v9217_v24 }
 0x2d2   :  { %v825_v16 = vpop.f32.mrf.mxu1  ;;  %v3181_v26 = vpop.f32.mrf.mxu2 }
 0x2d3   :  { %v1023_v28 = vpack.c.bf16 %v825_v16, %v825_v16  ;;  %v3182_v29 = vadd.f32 %v3181_v26, %v3163_v60 }
 0x2d4   :  { %v9316_v37 = vld [vmem:[#allocation2 + $0xe8] sm:$0xf] }
 0x2d5   :  { %1124 = vst.msk [vmem:[#allocation2 + $0x14c] sm:$0xf] %vm1088_vm0, %v1023_v28 }
 0x2da   :  { %v828_v32 = vpop.f32.mrf.mxu1  ;;  %v14356_v33 = vpop.f32.mrf.mxu2 }
 0x2db   :  { %v1024_v36 = vpack.c.bf16 %v828_v32, %v828_v32 }
 0x2dc   :  { %v12858_v38 = vld [vmem:[#allocation2 + $0x148] sm:$0xf0] }
 0x2dd   :  { %1125 = vst.msk [vmem:[#allocation2 + $0x24] sm:$0xf] %vm1088_vm0, %v1024_v36  ;;  %867 = vmatmul.bf16.gmra.mxu1 %v12793_v31  ;;  %v9317_v39 = vor.u32 %v12858_v38, %v9316_v37  ;;  %v12797_v36 = vld [vmem:[%s19029_s3 + $0xf0] sm:$0xff] }
 0x2df   :  { %3261 = vmatmul.bf16.gmra.mxu0 %v9317_v39  ;;  %v12967_v39 = vld [vmem:[%s19030_s4 + $0x320] sm:$0xff] }
 0x2e0   :  { %3327 = vmatpush.bf16.msrb.mxu2 %v12967_v39 }
 0x2e2   :  { %v830_v41 = vpop.f32.mrf.mxu1  ;;  %v3186_v42 = vpop.f32.mrf.mxu2 }
 0x2e3   :  { %v1025_v44 = vpack.c.bf16 %v830_v41, %v830_v41  ;;  %v3187_v45 = vadd.f32 %v3186_v42, %v3168_v13  ;;  %v12957_v13 = vld [vmem:[%s19030_s4 + $0x2d0] sm:$0xff] }
 0x2e4   :  { %v12821_v53 = vld [vmem:[#allocation2 + $0x24] sm:$0xf]  ;;  %3310 = vmatpush.bf16.msra.mxu0 %v12957_v13 }
 0x2e5   :  { %1126 = vst.msk [vmem:[#allocation2 + $0x88] sm:$0xf] %vm1088_vm0, %v1025_v44  ;;  %v12966_v44 = vld [vmem:[%s19030_s4 + $0x318] sm:$0xff] }
 0x2e6   :  { %3328 = vmatpush.bf16.msrb.mxu2 %v12966_v44  ;;  %v12801_v44 = vld [vmem:[%s19029_s3 + $0x110] sm:$0xff] }
 0x2e8   :  { %3311 = vmatpush.bf16.msra.mxu0 %v12956_v20  ;;  %v12974_v20 = vld [vmem:[%s19030_s4 + $0x358] sm:$0xff] }
 0x2ea   :  { %v833_v50 = vpop.f32.mrf.mxu1  ;;  %v14413_v22 = vpop.f32.mrf.mxu2 }
 0x2eb   :  { %v1026_v52 = vpack.c.bf16 %v833_v50, %v833_v50 }
 0x2ec   :  { %v9218_v54 = vld [vmem:[#allocation2 + $0x84] sm:$0xf0]  ;;  %3312 = vmatpush.bf16.msra.mxu0 %v12955_v17 }
 0x2ed   :  { %1127 = vst.msk [vmem:[#allocation2 + $0xec] sm:$0xf] %vm1088_vm0, %v1026_v52  ;;  %872 = vmatmul.bf16.gmra.mxu1 %v12794_v47  ;;  %v9221_v55 = vor.u32 %v12821_v53, %v9218_v54  ;;  %v12965_v47 = vld [vmem:[%s19030_s4 + $0x310] sm:$0xff]  ;;  %v12964_v52 = vld [vmem:[%s19030_s4 + $0x308] sm:$0xff]  ;;  %v12798_v53 = vld [vmem:[%s19029_s3 + $0xf8] sm:$0xff] }
 0x2ee   :  { %3329 = vmatpush.bf16.msrb.mxu2 %v12965_v47  ;;  %v12973_v17 = vld [vmem:[%s19030_s4 + $0x350] sm:$0xff] }
 0x2ef   :  { %3275 = vmatmul.bf16.vlgmr.msra.gmra.mxu2 %v9221_v55 }
 0x2f2   :  { %v835_v57 = vpop.f32.mrf.mxu1  ;;  %v3200_v58 = vpop.f32.mrf.mxu3  ;;  %3330 = vmatpush.bf16.msrb.mxu2 %v12964_v52 }
 0x2f3   :  { %v1027_v60 = vpack.c.bf16 %v835_v57, %v835_v57  ;;  %v3201_v61 = vadd.f32 %v3200_v58, %v3182_v29 }
 0x2f4   :  { %v12846_v7 = vld [vmem:[#allocation2 + $0xec] sm:$0xf] }
 0x2f5   :  { %1128 = vst.msk [vmem:[#allocation2 + $0x150] sm:$0xf] %vm1088_vm0, %v1027_v60 }
 0x2f6   :  { %3331 = vmatpush.bf16.msrb.mxu2 %v12963_v56  ;;  %v12982_v56 = vld [vmem:[%s19030_s4 + $0x398] sm:$0xff] }
 0x2fa   :  { %v838_v3 = vpop.f32.mrf.mxu1  ;;  %v14394_v4 = vpop.f32.mrf.mxu3 }
 0x2fb   :  { %v1028_v6 = vpack.c.bf16 %v838_v3, %v838_v3  ;;  %v12977_v3 = vld [vmem:[%s19030_s4 + $0x370] sm:$0xff] }
 0x2fc   :  { %v9318_v8 = vld [vmem:[#allocation2 + $0x14c] sm:$0xf0] }
 0x2fd   :  { %1129 = vst.msk [vmem:[#allocation2 + $0x28] sm:$0xf] %vm1088_vm0, %v1028_v6  ;;  %877 = vmatmul.bf16.gmra.mxu1 %v12795_v0  ;;  %v9321_v9 = vor.u32 %v12846_v7, %v9318_v8  ;;  %v12976_v7 = vld [vmem:[%s19030_s4 + $0x368] sm:$0xff]  ;;  %v12799_v8 = vld [vmem:[%s19029_s3 + $0x100] sm:$0xff] }
 0x2ff   :  { %3280 = vmatmul.bf16.gmra.mxu2 %v9321_v9 }
 0x302   :  { %v840_v11 = vpop.f32.mrf.mxu1  ;;  %v3205_v12 = vpop.f32.mrf.mxu3 }
 0x303   :  { %v1029_v14 = vpack.c.bf16 %v840_v11, %v840_v11  ;;  %v3206_v15 = vadd.f32 %v3205_v12, %v3187_v45  ;;  %v12975_v11 = vld [vmem:[%s19030_s4 + $0x360] sm:$0xff] }
 0x304   :  { %v9224_v25 = vld [vmem:[#allocation2 + $0x28] sm:$0xf] }
 0x305   :  { %1130 = vst.msk [vmem:[#allocation2 + $0x8c] sm:$0xf] %vm1088_vm0, %v1029_v14 }
 0x30a   :  { %v843_v23 = vpop.f32.mrf.mxu1  ;;  %v14451_v54 = vpop.f32.mrf.mxu3 }
 0x30b   :  { %v1030_v24 = vpack.c.bf16 %v843_v23, %v843_v23 }
 0x30c   :  { %v12834_v16 = vld [vmem:[#allocation2 + $0x88] sm:$0xf0] }
 0x30d   :  { %1131 = vst.msk [vmem:[#allocation2 + $0xf0] sm:$0xf] %vm1088_vm0, %v1030_v24  ;;  %882 = vmatmul.bf16.gmra.mxu1 %v12796_v21  ;;  %v9225_v26 = vor.u32 %v12834_v16, %v9224_v25  ;;  %v12972_v16 = vld [vmem:[%s19030_s4 + $0x348] sm:$0xff] }
 0x30f   :  { %3294 = vmatmul.bf16.vlgmr.msra.gmra.mxu3 %v9225_v26  ;;  %v12800_v26 = vld [vmem:[%s19029_s3 + $0x108] sm:$0xff] }
 0x312   :  { %v845_v28 = vpop.f32.mrf.mxu1  ;;  %v3219_v29 = vpop.f32.mrf.mxu2 }
 0x313   :  { %v1031_v31 = vpack.c.bf16 %v845_v28, %v845_v28  ;;  %v3220_v32 = vadd.f32 %v3219_v29, %v3201_v61  ;;  %v12978_v61 = vld [vmem:[%s19030_s4 + $0x378] sm:$0xff]  ;;  %v12971_v28 = vld [vmem:[%s19030_s4 + $0x340] sm:$0xff] }
 0x314   :  { %v9324_v41 = vld [vmem:[#allocation2 + $0xf0] sm:$0xf]  ;;  %3343 = vmatpush.bf16.msrb.mxu3 %v12978_v61 }
 0x315   :  { %1132 = vst.msk [vmem:[#allocation2 + $0x154] sm:$0xf] %vm1088_vm0, %v1031_v31  ;;  %v12802_v61 = vld [vmem:[%s19029_s3 + $0x118] sm:$0xff] }
 0x318   :  { %3344 = vmatpush.bf16.msrb.mxu3 %v12977_v3  ;;  %v12979_v3 = vld [vmem:[%s19030_s4 + $0x380] sm:$0xff] }
 0x31a   :  { %v848_v37 = vpop.f32.mrf.mxu1  ;;  %v14432_v38 = vpop.f32.mrf.mxu2 }
 0x31b   :  { %v1032_v40 = vpack.c.bf16 %v848_v37, %v848_v37  ;;  %v12986_v37 = vld [vmem:[%s19030_s4 + $0x3b8] sm:$0xff] }
 0x31c   :  { %v12859_v42 = vld [vmem:[#allocation2 + $0x150] sm:$0xf0]  ;;  %3345 = vmatpush.bf16.msrb.mxu3 %v12976_v7  ;;  %3362 = vmatpush.bf16.msrb.mxu0 %v12986_v37  ;;  %v12804_v37 = vld [vmem:[%s19029_s3 + $0x128] sm:$0xff] }
 0x31d   :  { %1133 = vst.msk [vmem:[#allocation2 + $0x2c] sm:$0xf] %vm1088_vm0, %v1032_v40  ;;  %887 = vmatmul.bf16.gmra.mxu1 %v12797_v36  ;;  %v9325_v43 = vor.u32 %v12859_v42, %v9324_v41  ;;  %v12985_v40 = vld [vmem:[%s19030_s4 + $0x3b0] sm:$0xff] }
 0x31f   :  { %3299 = vmatmul.bf16.gmra.mxu3 %v9325_v43  ;;  %v12984_v43 = vld [vmem:[%s19030_s4 + $0x3a8] sm:$0xff] }
 0x320   :  { %3346 = vmatpush.bf16.msrb.mxu3 %v12975_v11  ;;  %3363 = vmatpush.bf16.msrb.mxu0 %v12985_v40 }
 0x322   :  { %v850_v45 = vpop.f32.mrf.mxu1  ;;  %v3224_v46 = vpop.f32.mrf.mxu2 }
 0x323   :  { %v1033_v50 = vpack.c.bf16 %v850_v45, %v850_v45  ;;  %v3225_v51 = vadd.f32 %v3224_v46, %v3206_v15  ;;  %v12983_v46 = vld [vmem:[%s19030_s4 + $0x3a0] sm:$0xff] }
 0x324   :  { %v12822_v58 = vld [vmem:[#allocation2 + $0x2c] sm:$0xf]  ;;  %3347 = vmatpush.bf16.msrb.mxu3 %v12974_v20  ;;  %3364 = vmatpush.bf16.msrb.mxu0 %v12984_v43  ;;  %v12992_v20 = vld [vmem:[%s19030_s4 + $0x3e8] sm:$0xff] }
 0x325   :  { %1134 = vst.msk [vmem:[#allocation2 + $0x90] sm:$0xf] %vm1088_vm0, %v1033_v50 }
 0x328   :  { %3348 = vmatpush.bf16.msrb.mxu3 %v12973_v17  ;;  %3365 = vmatpush.bf16.msrb.mxu0 %v12983_v46 }
 0x32a   :  { %v853_v55 = vpop.f32.mrf.mxu1 }
 0x32b   :  { %v1034_v57 = vpack.c.bf16 %v853_v55, %v853_v55 }
 0x32c   :  { %v9226_v59 = vld [vmem:[#allocation2 + $0x8c] sm:$0xf0]  ;;  %3349 = vmatpush.bf16.msrb.mxu3 %v12972_v16  ;;  %3366 = vmatpush.bf16.msrb.mxu0 %v12982_v56  ;;  %v13000_v56 = vld [vmem:[%s19030_s4 + $0x428] sm:$0xff] }
 0x32d   :  { %1135 = vst.msk [vmem:[#allocation2 + $0xf4] sm:$0xf] %vm1088_vm0, %v1034_v57  ;;  %892 = vmatmul.bf16.gmra.mxu1 %v12798_v53  ;;  %v9229_v60 = vor.u32 %v12822_v58, %v9226_v59  ;;  %v12981_v58 = vld [vmem:[%s19030_s4 + $0x390] sm:$0xff] }
 0x32f   :  { %3313 = vmatmul.bf16.vlgmr.msra.gmra.mxu0 %v9229_v60  ;;  %v12980_v60 = vld [vmem:[%s19030_s4 + $0x388] sm:$0xff] }
 0x330   :  { %3350 = vmatpush.bf16.msrb.mxu3 %v12971_v28  ;;  %3367 = vmatpush.bf16.msrb.mxu0 %v12981_v58  ;;  %v12990_v28 = vld [vmem:[%s19030_s4 + $0x3d8] sm:$0xff] }
 0x332   :  { %v855_v63 = vpop.f32.mrf.mxu1  ;;  %v3238_v0 = vpop.f32.mrf.mxu3 }
 0x333   :  { %v1035_v5 = vpack.c.bf16 %v855_v63, %v855_v63  ;;  %v3239_v6 = vadd.f32 %v3238_v0, %v3220_v32  ;;  %v14525_v63 = vpop.f32.mrf.mxu2 }
 0x334   :  { %v12847_v13 = vld [vmem:[#allocation2 + $0xf4] sm:$0xf]  ;;  %3368 = vmatpush.bf16.msrb.mxu0 %v12980_v60  ;;  %v12999_v60 = vld [vmem:[%s19030_s4 + $0x420] sm:$0xff] }
 0x335   :  { %1136 = vst.msk [vmem:[#allocation2 + $0x158] sm:$0xf] %vm1088_vm0, %v1035_v5 }
 0x338   :  { %3369 = vmatpush.bf16.msrb.mxu0 %v12979_v3 }
 0x33a   :  { %v858_v9 = vpop.f32.mrf.mxu1  ;;  %v14470_v10 = vpop.f32.mrf.mxu3 }
 0x33b   :  { %v1036_v12 = vpack.c.bf16 %v858_v9, %v858_v9  ;;  %v12994_v9 = vld [vmem:[%s19030_s4 + $0x3f8] sm:$0xff] }
 0x33c   :  { %v9326_v14 = vld [vmem:[#allocation2 + $0x154] sm:$0xf0]  ;;  %3381 = vmatpush.bf16.msra.mxu2 %v12994_v9  ;;  %v12997_v9 = vld [vmem:[%s19030_s4 + $0x410] sm:$0xff] }
 0x33d   :  { %1137 = vst.msk [vmem:[#allocation2 + $0x30] sm:$0xf] %vm1088_vm0, %v1036_v12  ;;  %897 = vmatmul.bf16.gmra.mxu1 %v12799_v8  ;;  %v9329_v15 = vor.u32 %v12847_v13, %v9326_v14  ;;  %v12993_v13 = vld [vmem:[%s19030_s4 + $0x3f0] sm:$0xff] }
 0x33f   :  { %3318 = vmatmul.bf16.gmra.mxu0 %v9329_v15 }
 0x340   :  { %3382 = vmatpush.bf16.msra.mxu2 %v12993_v13 }
 0x342   :  { %v860_v21 = vpop.f32.mrf.mxu1  ;;  %v3243_v23 = vpop.f32.mrf.mxu3 }
 0x343   :  { %v1037_v24 = vpack.c.bf16 %v860_v21, %v860_v21  ;;  %v3244_v25 = vadd.f32 %v3243_v23, %v3225_v51  ;;  %v12803_v21 = vld [vmem:[%s19029_s3 + $0x120] sm:$0xff] }
 0x344   :  { %v9232_v31 = vld [vmem:[#allocation2 + $0x30] sm:$0xf]  ;;  %3383 = vmatpush.bf16.msra.mxu2 %v12992_v20 }
 0x345   :  { %1138 = vst.msk [vmem:[#allocation2 + $0x94] sm:$0xf] %vm1088_vm0, %v1037_v24  ;;  %v12991_v24 = vld [vmem:[%s19030_s4 + $0x3e0] sm:$0xff] }
 0x348   :  { %3384 = vmatpush.bf16.msra.mxu2 %v12991_v24 }
 0x34a   :  { %v863_v27 = vpop.f32.mrf.mxu1 }
 0x34b   :  { %v1038_v29 = vpack.c.bf16 %v863_v27, %v863_v27 }
 0x34c   :  { %v3257_v30 = vpop.f32.mrf.mxu0  ;;  %v12835_v32 = vld [vmem:[#allocation2 + $0x90] sm:$0xf0]  ;;  %3385 = vmatpush.bf16.msra.mxu2 %v12990_v28 }
 0x34d   :  { %1139 = vst.msk [vmem:[#allocation2 + $0xf8] sm:$0xf] %vm1088_vm0, %v1038_v29  ;;  %v3258_v35 = vadd.f32 %v3257_v30, %v3239_v6  ;;  %902 = vmatmul.bf16.gmra.mxu1 %v12800_v26  ;;  %v9233_v36 = vor.u32 %v12835_v32, %v9232_v31  ;;  %v12989_v31 = vld [vmem:[%s19030_s4 + $0x3d0] sm:$0xff]  ;;  %v13010_v28 = vld [vmem:[%s19030_s4 + $0x478] sm:$0xff] }
 0x34e   :  { %3419 = vmatpush.bf16.msra.mxu0 %v13010_v28 }
 0x34f   :  { %3332 = vmatmul.bf16.vlgmr.msrb.gmra.mxu2 %v9233_v36  ;;  %v12988_v36 = vld [vmem:[%s19030_s4 + $0x3c8] sm:$0xff] }
 0x350   :  { %3386 = vmatpush.bf16.msra.mxu2 %v12989_v31 }
 0x352   :  { %v865_v39 = vpop.f32.mrf.mxu1 }
 0x353   :  { %v1039_v41 = vpack.c.bf16 %v865_v39, %v865_v39  ;;  %v14563_v39 = vpop.f32.mrf.mxu3 }
 0x354   :  { %v14499_v42 = vpop.f32.mrf.mxu0  ;;  %v9332_v51 = vld [vmem:[#allocation2 + $0xf8] sm:$0xf]  ;;  %3387 = vmatpush.bf16.msra.mxu2 %v12988_v36 }
 0x355   :  { %1140 = vst.msk [vmem:[#allocation2 + $0x15c] sm:$0xf] %vm1088_vm0, %v1039_v41  ;;  %v12987_v41 = vld [vmem:[%s19030_s4 + $0x3c0] sm:$0xff] }
 0x356   :  { %v12807_v36 = vld [vmem:[%s19029_s3 + $0x140] sm:$0xff] }
 0x358   :  { %3388 = vmatpush.bf16.msra.mxu2 %v12987_v41 }
 0x35a   :  { %v868_v45 = vpop.f32.mrf.mxu1 }
 0x35b   :  { %v1040_v47 = vpack.c.bf16 %v868_v45, %v868_v45 }
 0x35c   :  { %v3262_v50 = vpop.f32.mrf.mxu0  ;;  %v12860_v52 = vld [vmem:[#allocation2 + $0x158] sm:$0xf0] }
 0x35d   :  { %1141 = vst.msk [vmem:[#allocation2 + $0x34] sm:$0xf] %vm1088_vm0, %v1040_v47  ;;  %v3263_v53 = vadd.f32 %v3262_v50, %v3244_v25  ;;  %907 = vmatmul.bf16.gmra.mxu1 %v12801_v44  ;;  %v9333_v55 = vor.u32 %v12860_v52, %v9332_v51  ;;  %v13002_v47 = vld [vmem:[%s19030_s4 + $0x438] sm:$0xff]  ;;  %v13001_v52 = vld [vmem:[%s19030_s4 + $0x430] sm:$0xff] }
 0x35e   :  { %3400 = vmatpush.bf16.msra.mxu3 %v13002_v47 }
 0x35f   :  { %3337 = vmatmul.bf16.gmra.mxu2 %v9333_v55 }
 0x362   :  { %v870_v57 = vpop.f32.mrf.mxu1  ;;  %3401 = vmatpush.bf16.msra.mxu3 %v13001_v52  ;;  %v13005_v52 = vld [vmem:[%s19030_s4 + $0x450] sm:$0xff] }
 0x363   :  { %v1041_v59 = vpack.c.bf16 %v870_v57, %v870_v57  ;;  %v12805_v57 = vld [vmem:[%s19029_s3 + $0x130] sm:$0xff] }
 0x364   :  { %v12823_v6 = vld [vmem:[#allocation2 + $0x34] sm:$0xf]  ;;  %v14594_v13 = vpop.f32.mrf.mxu0 }
 0x365   :  { %1142 = vst.msk [vmem:[#allocation2 + $0x98] sm:$0xf] %vm1088_vm0, %v1041_v59 }
 0x366   :  { %3402 = vmatpush.bf16.msra.mxu3 %v13000_v56  ;;  %v12808_v56 = vld [vmem:[%s19029_s3 + $0x148] sm:$0xff] }
 0x36a   :  { %v873_v0 = vpop.f32.mrf.mxu1  ;;  %3403 = vmatpush.bf16.msra.mxu3 %v12999_v60  ;;  %v13003_v60 = vld [vmem:[%s19030_s4 + $0x440] sm:$0xff] }
 0x36b   :  { %v1042_v5 = vpack.c.bf16 %v873_v0, %v873_v0 }
 0x36c   :  { %v9234_v7 = vld [vmem:[#allocation2 + $0x94] sm:$0xf0] }
 0x36d   :  { %1143 = vst.msk [vmem:[#allocation2 + $0xfc] sm:$0xf] %vm1088_vm0, %v1042_v5  ;;  %912 = vmatmul.bf16.gmra.mxu1 %v12802_v61  ;;  %v9237_v8 = vor.u32 %v12823_v6, %v9234_v7  ;;  %v12998_v6 = vld [vmem:[%s19030_s4 + $0x418] sm:$0xff] }
 0x36e   :  { %3404 = vmatpush.bf16.msra.mxu3 %v12998_v6  ;;  %v13018_v6 = vld [vmem:[%s19030_s4 + $0x4b8] sm:$0xff] }
 0x36f   :  { %3351 = vmatmul.bf16.vlgmr.msrb.gmra.mxu3 %v9237_v8  ;;  %3438 = vmatpush.bf16.msrb.mxu2 %v13018_v6 }
 0x372   :  { %v875_v11 = vpop.f32.mrf.mxu1  ;;  %v3276_v12 = vpop.f32.mrf.mxu2  ;;  %3405 = vmatpush.bf16.msra.mxu3 %v12997_v9  ;;  %v13017_v9 = vld [vmem:[%s19030_s4 + $0x4b0] sm:$0xff] }
 0x373   :  { %v1043_v14 = vpack.c.bf16 %v875_v11, %v875_v11  ;;  %v3277_v15 = vadd.f32 %v3276_v12, %v3258_v35  ;;  %3439 = vmatpush.bf16.msrb.mxu2 %v13017_v9  ;;  %v13022_v9 = vld [vmem:[%s19030_s4 + $0x4d8] sm:$0xff] }
 0x374   :  { %v12848_v16 = vld [vmem:[#allocation2 + $0xfc] sm:$0xf] }
 0x375   :  { %1144 = vst.msk [vmem:[#allocation2 + $0x160] sm:$0xf] %vm1088_vm0, %v1043_v14  ;;  %v12996_v14 = vld [vmem:[%s19030_s4 + $0x408] sm:$0xff] }
 0x376   :  { %3406 = vmatpush.bf16.msra.mxu3 %v12996_v14  ;;  %v13016_v14 = vld [vmem:[%s19030_s4 + $0x4a8] sm:$0xff] }
 0x377   :  { %3440 = vmatpush.bf16.msrb.mxu2 %v13016_v14  ;;  %v13021_v14 = vld [vmem:[%s19030_s4 + $0x4d0] sm:$0xff] }
 0x37a   :  { %v878_v23 = vpop.f32.mrf.mxu1  ;;  %v14544_v17 = vpop.f32.mrf.mxu2 }
 0x37b   :  { %v1044_v25 = vpack.c.bf16 %v878_v23, %v878_v23 }
 0x37c   :  { %v9334_v26 = vld [vmem:[#allocation2 + $0x15c] sm:$0xf0] }
 0x37d   :  { %1145 = vst.msk [vmem:[#allocation2 + $0x38] sm:$0xf] %vm1088_vm0, %v1044_v25  ;;  %917 = vmatmul.bf16.gmra.mxu1 %v12803_v21  ;;  %v9337_v27 = vor.u32 %v12848_v16, %v9334_v26  ;;  %v12995_v21 = vld [vmem:[%s19030_s4 + $0x400] sm:$0xff] }
 0x37e   :  { %3407 = vmatpush.bf16.msra.mxu3 %v12995_v21 }
 0x37f   :  { %3356 = vmatmul.bf16.gmra.mxu3 %v9337_v27 }
 0x382   :  { %v880_v29 = vpop.f32.mrf.mxu1  ;;  %v3281_v30 = vpop.f32.mrf.mxu2 }
 0x383   :  { %v1045_v32 = vpack.c.bf16 %v880_v29, %v880_v29  ;;  %v3282_v35 = vadd.f32 %v3281_v30, %v3263_v53  ;;  %v13009_v30 = vld [vmem:[%s19030_s4 + $0x470] sm:$0xff] }
 0x384   :  { %v9240_v44 = vld [vmem:[#allocation2 + $0x38] sm:$0xf]  ;;  %3420 = vmatpush.bf16.msra.mxu0 %v13009_v30  ;;  %v13013_v30 = vld [vmem:[%s19030_s4 + $0x490] sm:$0xff] }
 0x385   :  { %1146 = vst.msk [vmem:[#allocation2 + $0x9c] sm:$0xf] %vm1088_vm0, %v1045_v32 }
 0x38a   :  { %v883_v40 = vpop.f32.mrf.mxu1 }
 0x38b   :  { %v1046_v43 = vpack.c.bf16 %v883_v40, %v883_v40  ;;  %v13007_v40 = vld [vmem:[%s19030_s4 + $0x460] sm:$0xff] }
 0x38c   :  { %v12836_v45 = vld [vmem:[#allocation2 + $0x98] sm:$0xf0] }
 0x38d   :  { %1147 = vst.msk [vmem:[#allocation2 + $0x100] sm:$0xf] %vm1088_vm0, %v1046_v43  ;;  %922 = vmatmul.bf16.gmra.mxu1 %v12804_v37  ;;  %v9241_v46 = vor.u32 %v12836_v45, %v9240_v44 }
 0x38f   :  { %3370 = vmatmul.bf16.vlgmr.msrb.gmra.mxu0 %v9241_v46 }
 0x392   :  { %v885_v50 = vpop.f32.mrf.mxu1  ;;  %v3295_v51 = vpop.f32.mrf.mxu3 }
 0x393   :  { %v1047_v53 = vpack.c.bf16 %v885_v50, %v885_v50  ;;  %v3296_v55 = vadd.f32 %v3295_v51, %v3277_v15  ;;  %v12806_v15 = vld [vmem:[%s19029_s3 + $0x138] sm:$0xff] }
 0x394   :  { %v9340_v0 = vld [vmem:[#allocation2 + $0x100] sm:$0xf]  ;;  %v13006_v50 = vld [vmem:[%s19030_s4 + $0x458] sm:$0xff] }
 0x395   :  { %1148 = vst.msk [vmem:[#allocation2 + $0x164] sm:$0xf] %vm1088_vm0, %v1047_v53 }
 0x39a   :  { %v888_v58 = vpop.f32.mrf.mxu1  ;;  %v14582_v59 = vpop.f32.mrf.mxu3 }
 0x39b   :  { %v1048_v61 = vpack.c.bf16 %v888_v58, %v888_v58 }
 0x39c   :  { %v12861_v3 = vld [vmem:[#allocation2 + $0x160] sm:$0xf0] }
 0x39d   :  { %1149 = vst.msk [vmem:[#allocation2 + $0x3c] sm:$0xf] %vm1088_vm0, %v1048_v61  ;;  %927 = vmatmul.bf16.gmra.mxu1 %v12805_v57  ;;  %v9341_v5 = vor.u32 %v12861_v3, %v9340_v0  ;;  %v14639_v57 = vpop.f32.mrf.mxu2 }
 0x39f   :  { %3375 = vmatmul.bf16.gmra.mxu0 %v9341_v5 }
 0x3a2   :  { %v890_v7 = vpop.f32.mrf.mxu1  ;;  %v3300_v8 = vpop.f32.mrf.mxu3 }
 0x3a3   :  { %v1049_v11 = vpack.c.bf16 %v890_v7, %v890_v7  ;;  %v3301_v12 = vadd.f32 %v3300_v8, %v3282_v35  ;;  %v13008_v35 = vld [vmem:[%s19030_s4 + $0x468] sm:$0xff] }
 0x3a4   :  { %v12824_v25 = vld [vmem:[#allocation2 + $0x3c] sm:$0xf]  ;;  %3421 = vmatpush.bf16.msra.mxu0 %v13008_v35 }
 0x3a5   :  { %1150 = vst.msk [vmem:[#allocation2 + $0xa0] sm:$0xf] %vm1088_vm0, %v1049_v11 }
 0x3a8   :  { %3422 = vmatpush.bf16.msra.mxu0 %v13007_v40 }
 0x3aa   :  { %v893_v20 = vpop.f32.mrf.mxu1  ;;  %v14677_v40 = vpop.f32.mrf.mxu3 }
 0x3ab   :  { %v1050_v23 = vpack.c.bf16 %v893_v20, %v893_v20 }
 0x3ac   :  { %v3314_v24 = vpop.f32.mrf.mxu0  ;;  %v9242_v16 = vld [vmem:[#allocation2 + $0x9c] sm:$0xf0]  ;;  %3423 = vmatpush.bf16.msra.mxu0 %v13006_v50  ;;  %v13026_v50 = vld [vmem:[%s19030_s4 + $0x4f8] sm:$0xff] }
 0x3ad   :  { %1151 = vst.msk [vmem:[#allocation2 + $0x104] sm:$0xf] %vm1088_vm0, %v1050_v23  ;;  %v3315_v26 = vadd.f32 %v3314_v24, %v3296_v55  ;;  %932 = vmatmul.bf16.gmra.mxu1 %v12806_v15  ;;  %v9245_v27 = vor.u32 %v12824_v25, %v9242_v16  ;;  %v13004_v55 = vld [vmem:[%s19030_s4 + $0x448] sm:$0xff]  ;;  %v12809_v15 = vld [vmem:[%s19029_s3 + $0x150] sm:$0xff]  ;;  %v13015_v23 = vld [vmem:[%s19030_s4 + $0x4a0] sm:$0xff]  ;;  %3457 = vmatpush.bf16.msrb.mxu3 %v13026_v50 }
 0x3ae   :  { %3441 = vmatpush.bf16.msrb.mxu2 %v13015_v23  ;;  %v13031_v50 = vld [vmem:[%s19030_s4 + $0x520] sm:$0xff] }
 0x3af   :  { %3389 = vmatmul.bf16.vlgmr.msra.gmra.mxu2 %v9245_v27  ;;  %v13014_v27 = vld [vmem:[%s19030_s4 + $0x498] sm:$0xff] }
 0x3b0   :  { %3424 = vmatpush.bf16.msra.mxu0 %v13005_v52 }
 0x3b2   :  { %v895_v29 = vpop.f32.mrf.mxu1  ;;  %3442 = vmatpush.bf16.msrb.mxu2 %v13014_v27 }
 0x3b3   :  { %v1051_v31 = vpack.c.bf16 %v895_v29, %v895_v29 }
 0x3b4   :  { %v14613_v32 = vpop.f32.mrf.mxu0  ;;  %v12849_v44 = vld [vmem:[#allocation2 + $0x104] sm:$0xf]  ;;  %3425 = vmatpush.bf16.msra.mxu0 %v13004_v55 }
 0x3b5   :  { %1152 = vst.msk [vmem:[#allocation2 + $0x168] sm:$0xf] %vm1088_vm0, %v1051_v31 }
 0x3b6   :  { %3443 = vmatpush.bf16.msrb.mxu2 %v13013_v30 }
 0x3b8   :  { %3426 = vmatpush.bf16.msra.mxu0 %v13003_v60  ;;  %v12811_v60 = vld [vmem:[%s19029_s3 + $0x160] sm:$0xff] }
 0x3ba   :  { %v898_v37 = vpop.f32.mrf.mxu1 }
 0x3bb   :  { %v1052_v41 = vpack.c.bf16 %v898_v37, %v898_v37  ;;  %v12810_v37 = vld [vmem:[%s19029_s3 + $0x158] sm:$0xff] }
 0x3bc   :  { %v3319_v43 = vpop.f32.mrf.mxu0  ;;  %v9342_v45 = vld [vmem:[#allocation2 + $0x164] sm:$0xf0] }
 0x3bd   :  { %1153 = vst.msk [vmem:[#allocation2 + $0x40] sm:$0xf] %vm1088_vm0, %v1052_v41  ;;  %v3320_v46 = vadd.f32 %v3319_v43, %v3301_v12  ;;  %937 = vmatmul.bf16.gmra.mxu1 %v12807_v36  ;;  %v9345_v47 = vor.u32 %v12849_v44, %v9342_v45  ;;  %v13012_v36 = vld [vmem:[%s19030_s4 + $0x488] sm:$0xff]  ;;  %v13011_v43 = vld [vmem:[%s19030_s4 + $0x480] sm:$0xff] }
 0x3be   :  { %3444 = vmatpush.bf16.msrb.mxu2 %v13012_v36  ;;  %v13034_v36 = vld [vmem:[%s19030_s4 + $0x538] sm:$0xff] }
 0x3bf   :  { %3394 = vmatmul.bf16.gmra.mxu2 %v9345_v47  ;;  %3476 = vmatpush.bf16.msrb.mxu0 %v13034_v36 }
 0x3c2   :  { %v900_v51 = vpop.f32.mrf.mxu1  ;;  %3445 = vmatpush.bf16.msrb.mxu2 %v13011_v43 }
 0x3c3   :  { %v1053_v53 = vpack.c.bf16 %v900_v51, %v900_v51 }
 0x3c4   :  { %v9248_v0 = vld [vmem:[#allocation2 + $0x40] sm:$0xf]  ;;  %v14708_v23 = vpop.f32.mrf.mxu0 }
 0x3c5   :  { %1154 = vst.msk [vmem:[#allocation2 + $0xa4] sm:$0xf] %vm1088_vm0, %v1053_v53  ;;  %v13025_v53 = vld [vmem:[%s19030_s4 + $0x4f0] sm:$0xff] }
 0x3c6   :  { %3458 = vmatpush.bf16.msrb.mxu3 %v13025_v53 }
 0x3ca   :  { %v903_v58 = vpop.f32.mrf.mxu1 }
 0x3cb   :  { %v1054_v61 = vpack.c.bf16 %v903_v58, %v903_v58  ;;  %v13024_v58 = vld [vmem:[%s19030_s4 + $0x4e8] sm:$0xff] }
 0x3cc   :  { %v12837_v3 = vld [vmem:[#allocation2 + $0xa0] sm:$0xf0]  ;;  %3459 = vmatpush.bf16.msrb.mxu3 %v13024_v58 }
 0x3cd   :  { %1155 = vst.msk [vmem:[#allocation2 + $0x108] sm:$0xf] %vm1088_vm0, %v1054_v61  ;;  %942 = vmatmul.bf16.gmra.mxu1 %v12808_v56  ;;  %v9249_v5 = vor.u32 %v12837_v3, %v9248_v0  ;;  %v13023_v3 = vld [vmem:[%s19030_s4 + $0x4e0] sm:$0xff] }
 0x3cf   :  { %3408 = vmatmul.bf16.vlgmr.msra.gmra.mxu3 %v9249_v5 }
 0x3d0   :  { %3460 = vmatpush.bf16.msrb.mxu3 %v13023_v3  ;;  %v13029_v3 = vld [vmem:[%s19030_s4 + $0x510] sm:$0xff] }
 0x3d2   :  { %v905_v7 = vpop.f32.mrf.mxu1  ;;  %v3333_v8 = vpop.f32.mrf.mxu2 }
 0x3d3   :  { %v1055_v11 = vpack.c.bf16 %v905_v7, %v905_v7  ;;  %v3334_v12 = vadd.f32 %v3333_v8, %v3315_v26 }
 0x3d4   :  { %v9348_v25 = vld [vmem:[#allocation2 + $0x108] sm:$0xf]  ;;  %3461 = vmatpush.bf16.msrb.mxu3 %v13022_v9 }
 0x3d5   :  { %1156 = vst.msk [vmem:[#allocation2 + $0x16c] sm:$0xf] %vm1088_vm0, %v1055_v11 }
 0x3d8   :  { %3462 = vmatpush.bf16.msrb.mxu3 %v13021_v14 }
 0x3da   :  { %v908_v20 = vpop.f32.mrf.mxu1  ;;  %v14658_v21 = vpop.f32.mrf.mxu2 }
 0x3db   :  { %v1056_v24 = vpack.c.bf16 %v908_v20, %v908_v20 }
 0x3dc   :  { %v12862_v16 = vld [vmem:[#allocation2 + $0x168] sm:$0xf0] }
 0x3dd   :  { %1157 = vst.msk [vmem:[#allocation2 + $0x44] sm:$0xf] %vm1088_vm0, %v1056_v24  ;;  %947 = vmatmul.bf16.gmra.mxu1 %v12809_v15  ;;  %v9349_v26 = vor.u32 %v12862_v16, %v9348_v25  ;;  %v13020_v24 = vld [vmem:[%s19030_s4 + $0x4c8] sm:$0xff] }
 0x3de   :  { %3463 = vmatpush.bf16.msrb.mxu3 %v13020_v24  ;;  %v12812_v25 = vld [vmem:[%s19029_s3 + $0x168] sm:$0xff]  ;;  %v13042_v24 = vld [vmem:[%s19030_s4 + $0x578] sm:$0xff] }
 0x3df   :  { %3413 = vmatmul.bf16.gmra.mxu3 %v9349_v26  ;;  %v13019_v26 = vld [vmem:[%s19030_s4 + $0x4c0] sm:$0xff]  ;;  %3495 = vmatpush.bf16.msra.mxu2 %v13042_v24  ;;  %v13048_v24 = vld [vmem:[%s19030_s4 + $0x5a8] sm:$0xff] }
 0x3e2   :  { %v910_v28 = vpop.f32.mrf.mxu1  ;;  %v3338_v29 = vpop.f32.mrf.mxu2  ;;  %3464 = vmatpush.bf16.msrb.mxu3 %v13019_v26  ;;  %v13041_v26 = vld [vmem:[%s19030_s4 + $0x570] sm:$0xff] }
 0x3e3   :  { %v1057_v31 = vpack.c.bf16 %v910_v28, %v910_v28  ;;  %v3339_v35 = vadd.f32 %v3338_v29, %v3320_v46  ;;  %3496 = vmatpush.bf16.msra.mxu2 %v13041_v26 }
 0x3e4   :  { %v12825_v45 = vld [vmem:[#allocation2 + $0x44] sm:$0xf] }
 0x3e5   :  { %1158 = vst.msk [vmem:[#allocation2 + $0xa8] sm:$0xf] %vm1088_vm0, %v1057_v31 }
 0x3ea   :  { %v913_v41 = vpop.f32.mrf.mxu1 }
 0x3eb   :  { %v1058_v44 = vpack.c.bf16 %v913_v41, %v913_v41  ;;  %v13033_v41 = vld [vmem:[%s19030_s4 + $0x530] sm:$0xff] }
 0x3ec   :  { %v9250_v46 = vld [vmem:[#allocation2 + $0xa4] sm:$0xf0]  ;;  %3477 = vmatpush.bf16.msrb.mxu0 %v13033_v41 }
 0x3ed   :  { %1159 = vst.msk [vmem:[#allocation2 + $0x10c] sm:$0xf] %vm1088_vm0, %v1058_v44  ;;  %952 = vmatmul.bf16.gmra.mxu1 %v12810_v37  ;;  %v9253_v47 = vor.u32 %v12825_v45, %v9250_v46  ;;  %v13032_v45 = vld [vmem:[%s19030_s4 + $0x528] sm:$0xff]  ;;  %v12813_v46 = vld [vmem:[%s19029_s3 + $0x170] sm:$0xff] }
 0x3ef   :  { %3427 = vmatmul.bf16.vlgmr.msra.gmra.mxu0 %v9253_v47 }
 0x3f0   :  { %3478 = vmatpush.bf16.msrb.mxu0 %v13032_v45 }
 0x3f2   :  { %v915_v51 = vpop.f32.mrf.mxu1  ;;  %v3352_v52 = vpop.f32.mrf.mxu3 }
 0x3f3   :  { %v1059_v55 = vpack.c.bf16 %v915_v51, %v915_v51  ;;  %v3353_v56 = vadd.f32 %v3352_v52, %v3334_v12 }
 0x3f4   :  { %v12850_v6 = vld [vmem:[#allocation2 + $0x10c] sm:$0xf]  ;;  %3479 = vmatpush.bf16.msrb.mxu0 %v13031_v50 }
 0x3f5   :  { %1160 = vst.msk [vmem:[#allocation2 + $0x170] sm:$0xf] %vm1088_vm0, %v1059_v55 }
 0x3fa   :  { %v918_v61 = vpop.f32.mrf.mxu1  ;;  %v14696_v0 = vpop.f32.mrf.mxu3 }
 0x3fb   :  { %v1060_v5 = vpack.c.bf16 %v918_v61, %v918_v61 }
 0x3fc   :  { %v9350_v7 = vld [vmem:[#allocation2 + $0x16c] sm:$0xf0] }
 0x3fd   :  { %1161 = vst.msk [vmem:[#allocation2 + $0x48] sm:$0xf] %vm1088_vm0, %v1060_v5  ;;  %957 = vmatmul.bf16.gmra.mxu1 %v12811_v60  ;;  %v9353_v8 = vor.u32 %v12850_v6, %v9350_v7  ;;  %v13030_v60 = vld [vmem:[%s19030_s4 + $0x518] sm:$0xff]  ;;  %v13028_v6 = vld [vmem:[%s19030_s4 + $0x508] sm:$0xff] }
 0x3fe   :  { %3480 = vmatpush.bf16.msrb.mxu0 %v13030_v60  ;;  %v12814_v7 = vld [vmem:[%s19029_s3 + $0x178] sm:$0xff] }
 0x3ff   :  { %3432 = vmatmul.bf16.gmra.mxu0 %v9353_v8  ;;  %v14753_v8 = vpop.f32.mrf.mxu2 }
 0x402   :  { %v920_v11 = vpop.f32.mrf.mxu1  ;;  %v3357_v12 = vpop.f32.mrf.mxu3  ;;  %3481 = vmatpush.bf16.msrb.mxu0 %v13029_v3 }
 0x403   :  { %v1061_v15 = vpack.c.bf16 %v920_v11, %v920_v11  ;;  %v3358_v20 = vadd.f32 %v3357_v12, %v3339_v35  ;;  %v13027_v11 = vld [vmem:[%s19030_s4 + $0x500] sm:$0xff] }
 0x404   :  { %v9256_v29 = vld [vmem:[#allocation2 + $0x48] sm:$0xf] }
 0x405   :  { %1162 = vst.msk [vmem:[#allocation2 + $0xac] sm:$0xf] %vm1088_vm0, %v1061_v15 }
 0x406   :  { %3482 = vmatpush.bf16.msrb.mxu0 %v13028_v6 }
 0x40a   :  { %v923_v16 = vpop.f32.mrf.mxu1  ;;  %3483 = vmatpush.bf16.msrb.mxu0 %v13027_v11  ;;  %v14793_v60 = vpop.f32.mrf.mxu3 }
 0x40b   :  { %v1062_v27 = vpack.c.bf16 %v923_v16, %v923_v16 }
 0x40c   :  { %v3371_v28 = vpop.f32.mrf.mxu0  ;;  %v12838_v30 = vld [vmem:[#allocation2 + $0xa8] sm:$0xf0] }
 0x40d   :  { %1163 = vst.msk [vmem:[#allocation2 + $0x110] sm:$0xf] %vm1088_vm0, %v1062_v27  ;;  %v3372_v31 = vadd.f32 %v3371_v28, %v3353_v56  ;;  %962 = vmatmul.bf16.gmra.mxu1 %v12812_v25  ;;  %v9257_v35 = vor.u32 %v12838_v30, %v9256_v29  ;;  %v13040_v29 = vld [vmem:[%s19030_s4 + $0x568] sm:$0xff]  ;;  %v12815_v30 = vld [vmem:[%s19029_s3 + $0x180] sm:$0xff] }
 0x40e   :  { %3497 = vmatpush.bf16.msra.mxu2 %v13040_v29 }
 0x40f   :  { %3446 = vmatmul.bf16.vlgmr.msrb.gmra.mxu2 %v9257_v35 }
 0x412   :  { %v925_v37 = vpop.f32.mrf.mxu1 }
 0x413   :  { %v1063_v43 = vpack.c.bf16 %v925_v37, %v925_v37  ;;  %v13039_v37 = vld [vmem:[%s19030_s4 + $0x560] sm:$0xff] }
 0x414   :  { %v14727_v44 = vpop.f32.mrf.mxu0  ;;  %v9356_v53 = vld [vmem:[#allocation2 + $0x110] sm:$0xf]  ;;  %3498 = vmatpush.bf16.msra.mxu2 %v13039_v37  ;;  %v13045_v37 = vld [vmem:[%s19030_s4 + $0x590] sm:$0xff] }
 0x415   :  { %1164 = vst.msk [vmem:[#allocation2 + $0x174] sm:$0xf] %vm1088_vm0, %v1063_v43 }
 0x41a   :  { %v928_v47 = vpop.f32.mrf.mxu1 }
 0x41b   :  { %v1064_v51 = vpack.c.bf16 %v928_v47, %v928_v47 }
 0x41c   :  { %v3376_v52 = vpop.f32.mrf.mxu0  ;;  %v12863_v55 = vld [vmem:[#allocation2 + $0x170] sm:$0xf0] }
 0x41d   :  { %1165 = vst.msk [vmem:[#allocation2 + $0x4c] sm:$0xf] %vm1088_vm0, %v1064_v51  ;;  %v3377_v56 = vadd.f32 %v3376_v52, %v3358_v20  ;;  %967 = vmatmul.bf16.gmra.mxu1 %v12813_v46  ;;  %v9357_v58 = vor.u32 %v12863_v55, %v9356_v53  ;;  %v13038_v46 = vld [vmem:[%s19030_s4 + $0x558] sm:$0xff]  ;;  %v13037_v51 = vld [vmem:[%s19030_s4 + $0x550] sm:$0xff]  ;;  %v13036_v55 = vld [vmem:[%s19030_s4 + $0x548] sm:$0xff] }
 0x41e   :  { %3499 = vmatpush.bf16.msra.mxu2 %v13038_v46  ;;  %v13043_v46 = vld [vmem:[%s19030_s4 + $0x580] sm:$0xff] }
 0x41f   :  { %3451 = vmatmul.bf16.gmra.mxu2 %v9357_v58  ;;  %v12816_v58 = vld [vmem:[%s19029_s3 + $0x188] sm:$0xff] }
 0x422   :  { %v930_v61 = vpop.f32.mrf.mxu1  ;;  %3500 = vmatpush.bf16.msra.mxu2 %v13037_v51 }
 0x423   :  { %v1065_v5 = vpack.c.bf16 %v930_v61, %v930_v61 }
 0x424   :  { %v12826_v14 = vld [vmem:[#allocation2 + $0x4c] sm:$0xf] }
 0x425   :  { %1166 = vst.msk [vmem:[#allocation2 + $0xb0] sm:$0xf] %vm1088_vm0, %v1065_v5 }
 0x426   :  { %3501 = vmatpush.bf16.msra.mxu2 %v13036_v55 }
 0x42a   :  { %v933_v9 = vpop.f32.mrf.mxu1 }
 0x42b   :  { %v1066_v12 = vpack.c.bf16 %v933_v9, %v933_v9  ;;  %v13050_v9 = vld [vmem:[%s19030_s4 + $0x5b8] sm:$0xff] }
 0x42c   :  { %v9258_v15 = vld [vmem:[#allocation2 + $0xac] sm:$0xf0]  ;;  %3514 = vmatpush.bf16.msra.mxu3 %v13050_v9  ;;  %v13055_v9 = vld [vmem:[%s19030_s4 + $0x5e0] sm:$0xff] }
 0x42d   :  { %1167 = vst.msk [vmem:[#allocation2 + $0x114] sm:$0xf] %vm1088_vm0, %v1066_v12  ;;  %972 = vmatmul.bf16.gmra.mxu1 %v12814_v7  ;;  %v9261_v20 = vor.u32 %v12826_v14, %v9258_v15  ;;  %v13049_v14 = vld [vmem:[%s19030_s4 + $0x5b0] sm:$0xff] }
 0x42f   :  { %3465 = vmatmul.bf16.vlgmr.msrb.gmra.mxu3 %v9261_v20 }
 0x430   :  { %3515 = vmatpush.bf16.msra.mxu3 %v13049_v14 }
 0x432   :  { %v935_v25 = vpop.f32.mrf.mxu1  ;;  %v3390_v16 = vpop.f32.mrf.mxu2 }
 0x433   :  { %v1067_v27 = vpack.c.bf16 %v935_v25, %v935_v25  ;;  %v3391_v28 = vadd.f32 %v3390_v16, %v3372_v31  ;;  %v13047_v16 = vld [vmem:[%s19030_s4 + $0x5a0] sm:$0xff] }
 0x434   :  { %v12851_v41 = vld [vmem:[#allocation2 + $0x114] sm:$0xf]  ;;  %3516 = vmatpush.bf16.msra.mxu3 %v13048_v24 }
 0x435   :  { %1168 = vst.msk [vmem:[#allocation2 + $0x178] sm:$0xf] %vm1088_vm0, %v1067_v27 }
 0x438   :  { %3517 = vmatpush.bf16.msra.mxu3 %v13047_v16 }
 0x43a   :  { %v938_v35 = vpop.f32.mrf.mxu1  ;;  %v14772_v36 = vpop.f32.mrf.mxu2 }
 0x43b   :  { %v1068_v31 = vpack.c.bf16 %v938_v35, %v938_v35 }
 0x43c   :  { %v9358_v43 = vld [vmem:[#allocation2 + $0x174] sm:$0xf0] }
 0x43d   :  { %1169 = vst.msk [vmem:[#allocation2 + $0x50] sm:$0xf] %vm1088_vm0, %v1068_v31  ;;  %977 = vmatmul.bf16.gmra.mxu1 %v12815_v30  ;;  %v9361_v45 = vor.u32 %v12851_v41, %v9358_v43  ;;  %v13046_v30 = vld [vmem:[%s19030_s4 + $0x598] sm:$0xff]  ;;  %v14819_v41 = vpop.f32.mrf.mxu0  ;;  %v13044_v43 = vld [vmem:[%s19030_s4 + $0x588] sm:$0xff] }
 0x43e   :  { %3518 = vmatpush.bf16.msra.mxu3 %v13046_v30 }
 0x43f   :  { %3470 = vmatmul.bf16.gmra.mxu3 %v9361_v45 }
 0x442   :  { %v940_v47 = vpop.f32.mrf.mxu1  ;;  %v3395_v50 = vpop.f32.mrf.mxu2  ;;  %3519 = vmatpush.bf16.msra.mxu3 %v13045_v37 }
 0x443   :  { %v1069_v52 = vpack.c.bf16 %v940_v47, %v940_v47  ;;  %v14784_v53 = vadd.f32 %v3395_v50, %v3377_v56  ;;  %v13035_v56 = vld [vmem:[%s19030_s4 + $0x540] sm:$0xff] }
 0x444   :  { %v9264_v5 = vld [vmem:[#allocation2 + $0x50] sm:$0xf]  ;;  %3502 = vmatpush.bf16.msra.mxu2 %v13035_v56 }
 0x445   :  { %1170 = vst.msk [vmem:[#allocation2 + $0xb4] sm:$0xf] %vm1088_vm0, %v1069_v52 }
 0x446   :  { %3520 = vmatpush.bf16.msra.mxu3 %v13044_v43  ;;  %v13066_v43 = vld [vmem:[%s19030_s4 + $0x638] sm:$0xff] }
 0x448   :  { %3552 = vmatpush.bf16.msrb.mxu2 %v13066_v43 }
 0x44a   :  { %v943_v61 = vpop.f32.mrf.mxu1  ;;  %3521 = vmatpush.bf16.msra.mxu3 %v13043_v46 }
 0x44b   :  { %v1070_v3 = vpack.c.bf16 %v943_v61, %v943_v61  ;;  %v13058_v61 = vld [vmem:[%s19030_s4 + $0x5f8] sm:$0xff] }
 0x44c   :  { %v12839_v6 = vld [vmem:[#allocation2 + $0xb0] sm:$0xf0]  ;;  %3533 = vmatpush.bf16.msra.mxu0 %v13058_v61 }
 0x44d   :  { %1171 = vst.msk [vmem:[#allocation2 + $0x118] sm:$0xf] %vm1088_vm0, %v1070_v3  ;;  %982 = vmatmul.bf16.gmra.mxu1 %v12816_v58  ;;  %v9265_v7 = vor.u32 %v12839_v6, %v9264_v5  ;;  %v13057_v3 = vld [vmem:[%s19030_s4 + $0x5f0] sm:$0xff]  ;;  %v13056_v6 = vld [vmem:[%s19030_s4 + $0x5e8] sm:$0xff] }
 0x44f   :  { %3484 = vmatmul.bf16.vlgmr.msrb.gmra.mxu0 %v9265_v7 }
 0x450   :  { %3534 = vmatpush.bf16.msra.mxu0 %v13057_v3  ;;  %v13063_v3 = vld [vmem:[%s19030_s4 + $0x620] sm:$0xff] }
 0x452   :  { %v945_v11 = vpop.f32.mrf.mxu1  ;;  %v3409_v12 = vpop.f32.mrf.mxu3 }
 0x453   :  { %v1071_v15 = vpack.c.bf16 %v945_v11, %v945_v11  ;;  %v3410_v20 = vadd.f32 %v3409_v12, %v3391_v28 }
 0x454   :  { %v9364_v27 = vld [vmem:[#allocation2 + $0x118] sm:$0xf]  ;;  %3535 = vmatpush.bf16.msra.mxu0 %v13056_v6 }
 0x455   :  { %1172 = vst.msk [vmem:[#allocation2 + $0x17c] sm:$0xf] %vm1088_vm0, %v1071_v15 }
 0x458   :  { %3536 = vmatpush.bf16.msra.mxu0 %v13055_v9 }
 0x45a   :  { %v948_v25 = vpop.f32.mrf.mxu1 }
 0x45b   :  { %v1072_v26 = vpack.c.bf16 %v948_v25, %v948_v25  ;;  %v13053_v25 = vld [vmem:[%s19030_s4 + $0x5d0] sm:$0xff] }
 0x45c   :  { %v12864_v29 = vld [vmem:[#allocation2 + $0x178] sm:$0xf0] }
 0x45d   :  { %1173 = vst.msk [vmem:[#allocation2 + $0x54] sm:$0xf] %vm1088_vm0, %v1072_v26  ;;  %v9365_v28 = vor.u32 %v12864_v29, %v9364_v27  ;;  %v13052_v26 = vld [vmem:[%s19030_s4 + $0x5c8] sm:$0xff]  ;;  %v14853_v27 = vpop.f32.mrf.mxu2 }
 0x45f   :  { %3489 = vmatmul.bf16.gmra.mxu0 %v9365_v28  ;;  %v13051_v28 = vld [vmem:[%s19030_s4 + $0x5c0] sm:$0xff] }
 0x462   :  { %v950_v35 = vpop.f32.mrf.mxu1 }
 0x463   :  { %v1073_v31 = vpack.c.bf16 %v950_v35, %v950_v35 }
 0x464   :  { %v12827_v51 = vld [vmem:[#allocation2 + $0x54] sm:$0xf] }
 0x465   :  { %1174 = vst.msk [vmem:[#allocation2 + $0xb8] sm:$0xf] %vm1088_vm0, %v1073_v31 }
 0x46a   :  { %v953_v45 = vpop.f32.mrf.mxu1 }
 0x46b   :  { %v1074_v47 = vpack.c.bf16 %v953_v45, %v953_v45 }
 0x46c   :  { %v3428_v50 = vpop.f32.mrf.mxu0  ;;  %v9266_v52 = vld [vmem:[#allocation2 + $0xb4] sm:$0xf0] }
 0x46d   :  { %1175 = vst.msk [vmem:[#allocation2 + $0x11c] sm:$0xf] %vm1088_vm0, %v1074_v47  ;;  %v3429_v55 = vadd.f32 %v3428_v50, %v3410_v20  ;;  %v9269_v58 = vor.u32 %v12827_v51, %v9266_v52  ;;  %v13054_v20 = vld [vmem:[%s19030_s4 + $0x5d8] sm:$0xff]  ;;  %v13065_v47 = vld [vmem:[%s19030_s4 + $0x630] sm:$0xff] }
 0x46e   :  { %3537 = vmatpush.bf16.msra.mxu0 %v13054_v20  ;;  %3553 = vmatpush.bf16.msrb.mxu2 %v13065_v47  ;;  %v13349_v52 = vld [vmem:[%s19031_s6 + $0x874] sm:$0xf]  ;;  %v13060_v20 = vld [vmem:[%s19030_s4 + $0x608] sm:$0xff] }
 0x46f   :  { %3503 = vmatmul.bf16.vlgmr.msra.gmra.mxu2 %v9269_v58  ;;  %v11327_v58 = vld [vmem:[%s19031_s6 + $0x878] sm:$0xf0] }
 0x470   :  { %v11330_v61 = vor.u32 %v13349_v52, %v11327_v58 }
 0x472   :  { %v955_v56 = vpop.f32.mrf.mxu1  ;;  %3538 = vmatpush.bf16.msra.mxu0 %v13053_v25  ;;  %6876 = vmatpush.bf16.msrb.mxu1 %v11330_v61  ;;  %v13059_v25 = vld [vmem:[%s19030_s4 + $0x600] sm:$0xff] }
 0x473   :  { %v1075_v5 = vpack.c.bf16 %v955_v56, %v955_v56  ;;  %v13064_v56 = vld [vmem:[%s19030_s4 + $0x628] sm:$0xff] }
 0x474   :  { %v12852_v12 = vld [vmem:[#allocation2 + $0x11c] sm:$0xf]  ;;  %3554 = vmatpush.bf16.msrb.mxu2 %v13064_v56 }
 0x475   :  { %1176 = vst.msk [vmem:[#allocation2 + $0x180] sm:$0xf] %vm1088_vm0, %v1075_v5 }
 0x476   :  { %3539 = vmatpush.bf16.msra.mxu0 %v13052_v26 }
 0x478   :  { %3555 = vmatpush.bf16.msrb.mxu2 %v13063_v3 }
 0x47a   :  { %v958_v7 = vpop.f32.mrf.mxu1  ;;  %3540 = vmatpush.bf16.msra.mxu0 %v13051_v28 }
 0x47b   :  { %v1076_v11 = vpack.c.bf16 %v958_v7, %v958_v7 }
 0x47c   :  { %v9366_v14 = vld [vmem:[#allocation2 + $0x17c] sm:$0xf0] }
 0x47d   :  { %1177 = vst.msk [vmem:[#allocation2 + $0x58] sm:$0xf] %vm1088_vm0, %v1076_v11  ;;  %v9369_v15 = vor.u32 %v12852_v12, %v9366_v14  ;;  %v13062_v11 = vld [vmem:[%s19030_s4 + $0x618] sm:$0xff]  ;;  %v13061_v14 = vld [vmem:[%s19030_s4 + $0x610] sm:$0xff] }
 0x47e   :  { %3556 = vmatpush.bf16.msrb.mxu2 %v13062_v11  ;;  %v13347_v11 = vld [vmem:[%s19031_s6 + $0x864] sm:$0xf] }
 0x47f   :  { %3508 = vmatmul.bf16.gmra.mxu2 %v9369_v15 }
 0x482   :  { %v960_v24 = vpop.f32.mrf.mxu1  ;;  %3557 = vmatpush.bf16.msrb.mxu2 %v13061_v14 }
 0x483   :  { %v1077_v16 = vpack.c.bf16 %v960_v24, %v960_v24 }
 0x484   :  { %v9272_v35 = vld [vmem:[#allocation2 + $0x58] sm:$0xf] }
 0x485   :  { %1178 = vst.msk [vmem:[#allocation2 + $0xbc] sm:$0xf] %vm1088_vm0, %v1077_v16 }
 0x486   :  { %3558 = vmatpush.bf16.msrb.mxu2 %v13060_v20  ;;  %v14906_v20 = vpop.f32.mrf.mxu0 }
 0x48a   :  { %v963_v29 = vpop.f32.mrf.mxu1  ;;  %3559 = vmatpush.bf16.msrb.mxu2 %v13059_v25 }
 0x48b   :  { %v1078_v30 = vpack.c.bf16 %v963_v29, %v963_v29 }
 0x48c   :  { %v12840_v37 = vld [vmem:[#allocation2 + $0xb8] sm:$0xf0] }
 0x48d   :  { %1179 = vst.msk [vmem:[#allocation2 + $0x120] sm:$0xf] %vm1088_vm0, %v1078_v30  ;;  %v9273_v31 = vor.u32 %v12840_v37, %v9272_v35 }
 0x48e   :  { %v3433_v25 = vpop.f32.mrf.mxu0 }
 0x48f   :  { %3522 = vmatmul.bf16.vlgmr.msra.gmra.mxu3 %v9273_v31 }
 0x492   :  { %v965_v45 = vpop.f32.mrf.mxu1  ;;  %v3447_v46 = vpop.f32.mrf.mxu2 }
 0x493   :  { %v1079_v50 = vpack.c.bf16 %v965_v45, %v965_v45  ;;  %v14865_v51 = vadd.f32 %v3447_v46, %v3429_v55 }
 0x494   :  { %v9372_v6 = vld [vmem:[#allocation2 + $0x120] sm:$0xf] }
 0x495   :  { %1180 = vst.msk [vmem:[#allocation2 + $0x184] sm:$0xf] %vm1088_vm0, %v1079_v50 }
 0x49a   :  { %v968_v55 = vpop.f32.mrf.mxu1 }
 0x49b   :  { %v1080_v5 = vpack.c.bf16 %v968_v55, %v968_v55 }
 0x49c   :  { %v12865_v7 = vld [vmem:[#allocation2 + $0x180] sm:$0xf0] }
 0x49d   :  { %1181 = vst.msk [vmem:[#allocation2 + $0x5c] sm:$0xf] %vm1088_vm0, %v1080_v5  ;;  %v9373_v9 = vor.u32 %v12865_v7, %v9372_v6 }
 0x49f   :  { %3527 = vmatmul.bf16.gmra.mxu3 %v9373_v9 }
 0x4a2   :  { %v970_v12 = vpop.f32.mrf.mxu1 }
 0x4a3   :  { %v1081_v15 = vpack.c.bf16 %v970_v12, %v970_v12  ;;  %v11319_v12 = vld [vmem:[%s19031_s6 + $0x868] sm:$0xf0] }
 0x4a4   :  { %v12828_v26 = vld [vmem:[#allocation2 + $0x5c] sm:$0xf]  ;;  %v11322_v14 = vor.u32 %v13347_v11, %v11319_v12 }
 0x4a5   :  { %1182 = vst.msk [vmem:[#allocation2 + $0xc0] sm:$0xf] %vm1088_vm0, %v1081_v15  ;;  %v3411_v15 = vpop.f32.mrf.mxu3 }
 0x4a6   :  { %6877 = vmatpush.bf16.msrb.mxu1 %v11322_v14 }
 0x4aa   :  { %v973_v24 = vpop.f32.mrf.mxu1 }
 0x4ab   :  { %v1082_v16 = vpack.c.bf16 %v973_v24, %v973_v24 }
 0x4ac   :  { %v9274_v29 = vld [vmem:[#allocation2 + $0xbc] sm:$0xf0] }
 0x4ad   :  { %1183 = vst.msk [vmem:[#allocation2 + $0x124] sm:$0xf] %vm1088_vm0, %v1082_v16  ;;  %v9277_v28 = vor.u32 %v12828_v26, %v9274_v29  ;;  %v3414_v24 = vpop.f32.mrf.mxu3  ;;  %v14908_v16 = vpop.f32.mrf.mxu2 }
 0x4ae   :  { %v14910_v29 = vpop.f32.mrf.mxu0 }
 0x4af   :  { %3541 = vmatmul.bf16.vlgmr.msra.gmra.mxu0 %v9277_v28 }
 0x4b2   :  { %v975_v30 = vpop.f32.mrf.mxu1 }
 0x4b3   :  { %v1083_v35 = vpack.c.bf16 %v975_v30, %v975_v30 }
 0x4b4   :  { %v12853_v43 = vld [vmem:[#allocation2 + $0x124] sm:$0xf] }
 0x4b5   :  { %1184 = vst.msk [vmem:[#allocation2 + $0x188] sm:$0xf] %vm1088_vm0, %v1083_v35  ;;  %v3416_v26 = vpop.f32.mrf.mxu3  ;;  %v3452_v28 = vpop.f32.mrf.mxu2 }
 0x4ba   :  { %v978_v37 = vpop.f32.mrf.mxu1 }
 0x4bb   :  { %v1084_v31 = vpack.c.bf16 %v978_v37, %v978_v37 }
 0x4bc   :  { %v9374_v45 = vld [vmem:[#allocation2 + $0x184] sm:$0xf0] }
 0x4bd   :  { %1185 = vst.msk [vmem:[#allocation2 + $0x60] sm:$0xf] %vm1088_vm0, %v1084_v31  ;;  %v9377_v46 = vor.u32 %v12853_v43, %v9374_v45  ;;  %v14912_v30 = vpop.f32.mrf.mxu3  ;;  %v14916_v37 = vpop.f32.mrf.mxu2 }
 0x4bf   :  { %3546 = vmatmul.bf16.gmra.mxu0 %v9377_v46 }
 0x4c2   :  { %v980_v47 = vpop.f32.mrf.mxu1 }
 0x4c3   :  { %v1085_v50 = vpack.c.bf16 %v980_v47, %v980_v47 }
 0x4c4   :  { %v9280_v61 = vld [vmem:[#allocation2 + $0x60] sm:$0xf] }
 0x4c5   :  { %1186 = vst.msk [vmem:[#allocation2 + $0xc4] sm:$0xf] %vm1088_vm0, %v1085_v50  ;;  %v14918_v31 = vpop.f32.mrf.mxu3 }
 0x4ca   :  { %v983_v52 = vpop.f32.mrf.mxu1 }
 0x4cb   :  { %v1086_v58 = vpack.c.bf16 %v983_v52, %v983_v52  ;;  %v13780_v52 = vld [vmem:[%s19027_s2 + $0x1] ss:$0 sm:$0xff] }
 0x4cc   :  { %v12841_v56 = vld [vmem:[#allocation2 + $0xc0] sm:$0xf0]  ;;  %v14914_v35 = vpop.f32.mrf.mxu0 }
 0x4cd   :  { %1187 = vst.msk [vmem:[#allocation2 + $0x128] sm:$0xf] %vm1088_vm0, %v1086_v58  ;;  %v9281_v55 = vor.u32 %v12841_v56, %v9280_v61  ;;  %v3471_v46 = vpop.f32.mrf.mxu3  ;;  %v3108_v58 = vadd.f32 %v13780_v52, %v14233_v62  ;;  %v3113_v61 = vadd.f32 %v13780_v52, %v14261_v18 }
 0x4cf   :  { %3560 = vmatmul.bf16.vlgmr.msrb.gmra.mxu2 %v9281_v55  ;;  %v3127_v56 = vadd.f32 %v14242_v2, %v3108_v58  ;;  %v3132_v55 = vadd.f32 %v14299_v48, %v3113_v61 }
 0x4d2   :  { %v985_v3 = vpop.f32.mrf.mxu1 }
 0x4d3   :  { %v1087_v5 = vpack.c.bf16 %v985_v3, %v985_v3  ;;  %v3146_v3 = vadd.f32 %v14280_v34, %v3127_v56 }
 0x4d4   :  { %v9380_v6 = vld [vmem:[#allocation2 + $0x128] sm:$0xf]  ;;  %v14920_v43 = vpop.f32.mrf.mxu0 }
 0x4d5   :  { %1188 = vst.msk [vmem:[#allocation2 + $0x18c] sm:$0xf] %vm1088_vm0, %v1087_v5  ;;  %v3473_v5 = vpop.f32.mrf.mxu3 }
 0x4dc   :  { %v12866_v7 = vld [vmem:[#allocation2 + $0x188] sm:$0xf0]  ;;  %v3490_v47 = vpop.f32.mrf.mxu0 }
 0x4dd   :  { %v9381_v9 = vor.u32 %v12866_v7, %v9380_v6  ;;  %v3151_v6 = vadd.f32 %v14337_v19, %v3132_v55  ;;  %v3165_v7 = vadd.f32 %v14318_v1, %v3146_v3 }
 0x4df   :  { %3565 = vmatmul.bf16.gmra.mxu2 %v9381_v9  ;;  %v3170_v12 = vadd.f32 %v14375_v49, %v3151_v6  ;;  %v3184_v14 = vadd.f32 %v14356_v33, %v3165_v7 }
 0x4e1   :  { %v3189_v62 = vadd.f32 %v14413_v22, %v3170_v12  ;;  %v3203_v18 = vadd.f32 %v14394_v4, %v3184_v14 }
 0x4e3   :  { %v3208_v2 = vadd.f32 %v14451_v54, %v3189_v62  ;;  %v3222_v48 = vadd.f32 %v14432_v38, %v3203_v18  ;;  %v3467_v18 = vadd.f32 %v14912_v30, %v14865_v51 }
 0x4e4   :  { %v3492_v9 = vpop.f32.mrf.mxu0 }
 0x4e5   :  { %v3227_v52 = vadd.f32 %v14525_v63, %v3208_v2  ;;  %v3241_v19 = vadd.f32 %v14470_v10, %v3222_v48  ;;  %v3486_v48 = vadd.f32 %v14914_v35, %v3467_v18  ;;  %v13104_v18 = vld [vmem:[%s19031_s6 + $0xc4] sm:$0xf0] }
 0x4e7   :  { %v3246_v58 = vadd.f32 %v14563_v39, %v3227_v52  ;;  %v3260_v49 = vadd.f32 %v14499_v42, %v3241_v19 }
 0x4e9   :  { %v3265_v33 = vadd.f32 %v14594_v13, %v3246_v58  ;;  %v3279_v22 = vadd.f32 %v14544_v17, %v3260_v49 }
 0x4eb   :  { %v3284_v4 = vadd.f32 %v14639_v57, %v3265_v33  ;;  %v3298_v54 = vadd.f32 %v14582_v59, %v3279_v22 }
 0x4ed   :  { %v3303_v38 = vadd.f32 %v14677_v40, %v3284_v4  ;;  %v3317_v63 = vadd.f32 %v14613_v32, %v3298_v54  ;;  %v3415_v32 = vadd.f32 %v3414_v24, %v14784_v53 }
 0x4ef   :  { %v3322_v10 = vadd.f32 %v14708_v23, %v3303_v38  ;;  %v3336_v39 = vadd.f32 %v14658_v21, %v3317_v63  ;;  %v3434_v21 = vadd.f32 %v3433_v25, %v3415_v32  ;;  %v10293_v32 = vld [vmem:[%s19031_s6 + $0x60] sm:$0xf] }
 0x4f1   :  { %v3341_v3 = vadd.f32 %v14753_v8, %v3322_v10  ;;  %v3355_v13 = vadd.f32 %v14696_v0, %v3336_v39  ;;  %v13345_v8 = vld [vmem:[%s19031_s6 + $0x854] sm:$0xf]  ;;  %v11311_v0 = vld [vmem:[%s19031_s6 + $0x858] sm:$0xf0]  ;;  %v3453_v12 = vadd.f32 %v3452_v28, %v3434_v21  ;;  %v13067_v10 = vld [vmem:[%s19032_s5] sm:$0xff] }
 0x4f2   :  { %v14922_v45 = vpop.f32.mrf.mxu2  ;;  %v11314_v7 = vor.u32 %v13345_v8, %v11311_v0  ;;  %v13068_v39 = vld [vmem:[%s19032_s5 + $0x8] sm:$0xff] }
 0x4f3   :  { %v3360_v17 = vadd.f32 %v14793_v60, %v3341_v3  ;;  %v3374_v57 = vadd.f32 %v14727_v44, %v3355_v13  ;;  %v3472_v24 = vadd.f32 %v3471_v46, %v3453_v12  ;;  %v10301_v3 = vld [vmem:[%s19031_s6 + $0x70] sm:$0xf]  ;;  %v13094_v13 = vld [vmem:[%s19031_s6 + $0x74] sm:$0xf0]  ;;  %v13108_v8 = vld [vmem:[%s19031_s6 + $0xe4] sm:$0xf0] }
 0x4f4   :  { %6878 = vmatpush.bf16.msrb.mxu1 %v11314_v7  ;;  %v13090_v7 = vld [vmem:[%s19031_s6 + $0x54] sm:$0xf0] }
 0x4f5   :  { %v3379_v59 = vadd.f32 %v14819_v41, %v3360_v17  ;;  %v3393_v40 = vadd.f32 %v14772_v36, %v3374_v57  ;;  %v3491_v62 = vadd.f32 %v3490_v47, %v3472_v24  ;;  %v10365_v17 = vld [vmem:[%s19031_s6 + $0xf0] sm:$0xf]  ;;  %v10302_v57 = vor.u32 %v13094_v13, %v10301_v3  ;;  %v13106_v12 = vld [vmem:[%s19031_s6 + $0xd4] sm:$0xf0]  ;;  %v10277_v24 = vld [vmem:[%s19031_s6 + $0x40] sm:$0xf] }
 0x4f6   :  { %v10413_v13 = vld [vmem:[%s19031_s6 + $0x150] sm:$0xf] }
 0x4f7   :  { %v3398_v23 = vadd.f32 %v14853_v27, %v3379_v59  ;;  %v3412_v6 = vadd.f32 %v3411_v15, %v3393_v40  ;;  %v13110_v59 = vld [vmem:[%s19031_s6 + $0xf4] sm:$0xf0]  ;;  %6343 = vmatpush.bf16.msrb.mxu0 %v10302_v57  ;;  %v10477_v57 = vld [vmem:[%s19031_s6 + $0x1d0] sm:$0xf] }
 0x4f8   :  { %v10366_v40 = vor.u32 %v13110_v59, %v10365_v17  ;;  %v13122_v17 = vld [vmem:[%s19031_s6 + $0x154] sm:$0xf0] }
 0x4f9   :  { %v3417_v41 = vadd.f32 %v3416_v26, %v3398_v23  ;;  %v3431_v36 = vadd.f32 %v14906_v20, %v3412_v6  ;;  %v13092_v23 = vld [vmem:[%s19031_s6 + $0x64] sm:$0xf0]  ;;  %v10357_v6 = vld [vmem:[%s19031_s6 + $0xe0] sm:$0xf]  ;;  %v10414_v59 = vor.u32 %v13122_v17, %v10413_v13  ;;  %v11069_v13 = vld [vmem:[%s19031_s6 + $0x670] sm:$0xf] }
 0x4fa   :  { %v14924_v50 = vpop.f32.mrf.mxu2  ;;  %6356 = vmatpush.bf16.msra.mxu2 %v10366_v40  ;;  %v10294_v21 = vor.u32 %v13092_v23, %v10293_v32  ;;  %v10358_v0 = vor.u32 %v13108_v8, %v10357_v6  ;;  %v13138_v40 = vld [vmem:[%s19031_s6 + $0x1d4] sm:$0xf0]  ;;  %v13073_v32 = vld [vmem:[%s19032_s5 + $0x30] sm:$0xff]  ;;  %v10405_v6 = vld [vmem:[%s19031_s6 + $0x140] sm:$0xf] }
 0x4fb   :  { %v3436_v27 = vadd.f32 %v14910_v29, %v3417_v41  ;;  %v3450_v15 = vadd.f32 %v14908_v16, %v3431_v36  ;;  %v10349_v41 = vld [vmem:[%s19031_s6 + $0xd0] sm:$0xf]  ;;  %v10478_v23 = vor.u32 %v13138_v40, %v10477_v57  ;;  %v10469_v8 = vld [vmem:[%s19031_s6 + $0x1c0] sm:$0xf]  ;;  %v13286_v40 = vld [vmem:[%s19031_s6 + $0x674] sm:$0xf0] }
 0x4fc   :  { %6344 = vmatpush.bf16.msrb.mxu0 %v10294_v21  ;;  %v13120_v21 = vld [vmem:[%s19031_s6 + $0x144] sm:$0xf0] }
 0x4fd   :  { %v3455_v25 = vadd.f32 %v14916_v37, %v3436_v27  ;;  %v3469_v14 = vadd.f32 %v14918_v31, %v3450_v15  ;;  %v3505_v37 = vadd.f32 %v14922_v45, %v3486_v48  ;;  %v13343_v27 = vld [vmem:[%s19031_s6 + $0x844] sm:$0xf]  ;;  %v11303_v15 = vld [vmem:[%s19031_s6 + $0x848] sm:$0xf0]  ;;  %v10333_v48 = vld [vmem:[%s19031_s6 + $0xb0] sm:$0xf] }
 0x4fe   :  { %6357 = vmatpush.bf16.msra.mxu2 %v10358_v0  ;;  %v10406_v0 = vor.u32 %v13120_v21, %v10405_v6  ;;  %v13168_v6 = vld [vmem:[%s19031_s6 + $0x2c4] sm:$0xf0]  ;;  %v11070_v21 = vor.u32 %v13286_v40, %v11069_v13 }
 0x4ff   :  { %v3474_v2 = vadd.f32 %v3473_v5, %v3455_v25  ;;  %v3488_v26 = vadd.f32 %v14920_v43, %v3469_v14  ;;  %v11306_v25 = vor.u32 %v13343_v27, %v11303_v15  ;;  %v13088_v14 = vld [vmem:[%s19031_s6 + $0x44] sm:$0xf0]  ;;  %v10389_v15 = vld [vmem:[%s19031_s6 + $0x120] sm:$0xf] }
 0x500   :  { %v13276_v40 = vld [vmem:[%s19031_s6 + $0x624] sm:$0xf0] }
 0x501   :  { %v3493_v52 = vadd.f32 %v3492_v9, %v3474_v2  ;;  %v3507_v29 = vadd.f32 %v14924_v50, %v3488_v26  ;;  %v10278_v2 = vor.u32 %v13088_v14, %v10277_v24  ;;  %6879 = vmatpush.bf16.msrb.mxu1 %v11306_v25  ;;  %v13116_v24 = vld [vmem:[%s19031_s6 + $0x124] sm:$0xf0]  ;;  %v10453_v25 = vld [vmem:[%s19031_s6 + $0x1a0] sm:$0xf] }
 0x502   :  { %v3509_v11 = vpop.f32.mrf.mxu2  ;;  %v10390_v14 = vor.u32 %v13116_v24, %v10389_v15  ;;  %v13166_v15 = vld [vmem:[%s19031_s6 + $0x2b4] sm:$0xf0]  ;;  %v13077_v24 = vld [vmem:[%s19032_s5 + $0x50] sm:$0xff] }
 0x503   :  { %v3510_v20 = vadd.f32 %v3509_v11, %v3491_v62  ;;  %v10341_v62 = vld [vmem:[%s19031_s6 + $0xc0] sm:$0xf] }
 0x504   :  { %v10342_v26 = vor.u32 %v13104_v18, %v10341_v62  ;;  %v13132_v62 = vld [vmem:[%s19031_s6 + $0x1a4] sm:$0xf0] }
 0x505   :  { %v10454_v18 = vor.u32 %v13132_v62, %v10453_v25  ;;  %v11053_v62 = vld [vmem:[%s19031_s6 + $0x650] sm:$0xf] }
 0x50a   :  { %v3511_v61 = vpop.f32.mrf.mxu2 }
 0x50b   :  { %v3512_v19 = vadd.f32 %v3511_v61, %v3493_v52  ;;  %v13102_v52 = vld [vmem:[%s19031_s6 + $0xb4] sm:$0xf0] }
 0x512   :  { %v3523_v34 = vpop.f32.mrf.mxu3 }
 0x513   :  { %v3524_v49 = vadd.f32 %v3523_v34, %v3505_v37  ;;  %v13084_v37 = vld [vmem:[%s19031_s6 + $0x24] sm:$0xf0] }
 0x51a   :  { %v3525_v56 = vpop.f32.mrf.mxu3 }
 0x51b   :  { %v3526_v31 = vadd.f32 %v3525_v56, %v3507_v29 }
 0x522   :  { %v3528_v60 = vpop.f32.mrf.mxu3 }
 0x523   :  { %v3529_v16 = vadd.f32 %v3528_v60, %v3510_v20  ;;  %v13071_v60 = vld [vmem:[%s19032_s5 + $0x20] sm:$0xff]  ;;  %v10269_v20 = vld [vmem:[%s19031_s6 + $0x30] sm:$0xf] }
 0x52a   :  { %v3530_v46 = vpop.f32.mrf.mxu3 }
 0x52b   :  { %v3531_v51 = vadd.f32 %v3530_v46, %v3512_v19  ;;  %v10261_v46 = vld [vmem:[%s19031_s6 + $0x20] sm:$0xf] }
 0x52c   :  { %v3542_v1 = vpop.f32.mrf.mxu0  ;;  %v10325_v19 = vld [vmem:[%s19031_s6 + $0xa0] sm:$0xf] }
 0x52d   :  { %v3543_v43 = vadd.f32 %v3542_v1, %v3524_v49  ;;  %v10253_v49 = vld [vmem:[%s19031_s6 + $0x10] sm:$0xf] }
 0x534   :  { %v3544_v55 = vpop.f32.mrf.mxu0 }
 0x535   :  { %v3545_v30 = vadd.f32 %v3544_v55, %v3526_v31  ;;  %v13069_v55 = vld [vmem:[%s19032_s5 + $0x10] sm:$0xff]  ;;  %v13100_v31 = vld [vmem:[%s19031_s6 + $0xa4] sm:$0xf0] }
 0x53c   :  { %v3547_v53 = vpop.f32.mrf.mxu0 }
 0x53d   :  { %v3548_v47 = vadd.f32 %v3547_v53, %v3529_v16  ;;  %v10350_v53 = vor.u32 %v13106_v12, %v10349_v41  ;;  %v10334_v16 = vor.u32 %v13102_v52, %v10333_v48  ;;  %v13118_v41 = vld [vmem:[%s19031_s6 + $0x134] sm:$0xf0] }
 0x53e   :  { %v13130_v48 = vld [vmem:[%s19031_s6 + $0x194] sm:$0xf0] }
 0x53f   :  { %6358 = vmatpush.bf16.msra.mxu2 %v10350_v53  ;;  %v13134_v53 = vld [vmem:[%s19031_s6 + $0x1b4] sm:$0xf0] }
 0x540   :  { %v13074_v52 = vld [vmem:[%s19032_s5 + $0x38] sm:$0xff] }
 0x543   :  { %6359 = vmatpush.bf16.msra.mxu2 %v10342_v26  ;;  %v13114_v26 = vld [vmem:[%s19031_s6 + $0x114] sm:$0xf0] }
 0x544   :  { %v3549_v58 = vpop.f32.mrf.mxu0 }
 0x545   :  { %v3550_v11 = vadd.f32 %v3549_v58, %v3531_v51  ;;  %v10326_v58 = vor.u32 %v13100_v31, %v10325_v19  ;;  %v13082_v51 = vld [vmem:[%s19031_s6 + $0x14] sm:$0xf0]  ;;  %v13128_v31 = vld [vmem:[%s19031_s6 + $0x184] sm:$0xf0] }
 0x547   :  { %6360 = vmatpush.bf16.msra.mxu2 %v10334_v16  ;;  %v10373_v16 = vld [vmem:[%s19031_s6 + $0x100] sm:$0xf] }
 0x54b   :  { %6361 = vmatpush.bf16.msra.mxu2 %v10326_v58  ;;  %v13075_v58 = vld [vmem:[%s19032_s5 + $0x40] sm:$0xff] }
 0x552   :  { %v3561_v42 = vpop.f32.mrf.mxu2 }
 0x553   :  { %v3562_v35 = vadd.f32 %v3561_v42, %v3543_v43  ;;  %v13070_v42 = vld [vmem:[%s19032_s5 + $0x18] sm:$0xff]  ;;  %v13072_v43 = vld [vmem:[%s19032_s5 + $0x28] sm:$0xff] }
 0x555   :  { %v3575_v45 = vmul.f32 0.2, %v3562_v35  ;;  %vm3571_vm4 = vcmp.gt.f32.partialorder %v3562_v35, 0.0 }
 0x557   :  { %v3579_v56 = vsel %vm3571_vm4, %v3562_v35, %v3575_v45  ;;  %v13080_v35 = vld [vmem:[%s19031_s6 + $0x4] sm:$0xf0]  ;;  %v13126_v45 = vld [vmem:[%s19031_s6 + $0x174] sm:$0xf0]  ;;  %vm8912_vm4 = vcmask 1024  }
 0x55a   :  { %v3563_v44 = vpop.f32.mrf.mxu2 }
 0x55b   :  { %v3564_v33 = vadd.f32 %v3563_v44, %v3545_v30  ;;  %v10285_v44 = vld [vmem:[%s19031_s6 + $0x50] sm:$0xf] }
 0x55c   :  { %v10286_v36 = vor.u32 %v13090_v7, %v10285_v44  ;;  %v10317_v30 = vld [vmem:[%s19031_s6 + $0x90] sm:$0xf] }
 0x55d   :  { %v3576_v50 = vmul.f32 0.2, %v3564_v33  ;;  %vm3572_vm3 = vcmp.gt.f32.partialorder %v3564_v33, 0.0  ;;  %v10397_v7 = vld [vmem:[%s19031_s6 + $0x130] sm:$0xf] }
 0x55e   :  { %6345 = vmatpush.bf16.msrb.mxu0 %v10286_v36  ;;  %v10461_v36 = vld [vmem:[%s19031_s6 + $0x1b0] sm:$0xf]  ;;  %v10398_v12 = vor.u32 %v13118_v41, %v10397_v7 }
 0x55f   :  { %v3580_v63 = vsel %vm3572_vm3, %v3564_v33, %v3576_v50  ;;  %v13096_v50 = vld [vmem:[%s19031_s6 + $0x84] sm:$0xf0]  ;;  %v10462_v27 = vor.u32 %v13134_v53, %v10461_v36  ;;  %v10525_v41 = vld [vmem:[%s19031_s6 + $0x230] sm:$0xf]  ;;  %v13150_v36 = vld [vmem:[%s19031_s6 + $0x234] sm:$0xf0] }
 0x560   :  { %v3583_v1 = vpack.c.bf16 %v3580_v63, %v3579_v56  ;;  %v13142_v63 = vld [vmem:[%s19031_s6 + $0x1f4] sm:$0xf0]  ;;  %v10421_v56 = vld [vmem:[%s19031_s6 + $0x160] sm:$0xf]  ;;  %vm8898_vm3 = vcmask 1041408  }
 0x562   :  { %v3566_v28 = vpop.f32.mrf.mxu2  ;;  %6346 = vmatpush.bf16.msrb.mxu0 %v10278_v2  ;;  %v10381_v2 = vld [vmem:[%s19031_s6 + $0x110] sm:$0xf] }
 0x563   :  { %v3567_v5 = vadd.f32 %v3566_v28, %v3548_v47  ;;  %v13086_v28 = vld [vmem:[%s19031_s6 + $0x34] sm:$0xf0]  ;;  %v10262_v47 = vor.u32 %v13084_v37, %v10261_v46  ;;  %v13112_v46 = vld [vmem:[%s19031_s6 + $0x104] sm:$0xf0]  ;;  %v10437_v37 = vld [vmem:[%s19031_s6 + $0x180] sm:$0xf] }
 0x564   :  { %v10270_v29 = vor.u32 %v13086_v28, %v10269_v20  ;;  %v10445_v20 = vld [vmem:[%s19031_s6 + $0x190] sm:$0xf]  ;;  %v10382_v28 = vor.u32 %v13114_v26, %v10381_v2  ;;  %v10374_v19 = vor.u32 %v13112_v46, %v10373_v16  ;;  %v10517_v26 = vld [vmem:[%s19031_s6 + $0x220] sm:$0xf]  ;;  %v13164_v16 = vld [vmem:[%s19031_s6 + $0x2a4] sm:$0xf0] }
 0x565   :  { %v3577_v9 = vmul.f32 0.2, %v3567_v5  ;;  %vm3573_vm1 = vcmp.gt.f32.partialorder %v3567_v5, 0.0 }
 0x566   :  { %6347 = vmatpush.bf16.msrb.mxu0 %v10270_v29  ;;  %v10446_v29 = vor.u32 %v13130_v48, %v10445_v20  ;;  %v13282_v20 = vld [vmem:[%s19031_s6 + $0x654] sm:$0xf0] }
 0x567   :  { %v3581_v61 = vsel %vm3573_vm1, %v3567_v5, %v3577_v9  ;;  %v13098_v5 = vld [vmem:[%s19031_s6 + $0x94] sm:$0xf0]  ;;  %v10309_v9 = vld [vmem:[%s19031_s6 + $0x80] sm:$0xf]  ;;  %v11054_v46 = vor.u32 %v13282_v20, %v11053_v62 }
 0x568   :  { %v10318_v33 = vor.u32 %v13098_v5, %v10317_v30  ;;  %v10557_v30 = vld [vmem:[%s19031_s6 + $0x270] sm:$0xf]  ;;  %v13158_v5 = vld [vmem:[%s19031_s6 + $0x274] sm:$0xf0] }
 0x569   :  { %v13202_v62 = vld [vmem:[%s19031_s6 + $0x3d4] sm:$0xf0] }
 0x56a   :  { %v3568_v22 = vpop.f32.mrf.mxu2  ;;  %6348 = vmatpush.bf16.msrb.mxu0 %v10262_v47  ;;  %6362 = vmatpush.bf16.msra.mxu2 %v10318_v33  ;;  %v10438_v47 = vor.u32 %v13128_v31, %v10437_v37  ;;  %v10621_v33 = vld [vmem:[%s19031_s6 + $0x2f0] sm:$0xf]  ;;  %v11045_v37 = vld [vmem:[%s19031_s6 + $0x640] sm:$0xf] }
 0x56b   :  { %v3569_v4 = vadd.f32 %v3568_v22, %v3550_v11  ;;  %v10254_v11 = vor.u32 %v13082_v51, %v10253_v49  ;;  %v10245_v22 = vld [vmem:[%s19031_s6] sm:$0xf] }
 0x56d   :  { %vm3574_vm2 = vcmp.gt.f32.partialorder %v3569_v4, 0.0  ;;  %v3578_v54 = vmul.f32 0.2, %v3569_v4 }
 0x56e   :  { %6349 = vmatpush.bf16.msrb.mxu0 %v10254_v11  ;;  %v13076_v11 = vld [vmem:[%s19032_s5 + $0x48] sm:$0xff] }
 0x56f   :  { %v3582_v38 = vsel %vm3574_vm2, %v3569_v4, %v3578_v54  ;;  %v10246_v4 = vor.u32 %v13080_v35, %v10245_v22  ;;  %v10429_v54 = vld [vmem:[%s19031_s6 + $0x170] sm:$0xf]  ;;  %v13174_v22 = vld [vmem:[%s19031_s6 + $0x2f4] sm:$0xf0] }
 0x570   :  { %v3584_v34 = vpack.c.bf16 %v3582_v38, %v3581_v61  ;;  %v10310_v61 = vor.u32 %v13096_v50, %v10309_v9  ;;  %v10430_v38 = vor.u32 %v13126_v45, %v10429_v54  ;;  %v10622_v50 = vor.u32 %v13174_v22, %v10621_v33  ;;  %v10549_v54 = vld [vmem:[%s19031_s6 + $0x260] sm:$0xf]  ;;  %v13278_v33 = vld [vmem:[%s19031_s6 + $0x634] sm:$0xf0] }
 0x572   :  { %3720 = vmatpush.bf16.msrb.mxu3 %v3584_v34  ;;  %v10493_v34 = vld [vmem:[%s19031_s6 + $0x1f0] sm:$0xf]  ;;  %6350 = vmatpush.bf16.msrb.mxu0 %v10246_v4  ;;  %v10558_v4 = vor.u32 %v13158_v5, %v10557_v30  ;;  %v13162_v5 = vld [vmem:[%s19031_s6 + $0x294] sm:$0xf0] }
 0x573   :  { %6363 = vmatpush.bf16.msra.mxu2 %v10310_v61  ;;  %v10573_v30 = vld [vmem:[%s19031_s6 + $0x290] sm:$0xf] }
 0x576   :  { %3721 = vmatpush.bf16.msrb.mxu3 %v3583_v1  ;;  %v10494_v1 = vor.u32 %v13142_v63, %v10493_v34  ;;  %6369 = vmatpush.bf16.msra.mxu0 %v10430_v38  ;;  %v13156_v38 = vld [vmem:[%s19031_s6 + $0x264] sm:$0xf0]  ;;  %v10613_v34 = vld [vmem:[%s19031_s6 + $0x2e0] sm:$0xf] }
 0x577   :  { %v13172_v63 = vld [vmem:[%s19031_s6 + $0x2e4] sm:$0xf0] }
 0x578   :  { %6382 = vmatpush.bf16.msrb.mxu2 %v10494_v1  ;;  %v10550_v1 = vor.u32 %v13156_v38, %v10549_v54  ;;  %v13160_v54 = vld [vmem:[%s19031_s6 + $0x284] sm:$0xf0]  ;;  %v10685_v38 = vld [vmem:[%s19031_s6 + $0x370] sm:$0xf] }
 0x579   :  { %10230 = vmatmul.msk.bf16.vlgmr.msrb.gmra.mxu3 %vm3674_vm5, %v13067_v10  ;;  %v13124_v10 = vld [vmem:[%s19031_s6 + $0x164] sm:$0xf0] }
 0x57a   :  { %6499 = vmatpush.bf16.msra.mxu3 %v11070_v21 }
 0x589   :  { %10231 = vmatmul.msk.bf16.gmra.mxu3 %vm3674_vm5, %v13068_v39  ;;  %v10485_v39 = vld [vmem:[%s19031_s6 + $0x1e0] sm:$0xf] }
 0x599   :  { %10232 = vmatmul.msk.bf16.gmra.mxu3 %vm3674_vm5, %v13069_v55  ;;  %v13140_v55 = vld [vmem:[%s19031_s6 + $0x1e4] sm:$0xf0] }
 0x59a   :  { %v10486_v3 = vor.u32 %v13140_v55, %v10485_v39  ;;  %v10541_v39 = vld [vmem:[%s19031_s6 + $0x250] sm:$0xf]  ;;  %v13154_v55 = vld [vmem:[%s19031_s6 + $0x254] sm:$0xf0] }
 0x59b   :  { %v10542_v17 = vor.u32 %v13154_v55, %v10541_v39 }
 0x59c   :  { %6383 = vmatpush.bf16.msrb.mxu2 %v10486_v3  ;;  %v13170_v3 = vld [vmem:[%s19031_s6 + $0x2d4] sm:$0xf0] }
 0x5a0   :  { %6384 = vmatpush.bf16.msrb.mxu2 %v10478_v23  ;;  %v10597_v23 = vld [vmem:[%s19031_s6 + $0x2c0] sm:$0xf] }
 0x5a1   :  { %v10598_v7 = vor.u32 %v13168_v6, %v10597_v23  ;;  %v13204_v23 = vld [vmem:[%s19031_s6 + $0x3e4] sm:$0xf0]  ;;  %v13078_v6 = vld [vmem:[%s19032_s5 + $0x58] sm:$0xff] }
 0x5a9   :  { %10233 = vmatmul.msk.bf16.gmra.mxu3 %vm3674_vm5, %v13070_v42  ;;  %v10422_v42 = vor.u32 %v13124_v10, %v10421_v56  ;;  %v10614_v10 = vor.u32 %v13172_v63, %v10613_v34  ;;  %v13190_v63 = vld [vmem:[%s19031_s6 + $0x374] sm:$0xf0] }
 0x5aa   :  { %v10686_v13 = vor.u32 %v13190_v63, %v10685_v38  ;;  %v10645_v63 = vld [vmem:[%s19031_s6 + $0x320] sm:$0xf] }
 0x5ab   :  { %6370 = vmatpush.bf16.msra.mxu0 %v10422_v42  ;;  %v10605_v42 = vld [vmem:[%s19031_s6 + $0x2d0] sm:$0xf] }
 0x5ac   :  { %v10606_v57 = vor.u32 %v13170_v3, %v10605_v42  ;;  %v10677_v42 = vld [vmem:[%s19031_s6 + $0x360] sm:$0xf] }
 0x5af   :  { %6371 = vmatpush.bf16.msra.mxu0 %v10414_v59  ;;  %v10533_v59 = vld [vmem:[%s19031_s6 + $0x240] sm:$0xf] }
 0x5b3   :  { %6372 = vmatpush.bf16.msra.mxu0 %v10406_v0  ;;  %v13284_v0 = vld [vmem:[%s19031_s6 + $0x664] sm:$0xf0] }
 0x5b7   :  { %6373 = vmatpush.bf16.msra.mxu0 %v10398_v12 }
 0x5b9   :  { %10234 = vmatmul.msk.bf16.gmra.mxu3 %vm3674_vm5, %v13071_v60  ;;  %v13136_v60 = vld [vmem:[%s19031_s6 + $0x1c4] sm:$0xf0] }
 0x5ba   :  { %v10470_v44 = vor.u32 %v13136_v60, %v10469_v8  ;;  %v11061_v8 = vld [vmem:[%s19031_s6 + $0x660] sm:$0xf] }
 0x5bb   :  { %6374 = vmatpush.bf16.msra.mxu0 %v10390_v14  ;;  %v11062_v12 = vor.u32 %v13284_v0, %v11061_v8  ;;  %v13341_v0 = vld [vmem:[%s19031_s6 + $0x834] sm:$0xf] }
 0x5bc   :  { %6385 = vmatpush.bf16.msrb.mxu2 %v10470_v44 }
 0x5bd   :  { %6500 = vmatpush.bf16.msra.mxu3 %v11062_v12 }
 0x5bf   :  { %6375 = vmatpush.bf16.msra.mxu0 %v10382_v28 }
 0x5c0   :  { %6386 = vmatpush.bf16.msrb.mxu2 %v10462_v27  ;;  %v10589_v27 = vld [vmem:[%s19031_s6 + $0x2b0] sm:$0xf] }
 0x5c1   :  { %v10590_v2 = vor.u32 %v13166_v15, %v10589_v27  ;;  %6501 = vmatpush.bf16.msra.mxu3 %v11054_v46  ;;  %v10669_v27 = vld [vmem:[%s19031_s6 + $0x350] sm:$0xf]  ;;  %v13184_v46 = vld [vmem:[%s19031_s6 + $0x344] sm:$0xf0] }
 0x5c2   :  { %v11021_v15 = vld [vmem:[%s19031_s6 + $0x610] sm:$0xf] }
 0x5c3   :  { %6376 = vmatpush.bf16.msra.mxu0 %v10374_v19  ;;  %v13280_v19 = vld [vmem:[%s19031_s6 + $0x644] sm:$0xf0] }
 0x5c4   :  { %6387 = vmatpush.bf16.msrb.mxu2 %v10454_v18  ;;  %v10526_v18 = vor.u32 %v13150_v36, %v10525_v41 }
 0x5c8   :  { %6388 = vmatpush.bf16.msrb.mxu2 %v10446_v29  ;;  %v10581_v29 = vld [vmem:[%s19031_s6 + $0x2a0] sm:$0xf] }
 0x5c9   :  { %10235 = vmatmul.msk.bf16.gmra.mxu3 %vm3674_vm5, %v13072_v43 }
 0x5cc   :  { %6389 = vmatpush.bf16.msrb.mxu2 %v10438_v47 }
 0x5d9   :  { %10236 = vmatmul.msk.bf16.gmra.mxu3 %vm3674_vm5, %v13073_v32  ;;  %v13152_v32 = vld [vmem:[%s19031_s6 + $0x244] sm:$0xf0] }
 0x5da   :  { %v10534_v44 = vor.u32 %v13152_v32, %v10533_v59  ;;  %v11029_v59 = vld [vmem:[%s19031_s6 + $0x620] sm:$0xf] }
 0x5db   :  { %v10741_v32 = vld [vmem:[%s19031_s6 + $0x3e0] sm:$0xf]  ;;  %v11030_v41 = vor.u32 %v13276_v40, %v11029_v59  ;;  %v13178_v59 = vld [vmem:[%s19031_s6 + $0x314] sm:$0xf0]  ;;  %v10701_v40 = vld [vmem:[%s19031_s6 + $0x390] sm:$0xf] }
 0x5e9   :  { %10237 = vmatmul.msk.bf16.gmra.mxu3 %vm3674_vm5, %v13074_v52  ;;  %v13148_v52 = vld [vmem:[%s19031_s6 + $0x224] sm:$0xf0] }
 0x5ea   :  { %v10518_v47 = vor.u32 %v13148_v52, %v10517_v26  ;;  %v10661_v52 = vld [vmem:[%s19031_s6 + $0x340] sm:$0xf] }
 0x5f9   :  { %10238 = vmatmul.msk.bf16.gmra.mxu3 %vm3674_vm5, %v13075_v58  ;;  %v10582_v58 = vor.u32 %v13164_v16, %v10581_v29  ;;  %v11013_v29 = vld [vmem:[%s19031_s6 + $0x600] sm:$0xf]  ;;  %v13272_v16 = vld [vmem:[%s19031_s6 + $0x604] sm:$0xf0] }
 0x5fc   :  { %v3723_v49 = vpop.f32.mrf.mxu3 }
 0x604   :  { %v3725_v51 = vpop.f32.mrf.mxu3 }
 0x605   :  { %v13708_v43 = vpack.c.bf16 %v3725_v51, %v3723_v49  ;;  %v10509_v49 = vld [vmem:[%s19031_s6 + $0x210] sm:$0xf]  ;;  %v13146_v51 = vld [vmem:[%s19031_s6 + $0x214] sm:$0xf0] }
 0x606   :  { %v10510_v22 = vor.u32 %v13146_v51, %v10509_v49  ;;  %v11014_v49 = vor.u32 %v13272_v16, %v11013_v29  ;;  %v10662_v51 = vor.u32 %v13184_v46, %v10661_v52  ;;  %v10805_v46 = vld [vmem:[%s19031_s6 + $0x460] sm:$0xf] }
 0x607   :  { %v4268_v35 = vunpack.c.l.b16 %v13708_v43  ;;  %v4269_v9 = vunpack.c.h.b16 %v13708_v43  ;;  %v11046_v43 = vor.u32 %v13280_v19, %v11045_v37  ;;  %v10725_v37 = vld [vmem:[%s19031_s6 + $0x3c0] sm:$0xf]  ;;  %v13200_v19 = vld [vmem:[%s19031_s6 + $0x3c4] sm:$0xf0] }
 0x609   :  { %10239 = vmatmul.msk.bf16.gmra.mxu3 %vm3674_vm5, %v13076_v11  ;;  %v15232_v45 = vpack.c.b16 %v4268_v35, %v4268_v35  ;;  %v15234_v61 = vpack.c.b16 %v4269_v9, %v4269_v9  ;;  %v11037_v11 = vld [vmem:[%s19031_s6 + $0x630] sm:$0xf]  ;;  %v10574_v35 = vor.u32 %v13162_v5, %v10573_v30  ;;  %v10501_v9 = vld [vmem:[%s19031_s6 + $0x200] sm:$0xf]  ;;  %v10726_v30 = vor.u32 %v13200_v19, %v10725_v37  ;;  %v13220_v37 = vld [vmem:[%s19031_s6 + $0x464] sm:$0xf0] }
 0x60a   :  { %6502 = vmatpush.bf16.msra.mxu3 %v11046_v43  ;;  %v11038_v34 = vor.u32 %v13278_v33, %v11037_v11  ;;  %v10653_v5 = vld [vmem:[%s19031_s6 + $0x330] sm:$0xf]  ;;  %v13182_v43 = vld [vmem:[%s19031_s6 + $0x334] sm:$0xf0]  ;;  %v10869_v19 = vld [vmem:[%s19031_s6 + $0x4e0] sm:$0xf] }
 0x60b   :  { %6351 = vmatmul.bf16.vlgmr.msrb.gmra.mxu0 %v15232_v45  ;;  %6364 = vmatmul.bf16.vlgmr.msra.gmra.mxu2 %v15234_v61  ;;  %v10717_v11 = vld [vmem:[%s19031_s6 + $0x3b0] sm:$0xf]  ;;  %v13198_v33 = vld [vmem:[%s19031_s6 + $0x3b4] sm:$0xf0]  ;;  %v10654_v38 = vor.u32 %v13182_v43, %v10653_v5  ;;  %v13324_v5 = vld [vmem:[%s19031_s6 + $0x7a4] sm:$0xf0] }
 0x60c   :  { %v3728_v56 = vpop.f32.mrf.mxu3  ;;  %6395 = vmatpush.bf16.msrb.mxu0 %v10558_v4  ;;  %6408 = vmatpush.bf16.msra.mxu2 %v10622_v50  ;;  %v13144_v4 = vld [vmem:[%s19031_s6 + $0x204] sm:$0xf0]  ;;  %v10565_v50 = vld [vmem:[%s19031_s6 + $0x280] sm:$0xf] }
 0x60d   :  { %v10502_v39 = vor.u32 %v13144_v4, %v10501_v9  ;;  %v10566_v55 = vor.u32 %v13160_v54, %v10565_v50  ;;  %v11253_v4 = vld [vmem:[%s19031_s6 + $0x7e0] sm:$0xf]  ;;  %v13332_v50 = vld [vmem:[%s19031_s6 + $0x7e4] sm:$0xf0] }
 0x60e   :  { %6503 = vmatpush.bf16.msra.mxu3 %v11038_v34  ;;  %v10718_v34 = vor.u32 %v13198_v33, %v10717_v11  ;;  %v10806_v11 = vor.u32 %v13220_v37, %v10805_v46  ;;  %v13254_v37 = vld [vmem:[%s19031_s6 + $0x574] sm:$0xf0] }
 0x610   :  { %6396 = vmatpush.bf16.msrb.mxu0 %v10550_v1  ;;  %6409 = vmatpush.bf16.msra.mxu2 %v10614_v10  ;;  %v13206_v1 = vld [vmem:[%s19031_s6 + $0x3f4] sm:$0xf0] }
 0x612   :  { %6504 = vmatpush.bf16.msra.mxu3 %v11030_v41  ;;  %v10693_v41 = vld [vmem:[%s19031_s6 + $0x380] sm:$0xf] }
 0x614   :  { %v3730_v60 = vpop.f32.mrf.mxu3  ;;  %6397 = vmatpush.bf16.msrb.mxu0 %v10542_v17  ;;  %6410 = vmatpush.bf16.msra.mxu2 %v10606_v57  ;;  %v13188_v57 = vld [vmem:[%s19031_s6 + $0x364] sm:$0xf0] }
 0x615   :  { %v13713_v53 = vpack.c.bf16 %v3730_v60, %v3728_v56  ;;  %v10749_v56 = vld [vmem:[%s19031_s6 + $0x3f0] sm:$0xf]  ;;  %v11295_v60 = vld [vmem:[%s19031_s6 + $0x838] sm:$0xf0] }
 0x616   :  { %v10750_v17 = vor.u32 %v13206_v1, %v10749_v56  ;;  %v13180_v56 = vld [vmem:[%s19031_s6 + $0x324] sm:$0xf0]  ;;  %v10709_v1 = vld [vmem:[%s19031_s6 + $0x3a0] sm:$0xf] }
 0x617   :  { %v4270_v25 = vunpack.c.l.b16 %v13713_v53  ;;  %v4271_v14 = vunpack.c.h.b16 %v13713_v53  ;;  %v10742_v53 = vor.u32 %v13204_v23, %v10741_v32  ;;  %v13194_v32 = vld [vmem:[%s19031_s6 + $0x394] sm:$0xf0] }
 0x618   :  { %6398 = vmatpush.bf16.msrb.mxu0 %v10534_v44  ;;  %6411 = vmatpush.bf16.msra.mxu2 %v10598_v7  ;;  %v10678_v44 = vor.u32 %v13188_v57, %v10677_v42  ;;  %v11298_v7 = vor.u32 %v13341_v0, %v11295_v60  ;;  %v11245_v42 = vld [vmem:[%s19031_s6 + $0x7d0] sm:$0xf]  ;;  %v10702_v60 = vor.u32 %v13194_v32, %v10701_v40  ;;  %v13214_v40 = vld [vmem:[%s19031_s6 + $0x434] sm:$0xf0] }
 0x619   :  { %v15307_v28 = vpack.c.b16 %v4270_v25, %v4270_v25  ;;  %v15309_v48 = vpack.c.b16 %v4271_v14, %v4271_v14  ;;  %10240 = vmatmul.msk.bf16.gmra.mxu3 %vm3674_vm5, %v13077_v24  ;;  %v13274_v24 = vld [vmem:[%s19031_s6 + $0x614] sm:$0xf0]  ;;  %v10733_v14 = vld [vmem:[%s19031_s6 + $0x3d0] sm:$0xf] }
 0x61a   :  { %v13186_v25 = vld [vmem:[%s19031_s6 + $0x354] sm:$0xf0]  ;;  %6880 = vmatpush.bf16.msrb.mxu1 %v11298_v7  ;;  %v10734_v20 = vor.u32 %v13202_v62, %v10733_v14  ;;  %v10637_v57 = vld [vmem:[%s19031_s6 + $0x310] sm:$0xf]  ;;  %v13176_v7 = vld [vmem:[%s19031_s6 + $0x304] sm:$0xf0] }
 0x61b   :  { %6377 = vmatmul.bf16.vlgmr.msra.gmra.mxu0 %v15307_v28  ;;  %6390 = vmatmul.bf16.vlgmr.msrb.gmra.mxu2 %v15309_v48  ;;  %v10670_v26 = vor.u32 %v13186_v25, %v10669_v27  ;;  %v10638_v0 = vor.u32 %v13178_v59, %v10637_v57  ;;  %v10813_v27 = vld [vmem:[%s19031_s6 + $0x470] sm:$0xf]  ;;  %v13238_v25 = vld [vmem:[%s19031_s6 + $0x4f4] sm:$0xf0] }
 0x61c   :  { %v3733_v31 = vpop.f32.mrf.mxu3  ;;  %6399 = vmatpush.bf16.msrb.mxu0 %v10526_v18  ;;  %6412 = vmatpush.bf16.msra.mxu2 %v10590_v2  ;;  %v11022_v2 = vor.u32 %v13274_v24, %v11021_v15  ;;  %v13222_v15 = vld [vmem:[%s19031_s6 + $0x474] sm:$0xf0]  ;;  %v10877_v24 = vld [vmem:[%s19031_s6 + $0x4f0] sm:$0xf] }
 0x61d   :  { %v10814_v29 = vor.u32 %v13222_v15, %v10813_v27  ;;  %v10878_v16 = vor.u32 %v13238_v25, %v10877_v24  ;;  %v10781_v59 = vld [vmem:[%s19031_s6 + $0x430] sm:$0xf]  ;;  %v13210_v25 = vld [vmem:[%s19031_s6 + $0x414] sm:$0xf0] }
 0x61e   :  { %6505 = vmatpush.bf16.msra.mxu3 %v11022_v2  ;;  %v11229_v2 = vld [vmem:[%s19031_s6 + $0x7b0] sm:$0xf] }
 0x61f   :  { %v10845_v32 = vld [vmem:[%s19031_s6 + $0x4b0] sm:$0xf] }
 0x620   :  { %6400 = vmatpush.bf16.msrb.mxu0 %v10518_v47  ;;  %6413 = vmatpush.bf16.msra.mxu2 %v10582_v58  ;;  %v11261_v47 = vld [vmem:[%s19031_s6 + $0x7f0] sm:$0xf]  ;;  %v13334_v58 = vld [vmem:[%s19031_s6 + $0x7f4] sm:$0xf0] }
 0x621   :  { %v10765_v24 = vld [vmem:[%s19031_s6 + $0x410] sm:$0xf] }
 0x622   :  { %6506 = vmatpush.bf16.msra.mxu3 %v11014_v49 }
 0x624   :  { %v3735_v10 = vpop.f32.mrf.mxu3  ;;  %6401 = vmatpush.bf16.msrb.mxu0 %v10510_v22  ;;  %6414 = vmatpush.bf16.msra.mxu2 %v10574_v35  ;;  %v11262_v35 = vor.u32 %v13334_v58, %v11261_v47 }
 0x625   :  { %v13718_v3 = vpack.c.bf16 %v3735_v10, %v3733_v31  ;;  %v3610_v31 = vld [vmem:[%s19032_s5 + $0x60] sm:$0xf]  ;;  %v13196_v10 = vld [vmem:[%s19031_s6 + $0x3a4] sm:$0xf0] }
 0x626   :  { %v3660_v22 = vunpack.c.l.b16 %v3610_v31  ;;  %6538 = vmatpush.bf16.msrb.mxu3 %v11262_v35  ;;  %v13236_v31 = vld [vmem:[%s19031_s6 + $0x4e4] sm:$0xf0]  ;;  %v13218_v35 = vld [vmem:[%s19031_s6 + $0x454] sm:$0xf0] }
 0x627   :  { %v4272_v21 = vunpack.c.l.b16 %v13718_v3  ;;  %v4273_v8 = vunpack.c.h.b16 %v13718_v3  ;;  %v13330_v3 = vld [vmem:[%s19031_s6 + $0x7d4] sm:$0xf0]  ;;  %v10870_v33 = vor.u32 %v13236_v31, %v10869_v19  ;;  %v11005_v19 = vld [vmem:[%s19031_s6 + $0x5f0] sm:$0xf] }
 0x628   :  { %6402 = vmatpush.bf16.msrb.mxu0 %v10502_v39  ;;  %6415 = vmatpush.bf16.msra.mxu2 %v10566_v55  ;;  %v3673_v39 = vpack.c.b16 %v3660_v22, %v3660_v22  ;;  %v11254_v55 = vor.u32 %v13332_v50, %v11253_v4  ;;  %v11246_v23 = vor.u32 %v13330_v3, %v11245_v42  ;;  %v10797_v22 = vld [vmem:[%s19031_s6 + $0x450] sm:$0xf]  ;;  %v13234_v4 = vld [vmem:[%s19031_s6 + $0x4d4] sm:$0xf0]  ;;  %v11205_v3 = vld [vmem:[%s19031_s6 + $0x780] sm:$0xf] }
 0x629   :  { %v15398_v36 = vpack.c.b16 %v4272_v21, %v4272_v21  ;;  %v15400_v12 = vpack.c.b16 %v4273_v8, %v4273_v8  ;;  %10241 = vmatmul.msk.bf16.gmra.mxu3 %vm3674_vm5, %v13078_v6  ;;  %v11237_v21 = vld [vmem:[%s19031_s6 + $0x7c0] sm:$0xf]  ;;  %v13328_v8 = vld [vmem:[%s19031_s6 + $0x7c4] sm:$0xf0]  ;;  %v13270_v31 = vld [vmem:[%s19031_s6 + $0x5f4] sm:$0xf0] }
 0x62a   :  { %6539 = vmatpush.bf16.msrb.mxu3 %v11254_v55  ;;  %v11238_v14 = vor.u32 %v13328_v8, %v11237_v21  ;;  %v10782_v21 = vor.u32 %v13214_v40, %v10781_v59  ;;  %v13248_v59 = vld [vmem:[%s19031_s6 + $0x544] sm:$0xf0]  ;;  %v10981_v40 = vld [vmem:[%s19031_s6 + $0x5c0] sm:$0xf] }
 0x62b   :  { %6403 = vmatmul.bf16.vlgmr.msrb.gmra.mxu0 %v15398_v36  ;;  %6416 = vmatmul.bf16.vlgmr.msra.gmra.mxu2 %v15400_v12 }
 0x62c   :  { %6421 = vmatpush.bf16.msra.mxu0 %v10686_v13  ;;  %6434 = vmatpush.bf16.msrb.mxu2 %v10750_v17  ;;  %v3738_v18 = vpop.f32.mrf.mxu3  ;;  %v10646_v13 = vor.u32 %v13180_v56, %v10645_v63  ;;  %v10710_v17 = vor.u32 %v13196_v10, %v10709_v1  ;;  %v10789_v56 = vld [vmem:[%s19031_s6 + $0x440] sm:$0xf]  ;;  %v13216_v1 = vld [vmem:[%s19031_s6 + $0x444] sm:$0xf0] }
 0x62d   :  { %v10853_v10 = vld [vmem:[%s19031_s6 + $0x4c0] sm:$0xf] }
 0x62e   :  { %6540 = vmatpush.bf16.msrb.mxu3 %v11246_v23  ;;  %v13230_v23 = vld [vmem:[%s19031_s6 + $0x4b4] sm:$0xf0] }
 0x62f   :  { %v10846_v8 = vor.u32 %v13230_v23, %v10845_v32  ;;  %v13264_v32 = vld [vmem:[%s19031_s6 + $0x5c4] sm:$0xf0] }
 0x630   :  { %6422 = vmatpush.bf16.msra.mxu0 %v10678_v44  ;;  %6435 = vmatpush.bf16.msrb.mxu2 %v10742_v53  ;;  %v10629_v44 = vld [vmem:[%s19031_s6 + $0x300] sm:$0xf]  ;;  %v13192_v53 = vld [vmem:[%s19031_s6 + $0x384] sm:$0xf0] }
 0x631   :  { %v10694_v52 = vor.u32 %v13192_v53, %v10693_v41 }
 0x632   :  { %6541 = vmatpush.bf16.msrb.mxu3 %v11238_v14  ;;  %v10829_v14 = vld [vmem:[%s19031_s6 + $0x490] sm:$0xf] }
 0x634   :  { %6423 = vmatpush.bf16.msra.mxu0 %v10670_v26  ;;  %6436 = vmatpush.bf16.msrb.mxu2 %v10734_v20  ;;  %v3740_v9 = vpop.f32.mrf.mxu3  ;;  %v13326_v26 = vld [vmem:[%s19031_s6 + $0x7b4] sm:$0xf0]  ;;  %v10630_v20 = vor.u32 %v13176_v7, %v10629_v44  ;;  %v10837_v44 = vld [vmem:[%s19031_s6 + $0x4a0] sm:$0xf]  ;;  %v13228_v7 = vld [vmem:[%s19031_s6 + $0x4a4] sm:$0xf0] }
 0x635   :  { %v13723_v54 = vpack.c.bf16 %v3740_v9, %v3738_v18  ;;  %v11230_v47 = vor.u32 %v13326_v26, %v11229_v2  ;;  %v10861_v9 = vld [vmem:[%s19031_s6 + $0x4d0] sm:$0xf]  ;;  %v10838_v15 = vor.u32 %v13228_v7, %v10837_v44  ;;  %v10757_v26 = vld [vmem:[%s19031_s6 + $0x400] sm:$0xf] }
 0x636   :  { %v10862_v63 = vor.u32 %v13234_v4, %v10861_v9  ;;  %v10997_v9 = vld [vmem:[%s19031_s6 + $0x5e0] sm:$0xf]  ;;  %v10909_v44 = vld [vmem:[%s19031_s6 + $0x530] sm:$0xf] }
 0x637   :  { %v4274_v62 = vunpack.c.l.b16 %v13723_v54  ;;  %v4275_v18 = vunpack.c.h.b16 %v13723_v54  ;;  %6542 = vmatpush.bf16.msrb.mxu3 %v11230_v47  ;;  %v11213_v54 = vld [vmem:[%s19031_s6 + $0x790] sm:$0xf] }
 0x638   :  { %6424 = vmatpush.bf16.msra.mxu0 %v10662_v51  ;;  %6437 = vmatpush.bf16.msrb.mxu2 %v10726_v30  ;;  %v11221_v30 = vld [vmem:[%s19031_s6 + $0x7a0] sm:$0xf] }
 0x639   :  { %10242 = vmatmul.msk.bf16.gmra.mxu3 %vm3674_vm5, %v3673_v39  ;;  %v15547_v49 = vpack.c.b16 %v4274_v62, %v4274_v62  ;;  %v15549_v51 = vpack.c.b16 %v4275_v18, %v4275_v18  ;;  %v11222_v50 = vor.u32 %v13324_v5, %v11221_v30  ;;  %v13232_v39 = vld [vmem:[%s19031_s6 + $0x4c4] sm:$0xf0]  ;;  %v13226_v62 = vld [vmem:[%s19031_s6 + $0x494] sm:$0xf0]  ;;  %v10766_v18 = vor.u32 %v13210_v25, %v10765_v24  ;;  %v11437_v25 = vld [vmem:[%s19031_s6 + $0x950] sm:$0xf] }
 0x63a   :  { %v10854_v57 = vor.u32 %v13232_v39, %v10853_v10  ;;  %v10830_v2 = vor.u32 %v13226_v62, %v10829_v14  ;;  %v13266_v10 = vld [vmem:[%s19031_s6 + $0x5d4] sm:$0xf0] }
 0x63b   :  { %6543 = vmatpush.bf16.msrb.mxu3 %v11222_v50  ;;  %v13378_v14 = vld [vmem:[%s19031_s6 + $0x954] sm:$0xf0] }
 0x63c   :  { %6425 = vmatpush.bf16.msra.mxu0 %v10654_v38  ;;  %6438 = vmatpush.bf16.msrb.mxu2 %v10718_v34  ;;  %v3743_v6 = vpop.f32.mrf.mxu3  ;;  %v13322_v38 = vld [vmem:[%s19031_s6 + $0x794] sm:$0xf0]  ;;  %v10798_v34 = vor.u32 %v13218_v35, %v10797_v22  ;;  %v10933_v22 = vld [vmem:[%s19031_s6 + $0x560] sm:$0xf]  ;;  %v13252_v35 = vld [vmem:[%s19031_s6 + $0x564] sm:$0xf0] }
 0x63d   :  { %v11214_v55 = vor.u32 %v13322_v38, %v11213_v54  ;;  %v10934_v54 = vor.u32 %v13252_v35, %v10933_v22  ;;  %v11421_v22 = vld [vmem:[%s19031_s6 + $0x930] sm:$0xf]  ;;  %v13374_v35 = vld [vmem:[%s19031_s6 + $0x934] sm:$0xf0] }
 0x63f   :  { %6544 = vmatpush.bf16.msrb.mxu3 %v11214_v55  ;;  %v11453_v55 = vld [vmem:[%s19031_s6 + $0x970] sm:$0xf] }
 0x640   :  { %6426 = vmatpush.bf16.msra.mxu0 %v10646_v13  ;;  %6439 = vmatpush.bf16.msrb.mxu2 %v10710_v17  ;;  %v13320_v13 = vld [vmem:[%s19031_s6 + $0x784] sm:$0xf0]  ;;  %v10790_v17 = vor.u32 %v13216_v1, %v10789_v56  ;;  %v13250_v56 = vld [vmem:[%s19031_s6 + $0x554] sm:$0xf0]  ;;  %v10989_v1 = vld [vmem:[%s19031_s6 + $0x5d0] sm:$0xf] }
 0x644   :  { %6427 = vmatpush.bf16.msra.mxu0 %v10638_v0  ;;  %6440 = vmatpush.bf16.msrb.mxu2 %v10702_v60  ;;  %v3745_v58 = vpop.f32.mrf.mxu3  ;;  %v10773_v0 = vld [vmem:[%s19031_s6 + $0x420] sm:$0xf]  ;;  %v13212_v60 = vld [vmem:[%s19031_s6 + $0x424] sm:$0xf0] }
 0x645   :  { %v15557_v43 = vpack.c.bf16 %v3745_v58, %v3743_v6  ;;  %v11206_v6 = vor.u32 %v13320_v13, %v11205_v3  ;;  %v10774_v27 = vor.u32 %v13212_v60, %v10773_v0  ;;  %v10990_v13 = vor.u32 %v13266_v10, %v10989_v1  ;;  %v11133_v1 = vld [vmem:[%s19031_s6 + $0x6f0] sm:$0xf] }
 0x646   :  { %v10982_v60 = vor.u32 %v13264_v32, %v10981_v40  ;;  %v11422_v10 = vor.u32 %v13374_v35, %v11421_v22  ;;  %v11109_v22 = vld [vmem:[%s19031_s6 + $0x6c0] sm:$0xf] }
 0x647   :  { %6545 = vmatpush.bf16.msrb.mxu3 %v11206_v6  ;;  %v4276_v47 = vunpack.c.l.b16 %v15557_v43  ;;  %v4277_v58 = vunpack.c.h.b16 %v15557_v43  ;;  %v13268_v43 = vld [vmem:[%s19031_s6 + $0x5e4] sm:$0xf0] }
 0x648   :  { %6428 = vmatpush.bf16.msra.mxu0 %v10630_v20  ;;  %6441 = vmatpush.bf16.msrb.mxu2 %v10694_v52  ;;  %v13208_v20 = vld [vmem:[%s19031_s6 + $0x404] sm:$0xf0]  ;;  %v10821_v52 = vld [vmem:[%s19031_s6 + $0x480] sm:$0xf]  ;;  %v10998_v38 = vor.u32 %v13268_v43, %v10997_v9 }
 0x649   :  { %v10758_v30 = vor.u32 %v13208_v20, %v10757_v26  ;;  %v15673_v4 = vpack.c.b16 %v4276_v47, %v4276_v47  ;;  %v15675_v50 = vpack.c.b16 %v4277_v58, %v4277_v58  ;;  %v13244_v26 = vld [vmem:[%s19031_s6 + $0x524] sm:$0xf0]  ;;  %v10965_v20 = vld [vmem:[%s19031_s6 + $0x5a0] sm:$0xf]  ;;  %v13242_v58 = vld [vmem:[%s19031_s6 + $0x514] sm:$0xf0] }
 0x64b   :  { %6429 = vmatmul.bf16.vlgmr.msra.gmra.mxu0 %v15547_v49  ;;  %6442 = vmatmul.bf16.vlgmr.msrb.gmra.mxu2 %v15549_v51 }
 0x64c   :  { %6447 = vmatpush.bf16.msrb.mxu0 %v10814_v29  ;;  %6460 = vmatpush.bf16.msra.mxu2 %v10878_v16  ;;  %v3748_v42 = vpop.f32.mrf.mxu3  ;;  %v13224_v29 = vld [vmem:[%s19031_s6 + $0x484] sm:$0xf0]  ;;  %v10941_v16 = vld [vmem:[%s19031_s6 + $0x570] sm:$0xf] }
 0x64d   :  { %v10822_v5 = vor.u32 %v13224_v29, %v10821_v52  ;;  %v13260_v52 = vld [vmem:[%s19031_s6 + $0x5a4] sm:$0xf0]  ;;  %v11438_v29 = vor.u32 %v13378_v14, %v11437_v25  ;;  %v13370_v25 = vld [vmem:[%s19031_s6 + $0x914] sm:$0xf0] }
 0x650   :  { %6448 = vmatpush.bf16.msrb.mxu0 %v10806_v11  ;;  %6461 = vmatpush.bf16.msra.mxu2 %v10870_v33  ;;  %v10942_v11 = vor.u32 %v13254_v37, %v10941_v16  ;;  %v11006_v33 = vor.u32 %v13270_v31, %v11005_v19  ;;  %v11429_v16 = vld [vmem:[%s19031_s6 + $0x940] sm:$0xf]  ;;  %v10966_v19 = vor.u32 %v13260_v52, %v10965_v20  ;;  %v10893_v31 = vld [vmem:[%s19031_s6 + $0x510] sm:$0xf]  ;;  %v13314_v52 = vld [vmem:[%s19031_s6 + $0x754] sm:$0xf0] }
 0x651   :  { %v10894_v9 = vor.u32 %v13242_v58, %v10893_v31  ;;  %v11181_v20 = vld [vmem:[%s19031_s6 + $0x750] sm:$0xf]  ;;  %v13430_v31 = vld [vmem:[%s19031_s6 + $0xaf4] sm:$0xf0] }
 0x654   :  { %6449 = vmatpush.bf16.msrb.mxu0 %v10798_v34  ;;  %6462 = vmatpush.bf16.msra.mxu2 %v10862_v63  ;;  %v3750_v41 = vpop.f32.mrf.mxu3  ;;  %v10925_v34 = vld [vmem:[%s19031_s6 + $0x550] sm:$0xf] }
 0x655   :  { %v15621_v53 = vpack.c.bf16 %v3750_v41, %v3748_v42  ;;  %v13382_v42 = vld [vmem:[%s19031_s6 + $0x974] sm:$0xf0]  ;;  %v10926_v3 = vor.u32 %v13250_v56, %v10925_v34  ;;  %v13256_v56 = vld [vmem:[%s19031_s6 + $0x584] sm:$0xf0] }
 0x656   :  { %v11454_v6 = vor.u32 %v13382_v42, %v11453_v55  ;;  %v13246_v41 = vld [vmem:[%s19031_s6 + $0x534] sm:$0xf0]  ;;  %v11197_v42 = vld [vmem:[%s19031_s6 + $0x770] sm:$0xf] }
 0x657   :  { %v10910_v62 = vor.u32 %v13246_v41, %v10909_v44  ;;  %v13302_v55 = vld [vmem:[%s19031_s6 + $0x6f4] sm:$0xf0]  ;;  %v4279_v40 = vunpack.c.h.b16 %v15621_v53  ;;  %v13316_v41 = vld [vmem:[%s19031_s6 + $0x764] sm:$0xf0] }
 0x658   :  { %6450 = vmatpush.bf16.msrb.mxu0 %v10790_v17  ;;  %6463 = vmatpush.bf16.msra.mxu2 %v10854_v57  ;;  %v10917_v57 = vld [vmem:[%s19031_s6 + $0x540] sm:$0xf] }
 0x659   :  { %v10918_v0 = vor.u32 %v13248_v59, %v10917_v57  ;;  %v13372_v57 = vld [vmem:[%s19031_s6 + $0x924] sm:$0xf0]  ;;  %v4278_v59 = vunpack.c.l.b16 %v15621_v53  ;;  %v11189_v53 = vld [vmem:[%s19031_s6 + $0x760] sm:$0xf] }
 0x65c   :  { %6451 = vmatpush.bf16.msrb.mxu0 %v10782_v21  ;;  %6464 = vmatpush.bf16.msra.mxu2 %v10846_v8  ;;  %v3753_v46 = vpop.f32.mrf.mxu3  ;;  %v11445_v21 = vld [vmem:[%s19031_s6 + $0x960] sm:$0xf]  ;;  %v13380_v8 = vld [vmem:[%s19031_s6 + $0x964] sm:$0xf0] }
 0x65d   :  { %v11446_v24 = vor.u32 %v13380_v8, %v11445_v21  ;;  %v11134_v8 = vor.u32 %v13302_v55, %v11133_v1 }
 0x660   :  { %6452 = vmatpush.bf16.msrb.mxu0 %v10774_v27  ;;  %6465 = vmatpush.bf16.msra.mxu2 %v10838_v15  ;;  %v10973_v27 = vld [vmem:[%s19031_s6 + $0x5b0] sm:$0xf]  ;;  %v13262_v15 = vld [vmem:[%s19031_s6 + $0x5b4] sm:$0xf0] }
 0x664   :  { %6453 = vmatpush.bf16.msrb.mxu0 %v10766_v18  ;;  %6466 = vmatpush.bf16.msra.mxu2 %v10830_v2  ;;  %v3755_v63 = vpop.f32.mrf.mxu3  ;;  %v10974_v18 = vor.u32 %v13262_v15, %v10973_v27  ;;  %v10901_v2 = vld [vmem:[%s19031_s6 + $0x520] sm:$0xf]  ;;  %v15825_v27 = vpack.c.b16 %v4278_v59, %v4278_v59  ;;  %v15827_v15 = vpack.c.b16 %v4279_v40, %v4279_v40  ;;  %v13310_v59 = vld [vmem:[%s19031_s6 + $0x734] sm:$0xf0] }
 0x665   :  { %v15689_v39 = vpack.c.bf16 %v3755_v63, %v3753_v46  ;;  %v13376_v46 = vld [vmem:[%s19031_s6 + $0x944] sm:$0xf0]  ;;  %v10902_v37 = vor.u32 %v13244_v26, %v10901_v2  ;;  %v10949_v63 = vld [vmem:[%s19031_s6 + $0x580] sm:$0xf]  ;;  %v13298_v2 = vld [vmem:[%s19031_s6 + $0x6d4] sm:$0xf0] }
 0x667   :  { %v4280_v17 = vunpack.c.l.b16 %v15689_v39 }
 0x668   :  { %6454 = vmatpush.bf16.msrb.mxu0 %v10758_v30  ;;  %6467 = vmatpush.bf16.msra.mxu2 %v10822_v5  ;;  %v10957_v30 = vld [vmem:[%s19031_s6 + $0x590] sm:$0xf]  ;;  %v13258_v5 = vld [vmem:[%s19031_s6 + $0x594] sm:$0xf0] }
 0x669   :  { %v15712_v23 = vpack.c.b16 %v4280_v17, %v4280_v17  ;;  %v10958_v43 = vor.u32 %v13258_v5, %v10957_v30  ;;  %v11413_v17 = vld [vmem:[%s19031_s6 + $0x920] sm:$0xf]  ;;  %v11182_v5 = vor.u32 %v13314_v52, %v11181_v20  ;;  %v11085_v52 = vld [vmem:[%s19031_s6 + $0x690] sm:$0xf] }
 0x66a   :  { %v11414_v44 = vor.u32 %v13372_v57, %v11413_v17  ;;  %v13294_v17 = vld [vmem:[%s19031_s6 + $0x6b4] sm:$0xf0]  ;;  %v11165_v57 = vld [vmem:[%s19031_s6 + $0x730] sm:$0xf] }
 0x66b   :  { %6455 = vmatmul.bf16.vlgmr.msrb.gmra.mxu0 %v15673_v4  ;;  %6468 = vmatmul.bf16.vlgmr.msra.gmra.mxu2 %v15675_v50 }
 0x66c   :  { %6473 = vmatpush.bf16.msra.mxu0 %v10942_v11  ;;  %6486 = vmatpush.bf16.msrb.mxu2 %v11006_v33  ;;  %v3758_v7 = vpop.f32.mrf.mxu3  ;;  %v11430_v33 = vor.u32 %v13376_v46, %v11429_v16  ;;  %v13368_v16 = vld [vmem:[%s19031_s6 + $0x904] sm:$0xf0]  ;;  %v13339_v46 = vld [vmem:[%s19031_s6 + $0x824] sm:$0xf] }
 0x66d   :  { %6507 = vmatmul.bf16.vlgmr.msra.gmra.mxu3 %v15712_v23 }
 0x66e   :  { %6577 = vmatpush.bf16.msra.mxu3 %v11454_v6  ;;  %v10950_v6 = vor.u32 %v13256_v56, %v10949_v63  ;;  %v11637_v63 = vld [vmem:[%s19031_s6 + $0xae0] sm:$0xf]  ;;  %v13428_v56 = vld [vmem:[%s19031_s6 + $0xae4] sm:$0xf0] }
 0x66f   :  { %v11638_v40 = vor.u32 %v13428_v56, %v11637_v63  ;;  %v13350_v63 = vld [vmem:[%s19031_s6 + $0x874] sm:$0xf0]  ;;  %v11389_v56 = vld [vmem:[%s19031_s6 + $0x8f0] sm:$0xf] }
 0x670   :  { %6474 = vmatpush.bf16.msra.mxu0 %v10934_v54  ;;  %6487 = vmatpush.bf16.msrb.mxu2 %v10998_v38  ;;  %v10885_v54 = vld [vmem:[%s19031_s6 + $0x500] sm:$0xf]  ;;  %v13240_v38 = vld [vmem:[%s19031_s6 + $0x504] sm:$0xf0] }
 0x671   :  { %v10886_v32 = vor.u32 %v13240_v38, %v10885_v54  ;;  %v11173_v54 = vld [vmem:[%s19031_s6 + $0x740] sm:$0xf]  ;;  %v13312_v38 = vld [vmem:[%s19031_s6 + $0x744] sm:$0xf0] }
 0x672   :  { %6578 = vmatpush.bf16.msra.mxu3 %v11446_v24  ;;  %v11405_v24 = vld [vmem:[%s19031_s6 + $0x910] sm:$0xf] }
 0x673   :  { %v11406_v26 = vor.u32 %v13370_v25, %v11405_v24 }
 0x674   :  { %6475 = vmatpush.bf16.msra.mxu0 %v10926_v3  ;;  %6488 = vmatpush.bf16.msrb.mxu2 %v10990_v13  ;;  %v3760_v47 = vpop.f32.mrf.mxu3  ;;  %v13318_v3 = vld [vmem:[%s19031_s6 + $0x774] sm:$0xf0] }
 0x675   :  { %v15769_v11 = vpack.c.bf16 %v3760_v47, %v3758_v7  ;;  %v13300_v7 = vld [vmem:[%s19031_s6 + $0x6e4] sm:$0xf0] }
 0x676   :  { %6579 = vmatpush.bf16.msra.mxu3 %v11438_v29  ;;  %v11397_v29 = vld [vmem:[%s19031_s6 + $0x900] sm:$0xf] }
 0x677   :  { %v4283_v34 = vunpack.c.h.b16 %v15769_v11 }
 0x678   :  { %6476 = vmatpush.bf16.msra.mxu0 %v10918_v0  ;;  %6489 = vmatpush.bf16.msrb.mxu2 %v10982_v60  ;;  %v11198_v0 = vor.u32 %v13318_v3, %v11197_v42  ;;  %v11125_v60 = vld [vmem:[%s19031_s6 + $0x6e0] sm:$0xf]  ;;  %v11174_v42 = vor.u32 %v13312_v38, %v11173_v54  ;;  %v11101_v3 = vld [vmem:[%s19031_s6 + $0x6b0] sm:$0xf] }
 0x679   :  { %v15802_v13 = vpack.c.b16 %v4283_v34, %v4283_v34  ;;  %v11126_v14 = vor.u32 %v13300_v7, %v11125_v60  ;;  %v11093_v60 = vld [vmem:[%s19031_s6 + $0x6a0] sm:$0xf]  ;;  %v13292_v7 = vld [vmem:[%s19031_s6 + $0x6a4] sm:$0xf0]  ;;  %v11325_v54 = vld [vmem:[%s19031_s6 + $0x870] sm:$0xf] }
 0x67a   :  { %6580 = vmatpush.bf16.msra.mxu3 %v11430_v33  ;;  %v3585_v33 = vld [vmem:[%s19027_s2 + $0x2] sm:$0x3] }
 0x67b   :  { %v4251_v1 = vperm.slane %v3585_v33, 0  ;;  %v13288_v33 = vld [vmem:[%s19031_s6 + $0x684] sm:$0xf0] }
 0x67c   :  { %6477 = vmatpush.bf16.msra.mxu0 %v10910_v62  ;;  %6490 = vmatpush.bf16.msrb.mxu2 %v10974_v18  ;;  %v3763_v21 = vpop.f32.mrf.mxu3  ;;  %v11190_v62 = vor.u32 %v13316_v41, %v11189_v53  ;;  %v11117_v18 = vld [vmem:[%s19031_s6 + $0x6d0] sm:$0xf]  ;;  %v11157_v53 = vld [vmem:[%s19031_s6 + $0x720] sm:$0xf]  ;;  %v13308_v41 = vld [vmem:[%s19031_s6 + $0x724] sm:$0xf0] }
 0x67d   :  { %6546 = vmatmul.bf16.vlgmr.msrb.gmra.mxu3 %v15802_v13  ;;  %v11118_v30 = vor.u32 %v13298_v2, %v11117_v18  ;;  %v13424_v18 = vld [vmem:[%s19031_s6 + $0xac4] sm:$0xf0]  ;;  %v11158_v20 = vor.u32 %v13308_v41, %v11157_v53  ;;  %v11597_v41 = vld [vmem:[%s19031_s6 + $0xa90] sm:$0xf] }
 0x67e   :  { %6581 = vmatpush.bf16.msra.mxu3 %v11422_v10 }
 0x680   :  { %6478 = vmatpush.bf16.msra.mxu0 %v10902_v37  ;;  %6491 = vmatpush.bf16.msrb.mxu2 %v10966_v19  ;;  %v11287_v37 = vld [vmem:[%s19031_s6 + $0x828] sm:$0xf0]  ;;  %v11645_v19 = vld [vmem:[%s19031_s6 + $0xaf0] sm:$0xf] }
 0x681   :  { %v11290_v47 = vor.u32 %v13339_v46, %v11287_v37  ;;  %v11646_v34 = vor.u32 %v13430_v31, %v11645_v19  ;;  %v13306_v46 = vld [vmem:[%s19031_s6 + $0x714] sm:$0xf0]  ;;  %v11613_v19 = vld [vmem:[%s19031_s6 + $0xab0] sm:$0xf] }
 0x682   :  { %6582 = vmatpush.bf16.msra.mxu3 %v11414_v44  ;;  %v13422_v31 = vld [vmem:[%s19031_s6 + $0xab4] sm:$0xf0] }
 0x683   :  { %6881 = vmatpush.bf16.msrb.mxu1 %v11290_v47 }
 0x684   :  { %6479 = vmatpush.bf16.msra.mxu0 %v10894_v9  ;;  %6492 = vmatpush.bf16.msrb.mxu2 %v10958_v43  ;;  %v3765_v58 = vpop.f32.mrf.mxu3  ;;  %v11398_v9 = vor.u32 %v13368_v16, %v11397_v29  ;;  %v13296_v43 = vld [vmem:[%s19031_s6 + $0x6c4] sm:$0xf0]  ;;  %v13290_v29 = vld [vmem:[%s19031_s6 + $0x694] sm:$0xf0]  ;;  %v11149_v16 = vld [vmem:[%s19031_s6 + $0x710] sm:$0xf] }
 0x685   :  { %v15873_v35 = vpack.c.bf16 %v3765_v58, %v3763_v21  ;;  %v11110_v55 = vor.u32 %v13296_v43, %v11109_v22  ;;  %v11086_v58 = vor.u32 %v13290_v29, %v11085_v52  ;;  %v13304_v43 = vld [vmem:[%s19031_s6 + $0x704] sm:$0xf0]  ;;  %v13362_v29 = vld [vmem:[%s19031_s6 + $0x8d4] sm:$0xf0] }
 0x686   :  { %6583 = vmatpush.bf16.msra.mxu3 %v11406_v26  ;;  %v11094_v26 = vor.u32 %v13292_v7, %v11093_v60  ;;  %v11381_v60 = vld [vmem:[%s19031_s6 + $0x8e0] sm:$0xf] }
 0x688   :  { %6480 = vmatpush.bf16.msra.mxu0 %v10886_v32  ;;  %6493 = vmatpush.bf16.msrb.mxu2 %v10950_v6  ;;  %v6352_v10 = vpop.f32.mrf.mxu0  ;;  %v11629_v32 = vld [vmem:[%s19031_s6 + $0xad0] sm:$0xf]  ;;  %v13426_v6 = vld [vmem:[%s19031_s6 + $0xad4] sm:$0xf0] }
 0x689   :  { %v6353_v44 = vadd.f32 %v6352_v10, %v4251_v1  ;;  %v11630_v25 = vor.u32 %v13426_v6, %v11629_v32  ;;  %v13366_v1 = vld [vmem:[%s19031_s6 + $0x8f4] sm:$0xf0]  ;;  %v11605_v10 = vld [vmem:[%s19031_s6 + $0xaa0] sm:$0xf]  ;;  %v11326_v6 = vor.u32 %v13350_v63, %v11325_v54  ;;  %v13344_v54 = vld [vmem:[%s19031_s6 + $0x844] sm:$0xf0] }
 0x68a   :  { %6584 = vmatpush.bf16.msra.mxu3 %v11398_v9  ;;  %v11141_v9 = vld [vmem:[%s19031_s6 + $0x700] sm:$0xf]  ;;  %v13360_v63 = vld [vmem:[%s19031_s6 + $0x8c4] sm:$0xf0] }
 0x68b   :  { %6481 = vmatmul.bf16.vlgmr.msra.gmra.mxu0 %v15825_v27  ;;  %6494 = vmatmul.bf16.vlgmr.msrb.gmra.mxu2 %v15827_v15 }
 0x68c   :  { %6512 = vmatpush.bf16.msrb.mxu0 %v11134_v8  ;;  %6525 = vmatpush.bf16.msra.mxu2 %v11198_v0  ;;  %v3768_v21 = vpop.f32.mrf.mxu3  ;;  %v11102_v8 = vor.u32 %v13294_v17, %v11101_v3  ;;  %v11166_v0 = vor.u32 %v13310_v59, %v11165_v57  ;;  %v4282_v3 = vunpack.c.l.b16 %v15769_v11  ;;  %v13348_v11 = vld [vmem:[%s19031_s6 + $0x864] sm:$0xf0] }
 0x68e   :  { %6616 = vmatpush.bf16.msrb.mxu3 %v11646_v34  ;;  %v6365_v24 = vpop.f32.mrf.mxu2  ;;  %v11614_v34 = vor.u32 %v13422_v31, %v11613_v19  ;;  %v15995_v53 = vpack.c.b16 %v4282_v3, %v4282_v3  ;;  %v11589_v19 = vld [vmem:[%s19031_s6 + $0xa80] sm:$0xf]  ;;  %v13416_v31 = vld [vmem:[%s19031_s6 + $0xa84] sm:$0xf0] }
 0x68f   :  { %v13476_v3 = vld [vmem:[%s19031_s6 + $0xc64] sm:$0xf0] }
 0x690   :  { %6513 = vmatpush.bf16.msrb.mxu0 %v11126_v14  ;;  %6526 = vmatpush.bf16.msra.mxu2 %v11190_v62  ;;  %v6366_v14 = vadd.f32 %v6365_v24, %v6353_v44  ;;  %v11621_v62 = vld [vmem:[%s19031_s6 + $0xac0] sm:$0xf]  ;;  %v6354_v2 = vpop.f32.mrf.mxu0  ;;  %v13364_v44 = vld [vmem:[%s19031_s6 + $0x8e4] sm:$0xf0]  ;;  %v13418_v24 = vld [vmem:[%s19031_s6 + $0xa94] sm:$0xf0] }
 0x691   :  { %v11622_v37 = vor.u32 %v13424_v18, %v11621_v62  ;;  %v11382_v62 = vor.u32 %v13364_v44, %v11381_v60  ;;  %v11309_v18 = vld [vmem:[%s19031_s6 + $0x850] sm:$0xf]  ;;  %v13346_v2 = vld [vmem:[%s19031_s6 + $0x854] sm:$0xf0]  ;;  %v11598_v52 = vor.u32 %v13418_v24, %v11597_v41 }
 0x692   :  { %6617 = vmatpush.bf16.msrb.mxu3 %v11638_v40  ;;  %v11142_v40 = vor.u32 %v13304_v43, %v11141_v9  ;;  %v11301_v43 = vld [vmem:[%s19031_s6 + $0x840] sm:$0xf] }
 0x694   :  { %6514 = vmatpush.bf16.msrb.mxu0 %v11118_v30  ;;  %6527 = vmatpush.bf16.msra.mxu2 %v11182_v5  ;;  %v3770_v47 = vpop.f32.mrf.mxu3  ;;  %v11150_v30 = vor.u32 %v13306_v46, %v11149_v16  ;;  %v11077_v5 = vld [vmem:[%s19031_s6 + $0x680] sm:$0xf]  ;;  %v13337_v16 = vld [vmem:[%s19031_s6 + $0x814] sm:$0xf]  ;;  %v11279_v46 = vld [vmem:[%s19031_s6 + $0x818] sm:$0xf0] }
 0x695   :  { %v15950_v22 = vpack.c.bf16 %v3770_v47, %v3768_v21  ;;  %v11078_v59 = vor.u32 %v13288_v33, %v11077_v5  ;;  %v11390_v21 = vor.u32 %v13366_v1, %v11389_v56  ;;  %v11282_v47 = vor.u32 %v13337_v16, %v11279_v46  ;;  %v13478_v5 = vld [vmem:[%s19031_s6 + $0xc74] sm:$0xf0]  ;;  %v13335_v56 = vld [vmem:[%s19031_s6 + $0x804] sm:$0xf]  ;;  %v11271_v1 = vld [vmem:[%s19031_s6 + $0x808] sm:$0xf0] }
 0x696   :  { %6618 = vmatpush.bf16.msrb.mxu3 %v11630_v25  ;;  %v6367_v38 = vpop.f32.mrf.mxu2  ;;  %v11310_v33 = vor.u32 %v13346_v2, %v11309_v18  ;;  %v13356_v16 = vld [vmem:[%s19031_s6 + $0x8a4] sm:$0xf0] }
 0x697   :  { %v4286_v17 = vunpack.c.l.b16 %v15950_v22  ;;  %v11365_v38 = vld [vmem:[%s19031_s6 + $0x8c0] sm:$0xf]  ;;  %6882 = vmatpush.bf16.msrb.mxu1 %v11282_v47 }
 0x698   :  { %6515 = vmatpush.bf16.msrb.mxu0 %v11110_v55  ;;  %6528 = vmatpush.bf16.msra.mxu2 %v11174_v42  ;;  %v13420_v55 = vld [vmem:[%s19031_s6 + $0xaa4] sm:$0xf0]  ;;  %v4281_v42 = vunpack.c.h.b16 %v15689_v39  ;;  %v6378_v57 = vpop.f32.mrf.mxu0 }
 0x699   :  { %v6379_v32 = vadd.f32 %v6378_v57, %v6366_v14  ;;  %v11606_v39 = vor.u32 %v13420_v55, %v11605_v10  ;;  %v11274_v55 = vor.u32 %v13335_v56, %v11271_v1  ;;  %v4284_v57 = vunpack.c.l.b16 %v15873_v35  ;;  %v11269_v56 = vld [vmem:[%s19031_s6 + $0x800] sm:$0xf] }
 0x69a   :  { %6619 = vmatpush.bf16.msrb.mxu3 %v11622_v37  ;;  %v15993_v7 = vpack.c.b16 %v4281_v42, %v4281_v42  ;;  %v11829_v42 = vld [vmem:[%s19031_s6 + $0xc60] sm:$0xf] }
 0x69b   :  { %6883 = vmatpush.bf16.msrb.mxu1 %v11274_v55  ;;  %v11830_v60 = vor.u32 %v13476_v3, %v11829_v42  ;;  %v13336_v42 = vld [vmem:[%s19031_s6 + $0x804] sm:$0xf0]  ;;  %v13413_v3 = vld [vmem:[%s19031_s6 + $0xa74] sm:$0xf] }
 0x69c   :  { %6516 = vmatpush.bf16.msrb.mxu0 %v11102_v8  ;;  %6529 = vmatpush.bf16.msra.mxu2 %v11166_v0  ;;  %v11317_v8 = vld [vmem:[%s19031_s6 + $0x860] sm:$0xf]  ;;  %v15982_v0 = vpack.c.b16 %v4286_v17, %v4286_v17  ;;  %v3773_v25 = vpop.f32.mrf.mxu3 }
 0x69d   :  { %v11318_v14 = vor.u32 %v13348_v11, %v11317_v8  ;;  %v13358_v11 = vld [vmem:[%s19031_s6 + $0x8b4] sm:$0xf0] }
 0x69e   :  { %6620 = vmatpush.bf16.msrb.mxu3 %v11614_v34  ;;  %v11590_v34 = vor.u32 %v13416_v31, %v11589_v19  ;;  %v13472_v19 = vld [vmem:[%s19031_s6 + $0xc44] sm:$0xf0] }
 0x69f   :  { %6585 = vmatmul.bf16.vlgmr.msra.gmra.mxu3 %v15982_v0 }
 0x6a0   :  { %6517 = vmatpush.bf16.msrb.mxu0 %v11094_v26  ;;  %6530 = vmatpush.bf16.msra.mxu2 %v11158_v20  ;;  %v11373_v26 = vld [vmem:[%s19031_s6 + $0x8d0] sm:$0xf]  ;;  %v6391_v20 = vpop.f32.mrf.mxu2 }
 0x6a1   :  { %v6392_v37 = vadd.f32 %v6391_v20, %v6379_v32  ;;  %v11374_v9 = vor.u32 %v13362_v29, %v11373_v26  ;;  %v11285_v26 = vld [vmem:[%s19031_s6 + $0x820] sm:$0xf] }
 0x6a2   :  { %6621 = vmatpush.bf16.msrb.mxu3 %v11606_v39  ;;  %v11357_v39 = vld [vmem:[%s19031_s6 + $0x8b0] sm:$0xf]  ;;  %v11349_v29 = vld [vmem:[%s19031_s6 + $0x8a0] sm:$0xf] }
 0x6a3   :  { %v11358_v2 = vor.u32 %v13358_v11, %v11357_v39  ;;  %v11350_v47 = vor.u32 %v13356_v16, %v11349_v29  ;;  %v11581_v39 = vld [vmem:[%s19031_s6 + $0xa70] sm:$0xf]  ;;  %v13414_v11 = vld [vmem:[%s19031_s6 + $0xa74] sm:$0xf0]  ;;  %v13396_v16 = vld [vmem:[%s19031_s6 + $0x9e4] sm:$0xf0] }
 0x6a4   :  { %6518 = vmatpush.bf16.msrb.mxu0 %v11086_v58  ;;  %6531 = vmatpush.bf16.msra.mxu2 %v11150_v30  ;;  %v6380_v58 = vpop.f32.mrf.mxu0  ;;  %v11837_v30 = vld [vmem:[%s19031_s6 + $0xc70] sm:$0xf]  ;;  %v3775_v17 = vpop.f32.mrf.mxu3 }
 0x6a5   :  { %v11838_v10 = vor.u32 %v13478_v5, %v11837_v30  ;;  %v16061_v32 = vpack.c.bf16 %v3775_v17, %v3773_v25  ;;  %v11821_v25 = vld [vmem:[%s19031_s6 + $0xc50] sm:$0xf]  ;;  %v11583_v17 = vld [vmem:[%s19031_s6 + $0xa78] sm:$0xf0] }
 0x6a6   :  { %6622 = vmatpush.bf16.msrb.mxu3 %v11598_v52  ;;  %v13340_v52 = vld [vmem:[%s19031_s6 + $0x824] sm:$0xf0]  ;;  %v11277_v30 = vld [vmem:[%s19031_s6 + $0x810] sm:$0xf] }
 0x6a7   :  { %v4289_v44 = vunpack.c.h.b16 %v16061_v32  ;;  %v11286_v31 = vor.u32 %v13340_v52, %v11285_v26  ;;  %v11582_v52 = vor.u32 %v13414_v11, %v11581_v39  ;;  %v11493_v11 = vld [vmem:[%s19031_s6 + $0x9c0] sm:$0xf] }
 0x6a8   :  { %6519 = vmatpush.bf16.msrb.mxu0 %v11078_v59  ;;  %6532 = vmatpush.bf16.msra.mxu2 %v11142_v40  ;;  %v11302_v59 = vor.u32 %v13344_v54, %v11301_v43  ;;  %v11366_v40 = vor.u32 %v13360_v63, %v11365_v38  ;;  %v6393_v8 = vpop.f32.mrf.mxu2  ;;  %v13354_v43 = vld [vmem:[%s19031_s6 + $0x894] sm:$0xf0] }
 0x6a9   :  { %v16087_v20 = vpack.c.b16 %v4289_v44, %v4289_v44  ;;  %v13470_v63 = vld [vmem:[%s19031_s6 + $0xc34] sm:$0xf0]  ;;  %v13468_v44 = vld [vmem:[%s19031_s6 + $0xc24] sm:$0xf0] }
 0x6aa   :  { %6623 = vmatpush.bf16.msrb.mxu3 %v11590_v34  ;;  %v11805_v34 = vld [vmem:[%s19031_s6 + $0xc30] sm:$0xf]  ;;  %v13398_v8 = vld [vmem:[%s19031_s6 + $0x9f4] sm:$0xf0] }
 0x6ab   :  { %6520 = vmatmul.bf16.vlgmr.msrb.gmra.mxu0 %v15993_v7  ;;  %6533 = vmatmul.bf16.vlgmr.msra.gmra.mxu2 %v15995_v53 }
 0x6ac   :  { %6551 = vmatpush.bf16.msra.mxu0 %v11326_v6  ;;  %6564 = vmatpush.bf16.msrb.mxu2 %v11390_v21  ;;  %v11293_v6 = vld [vmem:[%s19031_s6 + $0x830] sm:$0xf]  ;;  %v13342_v21 = vld [vmem:[%s19031_s6 + $0x834] sm:$0xf0]  ;;  %v6404_v41 = vpop.f32.mrf.mxu0  ;;  %v3778_v58 = vpop.f32.mrf.mxu3 }
 0x6ad   :  { %v11294_v24 = vor.u32 %v13342_v21, %v11293_v6  ;;  %v6405_v18 = vadd.f32 %v6404_v41, %v6392_v37  ;;  %v11813_v37 = vld [vmem:[%s19031_s6 + $0xc40] sm:$0xf]  ;;  %v11586_v6 = vor.u32 %v13413_v3, %v11583_v17  ;;  %v11806_v21 = vor.u32 %v13470_v63, %v11805_v34  ;;  %v11501_v63 = vld [vmem:[%s19031_s6 + $0x9d0] sm:$0xf]  ;;  %v13464_v3 = vld [vmem:[%s19031_s6 + $0xc04] sm:$0xf0] }
 0x6ae   :  { %6655 = vmatpush.bf16.msra.mxu3 %v11838_v10  ;;  %v11814_v38 = vor.u32 %v13472_v19, %v11813_v37  ;;  %v4285_v41 = vunpack.c.h.b16 %v15873_v35  ;;  %v11509_v35 = vld [vmem:[%s19031_s6 + $0x9e0] sm:$0xf]  ;;  %v13407_v17 = vld [vmem:[%s19031_s6 + $0xa44] sm:$0xf] }
 0x6af   :  { %6624 = vmatmul.bf16.vlgmr.msrb.gmra.mxu3 %v16087_v20  ;;  %6928 = vmatpush.bf16.msra.mxu1 %v11586_v6 }
 0x6b0   :  { %6552 = vmatpush.bf16.msra.mxu0 %v11318_v14  ;;  %6565 = vmatpush.bf16.msrb.mxu2 %v11382_v62  ;;  %v13474_v14 = vld [vmem:[%s19031_s6 + $0xc54] sm:$0xf0]  ;;  %v16082_v62 = vpack.c.b16 %v4284_v57, %v4284_v57  ;;  %v6417_v5 = vpop.f32.mrf.mxu2  ;;  %v11333_v57 = vld [vmem:[%s19031_s6 + $0x880] sm:$0xf] }
 0x6b1   :  { %v11822_v46 = vor.u32 %v13474_v14, %v11821_v25  ;;  %v16118_v54 = vadd.f32 %v6417_v5, %v6405_v18  ;;  %v13411_v18 = vld [vmem:[%s19031_s6 + $0xa64] sm:$0xf]  ;;  %v16189_v5 = vpack.c.b16 %v4285_v41, %v4285_v41  ;;  %v11557_v41 = vld [vmem:[%s19031_s6 + $0xa40] sm:$0xf] }
 0x6b2   :  { %6884 = vmatmul.bf16.vlgmr.msrb.gmra.mxu1 %v16082_v62  ;;  %6656 = vmatpush.bf16.msra.mxu3 %v11830_v60  ;;  %v11797_v60 = vld [vmem:[%s19031_s6 + $0xc20] sm:$0xf] }
 0x6b4   :  { %6553 = vmatpush.bf16.msra.mxu0 %v11310_v33  ;;  %6566 = vmatpush.bf16.msrb.mxu2 %v11374_v9  ;;  %v13338_v33 = vld [vmem:[%s19031_s6 + $0x814] sm:$0xf0]  ;;  %v11341_v9 = vld [vmem:[%s19031_s6 + $0x890] sm:$0xf]  ;;  %v6406_v1 = vpop.f32.mrf.mxu0  ;;  %v3780_v14 = vpop.f32.mrf.mxu3 }
 0x6b5   :  { %v11278_v10 = vor.u32 %v13338_v33, %v11277_v30  ;;  %v11342_v55 = vor.u32 %v13354_v43, %v11341_v9  ;;  %v16169_v29 = vpack.c.bf16 %v3780_v14, %v3778_v58  ;;  %v11789_v58 = vld [vmem:[%s19031_s6 + $0xc10] sm:$0xf]  ;;  %v13466_v30 = vld [vmem:[%s19031_s6 + $0xc14] sm:$0xf0]  ;;  %v13409_v33 = vld [vmem:[%s19031_s6 + $0xa54] sm:$0xf] }
 0x6b6   :  { %6657 = vmatpush.bf16.msra.mxu3 %v11822_v46  ;;  %v11573_v46 = vld [vmem:[%s19031_s6 + $0xa60] sm:$0xf]  ;;  %v11567_v9 = vld [vmem:[%s19031_s6 + $0xa58] sm:$0xf0]  ;;  %v11790_v1 = vor.u32 %v13466_v30, %v11789_v58  ;;  %v13405_v14 = vld [vmem:[%s19031_s6 + $0xa34] sm:$0xf] }
 0x6b7   :  { %v11570_v43 = vor.u32 %v13409_v33, %v11567_v9  ;;  %v13403_v58 = vld [vmem:[%s19031_s6 + $0xa24] sm:$0xf]  ;;  %v11543_v30 = vld [vmem:[%s19031_s6 + $0xa28] sm:$0xf0]  ;;  %v13121_v9 = vld [vmem:[%s19031_s6 + $0x154] sm:$0xf] }
 0x6b8   :  { %6554 = vmatpush.bf16.msra.mxu0 %v11302_v59  ;;  %6567 = vmatpush.bf16.msrb.mxu2 %v11366_v40  ;;  %v13352_v59 = vld [vmem:[%s19031_s6 + $0x884] sm:$0xf0]  ;;  %v11517_v40 = vld [vmem:[%s19031_s6 + $0x9f0] sm:$0xf]  ;;  %v6419_v37 = vpop.f32.mrf.mxu2 }
 0x6b9   :  { %v11334_v25 = vor.u32 %v13352_v59, %v11333_v57  ;;  %v11518_v26 = vor.u32 %v13398_v8, %v11517_v40  ;;  %v11559_v57 = vld [vmem:[%s19031_s6 + $0xa48] sm:$0xf0]  ;;  %v13125_v40 = vld [vmem:[%s19031_s6 + $0x174] sm:$0xf]  ;;  %v13390_v37 = vld [vmem:[%s19031_s6 + $0x9b4] sm:$0xf0] }
 0x6ba   :  { %6658 = vmatpush.bf16.msra.mxu3 %v11814_v38  ;;  %v11510_v38 = vor.u32 %v13396_v16, %v11509_v35  ;;  %v11562_v6 = vor.u32 %v13407_v17, %v11559_v57 }
 0x6bc   :  { %6555 = vmatpush.bf16.msra.mxu0 %v11294_v24  ;;  %6568 = vmatpush.bf16.msrb.mxu2 %v11358_v2  ;;  %v11270_v24 = vor.u32 %v13336_v42, %v11269_v56  ;;  %v11575_v2 = vld [vmem:[%s19031_s6 + $0xa68] sm:$0xf0]  ;;  %v13394_v56 = vld [vmem:[%s19031_s6 + $0x9d4] sm:$0xf0]  ;;  %v11781_v42 = vld [vmem:[%s19031_s6 + $0xc00] sm:$0xf]  ;;  %v3783_v59 = vpop.f32.mrf.mxu3 }
 0x6bd   :  { %v11578_v19 = vor.u32 %v13411_v18, %v11575_v2  ;;  %v3811_v39 = vpack.c.bf16 %v3783_v59, %v3783_v59  ;;  %v11551_v18 = vld [vmem:[%s19031_s6 + $0xa38] sm:$0xf0]  ;;  %v13123_v2 = vld [vmem:[%s19031_s6 + $0x164] sm:$0xf]  ;;  %v13401_v59 = vld [vmem:[%s19031_s6 + $0xa14] sm:$0xf] }
 0x6be   :  { %6659 = vmatpush.bf16.msra.mxu3 %v11806_v21  ;;  %v11502_v21 = vor.u32 %v13394_v56, %v11501_v63 }
 0x6bf   :  { %6929 = vmatpush.bf16.msra.mxu1 %v11578_v19  ;;  %3836 = vst [vmem:[#allocation3 + $0x60] sm:$0xf] %v3811_v39  ;;  %v11549_v19 = vld [vmem:[%s19031_s6 + $0xa30] sm:$0xf] }
 0x6c0   :  { %6556 = vmatpush.bf16.msra.mxu0 %v11286_v31  ;;  %6569 = vmatpush.bf16.msrb.mxu2 %v11350_v47  ;;  %v11798_v31 = vor.u32 %v13468_v44, %v11797_v60  ;;  %v13412_v47 = vld [vmem:[%s19031_s6 + $0xa64] sm:$0xf0]  ;;  %v11782_v60 = vor.u32 %v13464_v3, %v11781_v42  ;;  %v11541_v42 = vld [vmem:[%s19031_s6 + $0xa20] sm:$0xf] }
 0x6c1   :  { %v11574_v34 = vor.u32 %v13412_v47, %v11573_v46  ;;  %v13392_v44 = vld [vmem:[%s19031_s6 + $0x9c4] sm:$0xf0]  ;;  %v11485_v46 = vld [vmem:[%s19031_s6 + $0x9b0] sm:$0xf] }
 0x6c2   :  { %6660 = vmatpush.bf16.msra.mxu3 %v11798_v31  ;;  %v11494_v35 = vor.u32 %v13392_v44, %v11493_v11  ;;  %v13406_v31 = vld [vmem:[%s19031_s6 + $0xa34] sm:$0xf0]  ;;  %v11486_v56 = vor.u32 %v13390_v37, %v11485_v46  ;;  %v11469_v11 = vld [vmem:[%s19031_s6 + $0x990] sm:$0xf] }
 0x6c3   :  { %6930 = vmatpush.bf16.msra.mxu1 %v11570_v43  ;;  %v10415_v43 = vld [vmem:[%s19031_s6 + $0x158] sm:$0xf0] }
 0x6c4   :  { %6557 = vmatpush.bf16.msra.mxu0 %v11278_v10  ;;  %6570 = vmatpush.bf16.msrb.mxu2 %v11342_v55  ;;  %v11565_v10 = vld [vmem:[%s19031_s6 + $0xa50] sm:$0xf]  ;;  %v13410_v55 = vld [vmem:[%s19031_s6 + $0xa54] sm:$0xf0]  ;;  %v10418_v17 = vor.u32 %v13121_v9, %v10415_v43 }
 0x6c5   :  { %v11566_v8 = vor.u32 %v13410_v55, %v11565_v10  ;;  %v11477_v10 = vld [vmem:[%s19031_s6 + $0x9a0] sm:$0xf]  ;;  %v13388_v55 = vld [vmem:[%s19031_s6 + $0x9a4] sm:$0xf0]  ;;  %v11709_v9 = vld [vmem:[%s19031_s6 + $0xb70] sm:$0xf] }
 0x6c6   :  { %6661 = vmatpush.bf16.msra.mxu3 %v11790_v1  ;;  %v11550_v1 = vor.u32 %v13406_v31, %v11549_v19  ;;  %v3849_v3 = vld [vmem:[#allocation3 + $0x60] sm:$0xf]  ;;  %v11461_v31 = vld [vmem:[%s19031_s6 + $0x980] sm:$0xf] }
 0x6c7   :  { %6931 = vmatpush.bf16.msra.mxu1 %v11562_v6  ;;  %v4292_v57 = vunpack.c.l.b16 %v3849_v3  ;;  %v10407_v6 = vld [vmem:[%s19031_s6 + $0x148] sm:$0xf0] }
 0x6c8   :  { %6558 = vmatpush.bf16.msra.mxu0 %v11270_v24  ;;  %6571 = vmatpush.bf16.msrb.mxu2 %v11334_v25  ;;  %v13408_v24 = vld [vmem:[%s19031_s6 + $0xa44] sm:$0xf0]  ;;  %v6430_v33 = vpop.f32.mrf.mxu0 }
 0x6c9   :  { %v11558_v16 = vor.u32 %v13408_v24, %v11557_v41  ;;  %v6431_v63 = vadd.f32 %v6430_v33, %v16118_v54  ;;  %v13404_v54 = vld [vmem:[%s19031_s6 + $0xa24] sm:$0xf0]  ;;  %v13386_v41 = vld [vmem:[%s19031_s6 + $0x994] sm:$0xf0]  ;;  %v11533_v24 = vld [vmem:[%s19031_s6 + $0xa10] sm:$0xf] }
 0x6ca   :  { %6662 = vmatpush.bf16.msra.mxu3 %v11782_v60  ;;  %v11542_v39 = vor.u32 %v13404_v54, %v11541_v42  ;;  %v16305_v60 = vpack.c.b16 %v4292_v57, %v4292_v57  ;;  %v11470_v37 = vor.u32 %v13386_v41, %v11469_v11  ;;  %v13400_v33 = vld [vmem:[%s19031_s6 + $0xa04] sm:$0xf0] }
 0x6cb   :  { %6559 = vmatmul.bf16.vlgmr.msra.gmra.mxu0 %v16082_v62  ;;  %6572 = vmatmul.bf16.vlgmr.msrb.gmra.mxu2 %v16189_v5  ;;  %v10431_v62 = vld [vmem:[%s19031_s6 + $0x178] sm:$0xf0] }
 0x6cc   :  { %6590 = vmatpush.bf16.msrb.mxu0 %v11518_v26  ;;  %6603 = vmatpush.bf16.msra.mxu2 %v11582_v52  ;;  %v10434_v25 = vor.u32 %v13125_v40, %v10431_v62  ;;  %v10423_v26 = vld [vmem:[%s19031_s6 + $0x168] sm:$0xf0]  ;;  %v11554_v52 = vor.u32 %v13405_v14, %v11551_v18  ;;  %v11535_v40 = vld [vmem:[%s19031_s6 + $0xa18] sm:$0xf0]  ;;  %v13119_v62 = vld [vmem:[%s19031_s6 + $0x144] sm:$0xf] }
 0x6cd   :  { %v10426_v47 = vor.u32 %v13123_v2, %v10423_v26  ;;  %v10410_v18 = vor.u32 %v13119_v62, %v10407_v6  ;;  %v13399_v2 = vld [vmem:[%s19031_s6 + $0xa04] sm:$0xf]  ;;  %v11527_v26 = vld [vmem:[%s19031_s6 + $0xa08] sm:$0xf0]  ;;  %6663 = vmatmul.bf16.vlgmr.msra.gmra.mxu3 %v16305_v60  ;;  %v13460_v62 = vld [vmem:[%s19031_s6 + $0xbe4] sm:$0xf0] }
 0x6ce   :  { %6694 = vmatpush.bf16.msrb.mxu3 %v10434_v25  ;;  %6932 = vmatpush.bf16.msra.mxu1 %v11554_v52  ;;  %v6443_v44 = vpop.f32.mrf.mxu2  ;;  %v13402_v25 = vld [vmem:[%s19031_s6 + $0xa14] sm:$0xf0]  ;;  %v13117_v52 = vld [vmem:[%s19031_s6 + $0x134] sm:$0xf]  ;;  %v11530_v46 = vor.u32 %v13399_v2, %v11527_v26  ;;  %v13111_v2 = vld [vmem:[%s19031_s6 + $0x104] sm:$0xf] }
 0x6cf   :  { %v16316_v14 = vadd.f32 %v6443_v44, %v6431_v63  ;;  %v11534_v19 = vor.u32 %v13402_v25, %v11533_v24  ;;  %v13115_v63 = vld [vmem:[%s19031_s6 + $0x124] sm:$0xf]  ;;  %v11693_v44 = vld [vmem:[%s19031_s6 + $0xb50] sm:$0xf]  ;;  %v13442_v24 = vld [vmem:[%s19031_s6 + $0xb54] sm:$0xf0] }
 0x6d0   :  { %6591 = vmatpush.bf16.msrb.mxu0 %v11510_v38  ;;  %6604 = vmatpush.bf16.msra.mxu2 %v11574_v34  ;;  %v11546_v38 = vor.u32 %v13403_v58, %v11543_v30  ;;  %v3785_v34 = vpop.f32.mrf.mxu3  ;;  %v4288_v58 = vunpack.c.l.b16 %v16061_v32  ;;  %v11525_v30 = vld [vmem:[%s19031_s6 + $0xa00] sm:$0xf]  ;;  %v11773_v32 = vld [vmem:[%s19031_s6 + $0xbf0] sm:$0xf]  ;;  %v10375_v26 = vld [vmem:[%s19031_s6 + $0x108] sm:$0xf0] }
 0x6d1   :  { %v13462_v34 = vld [vmem:[%s19031_s6 + $0xbf4] sm:$0xf0]  ;;  %v11757_v25 = vld [vmem:[%s19031_s6 + $0xbd0] sm:$0xf] }
 0x6d2   :  { %6695 = vmatpush.bf16.msrb.mxu3 %v10426_v47  ;;  %6933 = vmatpush.bf16.msra.mxu1 %v11546_v38  ;;  %v13384_v47 = vld [vmem:[%s19031_s6 + $0x984] sm:$0xf0]  ;;  %v13446_v38 = vld [vmem:[%s19031_s6 + $0xb74] sm:$0xf0]  ;;  %v4313_v42 = vpack.c.b16 %v4288_v58, %v4288_v58  ;;  %v11774_v3 = vor.u32 %v13462_v34, %v11773_v32 }
 0x6d3   :  { %v11710_v54 = vor.u32 %v13446_v38, %v11709_v9  ;;  %v11839_v9 = vld [vmem:[%s19031_s6 + $0xc78] sm:$0xf0]  ;;  %v10615_v38 = vld [vmem:[%s19031_s6 + $0x2e8] sm:$0xf0] }
 0x6d4   :  { %6592 = vmatpush.bf16.msrb.mxu0 %v11502_v21  ;;  %6605 = vmatpush.bf16.msra.mxu2 %v11566_v8  ;;  %v11538_v21 = vor.u32 %v13401_v59, %v11535_v40  ;;  %v11478_v8 = vor.u32 %v13388_v55, %v11477_v10  ;;  %v11462_v10 = vor.u32 %v13384_v47, %v11461_v31  ;;  %v13444_v40 = vld [vmem:[%s19031_s6 + $0xb64] sm:$0xf0]  ;;  %v11749_v47 = vld [vmem:[%s19031_s6 + $0xbc0] sm:$0xf] }
 0x6d5   :  { %v11526_v55 = vor.u32 %v13400_v33, %v11525_v30  ;;  %v13440_v31 = vld [vmem:[%s19031_s6 + $0xb44] sm:$0xf0]  ;;  %v13477_v33 = vld [vmem:[%s19031_s6 + $0xc74] sm:$0xf] }
 0x6d6   :  { %6696 = vmatpush.bf16.msrb.mxu3 %v10418_v17  ;;  %6934 = vmatpush.bf16.msra.mxu1 %v11538_v21  ;;  %v11701_v17 = vld [vmem:[%s19031_s6 + $0xb60] sm:$0xf]  ;;  %v6445_v57 = vpop.f32.mrf.mxu2  ;;  %v13113_v21 = vld [vmem:[%s19031_s6 + $0x114] sm:$0xf]  ;;  %v13456_v30 = vld [vmem:[%s19031_s6 + $0xbc4] sm:$0xf0]  ;;  %v11842_v32 = vor.u32 %v13477_v33, %v11839_v9 }
 0x6d7   :  { %v13169_v57 = vld [vmem:[%s19031_s6 + $0x2d4] sm:$0xf]  ;;  %v10591_v33 = vld [vmem:[%s19031_s6 + $0x2b8] sm:$0xf0] }
 0x6d8   :  { %6593 = vmatpush.bf16.msrb.mxu0 %v11494_v35  ;;  %6606 = vmatpush.bf16.msra.mxu2 %v11558_v16  ;;  %v10399_v35 = vld [vmem:[%s19031_s6 + $0x138] sm:$0xf0]  ;;  %v6432_v16 = vpop.f32.mrf.mxu0 }
 0x6d9   :  { %v10402_v43 = vor.u32 %v13117_v52, %v10399_v35  ;;  %v13173_v52 = vld [vmem:[%s19031_s6 + $0x2f4] sm:$0xf]  ;;  %v10623_v35 = vld [vmem:[%s19031_s6 + $0x2f8] sm:$0xf0]  ;;  %v11694_v16 = vor.u32 %v13442_v24, %v11693_v44  ;;  %v13167_v24 = vld [vmem:[%s19031_s6 + $0x2c4] sm:$0xf] }
 0x6da   :  { %6697 = vmatpush.bf16.msrb.mxu3 %v10410_v18  ;;  %6935 = vmatpush.bf16.msra.mxu1 %v11530_v46  ;;  %v13458_v18 = vld [vmem:[%s19031_s6 + $0xbd4] sm:$0xf0]  ;;  %v10626_v58 = vor.u32 %v13173_v52, %v10623_v35  ;;  %v13473_v44 = vld [vmem:[%s19031_s6 + $0xc54] sm:$0xf]  ;;  %v11661_v35 = vld [vmem:[%s19031_s6 + $0xb10] sm:$0xf] }
 0x6db   :  { %v11758_v46 = vor.u32 %v13458_v18, %v11757_v25  ;;  %v10599_v25 = vld [vmem:[%s19031_s6 + $0x2c8] sm:$0xf0] }
 0x6dc   :  { %6594 = vmatpush.bf16.msrb.mxu0 %v11486_v56  ;;  %6607 = vmatpush.bf16.msra.mxu2 %v11550_v1  ;;  %v10391_v56 = vld [vmem:[%s19031_s6 + $0x128] sm:$0xf0]  ;;  %v4287_v1 = vunpack.c.h.b16 %v15950_v22  ;;  %v11765_v22 = vld [vmem:[%s19031_s6 + $0xbe0] sm:$0xf] }
 0x6dd   :  { %v10394_v59 = vor.u32 %v13115_v63, %v10391_v56  ;;  %6936 = vmatmul.bf16.vlgmr.msra.gmra.mxu1 %v4313_v42  ;;  %v11766_v11 = vor.u32 %v13460_v62, %v11765_v22  ;;  %v11750_v63 = vor.u32 %v13456_v30, %v11749_v47  ;;  %v11677_v56 = vld [vmem:[%s19031_s6 + $0xb30] sm:$0xf]  ;;  %v13471_v47 = vld [vmem:[%s19031_s6 + $0xc44] sm:$0xf]  ;;  %v13165_v30 = vld [vmem:[%s19031_s6 + $0x2b4] sm:$0xf] }
 0x6de   :  { %6698 = vmatpush.bf16.msrb.mxu3 %v10402_v43  ;;  %v16375_v6 = vpack.c.b16 %v4287_v1, %v4287_v1  ;;  %v13171_v43 = vld [vmem:[%s19031_s6 + $0x2e4] sm:$0xf]  ;;  %v13438_v1 = vld [vmem:[%s19031_s6 + $0xb34] sm:$0xf0]  ;;  %6980 = vmatpush.bf16.msrb.mxu1 %v11842_v32  ;;  %v11653_v32 = vld [vmem:[%s19031_s6 + $0xb00] sm:$0xf] }
 0x6df   :  { %v11678_v62 = vor.u32 %v13438_v1, %v11677_v56  ;;  %v13448_v1 = vld [vmem:[%s19031_s6 + $0xb84] sm:$0xf0] }
 0x6e0   :  { %6595 = vmatpush.bf16.msrb.mxu0 %v11478_v8  ;;  %6608 = vmatpush.bf16.msra.mxu2 %v11542_v39  ;;  %v10383_v8 = vld [vmem:[%s19031_s6 + $0x118] sm:$0xf0]  ;;  %v11702_v39 = vor.u32 %v13444_v40, %v11701_v17 }
 0x6e1   :  { %v10386_v41 = vor.u32 %v13113_v21, %v10383_v8  ;;  %v11669_v8 = vld [vmem:[%s19031_s6 + $0xb20] sm:$0xf] }
 0x6e2   :  { %6699 = vmatpush.bf16.msrb.mxu3 %v10394_v59  ;;  %v10607_v59 = vld [vmem:[%s19031_s6 + $0x2d8] sm:$0xf0] }
 0x6e4   :  { %6596 = vmatpush.bf16.msrb.mxu0 %v11470_v37  ;;  %6609 = vmatpush.bf16.msra.mxu2 %v11534_v19  ;;  %v10378_v37 = vor.u32 %v13111_v2, %v10375_v26  ;;  %v11685_v19 = vld [vmem:[%s19031_s6 + $0xb40] sm:$0xf] }
 0x6e5   :  { %v11686_v34 = vor.u32 %v13440_v31, %v11685_v19  ;;  %v10602_v19 = vor.u32 %v13167_v24, %v10599_v25  ;;  %v13450_v31 = vld [vmem:[%s19031_s6 + $0xb94] sm:$0xf0] }
 0x6e6   :  { %6700 = vmatpush.bf16.msrb.mxu3 %v10386_v41  ;;  %v11823_v41 = vld [vmem:[%s19031_s6 + $0xc58] sm:$0xf0] }
 0x6e7   :  { %v11826_v18 = vor.u32 %v13473_v44, %v11823_v41  ;;  %v10295_v44 = vld [vmem:[%s19031_s6 + $0x68] sm:$0xf0] }
 0x6e8   :  { %6597 = vmatpush.bf16.msrb.mxu0 %v11462_v10  ;;  %6610 = vmatpush.bf16.msra.mxu2 %v11526_v55  ;;  %v11741_v10 = vld [vmem:[%s19031_s6 + $0xbb0] sm:$0xf]  ;;  %v10618_v55 = vor.u32 %v13171_v43, %v10615_v38  ;;  %v6456_v17 = vpop.f32.mrf.mxu0 }
 0x6e9   :  { %v6457_v22 = vadd.f32 %v6456_v17, %v16316_v14  ;;  %v10610_v14 = vor.u32 %v13169_v57, %v10607_v59  ;;  %v11807_v17 = vld [vmem:[%s19031_s6 + $0xc38] sm:$0xf0]  ;;  %v13163_v59 = vld [vmem:[%s19031_s6 + $0x2a4] sm:$0xf] }
 0x6ea   :  { %6701 = vmatpush.bf16.msrb.mxu3 %v10378_v37  ;;  %v10367_v57 = vld [vmem:[%s19031_s6 + $0xf8] sm:$0xf0] }
 0x6eb   :  { %6598 = vmatmul.bf16.vlgmr.msrb.gmra.mxu0 %v16375_v6  ;;  %6611 = vmatmul.bf16.vlgmr.msra.gmra.mxu2 %v4313_v42  ;;  %v13454_v42 = vld [vmem:[%s19031_s6 + $0xbb4] sm:$0xf0] }
 0x6ec   :  { %6629 = vmatpush.bf16.msra.mxu0 %v11710_v54  ;;  %6642 = vmatpush.bf16.msrb.mxu2 %v11774_v3  ;;  %v13475_v54 = vld [vmem:[%s19031_s6 + $0xc64] sm:$0xf]  ;;  %v11831_v3 = vld [vmem:[%s19031_s6 + $0xc68] sm:$0xf0]  ;;  %v11742_v21 = vor.u32 %v13454_v42, %v11741_v10  ;;  %v13093_v10 = vld [vmem:[%s19031_s6 + $0x74] sm:$0xf]  ;;  %v10594_v42 = vor.u32 %v13165_v30, %v10591_v33 }
 0x6ed   :  { %v11834_v40 = vor.u32 %v13475_v54, %v11831_v3  ;;  %6702 = vmatmul.bf16.vlgmr.msrb.gmra.mxu3 %v15307_v28  ;;  %v13452_v28 = vld [vmem:[%s19031_s6 + $0xba4] sm:$0xf0]  ;;  %v13109_v54 = vld [vmem:[%s19031_s6 + $0xf4] sm:$0xf] }
 0x6ee   :  { %6733 = vmatpush.bf16.msra.mxu3 %v10626_v58  ;;  %v6469_v26 = vpop.f32.mrf.mxu2  ;;  %v11815_v58 = vld [vmem:[%s19031_s6 + $0xc48] sm:$0xf0]  ;;  %v13469_v3 = vld [vmem:[%s19031_s6 + $0xc34] sm:$0xf]  ;;  %v10370_v24 = vor.u32 %v13109_v54, %v10367_v57  ;;  %v13087_v54 = vld [vmem:[%s19031_s6 + $0x44] sm:$0xf] }
 0x6ef   :  { %6981 = vmatpush.bf16.msrb.mxu1 %v11834_v40  ;;  %v16491_v37 = vadd.f32 %v6469_v26, %v6457_v22  ;;  %v11818_v43 = vor.u32 %v13471_v47, %v11815_v58  ;;  %v10583_v40 = vld [vmem:[%s19031_s6 + $0x2a8] sm:$0xf0]  ;;  %v4290_v22 = vunpack.c.l.b16 %v16169_v29  ;;  %v13089_v47 = vld [vmem:[%s19031_s6 + $0x54] sm:$0xf]  ;;  %v10287_v58 = vld [vmem:[%s19031_s6 + $0x58] sm:$0xf0] }
 0x6f0   :  { %6630 = vmatpush.bf16.msra.mxu0 %v11702_v39  ;;  %6643 = vmatpush.bf16.msrb.mxu2 %v11766_v11  ;;  %v13436_v39 = vld [vmem:[%s19031_s6 + $0xb24] sm:$0xf0]  ;;  %v11733_v11 = vld [vmem:[%s19031_s6 + $0xba0] sm:$0xf]  ;;  %v6458_v9 = vpop.f32.mrf.mxu0  ;;  %v10586_v25 = vor.u32 %v13163_v59, %v10583_v40  ;;  %v10279_v57 = vld [vmem:[%s19031_s6 + $0x48] sm:$0xf0] }
 0x6f1   :  { %v11670_v2 = vor.u32 %v13436_v39, %v11669_v8  ;;  %v11734_v52 = vor.u32 %v13452_v28, %v11733_v11  ;;  %v4291_v8 = vunpack.c.h.b16 %v16169_v29  ;;  %v16546_v39 = vpop.f32.mrf.mxu3  ;;  %v13091_v28 = vld [vmem:[%s19031_s6 + $0x64] sm:$0xf]  ;;  %v16563_v26 = vpack.c.b16 %v4290_v22, %v4290_v22  ;;  %v13105_v9 = vld [vmem:[%s19031_s6 + $0xd4] sm:$0xf]  ;;  %v11783_v40 = vld [vmem:[%s19031_s6 + $0xc08] sm:$0xf0] }
 0x6f2   :  { %6734 = vmatpush.bf16.msra.mxu3 %v10618_v55  ;;  %v10303_v55 = vld [vmem:[%s19031_s6 + $0x78] sm:$0xf0]  ;;  %v13107_v29 = vld [vmem:[%s19031_s6 + $0xe4] sm:$0xf] }
 0x6f3   :  { %6982 = vmatpush.bf16.msrb.mxu1 %v11826_v18  ;;  %v13467_v18 = vld [vmem:[%s19031_s6 + $0xc24] sm:$0xf] }
 0x6f4   :  { %6631 = vmatpush.bf16.msra.mxu0 %v11694_v16  ;;  %6644 = vmatpush.bf16.msrb.mxu2 %v11758_v46  ;;  %v13434_v16 = vld [vmem:[%s19031_s6 + $0xb14] sm:$0xf0]  ;;  %v11725_v46 = vld [vmem:[%s19031_s6 + $0xb90] sm:$0xf]  ;;  %v13463_v59 = vld [vmem:[%s19031_s6 + $0xc04] sm:$0xf] }
 0x6f5   :  { %v11662_v38 = vor.u32 %v13434_v16, %v11661_v35  ;;  %v11726_v56 = vor.u32 %v13450_v31, %v11725_v46  ;;  %v13161_v35 = vld [vmem:[%s19031_s6 + $0x294] sm:$0xf]  ;;  %v10575_v16 = vld [vmem:[%s19031_s6 + $0x298] sm:$0xf0]  ;;  %v10298_v31 = vor.u32 %v13091_v28, %v10295_v44  ;;  %v10282_v28 = vor.u32 %v13087_v54, %v10279_v57 }
 0x6f6   :  { %6735 = vmatpush.bf16.msra.mxu3 %v10610_v14  ;;  %v10306_v14 = vor.u32 %v13093_v10, %v10303_v55  ;;  %v6471_v41 = vpop.f32.mrf.mxu2  ;;  %v10578_v33 = vor.u32 %v13161_v35, %v10575_v16  ;;  %v10815_v10 = vld [vmem:[%s19031_s6 + $0x478] sm:$0xf0] }
 0x6f7   :  { %6983 = vmatpush.bf16.msrb.mxu1 %v11818_v43  ;;  %v13465_v43 = vld [vmem:[%s19031_s6 + $0xc14] sm:$0xf]  ;;  %v10799_v35 = vld [vmem:[%s19031_s6 + $0x458] sm:$0xf0] }
 0x6f8   :  { %6632 = vmatpush.bf16.msra.mxu0 %v11686_v34  ;;  %6645 = vmatpush.bf16.msrb.mxu2 %v11750_v63  ;;  %v13432_v34 = vld [vmem:[%s19031_s6 + $0xb04] sm:$0xf0]  ;;  %v11717_v63 = vld [vmem:[%s19031_s6 + $0xb80] sm:$0xf]  ;;  %v13085_v41 = vld [vmem:[%s19031_s6 + $0x34] sm:$0xf] }
 0x6f9   :  { %v11718_v11 = vor.u32 %v13448_v1, %v11717_v63  ;;  %v10567_v63 = vld [vmem:[%s19031_s6 + $0x288] sm:$0xf0]  ;;  %v13221_v1 = vld [vmem:[%s19031_s6 + $0x474] sm:$0xf]  ;;  %v6510_v55 = vpop.f32.mrf.mxu3  ;;  %v10783_v54 = vld [vmem:[%s19031_s6 + $0x438] sm:$0xf0] }
 0x6fa   :  { %6736 = vmatpush.bf16.msra.mxu3 %v10602_v19  ;;  %v16574_v19 = vpack.c.b16 %v4291_v8, %v4291_v8  ;;  %v10818_v22 = vor.u32 %v13221_v1, %v10815_v10  ;;  %v11786_v8 = vor.u32 %v13463_v59, %v11783_v40  ;;  %v13097_v10 = vld [vmem:[%s19031_s6 + $0x94] sm:$0xf]  ;;  %v10319_v55 = vld [vmem:[%s19031_s6 + $0x98] sm:$0xf0]  ;;  %v13079_v59 = vld [vmem:[%s19031_s6 + $0x4] sm:$0xf] }
 0x6fb   :  { %v10322_v40 = vor.u32 %v13097_v10, %v10319_v55 }
 0x6fc   :  { %6633 = vmatpush.bf16.msra.mxu0 %v11678_v62  ;;  %6646 = vmatpush.bf16.msrb.mxu2 %v11742_v21  ;;  %v11810_v62 = vor.u32 %v13469_v3, %v11807_v17  ;;  %v11654_v21 = vor.u32 %v13432_v34, %v11653_v32  ;;  %v10351_v32 = vld [vmem:[%s19031_s6 + $0xd8] sm:$0xf0]  ;;  %v13159_v34 = vld [vmem:[%s19031_s6 + $0x284] sm:$0xf] }
 0x6fd   :  { %v10354_v3 = vor.u32 %v13105_v9, %v10351_v32  ;;  %v10570_v17 = vor.u32 %v13159_v34, %v10567_v63  ;;  %v10791_v9 = vld [vmem:[%s19031_s6 + $0x448] sm:$0xf0]  ;;  %v13081_v34 = vld [vmem:[%s19031_s6 + $0x14] sm:$0xf]  ;;  %v10255_v63 = vld [vmem:[%s19031_s6 + $0x18] sm:$0xf0] }
 0x6fe   :  { %6984 = vmatpush.bf16.msrb.mxu1 %v11810_v62  ;;  %6737 = vmatpush.bf16.msra.mxu3 %v10594_v42  ;;  %v10290_v42 = vor.u32 %v13089_v47, %v10287_v58  ;;  %v13103_v62 = vld [vmem:[%s19031_s6 + $0xc4] sm:$0xf]  ;;  %v10263_v58 = vld [vmem:[%s19031_s6 + $0x28] sm:$0xf0]  ;;  %v10258_v57 = vor.u32 %v13081_v34, %v10255_v63 }
 0x6ff   :  { %v13083_v47 = vld [vmem:[%s19031_s6 + $0x24] sm:$0xf]  ;;  %v10759_v63 = vld [vmem:[%s19031_s6 + $0x408] sm:$0xf0] }
 0x700   :  { %6634 = vmatpush.bf16.msra.mxu0 %v11670_v2  ;;  %6647 = vmatpush.bf16.msrb.mxu2 %v11734_v52  ;;  %v11799_v2 = vld [vmem:[%s19031_s6 + $0xc28] sm:$0xf0]  ;;  %v13207_v34 = vld [vmem:[%s19031_s6 + $0x404] sm:$0xf] }
 0x701   :  { %v10359_v52 = vld [vmem:[%s19031_s6 + $0xe8] sm:$0xf0]  ;;  %v11802_v46 = vor.u32 %v13467_v18, %v11799_v2  ;;  %v10335_v18 = vld [vmem:[%s19031_s6 + $0xb8] sm:$0xf0]  ;;  %v10762_v55 = vor.u32 %v13207_v34, %v10759_v63 }
 0x702   :  { %6738 = vmatpush.bf16.msra.mxu3 %v10586_v25  ;;  %v10362_v30 = vor.u32 %v13107_v29, %v10359_v52  ;;  %v13101_v29 = vld [vmem:[%s19031_s6 + $0xb4] sm:$0xf]  ;;  %v10975_v34 = vld [vmem:[%s19031_s6 + $0x5b8] sm:$0xf0] }
 0x703   :  { %6985 = vmatpush.bf16.msrb.mxu1 %v11802_v46  ;;  %v13217_v52 = vld [vmem:[%s19031_s6 + $0x454] sm:$0xf] }
 0x704   :  { %6635 = vmatpush.bf16.msra.mxu0 %v11662_v38  ;;  %6648 = vmatpush.bf16.msrb.mxu2 %v11726_v56  ;;  %v11791_v38 = vld [vmem:[%s19031_s6 + $0xc18] sm:$0xf0] }
 0x705   :  { %v11794_v56 = vor.u32 %v13465_v43, %v11791_v38  ;;  %v16671_v43 = vpop.f32.mrf.mxu3 }
 0x706   :  { %6739 = vmatpush.bf16.msra.mxu3 %v10578_v33  ;;  %v13215_v33 = vld [vmem:[%s19031_s6 + $0x444] sm:$0xf] }
 0x707   :  { %6986 = vmatpush.bf16.msrb.mxu1 %v11794_v56  ;;  %v10794_v1 = vor.u32 %v13215_v33, %v10791_v9  ;;  %v13137_v9 = vld [vmem:[%s19031_s6 + $0x1d4] sm:$0xf] }
 0x708   :  { %6636 = vmatpush.bf16.msra.mxu0 %v11654_v21  ;;  %6649 = vmatpush.bf16.msrb.mxu2 %v11718_v11  ;;  %v10343_v21 = vld [vmem:[%s19031_s6 + $0xc8] sm:$0xf0]  ;;  %v13219_v11 = vld [vmem:[%s19031_s6 + $0x464] sm:$0xf]  ;;  %v6482_v2 = vpop.f32.mrf.mxu0 }
 0x709   :  { %v10346_v44 = vor.u32 %v13103_v62, %v10343_v21  ;;  %v6483_v16 = vadd.f32 %v6482_v2, %v16491_v37  ;;  %v10327_v37 = vld [vmem:[%s19031_s6 + $0xa8] sm:$0xf0]  ;;  %v13095_v62 = vld [vmem:[%s19031_s6 + $0x84] sm:$0xf] }
 0x70a   :  { %6740 = vmatpush.bf16.msra.mxu3 %v10570_v17 }
 0x70b   :  { %6637 = vmatmul.bf16.vlgmr.msra.gmra.mxu0 %v16563_v26  ;;  %6650 = vmatmul.bf16.vlgmr.msrb.gmra.mxu2 %v16574_v19 }
 0x70c   :  { %6668 = vmatpush.bf16.msrb.mxu0 %v10306_v14  ;;  %6681 = vmatpush.bf16.msra.mxu2 %v10370_v24  ;;  %v10807_v14 = vld [vmem:[%s19031_s6 + $0x468] sm:$0xf0]  ;;  %v10271_v24 = vld [vmem:[%s19031_s6 + $0x38] sm:$0xf0] }
 0x70d   :  { %v10810_v25 = vor.u32 %v13219_v11, %v10807_v14  ;;  %6987 = vmatpush.bf16.msrb.mxu1 %v11786_v8  ;;  %6741 = vmatmul.bf16.vlgmr.msra.gmra.mxu3 %v15400_v12  ;;  %v10274_v46 = vor.u32 %v13085_v41, %v10271_v24  ;;  %v13099_v12 = vld [vmem:[%s19031_s6 + $0xa4] sm:$0xf]  ;;  %v13141_v8 = vld [vmem:[%s19031_s6 + $0x1f4] sm:$0xf]  ;;  %v10495_v11 = vld [vmem:[%s19031_s6 + $0x1f8] sm:$0xf0]  ;;  %v6549_v24 = vpop.f32.mrf.mxu3 }
 0x70e   :  { %6772 = vmatpush.bf16.msrb.mxu3 %v10818_v22  ;;  %v6495_v38 = vpop.f32.mrf.mxu2  ;;  %v10330_v32 = vor.u32 %v13099_v12, %v10327_v37  ;;  %v10247_v22 = vld [vmem:[%s19031_s6 + $0x8] sm:$0xf0]  ;;  %v13157_v14 = vld [vmem:[%s19031_s6 + $0x274] sm:$0xf] }
 0x70f   :  { %v6496_v56 = vadd.f32 %v6495_v38, %v6483_v16  ;;  %v10775_v41 = vld [vmem:[%s19031_s6 + $0x428] sm:$0xf0]  ;;  %v13139_v16 = vld [vmem:[%s19031_s6 + $0x1e4] sm:$0xf]  ;;  %v13153_v38 = vld [vmem:[%s19031_s6 + $0x254] sm:$0xf] }
 0x710   :  { %6669 = vmatpush.bf16.msrb.mxu0 %v10298_v31  ;;  %6682 = vmatpush.bf16.msra.mxu2 %v10362_v30  ;;  %v10338_v31 = vor.u32 %v13101_v29, %v10335_v18  ;;  %v10802_v30 = vor.u32 %v13217_v52, %v10799_v35  ;;  %v10498_v18 = vor.u32 %v13141_v8, %v10495_v11  ;;  %v13149_v11 = vld [vmem:[%s19031_s6 + $0x234] sm:$0xf] }
 0x711   :  { %6988 = vmatmul.bf16.vlgmr.msrb.gmra.mxu1 %v16305_v60  ;;  %v10266_v60 = vor.u32 %v13083_v47, %v10263_v58  ;;  %v16692_v17 = vadd.f32 %v16546_v39, %v6496_v56  ;;  %v10311_v39 = vld [vmem:[%s19031_s6 + $0x88] sm:$0xf0]  ;;  %v13209_v58 = vld [vmem:[%s19031_s6 + $0x414] sm:$0xf] }
 0x712   :  { %6773 = vmatpush.bf16.msrb.mxu3 %v10810_v25  ;;  %v10250_v25 = vor.u32 %v13079_v59, %v10247_v22  ;;  %v10314_v29 = vor.u32 %v13095_v62, %v10311_v39  ;;  %v10551_v47 = vld [vmem:[%s19031_s6 + $0x268] sm:$0xf0]  ;;  %v13269_v56 = vld [vmem:[%s19031_s6 + $0x5f4] sm:$0xf]  ;;  %v13267_v59 = vld [vmem:[%s19031_s6 + $0x5e4] sm:$0xf] }
 0x713   :  { %v13133_v39 = vld [vmem:[%s19031_s6 + $0x1b4] sm:$0xf] }
 0x714   :  { %6670 = vmatpush.bf16.msrb.mxu0 %v10290_v42  ;;  %6683 = vmatpush.bf16.msra.mxu2 %v10354_v3  ;;  %v13213_v42 = vld [vmem:[%s19031_s6 + $0x434] sm:$0xf]  ;;  %v6484_v3 = vpop.f32.mrf.mxu0 }
 0x715   :  { %v10786_v21 = vor.u32 %v13213_v42, %v10783_v54  ;;  %v13135_v42 = vld [vmem:[%s19031_s6 + $0x1c4] sm:$0xf] }
 0x716   :  { %6774 = vmatpush.bf16.msrb.mxu3 %v10802_v30  ;;  %v6497_v2 = vpop.f32.mrf.mxu2  ;;  %v10767_v30 = vld [vmem:[%s19031_s6 + $0x418] sm:$0xf0]  ;;  %v13151_v3 = vld [vmem:[%s19031_s6 + $0x244] sm:$0xf] }
 0x717   :  { %v10770_v33 = vor.u32 %v13209_v58, %v10767_v30  ;;  %v10455_v2 = vld [vmem:[%s19031_s6 + $0x1a8] sm:$0xf0]  ;;  %v13129_v30 = vld [vmem:[%s19031_s6 + $0x194] sm:$0xf] }
 0x718   :  { %6671 = vmatpush.bf16.msrb.mxu0 %v10282_v28  ;;  %6684 = vmatpush.bf16.msra.mxu2 %v10346_v44  ;;  %v10559_v28 = vld [vmem:[%s19031_s6 + $0x278] sm:$0xf0]  ;;  %v13211_v44 = vld [vmem:[%s19031_s6 + $0x424] sm:$0xf] }
 0x719   :  { %v10562_v52 = vor.u32 %v13157_v14, %v10559_v28  ;;  %v10778_v35 = vor.u32 %v13211_v44, %v10775_v41  ;;  %v10527_v14 = vld [vmem:[%s19031_s6 + $0x238] sm:$0xf0]  ;;  %v13265_v44 = vld [vmem:[%s19031_s6 + $0x5d4] sm:$0xf] }
 0x71a   :  { %6775 = vmatpush.bf16.msrb.mxu3 %v10794_v1  ;;  %v10991_v41 = vld [vmem:[%s19031_s6 + $0x5d8] sm:$0xf0] }
 0x71c   :  { %6672 = vmatpush.bf16.msrb.mxu0 %v10274_v46  ;;  %6685 = vmatpush.bf16.msra.mxu2 %v10338_v31  ;;  %v10487_v46 = vld [vmem:[%s19031_s6 + $0x1e8] sm:$0xf0]  ;;  %v13155_v31 = vld [vmem:[%s19031_s6 + $0x264] sm:$0xf] }
 0x71d   :  { %v10490_v12 = vor.u32 %v13139_v16, %v10487_v46  ;;  %v10554_v37 = vor.u32 %v13155_v31, %v10551_v47  ;;  %v13263_v16 = vld [vmem:[%s19031_s6 + $0x5c4] sm:$0xf]  ;;  %v10983_v46 = vld [vmem:[%s19031_s6 + $0x5c8] sm:$0xf0] }
 0x71e   :  { %6776 = vmatpush.bf16.msrb.mxu3 %v10786_v21  ;;  %v10463_v21 = vld [vmem:[%s19031_s6 + $0x1b8] sm:$0xf0] }
 0x720   :  { %6673 = vmatpush.bf16.msrb.mxu0 %v10266_v60  ;;  %6686 = vmatpush.bf16.msra.mxu2 %v10330_v32  ;;  %v10479_v60 = vld [vmem:[%s19031_s6 + $0x1d8] sm:$0xf0] }
 0x721   :  { %v10543_v32 = vld [vmem:[%s19031_s6 + $0x258] sm:$0xf0]  ;;  %v10482_v1 = vor.u32 %v13137_v9, %v10479_v60  ;;  %v13145_v9 = vld [vmem:[%s19031_s6 + $0x214] sm:$0xf] }
 0x722   :  { %6777 = vmatpush.bf16.msrb.mxu3 %v10778_v35  ;;  %v10546_v10 = vor.u32 %v13153_v38, %v10543_v32  ;;  %v10994_v35 = vor.u32 %v13265_v44, %v10991_v41  ;;  %v10511_v60 = vld [vmem:[%s19031_s6 + $0x218] sm:$0xf0]  ;;  %v13261_v32 = vld [vmem:[%s19031_s6 + $0x5b4] sm:$0xf]  ;;  %v13187_v44 = vld [vmem:[%s19031_s6 + $0x364] sm:$0xf] }
 0x723   :  { %v10679_v41 = vld [vmem:[%s19031_s6 + $0x368] sm:$0xf0] }
 0x724   :  { %6674 = vmatpush.bf16.msrb.mxu0 %v10258_v57  ;;  %6687 = vmatpush.bf16.msra.mxu2 %v10322_v40  ;;  %v10535_v57 = vld [vmem:[%s19031_s6 + $0x248] sm:$0xf0] }
 0x725   :  { %v10999_v40 = vld [vmem:[%s19031_s6 + $0x5e8] sm:$0xf0]  ;;  %v10538_v62 = vor.u32 %v13151_v3, %v10535_v57  ;;  %v10687_v3 = vld [vmem:[%s19031_s6 + $0x378] sm:$0xf0]  ;;  %v13205_v57 = vld [vmem:[%s19031_s6 + $0x3f4] sm:$0xf] }
 0x726   :  { %6778 = vmatpush.bf16.msrb.mxu3 %v10770_v33  ;;  %v11002_v8 = vor.u32 %v13267_v59, %v10999_v40  ;;  %v10986_v33 = vor.u32 %v13263_v16, %v10983_v46  ;;  %v10751_v40 = vld [vmem:[%s19031_s6 + $0x3f8] sm:$0xf0]  ;;  %v13201_v46 = vld [vmem:[%s19031_s6 + $0x3d4] sm:$0xf] }
 0x727   :  { %v10671_v16 = vld [vmem:[%s19031_s6 + $0x358] sm:$0xf0] }
 0x728   :  { %6675 = vmatpush.bf16.msrb.mxu0 %v10250_v25  ;;  %6688 = vmatpush.bf16.msra.mxu2 %v10314_v29  ;;  %v6521_v28 = vpop.f32.mrf.mxu0  ;;  %v10466_v25 = vor.u32 %v13133_v39, %v10463_v21  ;;  %v10530_v29 = vor.u32 %v13149_v11, %v10527_v14  ;;  %v10754_v14 = vor.u32 %v13205_v57, %v10751_v40  ;;  %v10719_v57 = vld [vmem:[%s19031_s6 + $0x3b8] sm:$0xf0] }
 0x729   :  { %v6522_v24 = vadd.f32 %v6521_v28, %v16692_v17  ;;  %v10519_v17 = vld [vmem:[%s19031_s6 + $0x228] sm:$0xf0] }
 0x72a   :  { %6779 = vmatpush.bf16.msrb.mxu3 %v10762_v55  ;;  %v13143_v55 = vld [vmem:[%s19031_s6 + $0x204] sm:$0xf] }
 0x72b   :  { %6676 = vmatmul.bf16.vlgmr.msrb.gmra.mxu0 %v15232_v45  ;;  %6689 = vmatmul.bf16.vlgmr.msra.gmra.mxu2 %v15234_v61  ;;  %v11007_v45 = vld [vmem:[%s19031_s6 + $0x5f8] sm:$0xf0]  ;;  %v10471_v61 = vld [vmem:[%s19031_s6 + $0x1c8] sm:$0xf0] }
 0x72c   :  { %6707 = vmatpush.bf16.msra.mxu0 %v10498_v18  ;;  %6720 = vmatpush.bf16.msrb.mxu2 %v10562_v52  ;;  %v11010_v54 = vor.u32 %v13269_v56, %v11007_v45  ;;  %v10474_v22 = vor.u32 %v13135_v42, %v10471_v61  ;;  %v13131_v18 = vld [vmem:[%s19031_s6 + $0x1a4] sm:$0xf]  ;;  %v16812_v52 = vpop.f32.mrf.mxu3  ;;  %v10978_v61 = vor.u32 %v13261_v32, %v10975_v34 }
 0x72d   :  { %6780 = vmatmul.bf16.vlgmr.msrb.gmra.mxu3 %v15673_v4  ;;  %v13147_v4 = vld [vmem:[%s19031_s6 + $0x224] sm:$0xf]  ;;  %v10458_v31 = vor.u32 %v13131_v18, %v10455_v2  ;;  %v10959_v18 = vld [vmem:[%s19031_s6 + $0x598] sm:$0xf0]  ;;  %v10682_v2 = vor.u32 %v13187_v44, %v10679_v41  ;;  %v11175_v41 = vld [vmem:[%s19031_s6 + $0x748] sm:$0xf0] }
 0x72e   :  { %6811 = vmatpush.bf16.msra.mxu3 %v11010_v54  ;;  %v6534_v47 = vpop.f32.mrf.mxu2  ;;  %v10522_v58 = vor.u32 %v13147_v4, %v10519_v17  ;;  %v13127_v45 = vld [vmem:[%s19031_s6 + $0x184] sm:$0xf]  ;;  %v13189_v54 = vld [vmem:[%s19031_s6 + $0x374] sm:$0xf] }
 0x72f   :  { %v16868_v59 = vpop.f32.mrf.mxu1  ;;  %v13185_v17 = vld [vmem:[%s19031_s6 + $0x354] sm:$0xf]  ;;  %v13199_v34 = vld [vmem:[%s19031_s6 + $0x3c4] sm:$0xf] }
 0x730   :  { %6708 = vmatpush.bf16.msra.mxu0 %v10490_v12  ;;  %6721 = vmatpush.bf16.msrb.mxu2 %v10554_v37  ;;  %v10447_v12 = vld [vmem:[%s19031_s6 + $0x198] sm:$0xf0]  ;;  %v6535_v37 = vadd.f32 %v6534_v47, %v6522_v24  ;;  %v6523_v38 = vpop.f32.mrf.mxu0  ;;  %v13203_v24 = vld [vmem:[%s19031_s6 + $0x3e4] sm:$0xf] }
 0x731   :  { %v10450_v56 = vor.u32 %v13129_v30, %v10447_v12  ;;  %v13255_v30 = vld [vmem:[%s19031_s6 + $0x584] sm:$0xf]  ;;  %v10951_v12 = vld [vmem:[%s19031_s6 + $0x588] sm:$0xf0] }
 0x732   :  { %6812 = vmatpush.bf16.msra.mxu3 %v11002_v8  ;;  %v16845_v63 = vadd.f32 %v16671_v43, %v6535_v37  ;;  %v10503_v43 = vld [vmem:[%s19031_s6 + $0x208] sm:$0xf0]  ;;  %v10690_v8 = vor.u32 %v13189_v54, %v10687_v3  ;;  %v13317_v37 = vld [vmem:[%s19031_s6 + $0x774] sm:$0xf]  ;;  %v13183_v38 = vld [vmem:[%s19031_s6 + $0x344] sm:$0xf] }
 0x733   :  { %v10506_v21 = vor.u32 %v13143_v55, %v10503_v43  ;;  %v13181_v43 = vld [vmem:[%s19031_s6 + $0x334] sm:$0xf]  ;;  %v13311_v44 = vld [vmem:[%s19031_s6 + $0x744] sm:$0xf] }
 0x734   :  { %6709 = vmatpush.bf16.msra.mxu0 %v10482_v1  ;;  %6722 = vmatpush.bf16.msrb.mxu2 %v10546_v10  ;;  %v10514_v1 = vor.u32 %v13145_v9, %v10511_v60  ;;  %v10439_v10 = vld [vmem:[%s19031_s6 + $0x188] sm:$0xf0]  ;;  %v6588_v42 = vpop.f32.mrf.mxu3  ;;  %v10954_v60 = vor.u32 %v13255_v30, %v10951_v12  ;;  %v13197_v3 = vld [vmem:[%s19031_s6 + $0x3b4] sm:$0xf]  ;;  %v13175_v12 = vld [vmem:[%s19031_s6 + $0x304] sm:$0xf] }
 0x735   :  { %v10442_v39 = vor.u32 %v13127_v45, %v10439_v10  ;;  %v13315_v45 = vld [vmem:[%s19031_s6 + $0x764] sm:$0xf]  ;;  %v10655_v42 = vld [vmem:[%s19031_s6 + $0x338] sm:$0xf0] }
 0x736   :  { %6813 = vmatpush.bf16.msra.mxu3 %v10994_v35  ;;  %v6536_v11 = vpop.f32.mrf.mxu2 }
 0x737   :  { %v6887_v47 = vpop.f32.mrf.mxu1  ;;  %v13179_v11 = vld [vmem:[%s19031_s6 + $0x324] sm:$0xf] }
 0x738   :  { %6710 = vmatpush.bf16.msra.mxu0 %v10474_v22  ;;  %6723 = vmatpush.bf16.msrb.mxu2 %v10538_v62  ;;  %v13259_v22 = vld [vmem:[%s19031_s6 + $0x5a4] sm:$0xf]  ;;  %v10967_v62 = vld [vmem:[%s19031_s6 + $0x5a8] sm:$0xf0]  ;;  %v11167_v47 = vld [vmem:[%s19031_s6 + $0x738] sm:$0xf0] }
 0x739   :  { %v10970_v28 = vor.u32 %v13259_v22, %v10967_v62  ;;  %v13313_v22 = vld [vmem:[%s19031_s6 + $0x754] sm:$0xf]  ;;  %v11183_v62 = vld [vmem:[%s19031_s6 + $0x758] sm:$0xf0] }
 0x73a   :  { %6814 = vmatpush.bf16.msra.mxu3 %v10986_v33  ;;  %v10674_v33 = vor.u32 %v13185_v17, %v10671_v16  ;;  %v13193_v17 = vld [vmem:[%s19031_s6 + $0x394] sm:$0xf]  ;;  %v10703_v16 = vld [vmem:[%s19031_s6 + $0x398] sm:$0xf0] }
 0x73c   :  { %6711 = vmatpush.bf16.msra.mxu0 %v10466_v25  ;;  %6724 = vmatpush.bf16.msrb.mxu2 %v10530_v29  ;;  %v10743_v25 = vld [vmem:[%s19031_s6 + $0x3e8] sm:$0xf0]  ;;  %v13257_v29 = vld [vmem:[%s19031_s6 + $0x594] sm:$0xf] }
 0x73d   :  { %v10746_v35 = vor.u32 %v13203_v24, %v10743_v25  ;;  %v10962_v4 = vor.u32 %v13257_v29, %v10959_v18  ;;  %v13177_v18 = vld [vmem:[%s19031_s6 + $0x314] sm:$0xf] }
 0x73e   :  { %6815 = vmatpush.bf16.msra.mxu3 %v10978_v61 }
 0x740   :  { %6712 = vmatpush.bf16.msra.mxu0 %v10458_v31  ;;  %6725 = vmatpush.bf16.msrb.mxu2 %v10522_v58  ;;  %v16906_v31 = vpop.f32.mrf.mxu3  ;;  %v10735_v58 = vld [vmem:[%s19031_s6 + $0x3d8] sm:$0xf0] }
 0x741   :  { %v10738_v9 = vor.u32 %v13201_v46, %v10735_v58  ;;  %v13309_v46 = vld [vmem:[%s19031_s6 + $0x734] sm:$0xf] }
 0x742   :  { %6816 = vmatpush.bf16.msra.mxu3 %v10970_v28  ;;  %v11186_v28 = vor.u32 %v13313_v22, %v11183_v62  ;;  %v13305_v22 = vld [vmem:[%s19031_s6 + $0x714] sm:$0xf]  ;;  %v11151_v62 = vld [vmem:[%s19031_s6 + $0x718] sm:$0xf0] }
 0x744   :  { %6713 = vmatpush.bf16.msra.mxu0 %v10450_v56  ;;  %6726 = vmatpush.bf16.msrb.mxu2 %v10514_v1  ;;  %v10727_v56 = vld [vmem:[%s19031_s6 + $0x3c8] sm:$0xf0] }
 0x745   :  { %v11191_v1 = vld [vmem:[%s19031_s6 + $0x768] sm:$0xf0]  ;;  %v10730_v55 = vor.u32 %v13199_v34, %v10727_v56  ;;  %v10943_v34 = vld [vmem:[%s19031_s6 + $0x578] sm:$0xf0]  ;;  %v13307_v56 = vld [vmem:[%s19031_s6 + $0x724] sm:$0xf] }
 0x746   :  { %6817 = vmatpush.bf16.msra.mxu3 %v10962_v4  ;;  %v11194_v54 = vor.u32 %v13315_v45, %v11191_v1  ;;  %v11178_v4 = vor.u32 %v13311_v44, %v11175_v41  ;;  %v11159_v45 = vld [vmem:[%s19031_s6 + $0x728] sm:$0xf0]  ;;  %v13381_v41 = vld [vmem:[%s19031_s6 + $0x974] sm:$0xf] }
 0x747   :  { %v11143_v44 = vld [vmem:[%s19031_s6 + $0x708] sm:$0xf0] }
 0x748   :  { %6714 = vmatpush.bf16.msra.mxu0 %v10442_v39  ;;  %6727 = vmatpush.bf16.msrb.mxu2 %v10506_v21  ;;  %v6627_v61 = vpop.f32.mrf.mxu3  ;;  %v6560_v40 = vpop.f32.mrf.mxu0  ;;  %v10658_v21 = vor.u32 %v13181_v43, %v10655_v42 }
 0x749   :  { %v6561_v39 = vadd.f32 %v6560_v40, %v16845_v63  ;;  %v13195_v63 = vld [vmem:[%s19031_s6 + $0x3a4] sm:$0xf]  ;;  %v11162_v61 = vor.u32 %v13307_v56, %v11159_v45  ;;  %v10935_v40 = vld [vmem:[%s19031_s6 + $0x568] sm:$0xf0] }
 0x74a   :  { %6818 = vmatpush.bf16.msra.mxu3 %v10954_v60  ;;  %v10695_v60 = vld [vmem:[%s19031_s6 + $0x388] sm:$0xf0] }
 0x74b   :  { %6715 = vmatmul.bf16.vlgmr.msra.gmra.mxu0 %v15309_v48  ;;  %6728 = vmatmul.bf16.vlgmr.msrb.gmra.mxu2 %v15398_v36  ;;  %v11199_v48 = vld [vmem:[%s19031_s6 + $0x778] sm:$0xf0]  ;;  %v10663_v36 = vld [vmem:[%s19031_s6 + $0x348] sm:$0xf0] }
 0x74c   :  { %6746 = vmatpush.bf16.msrb.mxu0 %v10690_v8  ;;  %6759 = vmatpush.bf16.msra.mxu2 %v10754_v14  ;;  %v11202_v32 = vor.u32 %v13317_v37, %v11199_v48  ;;  %v10666_v10 = vor.u32 %v13183_v38, %v10663_v36  ;;  %v10722_v8 = vor.u32 %v13197_v3, %v10719_v57  ;;  %v10647_v14 = vld [vmem:[%s19031_s6 + $0x328] sm:$0xf0]  ;;  %v10879_v36 = vld [vmem:[%s19031_s6 + $0x4f8] sm:$0xf0]  ;;  %v13251_v57 = vld [vmem:[%s19031_s6 + $0x564] sm:$0xf] }
 0x74d   :  { %6819 = vmatmul.bf16.vlgmr.msra.gmra.mxu3 %v15827_v15  ;;  %v10711_v15 = vld [vmem:[%s19031_s6 + $0x3a8] sm:$0xf0]  ;;  %v10650_v24 = vor.u32 %v13179_v11, %v10647_v14  ;;  %v10706_v48 = vor.u32 %v13193_v17, %v10703_v16  ;;  %v11170_v38 = vor.u32 %v13309_v46, %v11167_v47  ;;  %v13233_v11 = vld [vmem:[%s19031_s6 + $0x4d4] sm:$0xf]  ;;  %v10863_v14 = vld [vmem:[%s19031_s6 + $0x4d8] sm:$0xf0] }
 0x74e   :  { %6850 = vmatpush.bf16.msrb.mxu3 %v11202_v32  ;;  %v6573_v25 = vpop.f32.mrf.mxu2  ;;  %v10714_v29 = vor.u32 %v13195_v63, %v10711_v15  ;;  %v13253_v32 = vld [vmem:[%s19031_s6 + $0x574] sm:$0xf]  ;;  %v10871_v3 = vld [vmem:[%s19031_s6 + $0x4e8] sm:$0xf0]  ;;  %v10927_v63 = vld [vmem:[%s19031_s6 + $0x558] sm:$0xf0] }
 0x74f   :  { %v10946_v42 = vor.u32 %v13253_v32, %v10943_v34  ;;  %v13303_v15 = vld [vmem:[%s19031_s6 + $0x704] sm:$0xf]  ;;  %v10919_v17 = vld [vmem:[%s19031_s6 + $0x548] sm:$0xf0] }
 0x750   :  { %6747 = vmatpush.bf16.msrb.mxu0 %v10682_v2  ;;  %6760 = vmatpush.bf16.msra.mxu2 %v10746_v35  ;;  %v10639_v2 = vld [vmem:[%s19031_s6 + $0x318] sm:$0xf0]  ;;  %v6574_v35 = vadd.f32 %v6573_v25, %v6561_v39  ;;  %v6562_v58 = vpop.f32.mrf.mxu0  ;;  %v13379_v46 = vld [vmem:[%s19031_s6 + $0x964] sm:$0xf]  ;;  %v11447_v47 = vld [vmem:[%s19031_s6 + $0x968] sm:$0xf0] }
 0x751   :  { %v10642_v30 = vor.u32 %v13177_v18, %v10639_v2  ;;  %v17076_v18 = vpop.f32.mrf.mxu3  ;;  %v10855_v2 = vld [vmem:[%s19031_s6 + $0x4c8] sm:$0xf0] }
 0x752   :  { %6851 = vmatpush.bf16.msrb.mxu3 %v11194_v54  ;;  %v17003_v37 = vadd.f32 %v16812_v52, %v6574_v35  ;;  %v13237_v52 = vld [vmem:[%s19031_s6 + $0x4f4] sm:$0xf]  ;;  %v13235_v54 = vld [vmem:[%s19031_s6 + $0x4e4] sm:$0xf] }
 0x753   :  { %v10874_v39 = vor.u32 %v13235_v54, %v10871_v3 }
 0x754   :  { %6748 = vmatpush.bf16.msrb.mxu0 %v10674_v33  ;;  %6761 = vmatpush.bf16.msra.mxu2 %v10738_v9  ;;  %v10631_v33 = vld [vmem:[%s19031_s6 + $0x308] sm:$0xf0]  ;;  %v13191_v9 = vld [vmem:[%s19031_s6 + $0x384] sm:$0xf] }
 0x755   :  { %v10634_v1 = vor.u32 %v13175_v12, %v10631_v33  ;;  %v13229_v12 = vld [vmem:[%s19031_s6 + $0x4b4] sm:$0xf]  ;;  %v11450_v33 = vor.u32 %v13379_v46, %v11447_v47 }
 0x756   :  { %6852 = vmatpush.bf16.msrb.mxu3 %v11186_v28  ;;  %v6575_v43 = vpop.f32.mrf.mxu2  ;;  %v13249_v28 = vld [vmem:[%s19031_s6 + $0x554] sm:$0xf] }
 0x757   :  { %v10930_v25 = vor.u32 %v13249_v28, %v10927_v63  ;;  %v11423_v28 = vld [vmem:[%s19031_s6 + $0x938] sm:$0xf0] }
 0x758   :  { %6749 = vmatpush.bf16.msrb.mxu0 %v10666_v10  ;;  %6762 = vmatpush.bf16.msra.mxu2 %v10730_v55  ;;  %v10698_v10 = vor.u32 %v13191_v9, %v10695_v60  ;;  %v10882_v55 = vor.u32 %v13237_v52, %v10879_v36  ;;  %v13245_v9 = vld [vmem:[%s19031_s6 + $0x534] sm:$0xf]  ;;  %v10911_v60 = vld [vmem:[%s19031_s6 + $0x538] sm:$0xf0] }
 0x759   :  { %v13377_v52 = vld [vmem:[%s19031_s6 + $0x954] sm:$0xf]  ;;  %v11439_v36 = vld [vmem:[%s19031_s6 + $0x958] sm:$0xf0]  ;;  %v10914_v56 = vor.u32 %v13245_v9, %v10911_v60  ;;  %v6666_v45 = vpop.f32.mrf.mxu3  ;;  %v11063_v9 = vld [vmem:[%s19031_s6 + $0x668] sm:$0xf0] }
 0x75a   :  { %6853 = vmatpush.bf16.msrb.mxu3 %v11178_v4  ;;  %v13247_v4 = vld [vmem:[%s19031_s6 + $0x544] sm:$0xf]  ;;  %v17090_v16 = vpop.f32.mrf.mxu1 }
 0x75b   :  { %v13299_v60 = vld [vmem:[%s19031_s6 + $0x6e4] sm:$0xf] }
 0x75c   :  { %6750 = vmatpush.bf16.msrb.mxu0 %v10658_v21  ;;  %6763 = vmatpush.bf16.msra.mxu2 %v10722_v8  ;;  %v10938_v21 = vor.u32 %v13251_v57, %v10935_v40  ;;  %v11154_v8 = vor.u32 %v13305_v22, %v11151_v62  ;;  %v13225_v40 = vld [vmem:[%s19031_s6 + $0x494] sm:$0xf]  ;;  %v10831_v22 = vld [vmem:[%s19031_s6 + $0x498] sm:$0xf0] }
 0x75d   :  { %v10834_v63 = vor.u32 %v13225_v40, %v10831_v22 }
 0x75e   :  { %6854 = vmatpush.bf16.msrb.mxu3 %v11170_v38 }
 0x760   :  { %6751 = vmatpush.bf16.msrb.mxu0 %v10650_v24  ;;  %6764 = vmatpush.bf16.msra.mxu2 %v10714_v29  ;;  %v10866_v24 = vor.u32 %v13233_v11, %v10863_v14  ;;  %v11146_v29 = vor.u32 %v13303_v15, %v11143_v44  ;;  %v13373_v14 = vld [vmem:[%s19031_s6 + $0x934] sm:$0xf]  ;;  %v13223_v15 = vld [vmem:[%s19031_s6 + $0x484] sm:$0xf] }
 0x762   :  { %6855 = vmatpush.bf16.msrb.mxu3 %v11162_v61  ;;  %v6939_v43 = vpop.f32.mrf.mxu1  ;;  %v11431_v61 = vld [vmem:[%s19031_s6 + $0x948] sm:$0xf0] }
 0x763   :  { %v11399_v43 = vld [vmem:[%s19031_s6 + $0x908] sm:$0xf0] }
 0x764   :  { %6752 = vmatpush.bf16.msrb.mxu0 %v10642_v30  ;;  %6765 = vmatpush.bf16.msra.mxu2 %v10706_v48  ;;  %v10922_v30 = vor.u32 %v13247_v4, %v10919_v17  ;;  %v10847_v48 = vld [vmem:[%s19031_s6 + $0x4b8] sm:$0xf0]  ;;  %v13371_v4 = vld [vmem:[%s19031_s6 + $0x924] sm:$0xf]  ;;  %v11415_v17 = vld [vmem:[%s19031_s6 + $0x928] sm:$0xf0] }
 0x765   :  { %v10850_v34 = vor.u32 %v13229_v12, %v10847_v48  ;;  %v11418_v48 = vor.u32 %v13371_v4, %v11415_v17  ;;  %v11031_v4 = vld [vmem:[%s19031_s6 + $0x628] sm:$0xf0] }
 0x766   :  { %6856 = vmatpush.bf16.msrb.mxu3 %v11154_v8  ;;  %v10895_v8 = vld [vmem:[%s19031_s6 + $0x518] sm:$0xf0] }
 0x768   :  { %6753 = vmatpush.bf16.msrb.mxu0 %v10634_v1  ;;  %6766 = vmatpush.bf16.msra.mxu2 %v10698_v10  ;;  %v6599_v38 = vpop.f32.mrf.mxu0  ;;  %v13227_v1 = vld [vmem:[%s19031_s6 + $0x4a4] sm:$0xf]  ;;  %v10839_v10 = vld [vmem:[%s19031_s6 + $0x4a8] sm:$0xf0] }
 0x769   :  { %v6600_v32 = vadd.f32 %v6599_v38, %v17003_v37  ;;  %v13243_v37 = vld [vmem:[%s19031_s6 + $0x524] sm:$0xf]  ;;  %v10842_v54 = vor.u32 %v13227_v1, %v10839_v10  ;;  %v13281_v1 = vld [vmem:[%s19031_s6 + $0x654] sm:$0xf]  ;;  %v11055_v10 = vld [vmem:[%s19031_s6 + $0x658] sm:$0xf0] }
 0x76a   :  { %6857 = vmatpush.bf16.msrb.mxu3 %v11146_v29  ;;  %v11426_v29 = vor.u32 %v13373_v14, %v11423_v28  ;;  %v13277_v28 = vld [vmem:[%s19031_s6 + $0x634] sm:$0xf] }
 0x76b   :  { %6754 = vmatmul.bf16.vlgmr.msrb.gmra.mxu0 %v15547_v49  ;;  %6767 = vmatmul.bf16.vlgmr.msra.gmra.mxu2 %v15549_v51  ;;  %v11455_v49 = vld [vmem:[%s19031_s6 + $0x978] sm:$0xf0]  ;;  %v13231_v51 = vld [vmem:[%s19031_s6 + $0x4c4] sm:$0xf] }
 0x76c   :  { %6785 = vmatpush.bf16.msra.mxu0 %v10882_v55  ;;  %6798 = vmatpush.bf16.msrb.mxu2 %v10946_v42  ;;  %v11458_v35 = vor.u32 %v13381_v41, %v11455_v49  ;;  %v10858_v58 = vor.u32 %v13231_v51, %v10855_v2  ;;  %v11442_v55 = vor.u32 %v13377_v52, %v11439_v36  ;;  %v13375_v42 = vld [vmem:[%s19031_s6 + $0x944] sm:$0xf]  ;;  %v10823_v49 = vld [vmem:[%s19031_s6 + $0x488] sm:$0xf0]  ;;  %v11071_v51 = vld [vmem:[%s19031_s6 + $0x678] sm:$0xf0] }
 0x76d   :  { %6858 = vmatmul.bf16.vlgmr.msrb.gmra.mxu3 %v15995_v53  ;;  %v10903_v53 = vld [vmem:[%s19031_s6 + $0x528] sm:$0xf0]  ;;  %v13301_v2 = vld [vmem:[%s19031_s6 + $0x6f4] sm:$0xf]  ;;  %v10826_v46 = vor.u32 %v13223_v15, %v10823_v49  ;;  %v11103_v49 = vld [vmem:[%s19031_s6 + $0x6b8] sm:$0xf0] }
 0x76e   :  { %6902 = vmatpush.bf16.msra.mxu3 %v11458_v35  ;;  %v6612_v3 = vpop.f32.mrf.mxu2  ;;  %v10906_v57 = vor.u32 %v13243_v37, %v10903_v53  ;;  %v11135_v35 = vld [vmem:[%s19031_s6 + $0x6f8] sm:$0xf0]  ;;  %v11127_v52 = vld [vmem:[%s19031_s6 + $0x6e8] sm:$0xf0]  ;;  %v13369_v36 = vld [vmem:[%s19031_s6 + $0x914] sm:$0xf] }
 0x76f   :  { %v6613_v62 = vadd.f32 %v6612_v3, %v6600_v32  ;;  %v11138_v12 = vor.u32 %v13301_v2, %v11135_v35  ;;  %v11407_v32 = vld [vmem:[%s19031_s6 + $0x918] sm:$0xf0]  ;;  %v13367_v53 = vld [vmem:[%s19031_s6 + $0x904] sm:$0xf] }
 0x770   :  { %6786 = vmatpush.bf16.msra.mxu0 %v10874_v39  ;;  %6799 = vmatpush.bf16.msrb.mxu2 %v10938_v21  ;;  %v11434_v39 = vor.u32 %v13375_v42, %v11431_v61  ;;  %v13241_v21 = vld [vmem:[%s19031_s6 + $0x514] sm:$0xf]  ;;  %v6601_v11 = vpop.f32.mrf.mxu0  ;;  %v17196_v38 = vpop.f32.mrf.mxu3  ;;  %v11410_v45 = vor.u32 %v13369_v36, %v11407_v32  ;;  %v11119_v37 = vld [vmem:[%s19031_s6 + $0x6d8] sm:$0xf0]  ;;  %v11058_v61 = vor.u32 %v13281_v1, %v11055_v10  ;;  %v13275_v35 = vld [vmem:[%s19031_s6 + $0x624] sm:$0xf] }
 0x771   :  { %v17158_v44 = vadd.f32 %v16906_v31, %v6613_v62  ;;  %v10898_v41 = vor.u32 %v13241_v21, %v10895_v8  ;;  %v13285_v31 = vld [vmem:[%s19031_s6 + $0x674] sm:$0xf]  ;;  %v11402_v3 = vor.u32 %v13367_v53, %v11399_v43  ;;  %v13295_v62 = vld [vmem:[%s19031_s6 + $0x6c4] sm:$0xf]  ;;  %v11703_v8 = vld [vmem:[%s19031_s6 + $0xb68] sm:$0xf0] }
 0x772   :  { %6903 = vmatpush.bf16.msra.mxu3 %v11450_v33  ;;  %v13283_v33 = vld [vmem:[%s19031_s6 + $0x664] sm:$0xf]  ;;  %v13445_v42 = vld [vmem:[%s19031_s6 + $0xb74] sm:$0xf]  ;;  %v11079_v43 = vld [vmem:[%s19031_s6 + $0x688] sm:$0xf0] }
 0x773   :  { %v13443_v21 = vld [vmem:[%s19031_s6 + $0xb64] sm:$0xf]  ;;  %v13437_v32 = vld [vmem:[%s19031_s6 + $0xb34] sm:$0xf] }
 0x774   :  { %6787 = vmatpush.bf16.msra.mxu0 %v10866_v24  ;;  %6800 = vmatpush.bf16.msrb.mxu2 %v10930_v25  ;;  %v13239_v24 = vld [vmem:[%s19031_s6 + $0x504] sm:$0xf]  ;;  %v10887_v25 = vld [vmem:[%s19031_s6 + $0x508] sm:$0xf0]  ;;  %v11706_v15 = vor.u32 %v13443_v21, %v11703_v8 }
 0x775   :  { %v10890_v47 = vor.u32 %v13239_v24, %v10887_v25  ;;  %v13441_v25 = vld [vmem:[%s19031_s6 + $0xb54] sm:$0xf]  ;;  %v13271_v1 = vld [vmem:[%s19031_s6 + $0x604] sm:$0xf] }
 0x776   :  { %6904 = vmatpush.bf16.msra.mxu3 %v11442_v55  ;;  %v13297_v55 = vld [vmem:[%s19031_s6 + $0x6d4] sm:$0xf]  ;;  %v13287_v53 = vld [vmem:[%s19031_s6 + $0x684] sm:$0xf] }
 0x777   :  { %v13331_v8 = vld [vmem:[%s19031_s6 + $0x7e4] sm:$0xf] }
 0x778   :  { %6788 = vmatpush.bf16.msra.mxu0 %v10858_v58  ;;  %6801 = vmatpush.bf16.msrb.mxu2 %v10922_v30  ;;  %v11074_v58 = vor.u32 %v13285_v31, %v11071_v51  ;;  %v6614_v30 = vpop.f32.mrf.mxu2  ;;  %v6705_v40 = vpop.f32.mrf.mxu3 }
 0x77a   :  { %6905 = vmatpush.bf16.msra.mxu3 %v11434_v39  ;;  %v11111_v39 = vld [vmem:[%s19031_s6 + $0x6c8] sm:$0xf0] }
 0x77b   :  { %v11114_v14 = vor.u32 %v13295_v62, %v11111_v39 }
 0x77c   :  { %6789 = vmatpush.bf16.msra.mxu0 %v10850_v34  ;;  %6802 = vmatpush.bf16.msrb.mxu2 %v10914_v56  ;;  %v11066_v34 = vor.u32 %v13283_v33, %v11063_v9  ;;  %v11130_v56 = vor.u32 %v13299_v60, %v11127_v52  ;;  %v13289_v60 = vld [vmem:[%s19031_s6 + $0x694] sm:$0xf]  ;;  %v11087_v52 = vld [vmem:[%s19031_s6 + $0x698] sm:$0xf0] }
 0x77e   :  { %6906 = vmatpush.bf16.msra.mxu3 %v11426_v29  ;;  %v11695_v29 = vld [vmem:[%s19031_s6 + $0xb58] sm:$0xf0] }
 0x77f   :  { %v11698_v17 = vor.u32 %v13441_v25, %v11695_v29 }
 0x780   :  { %6790 = vmatpush.bf16.msra.mxu0 %v10842_v54  ;;  %6803 = vmatpush.bf16.msrb.mxu2 %v10906_v57  ;;  %v11122_v54 = vor.u32 %v13297_v55, %v11119_v37  ;;  %v13279_v57 = vld [vmem:[%s19031_s6 + $0x644] sm:$0xf]  ;;  %v11090_v55 = vor.u32 %v13289_v60, %v11087_v52  ;;  %v11015_v37 = vld [vmem:[%s19031_s6 + $0x608] sm:$0xf0]  ;;  %v11231_v60 = vld [vmem:[%s19031_s6 + $0x7b8] sm:$0xf0] }
 0x781   :  { %v11018_v40 = vor.u32 %v13271_v1, %v11015_v37  ;;  %v13357_v52 = vld [vmem:[%s19031_s6 + $0x8b4] sm:$0xf]  ;;  %v11223_v37 = vld [vmem:[%s19031_s6 + $0x7a8] sm:$0xf0] }
 0x782   :  { %6907 = vmatpush.bf16.msra.mxu3 %v11418_v48  ;;  %v11023_v48 = vld [vmem:[%s19031_s6 + $0x618] sm:$0xf0] }
 0x784   :  { %6791 = vmatpush.bf16.msra.mxu0 %v10834_v63  ;;  %6804 = vmatpush.bf16.msrb.mxu2 %v10898_v41  ;;  %v11039_v63 = vld [vmem:[%s19031_s6 + $0x638] sm:$0xf0]  ;;  %v13293_v41 = vld [vmem:[%s19031_s6 + $0x6b4] sm:$0xf] }
 0x785   :  { %v11042_v51 = vor.u32 %v13277_v28, %v11039_v63  ;;  %v11106_v2 = vor.u32 %v13293_v41, %v11103_v49  ;;  %v13433_v41 = vld [vmem:[%s19031_s6 + $0xb14] sm:$0xf]  ;;  %v11663_v49 = vld [vmem:[%s19031_s6 + $0xb18] sm:$0xf0] }
 0x786   :  { %6908 = vmatpush.bf16.msra.mxu3 %v11410_v45  ;;  %v11666_v29 = vor.u32 %v13433_v41, %v11663_v49  ;;  %v11519_v41 = vld [vmem:[%s19031_s6 + $0x9f8] sm:$0xf0]  ;;  %v13429_v49 = vld [vmem:[%s19031_s6 + $0xaf4] sm:$0xf] }
 0x788   :  { %6792 = vmatpush.bf16.msra.mxu0 %v10826_v46  ;;  %6805 = vmatpush.bf16.msrb.mxu2 %v10890_v47  ;;  %v6638_v24 = vpop.f32.mrf.mxu0  ;;  %v13439_v46 = vld [vmem:[%s19031_s6 + $0xb44] sm:$0xf]  ;;  %v11687_v47 = vld [vmem:[%s19031_s6 + $0xb48] sm:$0xf0] }
 0x789   :  { %v6639_v31 = vadd.f32 %v6638_v24, %v17158_v44  ;;  %v13291_v44 = vld [vmem:[%s19031_s6 + $0x6a4] sm:$0xf]  ;;  %v11690_v9 = vor.u32 %v13439_v46, %v11687_v47 }
 0x78a   :  { %6909 = vmatpush.bf16.msra.mxu3 %v11402_v3  ;;  %v11391_v3 = vld [vmem:[%s19031_s6 + $0x8f8] sm:$0xf0]  ;;  %v13327_v47 = vld [vmem:[%s19031_s6 + $0x7c4] sm:$0xf] }
 0x78b   :  { %6793 = vmatmul.bf16.vlgmr.msra.gmra.mxu0 %v15675_v50  ;;  %6806 = vmatmul.bf16.vlgmr.msrb.gmra.mxu2 %v15825_v27  ;;  %v11711_v50 = vld [vmem:[%s19031_s6 + $0xb78] sm:$0xf0]  ;;  %v11047_v27 = vld [vmem:[%s19031_s6 + $0x648] sm:$0xf0] }
 0x78c   :  { %6824 = vmatpush.bf16.msrb.mxu0 %v11074_v58  ;;  %6837 = vmatpush.bf16.msra.mxu2 %v11138_v12  ;;  %v11714_v22 = vor.u32 %v13445_v42, %v11711_v50  ;;  %v11050_v11 = vor.u32 %v13279_v57, %v11047_v27  ;;  %v11034_v58 = vor.u32 %v13275_v35, %v11031_v4  ;;  %v13273_v12 = vld [vmem:[%s19031_s6 + $0x614] sm:$0xf]  ;;  %v11263_v50 = vld [vmem:[%s19031_s6 + $0x7f8] sm:$0xf0]  ;;  %v13435_v57 = vld [vmem:[%s19031_s6 + $0xb24] sm:$0xf] }
 0x78d   :  { %6910 = vmatmul.bf16.vlgmr.msra.gmra.mxu3 %v15982_v0  ;;  %v11095_v0 = vld [vmem:[%s19031_s6 + $0x6a8] sm:$0xf0]  ;;  %v11026_v45 = vor.u32 %v13273_v12, %v11023_v48  ;;  %v11375_v4 = vld [vmem:[%s19031_s6 + $0x8d8] sm:$0xf0]  ;;  %v13359_v12 = vld [vmem:[%s19031_s6 + $0x8c4] sm:$0xf] }
 0x78e   :  { %6954 = vmatpush.bf16.msrb.mxu3 %v11714_v22  ;;  %v11098_v30 = vor.u32 %v13291_v44, %v11095_v0  ;;  %v6651_v33 = vpop.f32.mrf.mxu2  ;;  %v11671_v27 = vld [vmem:[%s19031_s6 + $0xb28] sm:$0xf0]  ;;  %v11082_v22 = vor.u32 %v13287_v53, %v11079_v43 }
 0x78f   :  { %v6652_v36 = vadd.f32 %v6651_v33, %v6639_v31  ;;  %v11674_v21 = vor.u32 %v13435_v57, %v11671_v27  ;;  %v13329_v31 = vld [vmem:[%s19031_s6 + $0x7d4] sm:$0xf]  ;;  %v11655_v44 = vld [vmem:[%s19031_s6 + $0xb08] sm:$0xf0]  ;;  %v11343_v27 = vld [vmem:[%s19031_s6 + $0x898] sm:$0xf0] }
 0x790   :  { %6825 = vmatpush.bf16.msrb.mxu0 %v11066_v34  ;;  %6838 = vmatpush.bf16.msra.mxu2 %v11130_v56  ;;  %v11679_v34 = vld [vmem:[%s19031_s6 + $0xb38] sm:$0xf0]  ;;  %v6640_v56 = vpop.f32.mrf.mxu0  ;;  %v17351_v63 = vpop.f32.mrf.mxu3  ;;  %v11351_v53 = vld [vmem:[%s19031_s6 + $0x8a8] sm:$0xf0]  ;;  %v13353_v57 = vld [vmem:[%s19031_s6 + $0x894] sm:$0xf] }
 0x791   :  { %v17311_v10 = vadd.f32 %v17076_v18, %v6652_v36  ;;  %v11682_v42 = vor.u32 %v13437_v32, %v11679_v34  ;;  %v13333_v18 = vld [vmem:[%s19031_s6 + $0x7f4] sm:$0xf]  ;;  %v11359_v36 = vld [vmem:[%s19031_s6 + $0x8b8] sm:$0xf0]  ;;  %v13781_v56 = vld [vmem:[%s19027_s2 + $0x2] sm:$0x3] }
 0x792   :  { %6955 = vmatpush.bf16.msrb.mxu3 %v11706_v15  ;;  %v11266_v62 = vor.u32 %v13333_v18, %v11263_v50  ;;  %v11383_v15 = vld [vmem:[%s19031_s6 + $0x8e8] sm:$0xf0]  ;;  %v11362_v1 = vor.u32 %v13357_v52, %v11359_v36  ;;  %v13321_v50 = vld [vmem:[%s19031_s6 + $0x794] sm:$0xf] }
 0x793   :  { %v13389_v36 = vld [vmem:[%s19031_s6 + $0x9b4] sm:$0xf]  ;;  %vm6993_vm6 = vcmp.gt.f32.partialorder %v17311_v10, 0.0 }
 0x794   :  { %6826 = vmatpush.bf16.msrb.mxu0 %v11058_v61  ;;  %6839 = vmatpush.bf16.msra.mxu2 %v11122_v54  ;;  %v13365_v61 = vld [vmem:[%s19031_s6 + $0x8f4] sm:$0xf]  ;;  %v17331_v54 = vpop.f32.mrf.mxu1 }
 0x795   :  { %v11394_v39 = vor.u32 %v13365_v61, %v11391_v3  ;;  %v11215_v61 = vld [vmem:[%s19031_s6 + $0x798] sm:$0xf0] }
 0x796   :  { %6956 = vmatpush.bf16.msrb.mxu3 %v11698_v17  ;;  %v6653_v28 = vpop.f32.mrf.mxu2  ;;  %v13431_v17 = vld [vmem:[%s19031_s6 + $0xb04] sm:$0xf] }
 0x797   :  { %v11335_v28 = vld [vmem:[%s19031_s6 + $0x888] sm:$0xf0] }
 0x798   :  { %6827 = vmatpush.bf16.msrb.mxu0 %v11050_v11  ;;  %6840 = vmatpush.bf16.msra.mxu2 %v11114_v14  ;;  %v11255_v11 = vld [vmem:[%s19031_s6 + $0x7e8] sm:$0xf0]  ;;  %v13363_v14 = vld [vmem:[%s19031_s6 + $0x8e4] sm:$0xf] }
 0x799   :  { %v11258_v24 = vor.u32 %v13331_v8, %v11255_v11  ;;  %v11386_v25 = vor.u32 %v13363_v14, %v11383_v15  ;;  %v11207_v8 = vld [vmem:[%s19031_s6 + $0x788] sm:$0xf0]  ;;  %v13351_v11 = vld [vmem:[%s19031_s6 + $0x884] sm:$0xf]  ;;  %v13397_v15 = vld [vmem:[%s19031_s6 + $0x9f4] sm:$0xf] }
 0x79a   :  { %6957 = vmatpush.bf16.msrb.mxu3 %v11690_v9  ;;  %v13325_v9 = vld [vmem:[%s19031_s6 + $0x7b4] sm:$0xf] }
 0x79b   :  { %v11234_v34 = vor.u32 %v13325_v9, %v11231_v60  ;;  %v13423_v9 = vld [vmem:[%s19031_s6 + $0xac4] sm:$0xf] }
 0x79c   :  { %6828 = vmatpush.bf16.msrb.mxu0 %v11042_v51  ;;  %6841 = vmatpush.bf16.msra.mxu2 %v11106_v2  ;;  %v11247_v51 = vld [vmem:[%s19031_s6 + $0x7d8] sm:$0xf0]  ;;  %v13361_v2 = vld [vmem:[%s19031_s6 + $0x8d4] sm:$0xf]  ;;  %v6991_v35 = vpop.f32.mrf.mxu1 }
 0x79d   :  { %v11250_v0 = vor.u32 %v13329_v31, %v11247_v51  ;;  %v11378_v46 = vor.u32 %v13361_v2, %v11375_v4  ;;  %v13395_v2 = vld [vmem:[%s19031_s6 + $0x9e4] sm:$0xf]  ;;  %v11511_v35 = vld [vmem:[%s19031_s6 + $0x9e8] sm:$0xf0] }
 0x79e   :  { %6958 = vmatpush.bf16.msrb.mxu3 %v11682_v42 }
 0x7a0   :  { %6829 = vmatpush.bf16.msrb.mxu0 %v11034_v58  ;;  %6842 = vmatpush.bf16.msra.mxu2 %v11098_v30  ;;  %v11239_v58 = vld [vmem:[%s19031_s6 + $0x7c8] sm:$0xf0]  ;;  %v6744_v30 = vpop.f32.mrf.mxu3 }
 0x7a1   :  { %v11242_v48 = vor.u32 %v13327_v47, %v11239_v58  ;;  %v11503_v47 = vld [vmem:[%s19031_s6 + $0x9d8] sm:$0xf0]  ;;  %v13425_v58 = vld [vmem:[%s19031_s6 + $0xad4] sm:$0xf] }
 0x7a2   :  { %6959 = vmatpush.bf16.msrb.mxu3 %v11674_v21  ;;  %v13319_v21 = vld [vmem:[%s19031_s6 + $0x784] sm:$0xf]  ;;  %v11631_v30 = vld [vmem:[%s19031_s6 + $0xad8] sm:$0xf0] }
 0x7a4   :  { %6830 = vmatpush.bf16.msrb.mxu0 %v11026_v45  ;;  %6843 = vmatpush.bf16.msra.mxu2 %v11090_v55  ;;  %v4252_v45 = vperm.slane %v13781_v56, 1  ;;  %v13323_v55 = vld [vmem:[%s19031_s6 + $0x7a4] sm:$0xf]  ;;  %v11615_v56 = vld [vmem:[%s19031_s6 + $0xab8] sm:$0xf0] }
 0x7a5   :  { %v11226_v43 = vor.u32 %v13323_v55, %v11223_v37 }
 0x7a6   :  { %6960 = vmatpush.bf16.msrb.mxu3 %v11666_v29  ;;  %v11522_v29 = vor.u32 %v13397_v15, %v11519_v41  ;;  %v11591_v41 = vld [vmem:[%s19031_s6 + $0xa88] sm:$0xf0] }
 0x7a8   :  { %6831 = vmatpush.bf16.msrb.mxu0 %v11018_v40  ;;  %6844 = vmatpush.bf16.msra.mxu2 %v11082_v22  ;;  %v6677_v32 = vpop.f32.mrf.mxu0 }
 0x7a9   :  { %v6678_v42 = vadd.f32 %v6677_v32, %v4252_v45  ;;  %v11487_v32 = vld [vmem:[%s19031_s6 + $0x9b8] sm:$0xf0] }
 0x7aa   :  { %v11490_v55 = vor.u32 %v13389_v36, %v11487_v32 }
 0x7ab   :  { %6832 = vmatmul.bf16.vlgmr.msrb.gmra.mxu0 %v15712_v23  ;;  %6845 = vmatmul.bf16.vlgmr.msra.gmra.mxu2 %v15993_v7  ;;  %v11658_v23 = vor.u32 %v13431_v17, %v11655_v44  ;;  %v11367_v7 = vld [vmem:[%s19031_s6 + $0x8c8] sm:$0xf0]  ;;  %v13427_v17 = vld [vmem:[%s19031_s6 + $0xae4] sm:$0xf] }
 0x7ac   :  { %6863 = vmatpush.bf16.msra.mxu0 %v11266_v62  ;;  %6889 = vmatpush.bf16.msrb.mxu2 %v11394_v39  ;;  %v11370_v33 = vor.u32 %v13359_v12, %v11367_v7  ;;  %v11218_v62 = vor.u32 %v13321_v50, %v11215_v61  ;;  %v11346_v39 = vor.u32 %v13353_v57, %v11343_v27  ;;  %v11639_v44 = vld [vmem:[%s19031_s6 + $0xae8] sm:$0xf0]  ;;  %v13385_v61 = vld [vmem:[%s19031_s6 + $0x994] sm:$0xf]  ;;  %v6995_v57 = vmul.f32 0.2, %v17311_v10 }
 0x7ad   :  { %6961 = vmatpush.bf16.msrb.mxu3 %v11658_v23  ;;  %v13393_v23 = vld [vmem:[%s19031_s6 + $0x9d4] sm:$0xf]  ;;  %v11634_v7 = vor.u32 %v13425_v58, %v11631_v30  ;;  %v11751_v58 = vld [vmem:[%s19031_s6 + $0xbc8] sm:$0xf0] }
 0x7ae   :  { %v6690_v3 = vpop.f32.mrf.mxu2  ;;  %v11506_v12 = vor.u32 %v13393_v23, %v11503_v47  ;;  %v13455_v47 = vld [vmem:[%s19031_s6 + $0xbc4] sm:$0xf] }
 0x7af   :  { %v6691_v40 = vadd.f32 %v6690_v3, %v6678_v42  ;;  %v11607_v42 = vld [vmem:[%s19031_s6 + $0xaa8] sm:$0xf0]  ;;  %v11471_v3 = vld [vmem:[%s19031_s6 + $0x998] sm:$0xf0] }
 0x7b0   :  { %6864 = vmatpush.bf16.msra.mxu0 %v11258_v24  ;;  %6890 = vmatpush.bf16.msrb.mxu2 %v11386_v25  ;;  %v6679_v22 = vpop.f32.mrf.mxu0  ;;  %v11210_v24 = vor.u32 %v13319_v21, %v11207_v8  ;;  %v11338_v25 = vor.u32 %v13351_v11, %v11335_v28  ;;  %v17465_v4 = vpop.f32.mrf.mxu3  ;;  %v11474_v21 = vor.u32 %v13385_v61, %v11471_v3  ;;  %v13383_v11 = vld [vmem:[%s19031_s6 + $0x984] sm:$0xf] }
 0x7b1   :  { %6962 = vmatmul.bf16.vlgmr.msrb.gmra.mxu3 %v16563_v26  ;;  %v13355_v26 = vld [vmem:[%s19031_s6 + $0x8a4] sm:$0xf]  ;;  %v6704_v14 = vadd.f32 %v17196_v38, %v6691_v40  ;;  %v11647_v38 = vld [vmem:[%s19031_s6 + $0xaf8] sm:$0xf0]  ;;  %v13417_v40 = vld [vmem:[%s19031_s6 + $0xa94] sm:$0xf] }
 0x7b2   :  { %v11354_v18 = vor.u32 %v13355_v26, %v11351_v53  ;;  %v11650_v51 = vor.u32 %v13429_v49, %v11647_v38  ;;  %v13387_v26 = vld [vmem:[%s19031_s6 + $0x9a4] sm:$0xf]  ;;  %v11479_v53 = vld [vmem:[%s19031_s6 + $0x9a8] sm:$0xf0]  ;;  %v11599_v22 = vld [vmem:[%s19031_s6 + $0xa98] sm:$0xf0] }
 0x7b3   :  { %v11602_v8 = vor.u32 %v13417_v40, %v11599_v22  ;;  %v13415_v28 = vld [vmem:[%s19031_s6 + $0xa84] sm:$0xf]  ;;  %v13461_v49 = vld [vmem:[%s19031_s6 + $0xbf4] sm:$0xf]  ;;  %v11775_v38 = vld [vmem:[%s19031_s6 + $0xbf8] sm:$0xf0] }
 0x7b4   :  { %6865 = vmatpush.bf16.msra.mxu0 %v11250_v0  ;;  %6891 = vmatpush.bf16.msrb.mxu2 %v11378_v46  ;;  %v11514_v0 = vor.u32 %v13395_v2, %v11511_v35  ;;  %v11642_v46 = vor.u32 %v13427_v17, %v11639_v44  ;;  %v13459_v2 = vld [vmem:[%s19031_s6 + $0xbe4] sm:$0xf]  ;;  %v11767_v35 = vld [vmem:[%s19031_s6 + $0xbe8] sm:$0xf0] }
 0x7b5   :  { %v11770_v44 = vor.u32 %v13459_v2, %v11767_v35  ;;  %v13479_v2 = vld [vmem:[%s19033_s7] sm:$0xff] }
 0x7b6   :  { %v6692_v31 = vpop.f32.mrf.mxu2 }
 0x7b7   :  { %v11778_v31 = vor.u32 %v13461_v49, %v11775_v38 }
 0x7b8   :  { %6866 = vmatpush.bf16.msra.mxu0 %v11242_v48  ;;  %6892 = vmatpush.bf16.msrb.mxu2 %v11370_v33  ;;  %v13391_v48 = vld [vmem:[%s19031_s6 + $0x9c4] sm:$0xf]  ;;  %v6783_v33 = vpop.f32.mrf.mxu3 }
 0x7b9   :  { %v13451_v33 = vld [vmem:[%s19031_s6 + $0xba4] sm:$0xf] }
 0x7bc   :  { %6867 = vmatpush.bf16.msra.mxu0 %v11234_v34  ;;  %6893 = vmatpush.bf16.msrb.mxu2 %v11362_v1  ;;  %v13421_v34 = vld [vmem:[%s19031_s6 + $0xab4] sm:$0xf] }
 0x7bd   :  { %v11618_v37 = vor.u32 %v13421_v34, %v11615_v56 }
 0x7c0   :  { %6868 = vmatpush.bf16.msra.mxu0 %v11226_v43  ;;  %6894 = vmatpush.bf16.msrb.mxu2 %v11354_v18  ;;  %v13419_v43 = vld [vmem:[%s19031_s6 + $0xaa4] sm:$0xf]  ;;  %v11482_v18 = vor.u32 %v13387_v26, %v11479_v53 }
 0x7c1   :  { %v11610_v50 = vor.u32 %v13419_v43, %v11607_v42 }
 0x7c4   :  { %6869 = vmatpush.bf16.msra.mxu0 %v11218_v62  ;;  %6895 = vmatpush.bf16.msrb.mxu2 %v11346_v39 }
 0x7c8   :  { %6870 = vmatpush.bf16.msra.mxu0 %v11210_v24  ;;  %6896 = vmatpush.bf16.msrb.mxu2 %v11338_v25  ;;  %v6716_v45 = vpop.f32.mrf.mxu0  ;;  %v6997_v24 = vsel %vm6993_vm6, %v17311_v10, %v6995_v57 }
 0x7c9   :  { %v6717_v1 = vadd.f32 %v6716_v45, %v6704_v14  ;;  %v11463_v14 = vld [vmem:[%s19031_s6 + $0x988] sm:$0xf0]  ;;  %v13447_v45 = vld [vmem:[%s19031_s6 + $0xb84] sm:$0xf] }
 0x7ca   :  { %v11466_v25 = vor.u32 %v13383_v11, %v11463_v14 }
 0x7cb   :  { %6871 = vmatmul.bf16.vlgmr.msra.gmra.mxu0 %v15802_v13  ;;  %6897 = vmatmul.bf16.vlgmr.msrb.gmra.mxu2 %v16189_v5  ;;  %v11495_v13 = vld [vmem:[%s19031_s6 + $0x9c8] sm:$0xf0] }
 0x7cc   :  { %6915 = vmatpush.bf16.msrb.mxu0 %v11522_v29  ;;  %6941 = vmatpush.bf16.msra.mxu2 %v11650_v51  ;;  %v11623_v5 = vld [vmem:[%s19031_s6 + $0xac8] sm:$0xf0]  ;;  %v11498_v60 = vor.u32 %v13391_v48, %v11495_v13  ;;  %v11594_v29 = vor.u32 %v13415_v28, %v11591_v41 }
 0x7cd   :  { %v11626_v52 = vor.u32 %v13423_v9, %v11623_v5  ;;  %v11735_v9 = vld [vmem:[%s19031_s6 + $0xba8] sm:$0xf0] }
 0x7ce   :  { %v6729_v27 = vpop.f32.mrf.mxu2  ;;  %v11738_v5 = vor.u32 %v13451_v33, %v11735_v9  ;;  %v13494_v9 = vld [vmem:[%s19034_s8 + $0x64] sm:$0xf0] }
 0x7cf   :  { %v6730_v62 = vadd.f32 %v6729_v27, %v6717_v1  ;;  %v11719_v1 = vld [vmem:[%s19031_s6 + $0xb88] sm:$0xf0] }
 0x7d0   :  { %6916 = vmatpush.bf16.msrb.mxu0 %v11514_v0  ;;  %6942 = vmatpush.bf16.msra.mxu2 %v11642_v46  ;;  %v6718_v39 = vpop.f32.mrf.mxu0  ;;  %v6820_v17 = vpop.f32.mrf.mxu3  ;;  %v13457_v0 = vld [vmem:[%s19031_s6 + $0xbd4] sm:$0xf]  ;;  %v11759_v46 = vld [vmem:[%s19031_s6 + $0xbd8] sm:$0xf0] }
 0x7d1   :  { %v6743_v15 = vadd.f32 %v17351_v63, %v6730_v62  ;;  %v6999_v63 = vpack.c.bf16 %v6997_v24, %v6997_v24  ;;  %v11762_v23 = vor.u32 %v13457_v0, %v11759_v46  ;;  %v13480_v46 = vld [vmem:[%s19033_s7 + $0x8] sm:$0xff] }
 0x7d3   :  { %v7025_v10 = vsel %vm7023_vm7, %v6999_v63, 0 }
 0x7d4   :  { %6917 = vmatpush.bf16.msrb.mxu0 %v11506_v12  ;;  %6943 = vmatpush.bf16.msra.mxu2 %v11634_v7  ;;  %v11754_v12 = vor.u32 %v13455_v47, %v11751_v58  ;;  %v13453_v7 = vld [vmem:[%s19031_s6 + $0xbb4] sm:$0xf]  ;;  %v13496_v47 = vld [vmem:[%s19034_s8 + $0x74] sm:$0xf0] }
 0x7d6   :  { %v6731_v51 = vpop.f32.mrf.mxu2 }
 0x7d8   :  { %6918 = vmatpush.bf16.msrb.mxu0 %v11498_v60  ;;  %6944 = vmatpush.bf16.msra.mxu2 %v11626_v52  ;;  %v6822_v30 = vpop.f32.mrf.mxu3  ;;  %v13449_v60 = vld [vmem:[%s19031_s6 + $0xb94] sm:$0xf]  ;;  %v11727_v52 = vld [vmem:[%s19031_s6 + $0xb98] sm:$0xf0] }
 0x7d9   :  { %v11730_v56 = vor.u32 %v13449_v60, %v11727_v52  ;;  %v13512_v30 = vld [vmem:[%s19034_s8 + $0xf4] sm:$0xf0]  ;;  %v13510_v60 = vld [vmem:[%s19034_s8 + $0xe4] sm:$0xf0] }
 0x7dc   :  { %6919 = vmatpush.bf16.msrb.mxu0 %v11490_v55  ;;  %6945 = vmatpush.bf16.msra.mxu2 %v11618_v37  ;;  %v11722_v37 = vor.u32 %v13447_v45, %v11719_v1  ;;  %v12105_v1 = vld [vmem:[%s19034_s8 + $0x1f0] sm:$0xf] }
 0x7e0   :  { %6920 = vmatpush.bf16.msrb.mxu0 %v11482_v18  ;;  %6946 = vmatpush.bf16.msra.mxu2 %v11610_v50 }
 0x7e4   :  { %6921 = vmatpush.bf16.msrb.mxu0 %v11474_v21  ;;  %6947 = vmatpush.bf16.msra.mxu2 %v11602_v8 }
 0x7e8   :  { %6922 = vmatpush.bf16.msrb.mxu0 %v11466_v25  ;;  %6948 = vmatpush.bf16.msra.mxu2 %v11594_v29 }
 0x7eb   :  { %6923 = vmatmul.bf16.vlgmr.msrb.gmra.mxu0 %v16375_v6  ;;  %6949 = vmatmul.bf16.vlgmr.msra.gmra.mxu2 %v16087_v20  ;;  %v11743_v20 = vld [vmem:[%s19031_s6 + $0xbb8] sm:$0xf0]  ;;  %v6755_v6 = vpop.f32.mrf.mxu0 }
 0x7ec   :  { %6967 = vmatpush.bf16.msra.mxu0 %v11778_v31  ;;  %7037 = vmatpush.bf16.msrb.mxu2 %v7025_v10  ;;  %v6756_v48 = vadd.f32 %v6755_v6, %v6743_v15  ;;  %v11746_v13 = vor.u32 %v13453_v7, %v11743_v20  ;;  %v13528_v7 = vld [vmem:[%s19034_s8 + $0x174] sm:$0xf0] }
 0x7ee   :  { %v6768_v36 = vpop.f32.mrf.mxu2 }
 0x7ef   :  { %v6769_v32 = vadd.f32 %v6768_v36, %v6756_v48 }
 0x7f0   :  { %6968 = vmatpush.bf16.msra.mxu0 %v11770_v44  ;;  %v6859_v53 = vpop.f32.mrf.mxu3 }
 0x7f1   :  { %v6782_v55 = vadd.f32 %v17465_v4, %v6769_v32  ;;  %v12033_v32 = vld [vmem:[%s19034_s8 + $0x160] sm:$0xf] }
 0x7f3   :  { %v6757_v34 = vpop.f32.mrf.mxu0 }
 0x7f4   :  { %6969 = vmatpush.bf16.msra.mxu0 %v11762_v23  ;;  %v11913_v23 = vld [vmem:[%s19034_s8 + $0x70] sm:$0xf]  ;;  %v13526_v34 = vld [vmem:[%s19034_s8 + $0x164] sm:$0xf0] }
 0x7f5   :  { %v11914_v58 = vor.u32 %v13496_v47, %v11913_v23  ;;  %v12034_v45 = vor.u32 %v13526_v34, %v12033_v32  ;;  %v12073_v23 = vld [vmem:[%s19034_s8 + $0x1b0] sm:$0xf]  ;;  %v13536_v47 = vld [vmem:[%s19034_s8 + $0x1b4] sm:$0xf0] }
 0x7f6   :  { %v6770_v26 = vpop.f32.mrf.mxu2  ;;  %v13484_v32 = vld [vmem:[%s19034_s8 + $0x14] sm:$0xf0]  ;;  %v11929_v34 = vld [vmem:[%s19034_s8 + $0x90] sm:$0xf] }
 0x7f7   :  { %7893 = vmatpush.bf16.msra.mxu2 %v11914_v58  ;;  %v12074_v58 = vor.u32 %v13536_v47, %v12073_v23  ;;  %v12153_v23 = vld [vmem:[%s19034_s8 + $0x250] sm:$0xf]  ;;  %v13556_v47 = vld [vmem:[%s19034_s8 + $0x254] sm:$0xf0] }
 0x7f8   :  { %6970 = vmatpush.bf16.msra.mxu0 %v11754_v12  ;;  %v6861_v43 = vpop.f32.mrf.mxu3  ;;  %v12041_v12 = vld [vmem:[%s19034_s8 + $0x170] sm:$0xf] }
 0x7f9   :  { %v12042_v48 = vor.u32 %v13528_v7, %v12041_v12  ;;  %v13486_v12 = vld [vmem:[%s19034_s8 + $0x24] sm:$0xf0]  ;;  %v11937_v7 = vld [vmem:[%s19034_s8 + $0xa0] sm:$0xf] }
 0x7fb   :  { %11851 = vmatmul.msk.bf16.vlgmr.msrb.gmra.mxu2 %vm7016_vm8, %v13479_v2  ;;  %7919 = vmatpush.bf16.msra.mxu1 %v12042_v48  ;;  %v12001_v48 = vld [vmem:[%s19034_s8 + $0x120] sm:$0xf] }
 0x7fc   :  { %6971 = vmatpush.bf16.msra.mxu0 %v11746_v13  ;;  %v11905_v13 = vld [vmem:[%s19034_s8 + $0x60] sm:$0xf] }
 0x7fd   :  { %v11906_v52 = vor.u32 %v13494_v9, %v11905_v13  ;;  %v13518_v13 = vld [vmem:[%s19034_s8 + $0x124] sm:$0xf0] }
 0x7fe   :  { %v12002_v9 = vor.u32 %v13518_v13, %v12001_v48  ;;  %v12345_v13 = vld [vmem:[%s19034_s8 + $0x3d0] sm:$0xf] }
 0x7ff   :  { %7894 = vmatpush.bf16.msra.mxu2 %v11906_v52  ;;  %7920 = vmatpush.bf16.msra.mxu1 %v12034_v45  ;;  %v13500_v45 = vld [vmem:[%s19034_s8 + $0x94] sm:$0xf0] }
 0x800   :  { %6972 = vmatpush.bf16.msra.mxu0 %v11738_v5  ;;  %v11969_v5 = vld [vmem:[%s19034_s8 + $0xe0] sm:$0xf] }
 0x801   :  { %v11970_v36 = vor.u32 %v13510_v60, %v11969_v5  ;;  %v12065_v5 = vld [vmem:[%s19034_s8 + $0x1a0] sm:$0xf]  ;;  %v13534_v60 = vld [vmem:[%s19034_s8 + $0x1a4] sm:$0xf0] }
 0x802   :  { %v12066_v52 = vor.u32 %v13534_v60, %v12065_v5  ;;  %v12145_v5 = vld [vmem:[%s19034_s8 + $0x240] sm:$0xf]  ;;  %v13554_v60 = vld [vmem:[%s19034_s8 + $0x244] sm:$0xf0] }
 0x804   :  { %6973 = vmatpush.bf16.msra.mxu0 %v11730_v56 }
 0x808   :  { %6974 = vmatpush.bf16.msra.mxu0 %v11722_v37  ;;  %v6794_v42 = vpop.f32.mrf.mxu0  ;;  %v13544_v37 = vld [vmem:[%s19034_s8 + $0x1f4] sm:$0xf0] }
 0x809   :  { %v6795_v18 = vadd.f32 %v6794_v42, %v6782_v55  ;;  %v12106_v42 = vor.u32 %v13544_v37, %v12105_v1  ;;  %v11993_v1 = vld [vmem:[%s19034_s8 + $0x110] sm:$0xf]  ;;  %v11930_v37 = vor.u32 %v13500_v45, %v11929_v34  ;;  %v12273_v34 = vld [vmem:[%s19034_s8 + $0x340] sm:$0xf] }
 0x80b   :  { %6975 = vmatmul.bf16.vlgmr.msra.gmra.mxu0 %v16574_v19  ;;  %11852 = vmatmul.msk.bf16.gmra.mxu2 %vm7016_vm8, %v13480_v46 }
 0x80e   :  { %v6807_v50 = vpop.f32.mrf.mxu2 }
 0x80f   :  { %v6808_v61 = vadd.f32 %v6807_v50, %v6795_v18  ;;  %v13542_v18 = vld [vmem:[%s19034_s8 + $0x1e4] sm:$0xf0] }
 0x810   :  { %v6796_v3 = vpop.f32.mrf.mxu0  ;;  %v6911_v40 = vpop.f32.mrf.mxu3 }
 0x811   :  { %v6821_v57 = vadd.f32 %v6820_v17, %v6808_v61  ;;  %v11897_v3 = vld [vmem:[%s19034_s8 + $0x50] sm:$0xf] }
 0x816   :  { %v6809_v27 = vpop.f32.mrf.mxu2 }
 0x817   :  { %v11961_v27 = vld [vmem:[%s19034_s8 + $0xd0] sm:$0xf] }
 0x818   :  { %v6913_v22 = vpop.f32.mrf.mxu3 }
 0x819   :  { %v13508_v22 = vld [vmem:[%s19034_s8 + $0xd4] sm:$0xf0] }
 0x828   :  { %v6833_v62 = vpop.f32.mrf.mxu0 }
 0x829   :  { %v6834_v39 = vadd.f32 %v6833_v62, %v6821_v57  ;;  %v13492_v57 = vld [vmem:[%s19034_s8 + $0x54] sm:$0xf0]  ;;  %v12025_v62 = vld [vmem:[%s19034_s8 + $0x150] sm:$0xf] }
 0x82e   :  { %v6846_v4 = vpop.f32.mrf.mxu2 }
 0x82f   :  { %v6847_v21 = vadd.f32 %v6846_v4, %v6834_v39  ;;  %v13524_v39 = vld [vmem:[%s19034_s8 + $0x154] sm:$0xf0]  ;;  %v11962_v4 = vor.u32 %v13508_v22, %v11961_v27  ;;  %v13514_v27 = vld [vmem:[%s19034_s8 + $0x104] sm:$0xf0] }
 0x830   :  { %v6835_v8 = vpop.f32.mrf.mxu0 }
 0x831   :  { %v6860_v11 = vadd.f32 %v6859_v53, %v6847_v21  ;;  %v12026_v21 = vor.u32 %v13524_v39, %v12025_v62  ;;  %v12089_v8 = vld [vmem:[%s19034_s8 + $0x1d0] sm:$0xf]  ;;  %v12049_v62 = vld [vmem:[%s19034_s8 + $0x180] sm:$0xf]  ;;  %v13530_v39 = vld [vmem:[%s19034_s8 + $0x184] sm:$0xf0] }
 0x833   :  { %7921 = vmatpush.bf16.msra.mxu1 %v12026_v21  ;;  %v12050_v21 = vor.u32 %v13530_v39, %v12049_v62  ;;  %v13600_v62 = vld [vmem:[%s19034_s8 + $0x3b4] sm:$0xf0] }
 0x834   :  { %v6963_v28 = vpop.f32.mrf.mxu3 }
 0x836   :  { %v6848_v14 = vpop.f32.mrf.mxu2 }
 0x83c   :  { %v6965_v15 = vpop.f32.mrf.mxu3 }
 0x83d   :  { %v13490_v15 = vld [vmem:[%s19034_s8 + $0x44] sm:$0xf0] }
 0x848   :  { %v6872_v19 = vpop.f32.mrf.mxu0 }
 0x849   :  { %v6873_v41 = vadd.f32 %v6872_v19, %v6860_v11  ;;  %v13540_v11 = vld [vmem:[%s19034_s8 + $0x1d4] sm:$0xf0]  ;;  %v11953_v19 = vld [vmem:[%s19034_s8 + $0xc0] sm:$0xf] }
 0x84a   :  { %v12090_v14 = vor.u32 %v13540_v11, %v12089_v8  ;;  %v13560_v8 = vld [vmem:[%s19034_s8 + $0x274] sm:$0xf0]  ;;  %v12233_v11 = vld [vmem:[%s19034_s8 + $0x2f0] sm:$0xf] }
 0x84b   :  { %v6886_v49 = vadd.f32 %v16868_v59, %v6873_v41 }
 0x84e   :  { %v6898_v38 = vpop.f32.mrf.mxu2 }
 0x84f   :  { %v6899_v24 = vadd.f32 %v6898_v38, %v6886_v49  ;;  %v13506_v49 = vld [vmem:[%s19034_s8 + $0xc4] sm:$0xf0]  ;;  %v12017_v38 = vld [vmem:[%s19034_s8 + $0x140] sm:$0xf] }
 0x850   :  { %v6874_v25 = vpop.f32.mrf.mxu0 }
 0x851   :  { %v6912_v29 = vadd.f32 %v6911_v40, %v6899_v24  ;;  %v11898_v40 = vor.u32 %v13492_v57, %v11897_v3  ;;  %v13522_v24 = vld [vmem:[%s19034_s8 + $0x144] sm:$0xf0]  ;;  %v11954_v25 = vor.u32 %v13506_v49, %v11953_v19  ;;  %v11985_v57 = vld [vmem:[%s19034_s8 + $0x100] sm:$0xf]  ;;  %v12297_v19 = vld [vmem:[%s19034_s8 + $0x370] sm:$0xf] }
 0x852   :  { %v13498_v3 = vld [vmem:[%s19034_s8 + $0x84] sm:$0xf0]  ;;  %v11986_v22 = vor.u32 %v13514_v27, %v11985_v57  ;;  %v12361_v49 = vld [vmem:[%s19034_s8 + $0x3f0] sm:$0xf]  ;;  %v13584_v57 = vld [vmem:[%s19034_s8 + $0x334] sm:$0xf0] }
 0x853   :  { %7895 = vmatpush.bf16.msra.mxu2 %v11898_v40 }
 0x856   :  { %v6900_v31 = vpop.f32.mrf.mxu2 }
 0x857   :  { %v12081_v31 = vld [vmem:[%s19034_s8 + $0x1c0] sm:$0xf] }
 0x868   :  { %v6924_v63 = vpop.f32.mrf.mxu0 }
 0x869   :  { %v6925_v51 = vadd.f32 %v6924_v63, %v6912_v29  ;;  %v12018_v29 = vor.u32 %v13522_v24, %v12017_v38  ;;  %v13538_v63 = vld [vmem:[%s19034_s8 + $0x1c4] sm:$0xf0]  ;;  %v13608_v24 = vld [vmem:[%s19034_s8 + $0x3f4] sm:$0xf0] }
 0x86b   :  { %v6938_v35 = vadd.f32 %v17090_v16, %v6925_v51  ;;  %v11977_v16 = vld [vmem:[%s19034_s8 + $0xf0] sm:$0xf]  ;;  %v12082_v51 = vor.u32 %v13538_v63, %v12081_v31  ;;  %7922 = vmatpush.bf16.msra.mxu1 %v12018_v29  ;;  %v13558_v29 = vld [vmem:[%s19034_s8 + $0x264] sm:$0xf0]  ;;  %v12362_v31 = vor.u32 %v13608_v24, %v12361_v49 }
 0x86c   :  { %v11978_v6 = vor.u32 %v13512_v30, %v11977_v16  ;;  %v11873_v30 = vld [vmem:[%s19034_s8 + $0x20] sm:$0xf]  ;;  %v13582_v49 = vld [vmem:[%s19034_s8 + $0x324] sm:$0xf0] }
 0x86e   :  { %v6950_v17 = vpop.f32.mrf.mxu2  ;;  %7906 = vmatpush.bf16.msrb.mxu0 %v11978_v6  ;;  %v13502_v6 = vld [vmem:[%s19034_s8 + $0xa4] sm:$0xf0] }
 0x86f   :  { %v6951_v10 = vadd.f32 %v6950_v17, %v6938_v35  ;;  %v13488_v35 = vld [vmem:[%s19034_s8 + $0x34] sm:$0xf0] }
 0x870   :  { %v6926_v44 = vpop.f32.mrf.mxu0 }
 0x871   :  { %v6964_v59 = vadd.f32 %v6963_v28, %v6951_v10  ;;  %v11889_v28 = vld [vmem:[%s19034_s8 + $0x40] sm:$0xf]  ;;  %v11945_v10 = vld [vmem:[%s19034_s8 + $0xb0] sm:$0xf]  ;;  %v13504_v44 = vld [vmem:[%s19034_s8 + $0xb4] sm:$0xf0] }
 0x872   :  { %7907 = vmatpush.bf16.msrb.mxu0 %v11970_v36  ;;  %v11890_v41 = vor.u32 %v13490_v15, %v11889_v28  ;;  %v11865_v36 = vld [vmem:[%s19034_s8 + $0x10] sm:$0xf] }
 0x874   :  { %7896 = vmatpush.bf16.msra.mxu2 %v11890_v41  ;;  %v13592_v41 = vld [vmem:[%s19034_s8 + $0x374] sm:$0xf0] }
 0x875   :  { %v12298_v38 = vor.u32 %v13592_v41, %v12297_v19  ;;  %v13566_v19 = vld [vmem:[%s19034_s8 + $0x2a4] sm:$0xf0]  ;;  %v12257_v41 = vld [vmem:[%s19034_s8 + $0x320] sm:$0xf] }
 0x876   :  { %v6952_v0 = vpop.f32.mrf.mxu2  ;;  %7908 = vmatpush.bf16.msrb.mxu0 %v11962_v4  ;;  %v12169_v4 = vld [vmem:[%s19034_s8 + $0x270] sm:$0xf]  ;;  %v12258_v24 = vor.u32 %v13582_v49, %v12257_v41 }
 0x877   :  { %v11946_v0 = vor.u32 %v13504_v44, %v11945_v10  ;;  %v12170_v28 = vor.u32 %v13560_v8, %v12169_v4  ;;  %v13590_v10 = vld [vmem:[%s19034_s8 + $0x364] sm:$0xf0]  ;;  %v12353_v44 = vld [vmem:[%s19034_s8 + $0x3e0] sm:$0xf] }
 0x878   :  { %v12129_v8 = vld [vmem:[%s19034_s8 + $0x220] sm:$0xf] }
 0x87a   :  { %7909 = vmatpush.bf16.msrb.mxu0 %v11954_v25  ;;  %v12161_v25 = vld [vmem:[%s19034_s8 + $0x260] sm:$0xf] }
 0x87b   :  { %v12162_v63 = vor.u32 %v13558_v29, %v12161_v25  ;;  %v12321_v25 = vld [vmem:[%s19034_s8 + $0x3a0] sm:$0xf]  ;;  %v13598_v29 = vld [vmem:[%s19034_s8 + $0x3a4] sm:$0xf0] }
 0x87e   :  { %7910 = vmatpush.bf16.msrb.mxu0 %v11946_v0 }
 0x888   :  { %v6976_v20 = vpop.f32.mrf.mxu0 }
 0x889   :  { %v6977_v33 = vadd.f32 %v6976_v20, %v6964_v59  ;;  %v12009_v59 = vld [vmem:[%s19034_s8 + $0x130] sm:$0xf]  ;;  %v11874_v20 = vor.u32 %v13486_v12, %v11873_v30  ;;  %v13572_v30 = vld [vmem:[%s19034_s8 + $0x2d4] sm:$0xf0] }
 0x88a   :  { %v12281_v12 = vld [vmem:[%s19034_s8 + $0x350] sm:$0xf] }
 0x88b   :  { %v6990_v56 = vadd.f32 %v17331_v54, %v6977_v33  ;;  %v12097_v54 = vld [vmem:[%s19034_s8 + $0x1e0] sm:$0xf]  ;;  %v11938_v33 = vor.u32 %v13502_v6, %v11937_v7  ;;  %v13588_v7 = vld [vmem:[%s19034_s8 + $0x354] sm:$0xf0] }
 0x88c   :  { %v12098_v61 = vor.u32 %v13542_v18, %v12097_v54  ;;  %v11857_v54 = vld [vmem:[%s19034_s8] sm:$0xf]  ;;  %v13482_v18 = vld [vmem:[%s19034_s8 + $0x4] sm:$0xf0]  ;;  %v12282_v48 = vor.u32 %v13588_v7, %v12281_v12 }
 0x88d   :  { %vm6994_vm9 = vcmp.gt.f32.partialorder %v6990_v56, 0.0  ;;  %v6996_v55 = vmul.f32 0.2, %v6990_v56  ;;  %7911 = vmatpush.bf16.msrb.mxu0 %v11938_v33  ;;  %v13604_v33 = vld [vmem:[%s19034_s8 + $0x3d4] sm:$0xf0] }
 0x88e   :  { %v12177_v12 = vld [vmem:[%s19034_s8 + $0x280] sm:$0xf]  ;;  %v13562_v7 = vld [vmem:[%s19034_s8 + $0x284] sm:$0xf0] }
 0x88f   :  { %v6998_v26 = vsel %vm6994_vm9, %v6990_v56, %v6996_v55  ;;  %v11866_v56 = vor.u32 %v13484_v32, %v11865_v36  ;;  %v13516_v55 = vld [vmem:[%s19034_s8 + $0x114] sm:$0xf0]  ;;  %v12146_v36 = vor.u32 %v13554_v60, %v12145_v5  ;;  %v13570_v32 = vld [vmem:[%s19034_s8 + $0x2c4] sm:$0xf0] }
 0x890   :  { %v6978_v53 = vpop.f32.mrf.mxu0  ;;  %v7000_v43 = vpack.c.bf16 %v6998_v26, %v6998_v26  ;;  %v11994_v26 = vor.u32 %v13516_v55, %v11993_v1  ;;  %v12337_v55 = vld [vmem:[%s19034_s8 + $0x3c0] sm:$0xf] }
 0x891   :  { %v12057_v53 = vld [vmem:[%s19034_s8 + $0x190] sm:$0xf]  ;;  %7912 = vmatpush.bf16.msrb.mxu0 %v11930_v37  ;;  %v13602_v37 = vld [vmem:[%s19034_s8 + $0x3c4] sm:$0xf0] }
 0x892   :  { %v7028_v50 = vsel %vm7023_vm7, %v7000_v43, 0  ;;  %v13532_v43 = vld [vmem:[%s19034_s8 + $0x194] sm:$0xf0] }
 0x893   :  { %7056 = vmatpush.bf16.msra.mxu3 %v7028_v50  ;;  %v11921_v50 = vld [vmem:[%s19034_s8 + $0x80] sm:$0xf] }
 0x894   :  { %v11922_v40 = vor.u32 %v13498_v3, %v11921_v50  ;;  %v12265_v3 = vld [vmem:[%s19034_s8 + $0x330] sm:$0xf] }
 0x896   :  { %11853 = vmatmul.msk.bf16.vlgmr.msra.gmra.mxu3 %vm7016_vm8, %v13479_v2  ;;  %v11881_v2 = vld [vmem:[%s19034_s8 + $0x30] sm:$0xf]  ;;  %7913 = vmatpush.bf16.msrb.mxu0 %v11922_v40  ;;  %v12266_v40 = vor.u32 %v13584_v57, %v12265_v3  ;;  %v11979_v3 = vld [vmem:[%s19034_s8 + $0xf8] sm:$0xf0]  ;;  %v13527_v57 = vld [vmem:[%s19034_s8 + $0x174] sm:$0xf] }
 0x897   :  { %7932 = vmatpush.bf16.msrb.mxu3 %v12106_v42  ;;  %v11882_v17 = vor.u32 %v13488_v35, %v11881_v2  ;;  %v12058_v42 = vor.u32 %v13532_v43, %v12057_v53  ;;  %v13574_v2 = vld [vmem:[%s19034_s8 + $0x2e4] sm:$0xf0]  ;;  %v12289_v35 = vld [vmem:[%s19034_s8 + $0x360] sm:$0xf]  ;;  %v12137_v43 = vld [vmem:[%s19034_s8 + $0x230] sm:$0xf] }
 0x898   :  { %v12290_v0 = vor.u32 %v13590_v10, %v12289_v35  ;;  %v12249_v10 = vld [vmem:[%s19034_s8 + $0x310] sm:$0xf] }
 0x899   :  { %7897 = vmatpush.bf16.msra.mxu2 %v11882_v17 }
 0x89b   :  { %7933 = vmatpush.bf16.msrb.mxu3 %v12098_v61  ;;  %v11858_v61 = vor.u32 %v13482_v18, %v11857_v54  ;;  %v12201_v54 = vld [vmem:[%s19034_s8 + $0x2b0] sm:$0xf] }
 0x89d   :  { %7898 = vmatpush.bf16.msra.mxu2 %v11874_v20  ;;  %v7039_v20 = vpop.f32.mrf.mxu2 }
 0x89f   :  { %7934 = vmatpush.bf16.msrb.mxu3 %v12090_v14  ;;  %v13576_v14 = vld [vmem:[%s19034_s8 + $0x2f4] sm:$0xf0] }
 0x8a0   :  { %v12234_v15 = vor.u32 %v13576_v14, %v12233_v11  ;;  %v13550_v11 = vld [vmem:[%s19034_s8 + $0x224] sm:$0xf0]  ;;  %v12193_v14 = vld [vmem:[%s19034_s8 + $0x2a0] sm:$0xf] }
 0x8a1   :  { %7899 = vmatpush.bf16.msra.mxu2 %v11866_v56  ;;  %v13586_v56 = vld [vmem:[%s19034_s8 + $0x344] sm:$0xf0] }
 0x8a2   :  { %7958 = vmatpush.bf16.msra.mxu0 %v12234_v15  ;;  %v12274_v1 = vor.u32 %v13586_v56, %v12273_v34  ;;  %v12130_v15 = vor.u32 %v13550_v11, %v12129_v8  ;;  %v11971_v11 = vld [vmem:[%s19034_s8 + $0xe8] sm:$0xf0] }
 0x8a3   :  { %7935 = vmatpush.bf16.msrb.mxu3 %v12082_v51  ;;  %v12225_v51 = vld [vmem:[%s19034_s8 + $0x2e0] sm:$0xf] }
 0x8a4   :  { %v12226_v17 = vor.u32 %v13574_v2, %v12225_v51  ;;  %v13548_v51 = vld [vmem:[%s19034_s8 + $0x214] sm:$0xf0]  ;;  %v12185_v2 = vld [vmem:[%s19034_s8 + $0x290] sm:$0xf] }
 0x8a5   :  { %7900 = vmatpush.bf16.msra.mxu2 %v11858_v61  ;;  %v13568_v61 = vld [vmem:[%s19034_s8 + $0x2b4] sm:$0xf0] }
 0x8a6   :  { %11854 = vmatmul.msk.bf16.gmra.mxu3 %vm7016_vm8, %v13480_v46  ;;  %v13520_v46 = vld [vmem:[%s19034_s8 + $0x134] sm:$0xf0]  ;;  %7959 = vmatpush.bf16.msra.mxu0 %v12226_v17  ;;  %v12202_v27 = vor.u32 %v13568_v61, %v12201_v54  ;;  %v13511_v61 = vld [vmem:[%s19034_s8 + $0xf4] sm:$0xf] }
 0x8a7   :  { %v12010_v16 = vor.u32 %v13520_v46, %v12009_v59  ;;  %7936 = vmatpush.bf16.msrb.mxu3 %v12074_v58  ;;  %v13606_v59 = vld [vmem:[%s19034_s8 + $0x3e4] sm:$0xf0]  ;;  %v12154_v58 = vor.u32 %v13556_v47, %v12153_v23  ;;  %v13564_v17 = vld [vmem:[%s19034_s8 + $0x294] sm:$0xf0]  ;;  %v12313_v23 = vld [vmem:[%s19034_s8 + $0x390] sm:$0xf]  ;;  %v11982_v8 = vor.u32 %v13511_v61, %v11979_v3 }
 0x8a8   :  { %v12354_v46 = vor.u32 %v13606_v59, %v12353_v44  ;;  %v13580_v44 = vld [vmem:[%s19034_s8 + $0x314] sm:$0xf0]  ;;  %v13517_v61 = vld [vmem:[%s19034_s8 + $0x124] sm:$0xf]  ;;  %v12003_v3 = vld [vmem:[%s19034_s8 + $0x128] sm:$0xf0] }
 0x8a9   :  { %7923 = vmatpush.bf16.msra.mxu1 %v12010_v16  ;;  %7945 = vmatpush.bf16.msrb.mxu2 %v12170_v28  ;;  %v12217_v16 = vld [vmem:[%s19034_s8 + $0x2d0] sm:$0xf]  ;;  %v13596_v47 = vld [vmem:[%s19034_s8 + $0x394] sm:$0xf0] }
 0x8aa   :  { %v12218_v6 = vor.u32 %v13572_v30, %v12217_v16  ;;  %v12113_v16 = vld [vmem:[%s19034_s8 + $0x200] sm:$0xf]  ;;  %v13546_v30 = vld [vmem:[%s19034_s8 + $0x204] sm:$0xf0] }
 0x8ab   :  { %7937 = vmatpush.bf16.msrb.mxu3 %v12066_v52  ;;  %v12209_v52 = vld [vmem:[%s19034_s8 + $0x2c0] sm:$0xf]  ;;  %v12114_v60 = vor.u32 %v13546_v30, %v12113_v16  ;;  %v11891_v30 = vld [vmem:[%s19034_s8 + $0x48] sm:$0xf0] }
 0x8ac   :  { %7960 = vmatpush.bf16.msra.mxu0 %v12218_v6  ;;  %v12210_v45 = vor.u32 %v13570_v32, %v12209_v52  ;;  %v12314_v6 = vor.u32 %v13596_v47, %v12313_v23  ;;  %v12178_v52 = vor.u32 %v13562_v7, %v12177_v12  ;;  %v12091_v23 = vld [vmem:[%s19034_s8 + $0x1d8] sm:$0xf0] }
 0x8ad   :  { %7924 = vmatpush.bf16.msra.mxu1 %v12002_v9  ;;  %7946 = vmatpush.bf16.msrb.mxu2 %v12162_v63  ;;  %v12346_v9 = vor.u32 %v13604_v33, %v12345_v13  ;;  %v12121_v63 = vld [vmem:[%s19034_s8 + $0x210] sm:$0xf]  ;;  %v13578_v13 = vld [vmem:[%s19034_s8 + $0x304] sm:$0xf0]  ;;  %v12305_v33 = vld [vmem:[%s19034_s8 + $0x380] sm:$0xf] }
 0x8af   :  { %7938 = vmatpush.bf16.msrb.mxu3 %v12058_v42  ;;  %v13552_v42 = vld [vmem:[%s19034_s8 + $0x234] sm:$0xf0] }
 0x8b0   :  { %7961 = vmatpush.bf16.msra.mxu0 %v12210_v45  ;;  %v12138_v50 = vor.u32 %v13552_v42, %v12137_v43 }
 0x8b1   :  { %7925 = vmatpush.bf16.msra.mxu1 %v11994_v26  ;;  %7947 = vmatpush.bf16.msrb.mxu2 %v12154_v58  ;;  %v12338_v26 = vor.u32 %v13602_v37, %v12337_v55  ;;  %v12250_v58 = vor.u32 %v13580_v44, %v12249_v10  ;;  %v13507_v10 = vld [vmem:[%s19034_s8 + $0xd4] sm:$0xf]  ;;  %v11963_v44 = vld [vmem:[%s19034_s8 + $0xd8] sm:$0xf0] }
 0x8b2   :  { %v11966_v16 = vor.u32 %v13507_v10, %v11963_v44  ;;  %v11859_v44 = vld [vmem:[%s19034_s8 + $0x8] sm:$0xf0] }
 0x8b3   :  { %7939 = vmatpush.bf16.msrb.mxu3 %v12050_v21  ;;  %v7041_v21 = vpop.f32.mrf.mxu2 }
 0x8b4   :  { %7962 = vmatpush.bf16.msra.mxu0 %v12202_v27  ;;  %v12043_v27 = vld [vmem:[%s19034_s8 + $0x178] sm:$0xf0] }
 0x8b5   :  { %7926 = vmatpush.bf16.msra.mxu1 %v11986_v22  ;;  %7948 = vmatpush.bf16.msrb.mxu2 %v12146_v36  ;;  %v12329_v22 = vld [vmem:[%s19034_s8 + $0x3b0] sm:$0xf]  ;;  %v12046_v49 = vor.u32 %v13527_v57, %v12043_v27 }
 0x8b6   :  { %v12330_v4 = vor.u32 %v13600_v62, %v12329_v22  ;;  %v12107_v22 = vld [vmem:[%s19034_s8 + $0x1f8] sm:$0xf0]  ;;  %v13493_v62 = vld [vmem:[%s19034_s8 + $0x64] sm:$0xf] }
 0x8b7   :  { %7984 = vmatpush.bf16.msra.mxu3 %v12362_v31  ;;  %v12322_v31 = vor.u32 %v13598_v29, %v12321_v25  ;;  %v13541_v25 = vld [vmem:[%s19034_s8 + $0x1e4] sm:$0xf]  ;;  %v12099_v29 = vld [vmem:[%s19034_s8 + $0x1e8] sm:$0xf0] }
 0x8b9   :  { %7971 = vmatpush.bf16.msrb.mxu1 %v12298_v38  ;;  %7949 = vmatpush.bf16.msrb.mxu2 %v12138_v50  ;;  %v12194_v38 = vor.u32 %v13566_v19, %v12193_v14  ;;  %v11915_v50 = vld [vmem:[%s19034_s8 + $0x78] sm:$0xf0]  ;;  %v13525_v14 = vld [vmem:[%s19034_s8 + $0x164] sm:$0xf] }
 0x8bb   :  { %7985 = vmatpush.bf16.msra.mxu3 %v12354_v46  ;;  %7963 = vmatpush.bf16.msra.mxu0 %v12194_v38  ;;  %v12186_v46 = vor.u32 %v13564_v17, %v12185_v2  ;;  %v7044_v36 = vpop.f32.mrf.mxu2  ;;  %v11899_v2 = vld [vmem:[%s19034_s8 + $0x58] sm:$0xf0]  ;;  %v12102_v17 = vor.u32 %v13541_v25, %v12099_v29  ;;  %v13499_v25 = vld [vmem:[%s19034_s8 + $0x94] sm:$0xf] }
 0x8bc   :  { %v11931_v29 = vld [vmem:[%s19034_s8 + $0x98] sm:$0xf0] }
 0x8bd   :  { %7972 = vmatpush.bf16.msrb.mxu1 %v12290_v0  ;;  %7950 = vmatpush.bf16.msrb.mxu2 %v12130_v15  ;;  %v12122_v0 = vor.u32 %v13548_v51, %v12121_v63  ;;  %v13491_v51 = vld [vmem:[%s19034_s8 + $0x54] sm:$0xf]  ;;  %v11934_v10 = vor.u32 %v13499_v25, %v11931_v29 }
 0x8be   :  { %v11902_v47 = vor.u32 %v13491_v51, %v11899_v2  ;;  %v13531_v51 = vld [vmem:[%s19034_s8 + $0x194] sm:$0xf]  ;;  %v12059_v2 = vld [vmem:[%s19034_s8 + $0x198] sm:$0xf0] }
 0x8bf   :  { %7986 = vmatpush.bf16.msra.mxu3 %v12346_v9  ;;  %v13594_v9 = vld [vmem:[%s19034_s8 + $0x384] sm:$0xf0]  ;;  %7964 = vmatpush.bf16.msra.mxu0 %v12186_v46  ;;  %v13539_v46 = vld [vmem:[%s19034_s8 + $0x1d4] sm:$0xf] }
 0x8c0   :  { %v12306_v34 = vor.u32 %v13594_v9, %v12305_v33  ;;  %v12094_v7 = vor.u32 %v13539_v46, %v12091_v23  ;;  %v13537_v33 = vld [vmem:[%s19034_s8 + $0x1c4] sm:$0xf]  ;;  %v12083_v9 = vld [vmem:[%s19034_s8 + $0x1c8] sm:$0xf0]  ;;  %v12062_v23 = vor.u32 %v13531_v51, %v12059_v2 }
 0x8c1   :  { %7973 = vmatpush.bf16.msrb.mxu1 %v12282_v48  ;;  %v12241_v48 = vld [vmem:[%s19034_s8 + $0x300] sm:$0xf]  ;;  %7951 = vmatpush.bf16.msrb.mxu2 %v12122_v0  ;;  %v12027_v0 = vld [vmem:[%s19034_s8 + $0x158] sm:$0xf0]  ;;  %v13601_v51 = vld [vmem:[%s19034_s8 + $0x3c4] sm:$0xf] }
 0x8c2   :  { %v12242_v32 = vor.u32 %v13578_v13, %v12241_v48  ;;  %v13521_v48 = vld [vmem:[%s19034_s8 + $0x144] sm:$0xf]  ;;  %v12019_v13 = vld [vmem:[%s19034_s8 + $0x148] sm:$0xf0] }
 0x8c3   :  { %7987 = vmatpush.bf16.msra.mxu3 %v12338_v26  ;;  %7965 = vmatpush.bf16.msra.mxu0 %v12178_v52  ;;  %v7046_v37 = vpop.f32.mrf.mxu2  ;;  %v13487_v52 = vld [vmem:[%s19034_s8 + $0x34] sm:$0xf]  ;;  %v12339_v2 = vld [vmem:[%s19034_s8 + $0x3c8] sm:$0xf0] }
 0x8c5   :  { %7974 = vmatpush.bf16.msrb.mxu1 %v12274_v1  ;;  %7952 = vmatpush.bf16.msrb.mxu2 %v12114_v60 }
 0x8c7   :  { %7988 = vmatpush.bf16.msra.mxu3 %v12330_v4  ;;  %v13509_v4 = vld [vmem:[%s19034_s8 + $0xe4] sm:$0xf] }
 0x8c8   :  { %v11974_v63 = vor.u32 %v13509_v4, %v11971_v11 }
 0x8c9   :  { %7975 = vmatpush.bf16.msrb.mxu1 %v12266_v40  ;;  %v13543_v40 = vld [vmem:[%s19034_s8 + $0x1f4] sm:$0xf] }
 0x8ca   :  { %v12110_v38 = vor.u32 %v13543_v40, %v12107_v22 }
 0x8cb   :  { %7989 = vmatpush.bf16.msra.mxu3 %v12322_v31 }
 0x8cd   :  { %7976 = vmatpush.bf16.msrb.mxu1 %v12258_v24 }
 0x8cf   :  { %7990 = vmatpush.bf16.msra.mxu3 %v12314_v6  ;;  %v11955_v6 = vld [vmem:[%s19034_s8 + $0xc8] sm:$0xf0] }
 0x8d1   :  { %7977 = vmatpush.bf16.msrb.mxu1 %v12250_v58  ;;  %v13489_v58 = vld [vmem:[%s19034_s8 + $0x44] sm:$0xf] }
 0x8d3   :  { %7991 = vmatpush.bf16.msra.mxu3 %v12306_v34  ;;  %v12086_v34 = vor.u32 %v13537_v33, %v12083_v9  ;;  %v12299_v9 = vld [vmem:[%s19034_s8 + $0x378] sm:$0xf0] }
 0x8d5   :  { %7978 = vmatpush.bf16.msrb.mxu1 %v12242_v32  ;;  %v12022_v32 = vor.u32 %v13521_v48, %v12019_v13  ;;  %v13591_v48 = vld [vmem:[%s19034_s8 + $0x374] sm:$0xf] }
 0x919   :  { %v7058_v53 = vpop.f32.mrf.mxu3 }
 0x91a   :  { %v7068_v18 = vpack.c.bf16 %v7058_v53, %v7039_v20 }
 0x91c   :  { %v7073_v39 = vrot.slane %v7068_v18, 3 }
 0x91e   :  { %v7077_v28 = vsel %vm7074_vm10, %v7068_v18, %v7073_v39  ;;  %v13495_v18 = vld [vmem:[%s19034_s8 + $0x74] sm:$0xf]  ;;  %v11907_v39 = vld [vmem:[%s19034_s8 + $0x68] sm:$0xf0] }
 0x91f   :  { %7079 = vst [vmem:[#allocation4] sm:$0x3] %v7077_v28  ;;  %v12035_v28 = vld [vmem:[%s19034_s8 + $0x168] sm:$0xf0]  ;;  %v11910_v31 = vor.u32 %v13493_v62, %v11907_v39  ;;  %v13533_v62 = vld [vmem:[%s19034_s8 + $0x1a4] sm:$0xf] }
 0x921   :  { %v7060_v35 = vpop.f32.mrf.mxu3 }
 0x922   :  { %v7069_v59 = vpack.c.bf16 %v7060_v35, %v7041_v21  ;;  %v11918_v21 = vor.u32 %v13495_v18, %v11915_v50  ;;  %v12038_v35 = vor.u32 %v13525_v14, %v12035_v28  ;;  %v11939_v50 = vld [vmem:[%s19034_s8 + $0xa8] sm:$0xf0]  ;;  %v13483_v14 = vld [vmem:[%s19034_s8 + $0x14] sm:$0xf]  ;;  %v11867_v28 = vld [vmem:[%s19034_s8 + $0x18] sm:$0xf0] }
 0x924   :  { %v7081_v20 = vrot.slane %v7069_v59, 3 }
 0x926   :  { %v7084_v5 = vsel %vm7074_vm10, %v7069_v59, %v7081_v20  ;;  %v13523_v59 = vld [vmem:[%s19034_s8 + $0x154] sm:$0xf]  ;;  %v13505_v20 = vld [vmem:[%s19034_s8 + $0xc4] sm:$0xf] }
 0x927   :  { %7086 = vst [vmem:[#allocation4 + $0x2] sm:$0x3] %v7084_v5  ;;  %v12030_v12 = vor.u32 %v13523_v59, %v12027_v0  ;;  %v11894_v5 = vor.u32 %v13489_v58, %v11891_v30  ;;  %v11958_v60 = vor.u32 %v13505_v20, %v11955_v6  ;;  %v13497_v59 = vld [vmem:[%s19034_s8 + $0x84] sm:$0xf]  ;;  %v11923_v0 = vld [vmem:[%s19034_s8 + $0x88] sm:$0xf0] }
 0x928   :  { %v13529_v58 = vld [vmem:[%s19034_s8 + $0x184] sm:$0xf]  ;;  %v12051_v30 = vld [vmem:[%s19034_s8 + $0x188] sm:$0xf0]  ;;  %v13575_v20 = vld [vmem:[%s19034_s8 + $0x2f4] sm:$0xf]  ;;  %v11926_v33 = vor.u32 %v13497_v59, %v11923_v0  ;;  %v12342_v0 = vor.u32 %v13601_v51, %v12339_v2 }
 0x929   :  { %v7063_v56 = vpop.f32.mrf.mxu3  ;;  %v12235_v6 = vld [vmem:[%s19034_s8 + $0x2f8] sm:$0xf0]  ;;  %v12419_v51 = vld [vmem:[%s19035_s9 + $0x68] sm:$0xf0] }
 0x92a   :  { %v7070_v45 = vpack.c.bf16 %v7063_v56, %v7044_v36  ;;  %v11883_v36 = vld [vmem:[%s19034_s8 + $0x38] sm:$0xf0]  ;;  %v13503_v56 = vld [vmem:[%s19034_s8 + $0xb4] sm:$0xf] }
 0x92c   :  { %v7088_v1 = vrot.slane %v7070_v45, 3 }
 0x92e   :  { %v7091_v55 = vsel %vm7074_vm10, %v7070_v45, %v7088_v1  ;;  %v11947_v45 = vld [vmem:[%s19034_s8 + $0xb8] sm:$0xf0]  ;;  %v13519_v1 = vld [vmem:[%s19034_s8 + $0x134] sm:$0xf] }
 0x92f   :  { %7093 = vst [vmem:[#allocation4 + $0x4] sm:$0x3] %v7091_v55  ;;  %v12011_v55 = vld [vmem:[%s19034_s8 + $0x138] sm:$0xf0]  ;;  %v11950_v18 = vor.u32 %v13503_v56, %v11947_v45  ;;  %v13557_v56 = vld [vmem:[%s19034_s8 + $0x264] sm:$0xf] }
 0x930   :  { %v12014_v40 = vor.u32 %v13519_v1, %v12011_v55  ;;  %v12163_v45 = vld [vmem:[%s19034_s8 + $0x268] sm:$0xf0]  ;;  %v12302_v1 = vor.u32 %v13591_v48, %v12299_v9 }
 0x931   :  { %v7065_v26 = vpop.f32.mrf.mxu3  ;;  %v12195_v9 = vld [vmem:[%s19034_s8 + $0x2a8] sm:$0xf0] }
 0x932   :  { %v7071_v53 = vpack.c.bf16 %v7065_v26, %v7046_v37  ;;  %v13535_v37 = vld [vmem:[%s19034_s8 + $0x1b4] sm:$0xf]  ;;  %v12075_v26 = vld [vmem:[%s19034_s8 + $0x1b8] sm:$0xf0] }
 0x933   :  { %v12078_v22 = vor.u32 %v13535_v37, %v12075_v26  ;;  %v13573_v37 = vld [vmem:[%s19034_s8 + $0x2e4] sm:$0xf]  ;;  %v12227_v26 = vld [vmem:[%s19034_s8 + $0x2e8] sm:$0xf0] }
 0x934   :  { %v7095_v43 = vrot.slane %v7071_v53, 3 }
 0x936   :  { %v7098_v42 = vsel %vm7074_vm10, %v7071_v53, %v7095_v43  ;;  %v13485_v53 = vld [vmem:[%s19034_s8 + $0x24] sm:$0xf]  ;;  %v11875_v43 = vld [vmem:[%s19034_s8 + $0x28] sm:$0xf0] }
 0x937   :  { %7100 = vst [vmem:[#allocation4 + $0x6] sm:$0x3] %v7098_v42  ;;  %v13501_v42 = vld [vmem:[%s19034_s8 + $0xa4] sm:$0xf] }
 0x938   :  { %v11942_v11 = vor.u32 %v13501_v42, %v11939_v50  ;;  %v13605_v42 = vld [vmem:[%s19034_s8 + $0x3e4] sm:$0xf]  ;;  %v12230_v50 = vor.u32 %v13573_v37, %v12227_v26  ;;  %v13563_v37 = vld [vmem:[%s19034_s8 + $0x294] sm:$0xf]  ;;  %v12187_v26 = vld [vmem:[%s19034_s8 + $0x298] sm:$0xf0] }
 0x93e   :  { %v7101_v54 = vld [vmem:[#allocation4] sm:$0xff] }
 0x93f   :  { %7236 = vst [vmem:[#allocation1] ss:$9 sm:$0xff] %v7101_v54  ;;  %v11886_v54 = vor.u32 %v13487_v52, %v11883_v36  ;;  %v12054_v36 = vor.u32 %v13529_v58, %v12051_v30  ;;  %v13599_v58 = vld [vmem:[%s19034_s8 + $0x3b4] sm:$0xf]  ;;  %v12331_v30 = vld [vmem:[%s19034_s8 + $0x3b8] sm:$0xf0] }
 0x946   :  { %v18048_v15 = vld [vmem:[#allocation1] sm:$0xff]  ;;  %v18050_v19 = vld [vmem:[#allocation1 + $0x9] sm:$0xff]  ;;  %v18052_v41 = vld [vmem:[#allocation1 + $0x12] sm:$0xff] }
 0x947   :  { %7901 = vmatmul.bf16.vlgmr.msra.gmra.mxu2 %v18048_v15  ;;  %7914 = vmatmul.bf16.vlgmr.msrb.gmra.mxu0 %v18050_v19  ;;  %v18056_v24 = vld [vmem:[#allocation1 + $0x1b] sm:$0xff]  ;;  %v18156_v57 = vld [vmem:[#allocation1 + $0x24] sm:$0xff]  ;;  %v18158_v27 = vld [vmem:[#allocation1 + $0x2d] sm:$0xff] }
 0x948   :  { %7927 = vmatmul.bf16.vlgmr.msra.gmra.mxu1 %v18052_v41  ;;  %7940 = vmatmul.bf16.vlgmr.msrb.gmra.mxu3 %v18056_v24  ;;  %v18165_v39 = vld [vmem:[#allocation1 + $0x36] sm:$0xff]  ;;  %v18167_v4 = vld [vmem:[#allocation1 + $0x3f] sm:$0xff] }
 0x949   :  { %7997 = vmatpush.bf16.msra.mxu2 %v11918_v21  ;;  %8010 = vmatpush.bf16.msrb.mxu0 %v11982_v8  ;;  %v12067_v21 = vld [vmem:[%s19034_s8 + $0x1a8] sm:$0xf0]  ;;  %v11878_v8 = vor.u32 %v13485_v53, %v11875_v43  ;;  %v13589_v53 = vld [vmem:[%s19034_s8 + $0x364] sm:$0xf] }
 0x94a   :  { %8023 = vmatpush.bf16.msra.mxu1 %v12046_v49  ;;  %8036 = vmatpush.bf16.msrb.mxu3 %v12110_v38  ;;  %v12006_v49 = vor.u32 %v13517_v61, %v12003_v3  ;;  %v12070_v38 = vor.u32 %v13533_v62, %v12067_v21  ;;  %v12291_v43 = vld [vmem:[%s19034_s8 + $0x368] sm:$0xf0]  ;;  %v13555_v61 = vld [vmem:[%s19034_s8 + $0x254] sm:$0xf]  ;;  %v12155_v3 = vld [vmem:[%s19034_s8 + $0x258] sm:$0xf0] }
 0x94b   :  { %v13571_v62 = vld [vmem:[%s19034_s8 + $0x2d4] sm:$0xf]  ;;  %v12219_v21 = vld [vmem:[%s19034_s8 + $0x2d8] sm:$0xf0] }
 0x94d   :  { %7998 = vmatpush.bf16.msra.mxu2 %v11910_v31  ;;  %8011 = vmatpush.bf16.msrb.mxu0 %v11974_v63  ;;  %v13515_v31 = vld [vmem:[%s19034_s8 + $0x114] sm:$0xf]  ;;  %v11995_v63 = vld [vmem:[%s19034_s8 + $0x118] sm:$0xf0] }
 0x94e   :  { %8024 = vmatpush.bf16.msra.mxu1 %v12038_v35  ;;  %8037 = vmatpush.bf16.msrb.mxu3 %v12102_v17  ;;  %v13481_v35 = vld [vmem:[%s19034_s8 + $0x4] sm:$0xf]  ;;  %v11870_v17 = vor.u32 %v13483_v14, %v11867_v28  ;;  %v11998_v46 = vor.u32 %v13515_v31, %v11995_v63  ;;  %v13603_v14 = vld [vmem:[%s19034_s8 + $0x3d4] sm:$0xf]  ;;  %v12347_v28 = vld [vmem:[%s19034_s8 + $0x3d8] sm:$0xf0] }
 0x94f   :  { %v11862_v13 = vor.u32 %v13481_v35, %v11859_v44  ;;  %v12350_v29 = vor.u32 %v13603_v14, %v12347_v28  ;;  %v13585_v31 = vld [vmem:[%s19034_s8 + $0x344] sm:$0xf]  ;;  %v12275_v63 = vld [vmem:[%s19034_s8 + $0x348] sm:$0xf0]  ;;  %v12139_v44 = vld [vmem:[%s19034_s8 + $0x238] sm:$0xf0] }
 0x950   :  { %v12278_v59 = vor.u32 %v13585_v31, %v12275_v63  ;;  %v13593_v14 = vld [vmem:[%s19034_s8 + $0x384] sm:$0xf]  ;;  %v12307_v28 = vld [vmem:[%s19034_s8 + $0x388] sm:$0xf0] }
 0x951   :  { %7999 = vmatpush.bf16.msra.mxu2 %v11902_v47  ;;  %8012 = vmatpush.bf16.msrb.mxu0 %v11966_v16  ;;  %v13513_v47 = vld [vmem:[%s19034_s8 + $0x104] sm:$0xf]  ;;  %v11987_v16 = vld [vmem:[%s19034_s8 + $0x108] sm:$0xf0] }
 0x952   :  { %8025 = vmatpush.bf16.msra.mxu1 %v12030_v12  ;;  %8038 = vmatpush.bf16.msrb.mxu3 %v12094_v7  ;;  %v13559_v12 = vld [vmem:[%s19034_s8 + $0x274] sm:$0xf]  ;;  %v12171_v7 = vld [vmem:[%s19034_s8 + $0x278] sm:$0xf0]  ;;  %v11990_v52 = vor.u32 %v13513_v47, %v11987_v16  ;;  %v13621_v31 = vld [vmem:[%s19035_s9 + $0x64] sm:$0xf] }
 0x953   :  { %v13583_v47 = vld [vmem:[%s19034_s8 + $0x334] sm:$0xf]  ;;  %v12267_v16 = vld [vmem:[%s19034_s8 + $0x338] sm:$0xf0]  ;;  %v12422_v2 = vor.u32 %v13621_v31, %v12419_v51  ;;  %v12483_v31 = vld [vmem:[%s19035_s9 + $0xe8] sm:$0xf0] }
 0x954   :  { %v12270_v48 = vor.u32 %v13583_v47, %v12267_v16  ;;  %v13617_v47 = vld [vmem:[%s19035_s9 + $0x44] sm:$0xf] }
 0x955   :  { %8000 = vmatpush.bf16.msra.mxu2 %v11894_v5  ;;  %8013 = vmatpush.bf16.msrb.mxu0 %v11958_v60  ;;  %v13607_v5 = vld [vmem:[%s19034_s8 + $0x3f4] sm:$0xf]  ;;  %v12363_v60 = vld [vmem:[%s19034_s8 + $0x3f8] sm:$0xf0] }
 0x956   :  { %8026 = vmatpush.bf16.msra.mxu1 %v12022_v32  ;;  %8039 = vmatpush.bf16.msrb.mxu3 %v12086_v34  ;;  %v12174_v32 = vor.u32 %v13559_v12, %v12171_v7  ;;  %v12238_v34 = vor.u32 %v13575_v20, %v12235_v6  ;;  %v12366_v55 = vor.u32 %v13607_v5, %v12363_v60  ;;  %v13549_v20 = vld [vmem:[%s19034_s8 + $0x224] sm:$0xf]  ;;  %v12131_v6 = vld [vmem:[%s19034_s8 + $0x228] sm:$0xf0] }
 0x957   :  { %7953 = vmatmul.bf16.vlgmr.msrb.gmra.mxu2 %v18156_v57  ;;  %7966 = vmatmul.bf16.vlgmr.msra.gmra.mxu0 %v18158_v27  ;;  %v13581_v5 = vld [vmem:[%s19034_s8 + $0x324] sm:$0xf]  ;;  %v12259_v60 = vld [vmem:[%s19034_s8 + $0x328] sm:$0xf0] }
 0x958   :  { %7979 = vmatmul.bf16.vlgmr.msrb.gmra.mxu1 %v18165_v39  ;;  %7992 = vmatmul.bf16.vlgmr.msra.gmra.mxu3 %v18167_v4 }
 0x959   :  { %8001 = vmatpush.bf16.msra.mxu2 %v11886_v54  ;;  %8014 = vmatpush.bf16.msrb.mxu0 %v11950_v18  ;;  %v12355_v54 = vld [vmem:[%s19034_s8 + $0x3e8] sm:$0xf0]  ;;  %v12166_v18 = vor.u32 %v13557_v56, %v12163_v45  ;;  %v13547_v56 = vld [vmem:[%s19034_s8 + $0x214] sm:$0xf]  ;;  %v12123_v45 = vld [vmem:[%s19034_s8 + $0x218] sm:$0xf0] }
 0x95a   :  { %8027 = vmatpush.bf16.msra.mxu1 %v12014_v40  ;;  %8040 = vmatpush.bf16.msrb.mxu3 %v12078_v22  ;;  %v12294_v40 = vor.u32 %v13589_v53, %v12291_v43  ;;  %v12358_v22 = vor.u32 %v13605_v42, %v12355_v54  ;;  %v13579_v53 = vld [vmem:[%s19034_s8 + $0x314] sm:$0xf]  ;;  %v12251_v43 = vld [vmem:[%s19034_s8 + $0x318] sm:$0xf0] }
 0x95b   :  { %v13595_v42 = vld [vmem:[%s19034_s8 + $0x394] sm:$0xf]  ;;  %v12315_v54 = vld [vmem:[%s19034_s8 + $0x398] sm:$0xf0] }
 0x95d   :  { %8002 = vmatpush.bf16.msra.mxu2 %v11878_v8  ;;  %8015 = vmatpush.bf16.msrb.mxu0 %v11942_v11  ;;  %v13587_v8 = vld [vmem:[%s19034_s8 + $0x354] sm:$0xf]  ;;  %v12283_v11 = vld [vmem:[%s19034_s8 + $0x358] sm:$0xf0] }
 0x95e   :  { %8028 = vmatpush.bf16.msra.mxu1 %v12006_v49  ;;  %8041 = vmatpush.bf16.msrb.mxu3 %v12070_v38  ;;  %v13553_v49 = vld [vmem:[%s19034_s8 + $0x244] sm:$0xf]  ;;  %v12147_v38 = vld [vmem:[%s19034_s8 + $0x248] sm:$0xf0]  ;;  %v12286_v25 = vor.u32 %v13587_v8, %v12283_v11 }
 0x95f   :  { %v12150_v35 = vor.u32 %v13553_v49, %v12147_v38  ;;  %v13577_v8 = vld [vmem:[%s19034_s8 + $0x304] sm:$0xf]  ;;  %v12243_v11 = vld [vmem:[%s19034_s8 + $0x308] sm:$0xf0]  ;;  %v12310_v38 = vor.u32 %v13593_v14, %v12307_v28 }
 0x960   :  { %v12246_v49 = vor.u32 %v13577_v8, %v12243_v11 }
 0x961   :  { %8003 = vmatpush.bf16.msra.mxu2 %v11870_v17  ;;  %8016 = vmatpush.bf16.msrb.mxu0 %v11934_v10  ;;  %v13551_v10 = vld [vmem:[%s19034_s8 + $0x234] sm:$0xf] }
 0x962   :  { %8029 = vmatpush.bf16.msra.mxu1 %v11998_v46  ;;  %8042 = vmatpush.bf16.msrb.mxu3 %v12062_v23  ;;  %v13567_v46 = vld [vmem:[%s19034_s8 + $0x2b4] sm:$0xf]  ;;  %v12203_v23 = vld [vmem:[%s19034_s8 + $0x2b8] sm:$0xf0]  ;;  %v12142_v12 = vor.u32 %v13551_v10, %v12139_v44 }
 0x963   :  { %v12206_v7 = vor.u32 %v13567_v46, %v12203_v23  ;;  %v13619_v10 = vld [vmem:[%s19035_s9 + $0x54] sm:$0xf]  ;;  %v12401_v46 = vld [vmem:[%s19035_s9 + $0x40] sm:$0xf]  ;;  %v13618_v23 = vld [vmem:[%s19035_s9 + $0x44] sm:$0xf0] }
 0x964   :  { %v12402_v16 = vor.u32 %v13618_v23, %v12401_v46 }
 0x965   :  { %8004 = vmatpush.bf16.msra.mxu2 %v11862_v13  ;;  %8017 = vmatpush.bf16.msrb.mxu0 %v11926_v33  ;;  %v12334_v13 = vor.u32 %v13599_v58, %v12331_v30  ;;  %v13565_v33 = vld [vmem:[%s19034_s8 + $0x2a4] sm:$0xf]  ;;  %v12403_v58 = vld [vmem:[%s19035_s9 + $0x48] sm:$0xf0]  ;;  %v12393_v30 = vld [vmem:[%s19035_s9 + $0x30] sm:$0xf] }
 0x966   :  { %8030 = vmatpush.bf16.msra.mxu1 %v11990_v52  ;;  %8043 = vmatpush.bf16.msrb.mxu3 %v12054_v36  ;;  %v13597_v52 = vld [vmem:[%s19034_s8 + $0x3a4] sm:$0xf]  ;;  %v12323_v36 = vld [vmem:[%s19034_s8 + $0x3a8] sm:$0xf0] }
 0x968   :  { %8005 = vmatmul.bf16.vlgmr.msra.gmra.mxu2 %v18048_v15  ;;  %8018 = vmatmul.bf16.vlgmr.msrb.gmra.mxu0 %v18050_v19  ;;  %v12158_v15 = vor.u32 %v13555_v61, %v12155_v3  ;;  %v12222_v19 = vor.u32 %v13571_v62, %v12219_v21  ;;  %v13545_v61 = vld [vmem:[%s19034_s8 + $0x204] sm:$0xf]  ;;  %v12115_v3 = vld [vmem:[%s19034_s8 + $0x208] sm:$0xf0] }
 0x969   :  { %8049 = vmatpush.bf16.msrb.mxu2 %v12174_v32  ;;  %8062 = vmatpush.bf16.msra.mxu0 %v12238_v34  ;;  %v12134_v32 = vor.u32 %v13549_v20, %v12131_v6  ;;  %v12198_v34 = vor.u32 %v13565_v33, %v12195_v9  ;;  %v13561_v62 = vld [vmem:[%s19034_s8 + $0x284] sm:$0xf]  ;;  %v12179_v21 = vld [vmem:[%s19034_s8 + $0x288] sm:$0xf0]  ;;  %v13615_v20 = vld [vmem:[%s19035_s9 + $0x34] sm:$0xf] }
 0x96a   :  { %8075 = vmatpush.bf16.msrb.mxu1 %v12302_v1  ;;  %8088 = vmatpush.bf16.msra.mxu3 %v12366_v55  ;;  %v12262_v1 = vor.u32 %v13581_v5, %v12259_v60  ;;  %v12326_v55 = vor.u32 %v13597_v52, %v12323_v36  ;;  %v12395_v6 = vld [vmem:[%s19035_s9 + $0x38] sm:$0xf0]  ;;  %v12385_v33 = vld [vmem:[%s19035_s9 + $0x20] sm:$0xf]  ;;  %v13614_v9 = vld [vmem:[%s19035_s9 + $0x24] sm:$0xf0] }
 0x96b   :  { %8031 = vmatmul.bf16.vlgmr.msra.gmra.mxu1 %v18052_v41  ;;  %8044 = vmatmul.bf16.vlgmr.msrb.gmra.mxu3 %v18056_v24  ;;  %v13569_v41 = vld [vmem:[%s19034_s8 + $0x2c4] sm:$0xf]  ;;  %v12211_v24 = vld [vmem:[%s19034_s8 + $0x2c8] sm:$0xf0]  ;;  %v12386_v60 = vor.u32 %v13614_v9, %v12385_v33 }
 0x96c   :  { %v12214_v17 = vor.u32 %v13569_v41, %v12211_v24  ;;  %v13623_v41 = vld [vmem:[%s19035_s9 + $0x74] sm:$0xf]  ;;  %v13613_v5 = vld [vmem:[%s19035_s9 + $0x24] sm:$0xf]  ;;  %v12387_v52 = vld [vmem:[%s19035_s9 + $0x28] sm:$0xf0] }
 0x96d   :  { %8050 = vmatpush.bf16.msrb.mxu2 %v12166_v18  ;;  %8063 = vmatpush.bf16.msra.mxu0 %v12230_v50  ;;  %v12126_v18 = vor.u32 %v13547_v56, %v12123_v45  ;;  %v12190_v50 = vor.u32 %v13563_v37, %v12187_v26  ;;  %v12390_v36 = vor.u32 %v13613_v5, %v12387_v52  ;;  %v13611_v56 = vld [vmem:[%s19035_s9 + $0x14] sm:$0xf] }
 0x96e   :  { %8076 = vmatpush.bf16.msrb.mxu1 %v12294_v40  ;;  %8089 = vmatpush.bf16.msra.mxu3 %v12358_v22  ;;  %v12254_v40 = vor.u32 %v13579_v53, %v12251_v43  ;;  %v12318_v22 = vor.u32 %v13595_v42, %v12315_v54  ;;  %v18509_v53 = vld [vmem:[%s19027_s2 + $0x4] sm:$0x3]  ;;  %v12369_v43 = vld [vmem:[%s19035_s9] sm:$0xf]  ;;  %v13610_v42 = vld [vmem:[%s19035_s9 + $0x4] sm:$0xf0] }
 0x96f   :  { %v13609_v54 = vld [vmem:[%s19035_s9 + $0x4] sm:$0xf] }
 0x971   :  { %8051 = vmatpush.bf16.msrb.mxu2 %v12158_v15  ;;  %8064 = vmatpush.bf16.msra.mxu0 %v12222_v19  ;;  %v12118_v15 = vor.u32 %v13545_v61, %v12115_v3  ;;  %v12182_v19 = vor.u32 %v13561_v62, %v12179_v21  ;;  %v7231_v3 = vperm.slane %v18509_v53, 0 }
 0x972   :  { %8077 = vmatpush.bf16.msrb.mxu1 %v12286_v25  ;;  %8090 = vmatpush.bf16.msra.mxu3 %v12350_v29  ;;  %v12425_v25 = vld [vmem:[%s19035_s9 + $0x70] sm:$0xf]  ;;  %v13624_v29 = vld [vmem:[%s19035_s9 + $0x74] sm:$0xf0] }
 0x973   :  { %v12426_v24 = vor.u32 %v13624_v29, %v12425_v25  ;;  %v13640_v25 = vld [vmem:[%s19035_s9 + $0xf4] sm:$0xf0]  ;;  %v13639_v29 = vld [vmem:[%s19035_s9 + $0xf4] sm:$0xf] }
 0x975   :  { %8052 = vmatpush.bf16.msrb.mxu2 %v12150_v35  ;;  %8065 = vmatpush.bf16.msra.mxu0 %v12214_v17  ;;  %v12409_v35 = vld [vmem:[%s19035_s9 + $0x50] sm:$0xf]  ;;  %v13620_v17 = vld [vmem:[%s19035_s9 + $0x54] sm:$0xf0] }
 0x976   :  { %8078 = vmatpush.bf16.msrb.mxu1 %v12278_v59  ;;  %8091 = vmatpush.bf16.msra.mxu3 %v12342_v0  ;;  %v12410_v44 = vor.u32 %v13620_v17, %v12409_v35  ;;  %v12411_v59 = vld [vmem:[%s19035_s9 + $0x58] sm:$0xf0]  ;;  %v12473_v35 = vld [vmem:[%s19035_s9 + $0xd0] sm:$0xf]  ;;  %v13636_v17 = vld [vmem:[%s19035_s9 + $0xd4] sm:$0xf0] }
 0x977   :  { %v12414_v0 = vor.u32 %v13619_v10, %v12411_v59  ;;  %v12475_v59 = vld [vmem:[%s19035_s9 + $0xd8] sm:$0xf0] }
 0x979   :  { %8053 = vmatpush.bf16.msrb.mxu2 %v12142_v12  ;;  %8066 = vmatpush.bf16.msra.mxu0 %v12206_v7  ;;  %v13616_v12 = vld [vmem:[%s19035_s9 + $0x34] sm:$0xf0]  ;;  %v12406_v7 = vor.u32 %v13617_v47, %v12403_v58  ;;  %v12474_v47 = vor.u32 %v13636_v17, %v12473_v35 }
 0x97a   :  { %8079 = vmatpush.bf16.msrb.mxu1 %v12270_v48  ;;  %8092 = vmatpush.bf16.msra.mxu3 %v12334_v13  ;;  %v12394_v48 = vor.u32 %v13616_v12, %v12393_v30  ;;  %v12398_v13 = vor.u32 %v13615_v20, %v12395_v6  ;;  %v12465_v6 = vld [vmem:[%s19035_s9 + $0xc0] sm:$0xf] }
 0x97d   :  { %8054 = vmatpush.bf16.msrb.mxu2 %v12134_v32  ;;  %8067 = vmatpush.bf16.msra.mxu0 %v12198_v34  ;;  %v12377_v32 = vld [vmem:[%s19035_s9 + $0x10] sm:$0xf]  ;;  %v13612_v34 = vld [vmem:[%s19035_s9 + $0x14] sm:$0xf0] }
 0x97e   :  { %8080 = vmatpush.bf16.msrb.mxu1 %v12262_v1  ;;  %8093 = vmatpush.bf16.msra.mxu3 %v12326_v55  ;;  %v12378_v45 = vor.u32 %v13612_v34, %v12377_v32  ;;  %v12379_v1 = vld [vmem:[%s19035_s9 + $0x18] sm:$0xf0]  ;;  %v13632_v32 = vld [vmem:[%s19035_s9 + $0xb4] sm:$0xf0]  ;;  %v13631_v34 = vld [vmem:[%s19035_s9 + $0xb4] sm:$0xf] }
 0x97f   :  { %v12382_v37 = vor.u32 %v13611_v56, %v12379_v1  ;;  %v12459_v1 = vld [vmem:[%s19035_s9 + $0xb8] sm:$0xf0] }
 0x981   :  { %8055 = vmatpush.bf16.msrb.mxu2 %v12126_v18  ;;  %8068 = vmatpush.bf16.msra.mxu0 %v12190_v50  ;;  %v12370_v18 = vor.u32 %v13610_v42, %v12369_v43  ;;  %v12371_v50 = vld [vmem:[%s19035_s9 + $0x8] sm:$0xf0]  ;;  %v12449_v42 = vld [vmem:[%s19035_s9 + $0xa0] sm:$0xf] }
 0x982   :  { %8081 = vmatpush.bf16.msrb.mxu1 %v12254_v40  ;;  %8094 = vmatpush.bf16.msra.mxu3 %v12318_v22  ;;  %v12374_v61 = vor.u32 %v13609_v54, %v12371_v50  ;;  %v13630_v54 = vld [vmem:[%s19035_s9 + $0xa4] sm:$0xf0] }
 0x983   :  { %v12450_v50 = vor.u32 %v13630_v54, %v12449_v42  ;;  %v13661_v54 = vld [vmem:[%s19036_s10 + $0xa4] sm:$0xf] }
 0x985   :  { %8056 = vmatpush.bf16.msrb.mxu2 %v12118_v15  ;;  %8069 = vmatpush.bf16.msra.mxu0 %v12182_v19 }
 0x986   :  { %8082 = vmatpush.bf16.msrb.mxu1 %v12246_v49  ;;  %8095 = vmatpush.bf16.msra.mxu3 %v12310_v38  ;;  %v12489_v38 = vld [vmem:[%s19035_s9 + $0xf0] sm:$0xf] }
 0x988   :  { %8057 = vmatmul.bf16.vlgmr.msrb.gmra.mxu2 %v18156_v57  ;;  %8070 = vmatmul.bf16.vlgmr.msra.gmra.mxu0 %v18158_v27  ;;  %v12427_v57 = vld [vmem:[%s19035_s9 + $0x78] sm:$0xf0] }
 0x989   :  { %8083 = vmatmul.bf16.vlgmr.msrb.gmra.mxu1 %v18165_v39  ;;  %8096 = vmatmul.bf16.vlgmr.msra.gmra.mxu3 %v18167_v4  ;;  %v12430_v27 = vor.u32 %v13623_v41, %v12427_v57  ;;  %v12417_v39 = vld [vmem:[%s19035_s9 + $0x60] sm:$0xf]  ;;  %v13622_v4 = vld [vmem:[%s19035_s9 + $0x64] sm:$0xf0]  ;;  %v12490_v41 = vor.u32 %v13640_v25, %v12489_v38  ;;  %v13625_v25 = vld [vmem:[%s19035_s9 + $0x84] sm:$0xf] }
 0x98a   :  { %8307 = vmatpush.bf16.msra.mxu2 %v12426_v24  ;;  %v12418_v63 = vor.u32 %v13622_v4, %v12417_v39  ;;  %v12491_v24 = vld [vmem:[%s19035_s9 + $0xf8] sm:$0xf0]  ;;  %v12481_v57 = vld [vmem:[%s19035_s9 + $0xe0] sm:$0xf]  ;;  %v13637_v4 = vld [vmem:[%s19035_s9 + $0xe4] sm:$0xf] }
 0x98b   :  { %8333 = vmatpush.bf16.msra.mxu1 %v12430_v27  ;;  %v13638_v27 = vld [vmem:[%s19035_s9 + $0xe4] sm:$0xf0]  ;;  %v12494_v39 = vor.u32 %v13639_v29, %v12491_v24  ;;  %8320 = vmatpush.bf16.msrb.mxu0 %v12490_v41  ;;  %v12435_v41 = vld [vmem:[%s19035_s9 + $0x88] sm:$0xf0] }
 0x98c   :  { %v13626_v38 = vld [vmem:[%s19035_s9 + $0x84] sm:$0xf0] }
 0x98d   :  { %8346 = vmatpush.bf16.msrb.mxu3 %v12494_v39  ;;  %v7232_v39 = vperm.slane %v18509_v53, 1 }
 0x98e   :  { %8308 = vmatpush.bf16.msra.mxu2 %v12418_v63  ;;  %v12482_v63 = vor.u32 %v13638_v27, %v12481_v57  ;;  %v12438_v57 = vor.u32 %v13625_v25, %v12435_v41  ;;  %v13693_v25 = vld [vmem:[%s19036_s10 + $0x1a4] sm:$0xf]  ;;  %v12545_v41 = vld [vmem:[%s19036_s10 + $0x60] sm:$0xf] }
 0x98f   :  { %8334 = vmatpush.bf16.msra.mxu1 %v12422_v2  ;;  %v12486_v2 = vor.u32 %v13637_v4, %v12483_v31 }
 0x990   :  { %8321 = vmatpush.bf16.msrb.mxu0 %v12482_v63 }
 0x991   :  { %8347 = vmatpush.bf16.msrb.mxu3 %v12486_v2 }
 0x992   :  { %8309 = vmatpush.bf16.msra.mxu2 %v12410_v44  ;;  %v13635_v44 = vld [vmem:[%s19035_s9 + $0xd4] sm:$0xf] }
 0x993   :  { %8335 = vmatpush.bf16.msra.mxu1 %v12414_v0  ;;  %v12478_v30 = vor.u32 %v13635_v44, %v12475_v59 }
 0x994   :  { %8322 = vmatpush.bf16.msrb.mxu0 %v12474_v47 }
 0x995   :  { %8348 = vmatpush.bf16.msrb.mxu3 %v12478_v30 }
 0x996   :  { %8310 = vmatpush.bf16.msra.mxu2 %v12402_v16 }
 0x997   :  { %8336 = vmatpush.bf16.msra.mxu1 %v12406_v7 }
 0x99a   :  { %8311 = vmatpush.bf16.msra.mxu2 %v12394_v48  ;;  %v13634_v48 = vld [vmem:[%s19035_s9 + $0xc4] sm:$0xf0] }
 0x99b   :  { %8337 = vmatpush.bf16.msra.mxu1 %v12398_v13  ;;  %v13633_v13 = vld [vmem:[%s19035_s9 + $0xc4] sm:$0xf]  ;;  %v12466_v5 = vor.u32 %v13634_v48, %v12465_v6 }
 0x99c   :  { %v13669_v6 = vld [vmem:[%s19036_s10 + $0xe4] sm:$0xf] }
 0x99d   :  { %8323 = vmatpush.bf16.msrb.mxu0 %v12466_v5 }
 0x99e   :  { %8312 = vmatpush.bf16.msra.mxu2 %v12386_v60  ;;  %v12467_v60 = vld [vmem:[%s19035_s9 + $0xc8] sm:$0xf0] }
 0x99f   :  { %8338 = vmatpush.bf16.msra.mxu1 %v12390_v36  ;;  %v12470_v52 = vor.u32 %v13633_v13, %v12467_v60  ;;  %v12457_v36 = vld [vmem:[%s19035_s9 + $0xb0] sm:$0xf]  ;;  %v12611_v13 = vld [vmem:[%s19036_s10 + $0xf0] sm:$0xf0]  ;;  %v13665_v60 = vld [vmem:[%s19036_s10 + $0xc4] sm:$0xf] }
 0x9a0   :  { %v12614_v5 = vor.u32 %v13669_v6, %v12611_v13  ;;  %v12515_v13 = vld [vmem:[%s19036_s10 + $0x30] sm:$0xf0] }
 0x9a1   :  { %8349 = vmatpush.bf16.msrb.mxu3 %v12470_v52  ;;  %v12595_v52 = vld [vmem:[%s19036_s10 + $0xd0] sm:$0xf0] }
 0x9a2   :  { %8313 = vmatpush.bf16.msra.mxu2 %v12378_v45  ;;  %v12458_v45 = vor.u32 %v13632_v32, %v12457_v36  ;;  %v12598_v32 = vor.u32 %v13665_v60, %v12595_v52  ;;  %v13681_v52 = vld [vmem:[%s19036_s10 + $0x144] sm:$0xf] }
 0x9a3   :  { %8339 = vmatpush.bf16.msra.mxu1 %v12382_v37 }
 0x9a4   :  { %8324 = vmatpush.bf16.msrb.mxu0 %v12458_v45  ;;  %v13701_v45 = vld [vmem:[%s19036_s10 + $0x1e4] sm:$0xf] }
 0x9a6   :  { %8314 = vmatpush.bf16.msra.mxu2 %v12370_v18  ;;  %v13629_v18 = vld [vmem:[%s19035_s9 + $0xa4] sm:$0xf] }
 0x9a7   :  { %8340 = vmatpush.bf16.msra.mxu1 %v12374_v61  ;;  %v12451_v61 = vld [vmem:[%s19035_s9 + $0xa8] sm:$0xf0] }
 0x9a8   :  { %8325 = vmatpush.bf16.msrb.mxu0 %v12450_v50  ;;  %v12721_v50 = vld [vmem:[%s19036_s10 + $0x1c0] sm:$0xf] }
 0x9ab   :  { %8787 = vmatpush.bf16.msrb.mxu1 %v12614_v5  ;;  %v13683_v5 = vld [vmem:[%s19036_s10 + $0x14c] sm:$0xf0] }
 0x9af   :  { %8788 = vmatpush.bf16.msrb.mxu1 %v12598_v32  ;;  %v12497_v32 = vld [vmem:[%s19036_s10] sm:$0xf] }
 0x9c4   :  { %v7915_v55 = vpop.f32.mrf.mxu0 }
 0x9c5   :  { %v7928_v26 = vpop.f32.mrf.mxu1 }
 0x9ca   :  { %v7902_v40 = vpop.f32.mrf.mxu2 }
 0x9cb   :  { %v7941_v22 = vpop.f32.mrf.mxu3  ;;  %v7903_v21 = vadd.f32 %v7902_v40, %v7231_v3  ;;  %v12454_v40 = vor.u32 %v13629_v18, %v12451_v61  ;;  %v12579_v18 = vld [vmem:[%s19036_s10 + $0xb0] sm:$0xf0] }
 0x9cc   :  { %v7917_v62 = vpop.f32.mrf.mxu0  ;;  %v12582_v61 = vor.u32 %v13661_v54, %v12579_v18  ;;  %v12619_v18 = vld [vmem:[%s19036_s10 + $0xf8] sm:$0xf0] }
 0x9cd   :  { %v7930_v8 = vpop.f32.mrf.mxu1  ;;  %v7916_v11 = vadd.f32 %v7915_v55, %v7903_v21  ;;  %v12441_v21 = vld [vmem:[%s19035_s9 + $0x90] sm:$0xf] }
 0x9ce   :  { %v13628_v8 = vld [vmem:[%s19035_s9 + $0x94] sm:$0xf0]  ;;  %8789 = vmatpush.bf16.msrb.mxu1 %v12582_v61  ;;  %v13679_v61 = vld [vmem:[%s19036_s10 + $0x12c] sm:$0xf0] }
 0x9cf   :  { %v7929_v19 = vadd.f32 %v7928_v26, %v7916_v11  ;;  %v12462_v26 = vor.u32 %v13631_v34, %v12459_v1  ;;  %v13627_v11 = vld [vmem:[%s19035_s9 + $0x94] sm:$0xf]  ;;  %v12737_v34 = vld [vmem:[%s19036_s10 + $0x1e0] sm:$0xf] }
 0x9d1   :  { %v7942_v51 = vadd.f32 %v7941_v22, %v7929_v19  ;;  %8350 = vmatpush.bf16.msrb.mxu3 %v12462_v26  ;;  %v13663_v26 = vld [vmem:[%s19036_s10 + $0xac] sm:$0xf0] }
 0x9d2   :  { %v7904_v14 = vpop.f32.mrf.mxu2 }
 0x9d3   :  { %v7943_v28 = vpop.f32.mrf.mxu3 }
 0x9d4   :  { %v7967_v15 = vpop.f32.mrf.mxu0  ;;  %v12442_v28 = vor.u32 %v13628_v8, %v12441_v21  ;;  %v12561_v8 = vld [vmem:[%s19036_s10 + $0x80] sm:$0xf] }
 0x9d5   :  { %v7980_v49 = vpop.f32.mrf.mxu1  ;;  %8351 = vmatpush.bf16.msrb.mxu3 %v12454_v40  ;;  %v13697_v40 = vld [vmem:[%s19036_s10 + $0x1c4] sm:$0xf] }
 0x9d6   :  { %8326 = vmatpush.bf16.msrb.mxu0 %v12442_v28 }
 0x9da   :  { %v7954_v10 = vpop.f32.mrf.mxu2 }
 0x9db   :  { %v7955_v0 = vadd.f32 %v7954_v10, %v7942_v51  ;;  %v7993_v46 = vpop.f32.mrf.mxu3 }
 0x9dc   :  { %v7969_v23 = vpop.f32.mrf.mxu0 }
 0x9dd   :  { %v7968_v16 = vadd.f32 %v7967_v15, %v7955_v0  ;;  %v7982_v58 = vpop.f32.mrf.mxu1  ;;  %v12443_v15 = vld [vmem:[%s19035_s9 + $0x98] sm:$0xf0] }
 0x9de   :  { %v12446_v19 = vor.u32 %v13627_v11, %v12443_v15  ;;  %v13659_v11 = vld [vmem:[%s19036_s10 + $0x8c] sm:$0xf0]  ;;  %v12563_v15 = vld [vmem:[%s19036_s10 + $0x90] sm:$0xf0] }
 0x9df   :  { %v7981_v12 = vadd.f32 %v7980_v49, %v7968_v16  ;;  %v12433_v49 = vld [vmem:[%s19035_s9 + $0x80] sm:$0xf]  ;;  %v12562_v28 = vor.u32 %v13659_v11, %v12561_v8  ;;  %v12601_v8 = vld [vmem:[%s19036_s10 + $0xc8] sm:$0xf] }
 0x9e0   :  { %8352 = vmatpush.bf16.msrb.mxu3 %v12446_v19  ;;  %v12434_v29 = vor.u32 %v13626_v38, %v12433_v49  ;;  %v12705_v19 = vld [vmem:[%s19036_s10 + $0x1a0] sm:$0xf]  ;;  %v13695_v49 = vld [vmem:[%s19036_s10 + $0x1ac] sm:$0xf0] }
 0x9e1   :  { %v7994_v7 = vadd.f32 %v7993_v46, %v7981_v12 }
 0x9e2   :  { %v7956_v20 = vpop.f32.mrf.mxu2  ;;  %8327 = vmatpush.bf16.msrb.mxu0 %v12434_v29  ;;  %v12707_v29 = vld [vmem:[%s19036_s10 + $0x1b0] sm:$0xf0] }
 0x9e3   :  { %vm8101_vm11 = vcmp.gt.f32.partialorder %v7994_v7, 0.0  ;;  %v8103_v33 = vmul.f32 0.2, %v7994_v7  ;;  %v7995_v9 = vpop.f32.mrf.mxu3  ;;  %v13671_v20 = vld [vmem:[%s19036_s10 + $0xec] sm:$0xf0] }
 0x9e4   :  { %8353 = vmatpush.bf16.msrb.mxu3 %v12438_v57  ;;  %v13667_v9 = vld [vmem:[%s19036_s10 + $0xcc] sm:$0xf0] }
 0x9e5   :  { %v8105_v56 = vsel %vm8101_vm11, %v7994_v7, %v8103_v33  ;;  %v8019_v37 = vpop.f32.mrf.mxu0  ;;  %v12609_v7 = vld [vmem:[%s19036_s10 + $0xe0] sm:$0xf]  ;;  %v13655_v57 = vld [vmem:[%s19036_s10 + $0x6c] sm:$0xf0] }
 0x9e6   :  { %v8107_v55 = vpack.c.bf16 %v8105_v56, %v8105_v56  ;;  %v12610_v48 = vor.u32 %v13671_v20, %v12609_v7  ;;  %v12593_v33 = vld [vmem:[%s19036_s10 + $0xc0] sm:$0xf]  ;;  %v13703_v56 = vld [vmem:[%s19036_s10 + $0x1ec] sm:$0xf0] }
 0x9e7   :  { %v12594_v36 = vor.u32 %v13667_v9, %v12593_v33  ;;  %v12738_v1 = vor.u32 %v13703_v56, %v12737_v34  ;;  %v12513_v7 = vld [vmem:[%s19036_s10 + $0x20] sm:$0xf]  ;;  %v13647_v20 = vld [vmem:[%s19036_s10 + $0x2c] sm:$0xf0] }
 0x9e8   :  { %v8032_v43 = vpop.f32.mrf.mxu1  ;;  %8315 = vmatmul.bf16.vlgmr.msra.gmra.mxu2 %v8107_v55  ;;  %8341 = vmatmul.bf16.vlgmr.msra.gmra.mxu1 %v8107_v55  ;;  %v12739_v55 = vld [vmem:[%s19036_s10 + $0x1f0] sm:$0xf0]  ;;  %v12657_v9 = vld [vmem:[%s19036_s10 + $0x140] sm:$0xf]  ;;  %v12514_v60 = vor.u32 %v13647_v20, %v12513_v7  ;;  %v12731_v7 = vld [vmem:[%s19036_s10 + $0x1d8] sm:$0xf0] }
 0x9e9   :  { %8761 = vmatpush.bf16.msrb.mxu2 %v12610_v48  ;;  %8774 = vmatpush.bf16.msra.mxu0 %v12738_v1  ;;  %v13645_v48 = vld [vmem:[%s19036_s10 + $0x24] sm:$0xf] }
 0x9ea   :  { %v12518_v56 = vor.u32 %v13645_v48, %v12515_v13  ;;  %v13641_v1 = vld [vmem:[%s19036_s10 + $0x4] sm:$0xf]  ;;  %v13660_v48 = vld [vmem:[%s19036_s10 + $0x94] sm:$0xf0]  ;;  %v13658_v13 = vld [vmem:[%s19036_s10 + $0x8c] sm:$0xf] }
 0x9eb   :  { %v8006_v3 = vpop.f32.mrf.mxu2 }
 0x9ec   :  { %v8007_v4 = vadd.f32 %v8006_v3, %v7232_v39  ;;  %v13699_v3 = vld [vmem:[%s19036_s10 + $0x1cc] sm:$0xf0]  ;;  %v12547_v39 = vld [vmem:[%s19036_s10 + $0x70] sm:$0xf0] }
 0x9ed   :  { %v8021_v62 = vpop.f32.mrf.mxu0  ;;  %8762 = vmatpush.bf16.msrb.mxu2 %v12594_v36  ;;  %v12659_v36 = vld [vmem:[%s19036_s10 + $0x150] sm:$0xf0] }
 0x9ee   :  { %v8045_v22 = vpop.f32.mrf.mxu3  ;;  %v8020_v31 = vadd.f32 %v8019_v37, %v8007_v4  ;;  %v12577_v37 = vld [vmem:[%s19036_s10 + $0xa0] sm:$0xf]  ;;  %v12722_v62 = vor.u32 %v13699_v3, %v12721_v50  ;;  %v12710_v4 = vor.u32 %v13693_v25, %v12707_v29  ;;  %v12662_v54 = vor.u32 %v13681_v52, %v12659_v36  ;;  %v13675_v29 = vld [vmem:[%s19036_s10 + $0x10c] sm:$0xf0]  ;;  %v13696_v52 = vld [vmem:[%s19036_s10 + $0x1b4] sm:$0xf0] }
 0x9ef   :  { %v12578_v42 = vor.u32 %v13663_v26, %v12577_v37  ;;  %v12658_v37 = vor.u32 %v13683_v5, %v12657_v9  ;;  %v12617_v26 = vld [vmem:[%s19036_s10 + $0xe8] sm:$0xf]  ;;  %v12641_v50 = vld [vmem:[%s19036_s10 + $0x120] sm:$0xf]  ;;  %v12571_v9 = vld [vmem:[%s19036_s10 + $0x98] sm:$0xf0] }
 0x9f0   :  { %v8034_v14 = vpop.f32.mrf.mxu1  ;;  %v8033_v51 = vadd.f32 %v8032_v43, %v8020_v31  ;;  %v12742_v43 = vor.u32 %v13701_v45, %v12739_v55  ;;  %8775 = vmatpush.bf16.msra.mxu0 %v12722_v62  ;;  %v12689_v31 = vld [vmem:[%s19036_s10 + $0x180] sm:$0xf]  ;;  %v13643_v45 = vld [vmem:[%s19036_s10 + $0xc] sm:$0xf0]  ;;  %v12499_v55 = vld [vmem:[%s19036_s10 + $0x10] sm:$0xf0]  ;;  %v12574_v5 = vor.u32 %v13658_v13, %v12571_v9 }
 0x9f1   :  { %v13657_v14 = vld [vmem:[%s19036_s10 + $0x84] sm:$0xf]  ;;  %8763 = vmatpush.bf16.msrb.mxu2 %v12578_v42  ;;  %v13670_v42 = vld [vmem:[%s19036_s10 + $0xec] sm:$0xf]  ;;  %v12498_v3 = vor.u32 %v13643_v45, %v12497_v32  ;;  %v12502_v62 = vor.u32 %v13641_v1, %v12499_v55  ;;  %v12625_v25 = vld [vmem:[%s19036_s10 + $0x100] sm:$0xf] }
 0x9f2   :  { %v8046_v35 = vadd.f32 %v8045_v22, %v8033_v51  ;;  %v12723_v22 = vld [vmem:[%s19036_s10 + $0x1d0] sm:$0xf0]  ;;  %8800 = vmatpush.bf16.msra.mxu3 %v12742_v43  ;;  %v12566_v38 = vor.u32 %v13657_v14, %v12563_v15  ;;  %v12546_v51 = vor.u32 %v13655_v57, %v12545_v41  ;;  %v13672_v43 = vld [vmem:[%s19036_s10 + $0xf4] sm:$0xf0]  ;;  %v12622_v11 = vor.u32 %v13670_v42, %v12619_v18  ;;  %v13666_v15 = vld [vmem:[%s19036_s10 + $0xcc] sm:$0xf] }
 0x9f3   :  { %v8008_v24 = vpop.f32.mrf.mxu2  ;;  %v12726_v21 = vor.u32 %v13697_v40, %v12723_v22  ;;  %v13677_v40 = vld [vmem:[%s19036_s10 + $0x124] sm:$0xf]  ;;  %v12643_v22 = vld [vmem:[%s19036_s10 + $0x130] sm:$0xf0]  ;;  %v12642_v14 = vor.u32 %v13679_v61, %v12641_v50  ;;  %v12745_v57 = vld [vmem:[%s19036_s10 + $0x1e8] sm:$0xf] }
 0x9f4   :  { %v12706_v24 = vor.u32 %v13695_v49, %v12705_v19  ;;  %8790 = vmatpush.bf16.msrb.mxu1 %v12566_v38  ;;  %v12603_v19 = vld [vmem:[%s19036_s10 + $0xd8] sm:$0xf0]  ;;  %v12646_v38 = vor.u32 %v13677_v40, %v12643_v22  ;;  %v13673_v41 = vld [vmem:[%s19036_s10 + $0x104] sm:$0xf]  ;;  %v13694_v36 = vld [vmem:[%s19036_s10 + $0x1ac] sm:$0xf] }
 0x9f5   :  { %8764 = vmatpush.bf16.msrb.mxu2 %v12562_v28  ;;  %v13668_v28 = vld [vmem:[%s19036_s10 + $0xd4] sm:$0xf0]  ;;  %v12553_v1 = vld [vmem:[%s19036_s10 + $0x68] sm:$0xf]  ;;  %v13690_v50 = vld [vmem:[%s19036_s10 + $0x18c] sm:$0xf] }
 0x9f6   :  { %v8047_v27 = vpop.f32.mrf.mxu3  ;;  %8801 = vmatpush.bf16.msra.mxu3 %v12726_v21  ;;  %8776 = vmatpush.bf16.msra.mxu0 %v12706_v24  ;;  %v12618_v21 = vor.u32 %v13672_v43, %v12617_v26  ;;  %v12627_v24 = vld [vmem:[%s19036_s10 + $0x110] sm:$0xf0]  ;;  %v13656_v55 = vld [vmem:[%s19036_s10 + $0x74] sm:$0xf0]  ;;  %v12555_v43 = vld [vmem:[%s19036_s10 + $0x78] sm:$0xf0] }
 0x9f7   :  { %v13653_v27 = vld [vmem:[%s19036_s10 + $0x64] sm:$0xf]  ;;  %v12554_v26 = vor.u32 %v13656_v55, %v12553_v1  ;;  %v13692_v18 = vld [vmem:[%s19036_s10 + $0x194] sm:$0xf0]  ;;  %v12537_v22 = vld [vmem:[%s19036_s10 + $0x48] sm:$0xf] }
 0x9f8   :  { %v12635_v13 = vld [vmem:[%s19036_s10 + $0x118] sm:$0xf0] }
 0x9f9   :  { %8765 = vmatpush.bf16.msrb.mxu2 %v12546_v51  ;;  %v12606_v51 = vor.u32 %v13666_v15, %v12603_v19  ;;  %v13688_v15 = vld [vmem:[%s19036_s10 + $0x174] sm:$0xf0]  ;;  %v13686_v19 = vld [vmem:[%s19036_s10 + $0x16c] sm:$0xf] }
 0x9fa   :  { %8802 = vmatpush.bf16.msra.mxu3 %v12710_v4  ;;  %v12602_v4 = vor.u32 %v13668_v28, %v12601_v8  ;;  %v12681_v28 = vld [vmem:[%s19036_s10 + $0x168] sm:$0xf] }
 0xa05   :  { %v8071_v63 = vpop.f32.mrf.mxu0 }
 0xa06   :  { %v8084_v2 = vpop.f32.mrf.mxu1 }
 0xa0b   :  { %v8058_v17 = vpop.f32.mrf.mxu2 }
 0xa0c   :  { %v8059_v10 = vadd.f32 %v8058_v17, %v8046_v35  ;;  %v8097_v44 = vpop.f32.mrf.mxu3  ;;  %v12691_v35 = vld [vmem:[%s19036_s10 + $0x190] sm:$0xf0]  ;;  %v12550_v17 = vor.u32 %v13653_v27, %v12547_v39  ;;  %v13704_v27 = vld [vmem:[%s19036_s10 + $0x1f4] sm:$0xf0] }
 0xa0d   :  { %v8073_v59 = vpop.f32.mrf.mxu0 }
 0xa0e   :  { %v8072_v0 = vadd.f32 %v8071_v63, %v8059_v10  ;;  %v8086_v46 = vpop.f32.mrf.mxu1  ;;  %v13691_v63 = vld [vmem:[%s19036_s10 + $0x18c] sm:$0xf0]  ;;  %v12529_v10 = vld [vmem:[%s19036_s10 + $0x40] sm:$0xf]  ;;  %8791 = vmatpush.bf16.msrb.mxu1 %v12550_v17  ;;  %v12746_v17 = vor.u32 %v13704_v27, %v12745_v57  ;;  %v13646_v27 = vld [vmem:[%s19036_s10 + $0x2c] sm:$0xf] }
 0xa0f   :  { %v12690_v59 = vor.u32 %v13691_v63, %v12689_v31  ;;  %v12531_v46 = vld [vmem:[%s19036_s10 + $0x50] sm:$0xf0]  ;;  %v13702_v31 = vld [vmem:[%s19036_s10 + $0x1ec] sm:$0xf]  ;;  %v12747_v63 = vld [vmem:[%s19036_s10 + $0x1f8] sm:$0xf0] }
 0xa10   :  { %v8085_v23 = vadd.f32 %v8084_v2, %v8072_v0  ;;  %v13689_v2 = vld [vmem:[%s19036_s10 + $0x184] sm:$0xf] }
 0xa11   :  { %v13649_v0 = vld [vmem:[%s19036_s10 + $0x44] sm:$0xf]  ;;  %8777 = vmatpush.bf16.msra.mxu0 %v12690_v59  ;;  %v12585_v59 = vld [vmem:[%s19036_s10 + $0xa8] sm:$0xf] }
 0xa12   :  { %v8098_v47 = vadd.f32 %v8097_v44, %v8085_v23  ;;  %v13651_v44 = vld [vmem:[%s19036_s10 + $0x4c] sm:$0xf0]  ;;  %v12694_v23 = vor.u32 %v13689_v2, %v12691_v35  ;;  %v12626_v2 = vor.u32 %v13675_v29, %v12625_v25  ;;  %v12630_v35 = vor.u32 %v13673_v41, %v12627_v24  ;;  %v12683_v25 = vld [vmem:[%s19036_s10 + $0x178] sm:$0xf0]  ;;  %v12521_v29 = vld [vmem:[%s19036_s10 + $0x28] sm:$0xf] }
 0xa13   :  { %v8060_v16 = vpop.f32.mrf.mxu2  ;;  %v13648_v41 = vld [vmem:[%s19036_s10 + $0x34] sm:$0xf0]  ;;  %v12686_v24 = vor.u32 %v13686_v19, %v12683_v25 }
 0xa14   :  { %vm8102_vm12 = vcmp.gt.f32.partialorder %v8098_v47, 0.0  ;;  %v8104_v58 = vmul.f32 0.2, %v8098_v47  ;;  %v8099_v30 = vpop.f32.mrf.mxu3  ;;  %v13687_v16 = vld [vmem:[%s19036_s10 + $0x16c] sm:$0xf0]  ;;  %8803 = vmatpush.bf16.msra.mxu3 %v12694_v23  ;;  %v12522_v57 = vor.u32 %v13648_v41, %v12521_v29 }
 0xa15   :  { %v13685_v30 = vld [vmem:[%s19036_s10 + $0x164] sm:$0xf] }
 0xa16   :  { %v8106_v12 = vsel %vm8102_vm12, %v8098_v47, %v8104_v58  ;;  %v12673_v47 = vld [vmem:[%s19036_s10 + $0x160] sm:$0xf]  ;;  %v12530_v58 = vor.u32 %v13651_v44, %v12529_v10  ;;  %v12750_v10 = vor.u32 %v13702_v31, %v12747_v63  ;;  %v13684_v63 = vld [vmem:[%s19036_s10 + $0x154] sm:$0xf0] }
 0xa17   :  { %v8108_v53 = vpack.c.bf16 %v8106_v12, %v8106_v12  ;;  %v12675_v12 = vld [vmem:[%s19036_s10 + $0x170] sm:$0xf0]  ;;  %v12674_v6 = vor.u32 %v13687_v16, %v12673_v47  ;;  %v12587_v47 = vld [vmem:[%s19036_s10 + $0xb8] sm:$0xf0] }
 0xa18   :  { %v12678_v33 = vor.u32 %v13685_v30, %v12675_v12  ;;  %8766 = vmatpush.bf16.msrb.mxu2 %v12530_v58  ;;  %v12729_v58 = vld [vmem:[%s19036_s10 + $0x1c8] sm:$0xf]  ;;  %v13700_v30 = vld [vmem:[%s19036_s10 + $0x1d4] sm:$0xf0]  ;;  %v13698_v12 = vld [vmem:[%s19036_s10 + $0x1cc] sm:$0xf] }
 0xa19   :  { %8328 = vmatmul.bf16.vlgmr.msrb.gmra.mxu0 %v8108_v53  ;;  %8354 = vmatmul.bf16.vlgmr.msrb.gmra.mxu3 %v8108_v53  ;;  %v12534_v53 = vor.u32 %v13649_v0, %v12531_v46  ;;  %v13664_v0 = vld [vmem:[%s19036_s10 + $0xb4] sm:$0xf0]  ;;  %v13662_v46 = vld [vmem:[%s19036_s10 + $0xac] sm:$0xf]  ;;  %v12734_v20 = vor.u32 %v13698_v12, %v12731_v7  ;;  %v12633_v7 = vld [vmem:[%s19036_s10 + $0x108] sm:$0xf] }
 0xa1a   :  { %8778 = vmatpush.bf16.msra.mxu0 %v12674_v6  ;;  %8804 = vmatpush.bf16.msra.mxu3 %v12678_v33  ;;  %v12586_v23 = vor.u32 %v13664_v0, %v12585_v59  ;;  %v12590_v16 = vor.u32 %v13662_v46, %v12587_v47  ;;  %v12569_v6 = vld [vmem:[%s19036_s10 + $0x88] sm:$0xf]  ;;  %v13642_v59 = vld [vmem:[%s19036_s10 + $0xc] sm:$0xf]  ;;  %v12507_v46 = vld [vmem:[%s19036_s10 + $0x18] sm:$0xf0] }
 0xa1b   :  { %8792 = vmatpush.bf16.msrb.mxu1 %v12534_v53  ;;  %v12730_v53 = vor.u32 %v13700_v30, %v12729_v58  ;;  %v12570_v33 = vor.u32 %v13660_v48, %v12569_v6  ;;  %v13680_v47 = vld [vmem:[%s19036_s10 + $0x134] sm:$0xf0]  ;;  %v13678_v58 = vld [vmem:[%s19036_s10 + $0x12c] sm:$0xf]  ;;  %v12651_v30 = vld [vmem:[%s19036_s10 + $0x138] sm:$0xf0] }
 0xa1c   :  { %8767 = vmatpush.bf16.msrb.mxu2 %v12514_v60  ;;  %v12713_v60 = vld [vmem:[%s19036_s10 + $0x1a8] sm:$0xf]  ;;  %v13674_v6 = vld [vmem:[%s19036_s10 + $0x10c] sm:$0xf] }
 0xa1d   :  { %v12714_v32 = vor.u32 %v13696_v52, %v12713_v60  ;;  %v12638_v9 = vor.u32 %v13674_v6, %v12635_v13 }
 0xa1e   :  { %8779 = vmatpush.bf16.msra.mxu0 %v12658_v37  ;;  %8805 = vmatpush.bf16.msra.mxu3 %v12662_v54  ;;  %v13654_v37 = vld [vmem:[%s19036_s10 + $0x6c] sm:$0xf]  ;;  %v12697_v54 = vld [vmem:[%s19036_s10 + $0x188] sm:$0xf] }
 0xa1f   :  { %8793 = vmatpush.bf16.msrb.mxu1 %v12518_v56  ;;  %v12715_v56 = vld [vmem:[%s19036_s10 + $0x1b8] sm:$0xf0]  ;;  %v12558_v42 = vor.u32 %v13654_v37, %v12555_v43  ;;  %v12698_v61 = vor.u32 %v13692_v18, %v12697_v54 }
 0xa20   :  { %8768 = vmatpush.bf16.msrb.mxu2 %v12498_v3  ;;  %v12718_v45 = vor.u32 %v13694_v36, %v12715_v56  ;;  %v12699_v3 = vld [vmem:[%s19036_s10 + $0x198] sm:$0xf0] }
 0xa21   :  { %v12702_v40 = vor.u32 %v13690_v50, %v12699_v3 }
 0xa22   :  { %8780 = vmatpush.bf16.msra.mxu0 %v12642_v14  ;;  %8806 = vmatpush.bf16.msra.mxu3 %v12646_v38  ;;  %v12682_v38 = vor.u32 %v13688_v15, %v12681_v28 }
 0xa23   :  { %8794 = vmatpush.bf16.msrb.mxu1 %v12502_v62  ;;  %v13652_v62 = vld [vmem:[%s19036_s10 + $0x54] sm:$0xf0] }
 0xa24   :  { %8813 = vmatpush.bf16.msra.mxu2 %v12618_v21  ;;  %v13650_v21 = vld [vmem:[%s19036_s10 + $0x4c] sm:$0xf]  ;;  %v12538_v8 = vor.u32 %v13652_v62, %v12537_v22 }
 0xa26   :  { %8781 = vmatpush.bf16.msra.mxu0 %v12626_v2  ;;  %8807 = vmatpush.bf16.msra.mxu3 %v12630_v35  ;;  %v12667_v2 = vld [vmem:[%s19036_s10 + $0x158] sm:$0xf0] }
 0xa27   :  { %8839 = vmatpush.bf16.msra.mxu1 %v12622_v11  ;;  %v12539_v11 = vld [vmem:[%s19036_s10 + $0x58] sm:$0xf0] }
 0xa28   :  { %8814 = vmatpush.bf16.msra.mxu2 %v12602_v4  ;;  %v12542_v14 = vor.u32 %v13650_v21, %v12539_v11  ;;  %v12665_v4 = vld [vmem:[%s19036_s10 + $0x148] sm:$0xf] }
 0xa29   :  { %v12666_v35 = vor.u32 %v13684_v63, %v12665_v4 }
 0xa2a   :  { %8826 = vmatpush.bf16.msrb.mxu0 %v12746_v17  ;;  %8852 = vmatpush.bf16.msrb.mxu3 %v12750_v10  ;;  %v12505_v10 = vld [vmem:[%s19036_s10 + $0x8] sm:$0xf] }
 0xa2b   :  { %8840 = vmatpush.bf16.msra.mxu1 %v12606_v51  ;;  %v13682_v51 = vld [vmem:[%s19036_s10 + $0x14c] sm:$0xf] }
 0xa2c   :  { %8815 = vmatpush.bf16.msra.mxu2 %v12586_v23  ;;  %v12670_v17 = vor.u32 %v13682_v51, %v12667_v2  ;;  %v12649_v23 = vld [vmem:[%s19036_s10 + $0x128] sm:$0xf] }
 0xa2d   :  { %v12650_v12 = vor.u32 %v13680_v47, %v12649_v23 }
 0xa2e   :  { %8827 = vmatpush.bf16.msrb.mxu0 %v12730_v53  ;;  %8853 = vmatpush.bf16.msrb.mxu3 %v12734_v20  ;;  %v12654_v53 = vor.u32 %v13678_v58, %v12651_v30  ;;  %v13676_v20 = vld [vmem:[%s19036_s10 + $0x114] sm:$0xf0] }
 0xa2f   :  { %8841 = vmatpush.bf16.msra.mxu1 %v12590_v16  ;;  %v12510_v16 = vor.u32 %v13642_v59, %v12507_v46  ;;  %v12634_v48 = vor.u32 %v13676_v20, %v12633_v7 }
 0xa30   :  { %8816 = vmatpush.bf16.msra.mxu2 %v12570_v33  ;;  %v8109_v33 = vld [vmem:[%s19027_s2 + $0x6] sm:$0x3] }
 0xa31   :  { %v8144_v36 = vperm.slane %v8109_v33, 1 }
 0xa32   :  { %8828 = vmatpush.bf16.msrb.mxu0 %v12714_v32  ;;  %8854 = vmatpush.bf16.msrb.mxu3 %v12718_v45 }
 0xa33   :  { %8842 = vmatpush.bf16.msra.mxu1 %v12574_v5  ;;  %v8143_v5 = vperm.slane %v8109_v33, 0 }
 0xa34   :  { %8817 = vmatpush.bf16.msra.mxu2 %v12554_v26 }
 0xa36   :  { %8829 = vmatpush.bf16.msrb.mxu0 %v12698_v61  ;;  %8855 = vmatpush.bf16.msrb.mxu3 %v12702_v40 }
 0xa37   :  { %8843 = vmatpush.bf16.msra.mxu1 %v12558_v42 }
 0xa38   :  { %8818 = vmatpush.bf16.msra.mxu2 %v12538_v8 }
 0xa3a   :  { %8830 = vmatpush.bf16.msrb.mxu0 %v12682_v38  ;;  %8856 = vmatpush.bf16.msrb.mxu3 %v12686_v24 }
 0xa3b   :  { %8844 = vmatpush.bf16.msra.mxu1 %v12542_v14 }
 0xa3c   :  { %8819 = vmatpush.bf16.msra.mxu2 %v12522_v57 }
 0xa3e   :  { %8831 = vmatpush.bf16.msrb.mxu0 %v12666_v35  ;;  %8857 = vmatpush.bf16.msrb.mxu3 %v12670_v17  ;;  %v8879_v17 = vld [vmem:[%s19027_s2 + $0xc] sm:$0xf] }
 0xa3f   :  { %v8886_v46 = vperm.slane %v8879_v17, 0  ;;  %v8887_v23 = vperm.slane %v8879_v17, 1  ;;  %v8888_v13 = vperm.slane %v8879_v17, 2  ;;  %v8889_v33 = vperm.slane %v8879_v17, 3 }
 0xa42   :  { %8832 = vmatpush.bf16.msrb.mxu0 %v12650_v12  ;;  %8858 = vmatpush.bf16.msrb.mxu3 %v12654_v53 }
 0xa46   :  { %8833 = vmatpush.bf16.msrb.mxu0 %v12634_v48  ;;  %8859 = vmatpush.bf16.msrb.mxu3 %v12638_v9 }
 0xa65   :  { %v18780_v34 = vpop.f32.mrf.mxu1 }
 0xa66   :  { %v8343_v45 = vadd.f32 %v18780_v34, %v8144_v36  ;;  %v8367_v34 = vld [vmem:[%s19027_s2 + $0x8] sm:$0xf] }
 0xa67   :  { %v8434_v40 = vperm.slane %v8367_v34, 1  ;;  %v8433_v22 = vperm.slane %v8367_v34, 0  ;;  %v8435_v41 = vperm.slane %v8367_v34, 2 }
 0xa6b   :  { %v18827_v49 = vpop.f32.mrf.mxu2 }
 0xa6c   :  { %v8317_v60 = vadd.f32 %v18827_v49, %v8143_v5 }
 0xa6d   :  { %v8344_v39 = vpop.f32.mrf.mxu1 }
 0xa6e   :  { %v12523_v39 = vld [vmem:[%s19036_s10 + $0x38] sm:$0xf0] }
 0xa6f   :  { %v12526_v31 = vor.u32 %v13646_v27, %v12523_v39 }
 0xa71   :  { %8845 = vmatpush.bf16.msra.mxu1 %v12526_v31  ;;  %v8436_v31 = vperm.slane %v8367_v34, 3 }
 0xa73   :  { %v8318_v44 = vpop.f32.mrf.mxu2 }
 0xa74   :  { %v13644_v44 = vld [vmem:[%s19036_s10 + $0x14] sm:$0xf0] }
 0xa75   :  { %v12506_v0 = vor.u32 %v13644_v44, %v12505_v10  ;;  %8846 = vmatpush.bf16.msra.mxu1 %v12510_v16 }
 0xa77   :  { %8820 = vmatpush.bf16.msra.mxu2 %v12506_v0 }
 0xa96   :  { %v8329_v52 = vpop.f32.mrf.mxu0 }
 0xa97   :  { %v8330_v32 = vadd.f32 %v8329_v52, %v8317_v60 }
 0xa99   :  { %vm8359_vm13 = vcmp.gt.f32.partialorder %v8330_v32, 0.0  ;;  %v8361_v56 = vmul.f32 0.2, %v8330_v32 }
 0xa9b   :  { %v8363_v1 = vsel %vm8359_vm13, %v8330_v32, %v8361_v56 }
 0xa9c   :  { %v8365_v55 = vpack.c.bf16 %v8363_v1, %v8363_v1  ;;  %v8355_v37 = vpop.f32.mrf.mxu3 }
 0xa9d   :  { %v8356_v26 = vadd.f32 %v8355_v37, %v8343_v45 }
 0xa9e   :  { %v8331_v43 = vpop.f32.mrf.mxu0  ;;  %8769 = vmatmul.bf16.vlgmr.msrb.gmra.mxu2 %v8365_v55  ;;  %8795 = vmatmul.bf16.vlgmr.msrb.gmra.mxu1 %v8365_v55 }
 0xa9f   :  { %vm8360_vm14 = vcmp.gt.f32.partialorder %v8356_v26, 0.0  ;;  %v8362_v42 = vmul.f32 0.2, %v8356_v26  ;;  %v13779_v43 = vld [vmem:[%s19027_s2 + $0x10] ss:$0 sm:$0xff] }
 0xaa1   :  { %v8364_v54 = vsel %vm8360_vm14, %v8356_v26, %v8362_v42 }
 0xaa2   :  { %v8366_v18 = vpack.c.bf16 %v8364_v54, %v8364_v54 }
 0xaa4   :  { %v8357_v50 = vpop.f32.mrf.mxu3  ;;  %8782 = vmatmul.bf16.vlgmr.msra.gmra.mxu0 %v8366_v18  ;;  %8808 = vmatmul.bf16.vlgmr.msra.gmra.mxu3 %v8366_v18 }
 0xaae   :  { %8821 = vmatmul.bf16.vlgmr.msra.gmra.mxu2 %v8365_v55  ;;  %8847 = vmatmul.bf16.vlgmr.msra.gmra.mxu1 %v8365_v55 }
 0xab4   :  { %8834 = vmatmul.bf16.vlgmr.msrb.gmra.mxu0 %v8366_v18  ;;  %8860 = vmatmul.bf16.vlgmr.msrb.gmra.mxu3 %v8366_v18 }
 0xb1b   :  { %v8796_v49 = vpop.f32.mrf.mxu1 }
 0xb1c   :  { %v8797_v21 = vadd.f32 %v8796_v49, %v8434_v40 }
 0xb21   :  { %v8770_v61 = vpop.f32.mrf.mxu2  ;;  %v8783_v3 = vpop.f32.mrf.mxu0 }
 0xb22   :  { %v8771_v8 = vadd.f32 %v8770_v61, %v8433_v22 }
 0xb23   :  { %v8798_v62 = vpop.f32.mrf.mxu1 }
 0xb24   :  { %v8784_v19 = vadd.f32 %v8783_v3, %v8771_v8 }
 0xb26   :  { %v8869_v29 = vmul.f32 0.2, %v8784_v19  ;;  %vm8865_vm0 = vcmp.gt.f32.partialorder %v8784_v19, 0.0 }
 0xb27   :  { %v8809_v11 = vpop.f32.mrf.mxu3 }
 0xb28   :  { %v8810_v14 = vadd.f32 %v8809_v11, %v8797_v21  ;;  %v8873_v4 = vsel %vm8865_vm0, %v8784_v19, %v8869_v29 }
 0xb29   :  { %v8772_v28 = vpop.f32.mrf.mxu2  ;;  %v8785_v15 = vpop.f32.mrf.mxu0 }
 0xb2a   :  { %v8870_v25 = vmul.f32 0.2, %v8810_v14  ;;  %vm8866_vm15 = vcmp.gt.f32.partialorder %v8810_v14, 0.0 }
 0xb2b   :  { %v8848_v38 = vpop.f32.mrf.mxu1 }
 0xb2c   :  { %v8874_v57 = vsel %vm8866_vm15, %v8810_v14, %v8870_v25  ;;  %v8849_v10 = vadd.f32 %v8848_v38, %v8436_v31 }
 0xb2d   :  { %v8877_v51 = vpack.c.bf16 %v8874_v57, %v8873_v4 }
 0xb2f   :  { %v8811_v24 = vpop.f32.mrf.mxu3  ;;  %v8881_v44 = vunpack.c.l.bf16 %v8877_v51  ;;  %v8882_v59 = vunpack.c.h.bf16 %v8877_v51 }
 0xb31   :  { %v8822_v27 = vpop.f32.mrf.mxu2  ;;  %v8835_v39 = vpop.f32.mrf.mxu0  ;;  %v8894_v53 = vmul.f32 %v8886_v46, %v8881_v44  ;;  %v8895_v7 = vmul.f32 %v8887_v23, %v8882_v59 }
 0xb32   :  { %v8823_v63 = vadd.f32 %v8822_v27, %v8435_v41 }
 0xb33   :  { %v8850_v2 = vpop.f32.mrf.mxu1  ;;  %v8899_v52 = vsel %vm8898_vm3, %v8894_v53, 0.0  ;;  %v8900_v36 = vsel %vm8898_vm3, %v8895_v7, 0.0 }
 0xb34   :  { %v8836_v35 = vadd.f32 %v8835_v39, %v8823_v63  ;;  %v8901_v45 = vadd.f32 %v8900_v36, %v8899_v52 }
 0xb36   :  { %v8871_v47 = vmul.f32 0.2, %v8836_v35  ;;  %vm8867_vm1 = vcmp.gt.f32.partialorder %v8836_v35, 0.0 }
 0xb37   :  { %v8861_v0 = vpop.f32.mrf.mxu3 }
 0xb38   :  { %v8862_v16 = vadd.f32 %v8861_v0, %v8849_v10  ;;  %v8875_v20 = vsel %vm8867_vm1, %v8836_v35, %v8871_v47 }
 0xb39   :  { %v8824_v58 = vpop.f32.mrf.mxu2  ;;  %v8837_v30 = vpop.f32.mrf.mxu0 }
 0xb3a   :  { %vm8868_vm2 = vcmp.gt.f32.partialorder %v8862_v16, 0.0  ;;  %v8872_v12 = vmul.f32 0.2, %v8862_v16 }
 0xb3c   :  { %v8876_v6 = vsel %vm8868_vm2, %v8862_v16, %v8872_v12 }
 0xb3d   :  { %v8878_v48 = vpack.c.bf16 %v8876_v6, %v8875_v20 }
 0xb3f   :  { %v8863_v9 = vpop.f32.mrf.mxu3  ;;  %v8883_v5 = vunpack.c.l.bf16 %v8878_v48  ;;  %v8884_v60 = vunpack.c.h.bf16 %v8878_v48 }
 0xb41   :  { %v8896_v32 = vmul.f32 %v8888_v13, %v8883_v5  ;;  %v8897_v56 = vmul.f32 %v8889_v33, %v8884_v60 }
 0xb43   :  { %v8902_v1 = vsel %vm8898_vm3, %v8896_v32, 0.0  ;;  %v8904_v37 = vsel %vm8898_vm3, %v8897_v56, 0.0 }
 0xb44   :  { %v8903_v55 = vadd.f32 %v8902_v1, %v8901_v45 }
 0xb46   :  { %v8905_v26 = vadd.f32 %v8904_v37, %v8903_v55 }
 0xb48   :  { %8906 = vadd.xlane.f32.xlu0 %v8905_v26 }
 0xbbb   :  { %v8907_v42 = vpop.xlane.xlu0 %8906 }
 0xbbc   :  { %v8911_v54 = vadd.f32 %v13779_v43, %v8907_v42 }
 0xbbe   :  { %8913 = vst.msk [vmem:[%s19037_s11] sm:$0x3] %vm8912_vm4, %v8911_v54 }

</bundles_post_ra>
